<compile_context>
chip_gen: v5e
topology: v5e:2x2
jax: 0.10.0
libtpu: 0.0.40
codegen_flags: <defaults>
</compile_context>

<pallas_src>
import functools

import numpy as np
import jax
import jax.numpy as jnp
from jax.experimental import pallas as pl
from jax.experimental.pallas import tpu as pltpu

EPS = 1e-5      # InstanceNorm2d default eps
DEPTH = 4       # DenseBlockV2 depth
PADT = 8        # max causal (top) padding = dilation of the last dense stage
NOUT = 8        # packed final-conv lanes: [r_even, i_even, r_odd, i_odd, 0, 0, 0, 0]


# --------------------------------------------------------------------------
# Fused Pallas kernel: DenseBlockV2 + SubPixel phase_conv + packed r/i convs
# --------------------------------------------------------------------------
def _phase_decoder_kernel(x_ref, w0_ref, w1_ref, w2_ref, w3_ref,
                          wp_ref, bp_ref, wri_ref, bri_ref,
                          g_ref, be_ref, al_ref,
                          o_ref, xs_ref, *, T, F, C):
    wds = (w0_ref, w1_ref, w2_ref, w3_ref)
    CT = (DEPTH + 1) * C

    def in_prelu(y, idx):
        # y: (T*F, C).  InstanceNorm2d (biased var) + affine + PReLU per channel.
        mean = jnp.mean(y, axis=0, keepdims=True)
        cen = y - mean
        var = jnp.mean(cen * cen, axis=0, keepdims=True)
        yn = cen * jax.lax.rsqrt(var + EPS)
        yn = yn * g_ref[idx:idx + 1, :] + be_ref[idx:idx + 1, :]
        return jnp.where(yn > 0, yn, al_ref[idx:idx + 1, :] * yn)

    # Zero ONLY the ConstantPad2d regions (top PADT rows, width cols 0 and F+1)
    # for every channel slab.  The interior is fully rewritten each grid step.
    xs_ref[pl.ds(0, PADT), :, :] = jnp.zeros((PADT, F + 2, CT), jnp.float32)
    zcol = jnp.zeros((T, 1, CT), jnp.float32)
    xs_ref[pl.ds(PADT, T), pl.ds(0, 1), :] = zcol
    xs_ref[pl.ds(PADT, T), pl.ds(F + 1, 1), :] = zcol

    # Drop x0 into channel slab 0 of the channels-last skip scratch.
    xs_ref[pl.ds(PADT, T), pl.ds(1, F), 0:C] = x_ref[0]

    # ---------------- DenseBlockV2, depth 4 (fully unrolled, static indices) ----
    # Stage i: Conv2d(C*(i+1), C, (2,3), dilation=(dil,1)) over skip = [x_i..x_0],
    # computed as ONE matmul with K = 6*(i+1)*C (dh, dw taps folded along lanes).
    for i in range(DEPTH):
        dil = 2 ** i
        kc = (i + 1) * C
        taps = []
        for dh in range(2):
            r0 = PADT + (dh - 1) * dil
            for dw in range(3):
                taps.append(
                    xs_ref[pl.ds(r0, T), pl.ds(dw, F), 0:kc].reshape(T * F, kc))
        patch = jnp.concatenate(taps, axis=-1)                 # (T*F, 6*kc)
        acc = jnp.dot(patch, wds[i][...], preferred_element_type=jnp.float32)
        # Conv bias intentionally omitted: a per-channel constant is exactly
        # cancelled by the InstanceNorm mean subtraction that follows.
        y = in_prelu(acc, i)
        xs_ref[pl.ds(PADT, T), pl.ds(1, F), kc:kc + C] = y.reshape(T, F, C)

    # ---------------- phase_conv: SubPixelConvTranspose2d + IN + PReLU ----------
    # conv1: Conv2d(C, 2C, (1,3), pad=(0,1)).  Output channels were regrouped in
    # the wrapper into the two width phases w in {0,1}; phase w lands at upsampled
    # width position 2f + w, so no in-kernel channel interleave is needed.
    c4 = DEPTH * C
    tapc = jnp.concatenate(
        [xs_ref[pl.ds(PADT, T), pl.ds(dw, F), c4:c4 + C].reshape(T * F, C)
         for dw in range(3)], axis=-1)                         # (T*F, 3C)
    y0 = jnp.dot(tapc, wp_ref[0], preferred_element_type=jnp.float32) + bp_ref[0:1, :]
    y1 = jnp.dot(tapc, wp_ref[1], preferred_element_type=jnp.float32) + bp_ref[1:2, :]
    # (SubPixel conv bias kept: NOT uniform per IN channel after the width shuffle.)

    # InstanceNorm over the full upsampled (T, 2F) extent, computed on the halves
    # (both halves have T*F elements, so 0.5*(stat0 + stat1) is exact).
    mean = 0.5 * (jnp.mean(y0, axis=0, keepdims=True)
                  + jnp.mean(y1, axis=0, keepdims=True))
    d0, d1 = y0 - mean, y1 - mean
    var = 0.5 * (jnp.mean(d0 * d0, axis=0, keepdims=True)
                 + jnp.mean(d1 * d1, axis=0, keepdims=True))
    inv = jax.lax.rsqrt(var + EPS)
    gam = g_ref[DEPTH:DEPTH + 1, :]
    bet = be_ref[DEPTH:DEPTH + 1, :]
    alp = al_ref[DEPTH:DEPTH + 1, :]

    def act(d):
        yn = d * inv * gam + bet
        return jnp.where(yn > 0, yn, alp * yn)

    xp0 = act(d0).reshape(T, F, C)      # upsampled width positions 2f
    xp1 = act(d1).reshape(T, F, C)      # upsampled width positions 2f + 1

    # -------- phase_conv_r / phase_conv_i: Conv2d(C, 1, (1,2)), fused + packed ---
    # Upsampled column 2f   pairs (xp0[:, f], xp1[:, f])      f = 0..F-1
    # Upsampled column 2f+1 pairs (xp1[:, f], xp0[:, f+1])    f = 0..F-2
    # (the last "odd" column uses a zero right tap and is discarded in the wrapper)
    xp0n = jnp.concatenate([xp0[:, 1:, :], jnp.zeros((T, 1, C), jnp.float32)], axis=1)
    cat_e = jnp.concatenate([xp0, xp1], axis=-1).reshape(T * F, 2 * C)
    cat_o = jnp.concatenate([xp1, xp0n], axis=-1).reshape(T * F, 2 * C)
    packed = (jnp.dot(cat_e, wri_ref[0], preferred_element_type=jnp.float32)
              + jnp.dot(cat_o, wri_ref[1], preferred_element_type=jnp.float32)
              + bri_ref[...])
    o_ref[0] = packed.reshape(T, F, NOUT)


def _const_spec(shape):
    return pl.BlockSpec(shape, lambda b: (0,) * len(shape))


def phase_decoder_forward(x_nchw, p, *, return_ri=False):
    """x_nchw: (B, C, T, F) float32 (PhaseDecoder input).  Returns (B, 1, T, 2F-1)."""
    x = jnp.transpose(x_nchw, (0, 2, 3, 1)).astype(jnp.float32)   # NCHW -> NHWC
    B, T, F, C = x.shape
    CT = (DEPTH + 1) * C

    # Dense-block conv weights: PyTorch skip concat order is [x_i .. x_0]; the
    # scratch stores slabs in natural order [x_0 .. x_i], so reverse the input-
    # channel slabs once here and flatten to (2*3*(i+1)*C, C) matching the
    # kernel's dh-major / dw / channel patch layout.  Biases dropped (see kernel).
    wds = []
    for i in range(DEPTH):
        w = p[f'db{i}_w'].astype(jnp.float32)                     # (2,3,(i+1)*C,C)
        w = w.reshape(2, 3, i + 1, C, C)[:, :, ::-1]
        wds.append(w.reshape(2 * 3 * (i + 1) * C, C))

    # SubPixel conv1 weight/bias: regroup output channels from PyTorch order
    # co*2 + w into two width-phase blocks, flatten kw into K.
    wp = p['pc_w'][0].reshape(3, C, C, 2)                          # (kw, cin, co, w)
    wp = jnp.transpose(wp, (3, 0, 1, 2)).reshape(2, 3 * C, C).astype(jnp.float32)
    bp = p['pc_b'].reshape(C, 2).T.astype(jnp.float32)             # (2, C)

    # Final r/i convs fused & packed: lanes [r_even, i_even, r_odd, i_odd, 0...].
    w_core = jnp.concatenate(
        [jnp.concatenate([p['pr_w'][0, kw], p['pi_w'][0, kw]], axis=-1)
         for kw in range(2)], axis=0).astype(jnp.float32)          # (2C, 2)
    wri = jnp.stack([jnp.pad(w_core, ((0, 0), (0, NOUT - 2))),     # even -> lanes 0,1
                     jnp.pad(w_core, ((0, 0), (2, NOUT - 4)))],    # odd  -> lanes 2,3
                    axis=0)                                        # (2, 2C, NOUT)
    bri = jnp.pad(jnp.concatenate([p['pr_b'], p['pi_b'], p['pr_b'], p['pi_b']]
                                  ).reshape(1, 4),
                  ((0, 0), (0, NOUT - 4))).astype(jnp.float32)     # (1, NOUT)

    gam = jnp.stack([p[f'db{i}_g'] for i in range(DEPTH)] + [p['pc_g']]).astype(jnp.float32)
    bet = jnp.stack([p[f'db{i}_be'] for i in range(DEPTH)] + [p['pc_be']]).astype(jnp.float32)
    alp = jnp.stack([p[f'db{i}_a'] for i in range(DEPTH)] + [p['pc_a']]).astype(jnp.float32)

    kernel = functools.partial(_phase_decoder_kernel, T=T, F=F, C=C)

    # VMEM footprint per grid step: scratch (T+8)*(F+2)*5C*4 B (~90 KiB here) plus
    # KiB-scale double-buffered input/output blocks -> fits the default scoped
    # VMEM limit on v5e / v6e / v7x; no vmem_limit override needed.
    packed = pl.pallas_call(
        kernel,
        out_shape=jax.ShapeDtypeStruct((B, T, F, NOUT), jnp.float32),
        grid=(B,),
        in_specs=[
            pl.BlockSpec((1, T, F, C), lambda b: (b, 0, 0, 0)),
            _const_spec((2 * 3 * 1 * C, C)),
            _const_spec((2 * 3 * 2 * C, C)),
            _const_spec((2 * 3 * 3 * C, C)),
            _const_spec((2 * 3 * 4 * C, C)),
            _const_spec((2, 3 * C, C)),
            _const_spec((2, C)),
            _const_spec((2, 2 * C, NOUT)),
            _const_spec((1, NOUT)),
            _const_spec((DEPTH + 1, C)),
            _const_spec((DEPTH + 1, C)),
            _const_spec((DEPTH + 1, C)),
        ],
        out_specs=pl.BlockSpec((1, T, F, NOUT), lambda b: (b, 0, 0, 0)),
        scratch_shapes=[pltpu.VMEM((T + PADT, F + 2, CT), jnp.float32)],
        compiler_params=pltpu.CompilerParams(
            dimension_semantics=("parallel",)),
    )(x, *wds, wp, bp, wri, bri, gam, bet, alp)

    # Interleave even/odd upsampled columns and drop the invalid last odd column.
    re = packed[..., 0:2]                                          # cols 2f
    ro = packed[..., 2:4]                                          # cols 2f+1
    ri = jnp.stack([re, ro], axis=3).reshape(B, T, 2 * F, 2)[:, :, :2 * F - 1, :]

    # TODO(synk): torch.atan2 is evaluated here in the wrapper on the small packed
    # (r, i) kernel output (atan2 lowering inside Mosaic is not guaranteed).
    phase = jnp.arctan2(ri[..., 1], ri[..., 0])[:, None, :, :]     # (B, 1, T, 2F-1)
    return (phase, ri) if return_ri else phase


# --------------------------------------------------------------------------
# Pure-JAX reference (lax.conv) to validate the fused Pallas kernel.
# --------------------------------------------------------------------------
def _in_prelu_ref(y, g, be, a):
    mean = jnp.mean(y, axis=(1, 2), keepdims=True)
    var = jnp.mean(jnp.square(y - mean), axis=(1, 2), keepdims=True)
    yn = (y - mean) / jnp.sqrt(var + EPS)
    yn = yn * g.reshape(1, 1, 1, -1) + be.reshape(1, 1, 1, -1)
    return jnp.where(yn > 0, yn, a.reshape(1, 1, 1, -1) * yn)


def phase_decoder_ref(x_nchw, p, *, return_ri=False):
    x = jnp.transpose(x_nchw, (0, 2, 3, 1)).astype(jnp.float32)
    B, T, F, C = x.shape

    skip = x
    y = x
    for i in range(DEPTH):
        dil = 2 ** i
        y = jax.lax.conv_general_dilated(
            skip, p[f'db{i}_w'], window_strides=(1, 1),
            padding=((dil, 0), (1, 1)), rhs_dilation=(dil, 1),
            dimension_numbers=('NHWC', 'HWIO', 'NHWC'))
        y = y + p[f'db{i}_b'].reshape(1, 1, 1, -1)
        y = _in_prelu_ref(y, p[f'db{i}_g'], p[f'db{i}_be'], p[f'db{i}_a'])
        skip = jnp.concatenate([y, skip], axis=-1)

    # SubPixelConvTranspose2d + IN + PReLU
    u = jax.lax.conv_general_dilated(
        y, p['pc_w'], window_strides=(1, 1), padding=((0, 0), (1, 1)),
        dimension_numbers=('NHWC', 'HWIO', 'NHWC')) + p['pc_b'].reshape(1, 1, 1, -1)
    u = u.reshape(B, T, F, C, 2)                        # channel co*2 + w -> (co, w)
    u = jnp.transpose(u, (0, 1, 2, 4, 3)).reshape(B, T, 2 * F, C)
    u = _in_prelu_ref(u, p['pc_g'], p['pc_be'], p['pc_a'])

    r = jax.lax.conv_general_dilated(
        u, p['pr_w'], (1, 1), 'VALID',
        dimension_numbers=('NHWC', 'HWIO', 'NHWC')) + p['pr_b'].reshape(1, 1, 1, -1)
    im = jax.lax.conv_general_dilated(
        u, p['pi_w'], (1, 1), 'VALID',
        dimension_numbers=('NHWC', 'HWIO', 'NHWC')) + p['pi_b'].reshape(1, 1, 1, -1)
    ri = jnp.concatenate([r, im], axis=-1)              # (B, T, 2F-1, 2)
    phase = jnp.transpose(jnp.arctan2(im, r), (0, 3, 1, 2))   # (B, 1, T, 2F-1)
    return (phase, ri) if return_ri else phase


# --------------------------------------------------------------------------
# Deterministic synthetic parameters (shapes follow the nn.Module __init__).
# --------------------------------------------------------------------------
def init_params(key, C):
    keys = iter(jax.random.split(key, 64))
    nrm = lambda shape: 0.1 * jax.random.normal(next(keys), shape, dtype=jnp.float32)
    p = {}
    for i in range(DEPTH):
        cin = C * (i + 1)
        p[f'db{i}_w'] = nrm((2, 3, cin, C))               # HWIO
        p[f'db{i}_b'] = nrm((C,))                         # conv bias (ref only)
        p[f'db{i}_g'] = 1.0 + nrm((C,))                   # IN gamma
        p[f'db{i}_be'] = nrm((C,))                        # IN beta
        p[f'db{i}_a'] = 0.25 * jnp.ones((C,), jnp.float32)   # PReLU init
    # SubPixelConvTranspose2d conv1: Conv2d(C, 2C, (1,3), padding=(0,1))
    p['pc_w'] = nrm((1, 3, C, 2 * C))
    p['pc_b'] = nrm((2 * C,))
    p['pc_g'] = 1.0 + nrm((C,))
    p['pc_be'] = nrm((C,))
    p['pc_a'] = 0.25 * jnp.ones((C,), jnp.float32)
    # phase_conv_r / phase_conv_i: Conv2d(C, 1, (1,2))
    p['pr_w'] = nrm((1, 2, C, 1))
    p['pi_w'] = nrm((1, 2, C, 1))
    p['pr_b'] = nrm((1,))
    p['pi_b'] = nrm((1,))
    return p


if __name__ == "__main__":
    B, C, T, F = 2, 16, 8, 16            # (batch, dense_channel, time, freq)

    key = jax.random.PRNGKey(0)
    k_x, k_p = jax.random.split(key)
    x = jax.random.normal(k_x, (B, C, T, F), dtype=jnp.float32)   # NCHW PhaseDecoder input
    params = init_params(k_p, C)

    phase, ri = phase_decoder_forward(x, params, return_ri=True)
    phase = jax.block_until_ready(phase)
    ri = jax.block_until_ready(ri)

    phase_ref, ri_ref = phase_decoder_ref(x, params, return_ri=True)

    assert phase.shape == (B, 1, T, 2 * F - 1), phase.shape
    # Validate the full kernel math on the pre-atan2 (r, i) conv outputs; atan2 is
    # identical wrapper-side math for both paths (avoids branch-cut sensitivity).
    np.testing.assert_allclose(np.asarray(ri), np.asarray(ri_ref), atol=5e-4, rtol=5e-4)
    print("KERNEL_OK")
</pallas_src>

<mosaic_0001>
module attributes {stable_mosaic.version = 11 : i64} {
  func.func @_phase_decoder_kernel(%arg0: i32, %arg1: memref<1x8x16x16xf32, #tpu.memory_space<vmem>>, %arg2: memref<96x16xf32, #tpu.memory_space<vmem>>, %arg3: memref<192x16xf32, #tpu.memory_space<vmem>>, %arg4: memref<288x16xf32, #tpu.memory_space<vmem>>, %arg5: memref<384x16xf32, #tpu.memory_space<vmem>>, %arg6: memref<2x48x16xf32, #tpu.memory_space<vmem>>, %arg7: memref<2x16xf32, #tpu.memory_space<vmem>>, %arg8: memref<2x32x8xf32, #tpu.memory_space<vmem>>, %arg9: memref<1x8xf32, #tpu.memory_space<vmem>>, %arg10: memref<5x16xf32, #tpu.memory_space<vmem>>, %arg11: memref<5x16xf32, #tpu.memory_space<vmem>>, %arg12: memref<5x16xf32, #tpu.memory_space<vmem>>, %arg13: memref<1x8x16x8xf32, #tpu.memory_space<vmem>>, %arg14: memref<16x18x80xf32, #tpu.memory_space<vmem>>) attributes {dimension_semantics = [#tpu.dimension_semantics<parallel>], iteration_bounds = array<i64: 2>, scalar_prefetch = 0 : i64, scratch_operands = 1 : i64, tpu.core_type = #tpu.core_type<tc>, window_params = [{transform_indices = @transform_0, window_bounds = array<i64: 1, 8, 16, 16>}, {pipeline_mode = #tpu.pipeline_mode<synchronous>, transform_indices = @transform_1, window_bounds = array<i64: 96, 16>}, {pipeline_mode = #tpu.pipeline_mode<synchronous>, transform_indices = @transform_2, window_bounds = array<i64: 192, 16>}, {pipeline_mode = #tpu.pipeline_mode<synchronous>, transform_indices = @transform_3, window_bounds = array<i64: 288, 16>}, {pipeline_mode = #tpu.pipeline_mode<synchronous>, transform_indices = @transform_4, window_bounds = array<i64: 384, 16>}, {pipeline_mode = #tpu.pipeline_mode<synchronous>, transform_indices = @transform_5, window_bounds = array<i64: 2, 48, 16>}, {pipeline_mode = #tpu.pipeline_mode<synchronous>, transform_indices = @transform_6, window_bounds = array<i64: 2, 16>}, {pipeline_mode = #tpu.pipeline_mode<synchronous>, transform_indices = @transform_7, window_bounds = array<i64: 2, 32, 8>}, {pipeline_mode = #tpu.pipeline_mode<synchronous>, transform_indices = @transform_8, window_bounds = array<i64: 1, 8>}, {pipeline_mode = #tpu.pipeline_mode<synchronous>, transform_indices = @transform_9, window_bounds = array<i64: 5, 16>}, {pipeline_mode = #tpu.pipeline_mode<synchronous>, transform_indices = @transform_10, window_bounds = array<i64: 5, 16>}, {pipeline_mode = #tpu.pipeline_mode<synchronous>, transform_indices = @transform_11, window_bounds = array<i64: 5, 16>}, {transform_indices = @transform_12, window_bounds = array<i64: 1, 8, 16, 8>}]} {
    %cst = arith.constant 0.000000e+00 : f32
    %0 = vector.broadcast %cst : f32 to vector<8x18x80xf32>
    %c0 = arith.constant 0 : index
    %c0_0 = arith.constant 0 : index
    %c0_1 = arith.constant 0 : index
    %1 = vector.load %arg14[%c0, %c0_0, %c0_1] : memref<16x18x80xf32, #tpu.memory_space<vmem>>, vector<8x18x80xf32>
    tpu.vector_store %arg14[%c0, %c0_0, %c0_1], %0 {strides = array<i32>} : memref<16x18x80xf32, #tpu.memory_space<vmem>>, vector<8x18x80xf32>,
    %cst_2 = arith.constant 0.000000e+00 : f32
    %2 = vector.broadcast %cst_2 : f32 to vector<8x1x80xf32>
    %c8 = arith.constant 8 : index
    %c0_3 = arith.constant 0 : index
    %c0_4 = arith.constant 0 : index
    %3 = vector.load %arg14[%c8, %c0_3, %c0_4] : memref<16x18x80xf32, #tpu.memory_space<vmem>>, vector<8x1x80xf32>
    tpu.vector_store %arg14[%c8, %c0_3, %c0_4], %2 {strides = array<i32>} : memref<16x18x80xf32, #tpu.memory_space<vmem>>, vector<8x1x80xf32>,
    %c8_5 = arith.constant 8 : index
    %c17 = arith.constant 17 : index
    %c0_6 = arith.constant 0 : index
    %4 = vector.load %arg14[%c8_5, %c17, %c0_6] : memref<16x18x80xf32, #tpu.memory_space<vmem>>, vector<8x1x80xf32>
    tpu.vector_store %arg14[%c8_5, %c17, %c0_6], %2 {strides = array<i32>} : memref<16x18x80xf32, #tpu.memory_space<vmem>>, vector<8x1x80xf32>,
    %c0_7 = arith.constant 0 : index
    %c0_8 = arith.constant 0 : index
    %c0_9 = arith.constant 0 : index
    %c0_10 = arith.constant 0 : index
    %5 = vector.load %arg1[%c0_7, %c0_8, %c0_9, %c0_10] : memref<1x8x16x16xf32, #tpu.memory_space<vmem>>, vector<1x8x16x16xf32>
    %6 = vector.shape_cast %5 : vector<1x8x16x16xf32> to vector<8x16x16xf32>
    %c8_11 = arith.constant 8 : index
    %c1 = arith.constant 1 : index
    %c0_12 = arith.constant 0 : index
    %7 = vector.load %arg14[%c8_11, %c1, %c0_12] : memref<16x18x80xf32, #tpu.memory_space<vmem>>, vector<8x16x16xf32>
    tpu.vector_store %arg14[%c8_11, %c1, %c0_12], %6 {strides = array<i32>} : memref<16x18x80xf32, #tpu.memory_space<vmem>>, vector<8x16x16xf32>,
    %c7 = arith.constant 7 : index
    %c0_13 = arith.constant 0 : index
    %c0_14 = arith.constant 0 : index
    %8 = vector.load %arg14[%c7, %c0_13, %c0_14] : memref<16x18x80xf32, #tpu.memory_space<vmem>>, vector<8x16x16xf32>
    %9 = vector.shape_cast %8 : vector<8x16x16xf32> to vector<128x16xf32>
    %c7_15 = arith.constant 7 : index
    %c1_16 = arith.constant 1 : index
    %c0_17 = arith.constant 0 : index
    %10 = vector.load %arg14[%c7_15, %c1_16, %c0_17] : memref<16x18x80xf32, #tpu.memory_space<vmem>>, vector<8x16x16xf32>
    %11 = vector.shape_cast %10 : vector<8x16x16xf32> to vector<128x16xf32>
    %c7_18 = arith.constant 7 : index
    %c2 = arith.constant 2 : index
    %c0_19 = arith.constant 0 : index
    %12 = vector.load %arg14[%c7_18, %c2, %c0_19] : memref<16x18x80xf32, #tpu.memory_space<vmem>>, vector<8x16x16xf32>
    %13 = vector.shape_cast %12 : vector<8x16x16xf32> to vector<128x16xf32>
    %c8_20 = arith.constant 8 : index
    %c0_21 = arith.constant 0 : index
    %c0_22 = arith.constant 0 : index
    %14 = vector.load %arg14[%c8_20, %c0_21, %c0_22] : memref<16x18x80xf32, #tpu.memory_space<vmem>>, vector<8x16x16xf32>
    %15 = vector.shape_cast %14 : vector<8x16x16xf32> to vector<128x16xf32>
    %c8_23 = arith.constant 8 : index
    %c1_24 = arith.constant 1 : index
    %c0_25 = arith.constant 0 : index
    %16 = vector.load %arg14[%c8_23, %c1_24, %c0_25] : memref<16x18x80xf32, #tpu.memory_space<vmem>>, vector<8x16x16xf32>
    %17 = vector.shape_cast %16 : vector<8x16x16xf32> to vector<128x16xf32>
    %c8_26 = arith.constant 8 : index
    %c2_27 = arith.constant 2 : index
    %c0_28 = arith.constant 0 : index
    %18 = vector.load %arg14[%c8_26, %c2_27, %c0_28] : memref<16x18x80xf32, #tpu.memory_space<vmem>>, vector<8x16x16xf32>
    %19 = vector.shape_cast %18 : vector<8x16x16xf32> to vector<128x16xf32>
    %20 = tpu.concatenate %9, %11, %13, %15, %17, %19 in 1 : vector<128x16xf32>, vector<128x16xf32>, vector<128x16xf32>, vector<128x16xf32>, vector<128x16xf32>, vector<128x16xf32> -> vector<128x96xf32>
    %c0_29 = arith.constant 0 : index
    %c0_30 = arith.constant 0 : index
    %21 = vector.load %arg2[%c0_29, %c0_30] : memref<96x16xf32, #tpu.memory_space<vmem>>, vector<96x16xf32>
    %cst_31 = arith.constant dense<0.000000e+00> : vector<128x16xf32>
    %22 = tpu.matmul %20, %21, %cst_31 {dimension_numbers = #tpu.dot_dimension_numbers<[1], [0], [0], [1], [0, 0, 1, 1], [], []>} : vector<128x96xf32>, vector<96x16xf32>, vector<128x16xf32> -> vector<128x16xf32>
    %cst_32 = arith.constant dense<0.000000e+00> : vector<16xf32>
    %23 = vector.multi_reduction <add>, %22, %cst_32 [0] : vector<128x16xf32> to vector<16xf32>
    %24 = vector.shape_cast %23 : vector<16xf32> to vector<1x16xf32>
    %cst_33 = arith.constant 1.280000e+02 : f32
    %25 = vector.broadcast %cst_33 : f32 to vector<1x16xf32>
    %26 = arith.divf %24, %25 : vector<1x16xf32>
    %27 = vector.broadcast %26 : vector<1x16xf32> to vector<128x16xf32>
    %28 = arith.subf %22, %27 : vector<128x16xf32>
    %29 = arith.mulf %28, %28 : vector<128x16xf32>
    %cst_34 = arith.constant dense<0.000000e+00> : vector<16xf32>
    %30 = vector.multi_reduction <add>, %29, %cst_34 [0] : vector<128x16xf32> to vector<16xf32>
    %31 = vector.shape_cast %30 : vector<16xf32> to vector<1x16xf32>
    %cst_35 = arith.constant 1.280000e+02 : f32
    %32 = vector.broadcast %cst_35 : f32 to vector<1x16xf32>
    %33 = arith.divf %31, %32 : vector<1x16xf32>
    %cst_36 = arith.constant 9.99999974E-6 : f32
    %34 = vector.broadcast %cst_36 : f32 to vector<1x16xf32>
    %35 = arith.addf %33, %34 : vector<1x16xf32>
    %36 = math.rsqrt %35 : vector<1x16xf32>
    %37 = vector.broadcast %36 : vector<1x16xf32> to vector<128x16xf32>
    %38 = arith.mulf %28, %37 : vector<128x16xf32>
    %c0_37 = arith.constant 0 : index
    %c0_38 = arith.constant 0 : index
    %39 = vector.load %arg10[%c0_37, %c0_38] : memref<5x16xf32, #tpu.memory_space<vmem>>, vector<1x16xf32>
    %40 = vector.broadcast %39 : vector<1x16xf32> to vector<128x16xf32>
    %41 = arith.mulf %38, %40 : vector<128x16xf32>
    %c0_39 = arith.constant 0 : index
    %c0_40 = arith.constant 0 : index
    %42 = vector.load %arg11[%c0_39, %c0_40] : memref<5x16xf32, #tpu.memory_space<vmem>>, vector<1x16xf32>
    %43 = vector.broadcast %42 : vector<1x16xf32> to vector<128x16xf32>
    %44 = arith.addf %41, %43 : vector<128x16xf32>
    %cst_41 = arith.constant 0.000000e+00 : f32
    %45 = vector.broadcast %cst_41 : f32 to vector<128x16xf32>
    %46 = arith.cmpf ogt, %44, %45 : vector<128x16xf32>
    %c0_42 = arith.constant 0 : index
    %c0_43 = arith.constant 0 : index
    %47 = vector.load %arg12[%c0_42, %c0_43] : memref<5x16xf32, #tpu.memory_space<vmem>>, vector<1x16xf32>
    %48 = vector.broadcast %47 : vector<1x16xf32> to vector<128x16xf32>
    %49 = arith.mulf %48, %44 : vector<128x16xf32>
    %50 = arith.select %46, %44, %49 : vector<128x16xi1>, vector<128x16xf32>
    %51 = vector.shape_cast %50 : vector<128x16xf32> to vector<8x16x16xf32>
    %c8_44 = arith.constant 8 : index
    %c1_45 = arith.constant 1 : index
    %c16 = arith.constant 16 : index
    %52 = vector.load %arg14[%c8_44, %c1_45, %c16] : memref<16x18x80xf32, #tpu.memory_space<vmem>>, vector<8x16x16xf32>
    tpu.vector_store %arg14[%c8_44, %c1_45, %c16], %51 {strides = array<i32>} : memref<16x18x80xf32, #tpu.memory_space<vmem>>, vector<8x16x16xf32>,
    %c6 = arith.constant 6 : index
    %c0_46 = arith.constant 0 : index
    %c0_47 = arith.constant 0 : index
    %53 = vector.load %arg14[%c6, %c0_46, %c0_47] : memref<16x18x80xf32, #tpu.memory_space<vmem>>, vector<8x16x32xf32>
    %54 = vector.shape_cast %53 : vector<8x16x32xf32> to vector<128x32xf32>
    %c6_48 = arith.constant 6 : index
    %c1_49 = arith.constant 1 : index
    %c0_50 = arith.constant 0 : index
    %55 = vector.load %arg14[%c6_48, %c1_49, %c0_50] : memref<16x18x80xf32, #tpu.memory_space<vmem>>, vector<8x16x32xf32>
    %56 = vector.shape_cast %55 : vector<8x16x32xf32> to vector<128x32xf32>
    %c6_51 = arith.constant 6 : index
    %c2_52 = arith.constant 2 : index
    %c0_53 = arith.constant 0 : index
    %57 = vector.load %arg14[%c6_51, %c2_52, %c0_53] : memref<16x18x80xf32, #tpu.memory_space<vmem>>, vector<8x16x32xf32>
    %58 = vector.shape_cast %57 : vector<8x16x32xf32> to vector<128x32xf32>
    %c8_54 = arith.constant 8 : index
    %c0_55 = arith.constant 0 : index
    %c0_56 = arith.constant 0 : index
    %59 = vector.load %arg14[%c8_54, %c0_55, %c0_56] : memref<16x18x80xf32, #tpu.memory_space<vmem>>, vector<8x16x32xf32>
    %60 = vector.shape_cast %59 : vector<8x16x32xf32> to vector<128x32xf32>
    %c8_57 = arith.constant 8 : index
    %c1_58 = arith.constant 1 : index
    %c0_59 = arith.constant 0 : index
    %61 = vector.load %arg14[%c8_57, %c1_58, %c0_59] : memref<16x18x80xf32, #tpu.memory_space<vmem>>, vector<8x16x32xf32>
    %62 = vector.shape_cast %61 : vector<8x16x32xf32> to vector<128x32xf32>
    %c8_60 = arith.constant 8 : index
    %c2_61 = arith.constant 2 : index
    %c0_62 = arith.constant 0 : index
    %63 = vector.load %arg14[%c8_60, %c2_61, %c0_62] : memref<16x18x80xf32, #tpu.memory_space<vmem>>, vector<8x16x32xf32>
    %64 = vector.shape_cast %63 : vector<8x16x32xf32> to vector<128x32xf32>
    %65 = tpu.concatenate %54, %56, %58, %60, %62, %64 in 1 : vector<128x32xf32>, vector<128x32xf32>, vector<128x32xf32>, vector<128x32xf32>, vector<128x32xf32>, vector<128x32xf32> -> vector<128x192xf32>
    %c0_63 = arith.constant 0 : index
    %c0_64 = arith.constant 0 : index
    %66 = vector.load %arg3[%c0_63, %c0_64] : memref<192x16xf32, #tpu.memory_space<vmem>>, vector<192x16xf32>
    %cst_65 = arith.constant dense<0.000000e+00> : vector<128x16xf32>
    %67 = tpu.matmul %65, %66, %cst_65 {dimension_numbers = #tpu.dot_dimension_numbers<[1], [0], [0], [1], [0, 0, 1, 1], [], []>} : vector<128x192xf32>, vector<192x16xf32>, vector<128x16xf32> -> vector<128x16xf32>
    %cst_66 = arith.constant dense<0.000000e+00> : vector<16xf32>
    %68 = vector.multi_reduction <add>, %67, %cst_66 [0] : vector<128x16xf32> to vector<16xf32>
    %69 = vector.shape_cast %68 : vector<16xf32> to vector<1x16xf32>
    %cst_67 = arith.constant 1.280000e+02 : f32
    %70 = vector.broadcast %cst_67 : f32 to vector<1x16xf32>
    %71 = arith.divf %69, %70 : vector<1x16xf32>
    %72 = vector.broadcast %71 : vector<1x16xf32> to vector<128x16xf32>
    %73 = arith.subf %67, %72 : vector<128x16xf32>
    %74 = arith.mulf %73, %73 : vector<128x16xf32>
    %cst_68 = arith.constant dense<0.000000e+00> : vector<16xf32>
    %75 = vector.multi_reduction <add>, %74, %cst_68 [0] : vector<128x16xf32> to vector<16xf32>
    %76 = vector.shape_cast %75 : vector<16xf32> to vector<1x16xf32>
    %cst_69 = arith.constant 1.280000e+02 : f32
    %77 = vector.broadcast %cst_69 : f32 to vector<1x16xf32>
    %78 = arith.divf %76, %77 : vector<1x16xf32>
    %cst_70 = arith.constant 9.99999974E-6 : f32
    %79 = vector.broadcast %cst_70 : f32 to vector<1x16xf32>
    %80 = arith.addf %78, %79 : vector<1x16xf32>
    %81 = math.rsqrt %80 : vector<1x16xf32>
    %82 = vector.broadcast %81 : vector<1x16xf32> to vector<128x16xf32>
    %83 = arith.mulf %73, %82 : vector<128x16xf32>
    %c1_71 = arith.constant 1 : index
    %c0_72 = arith.constant 0 : index
    %84 = vector.load %arg10[%c1_71, %c0_72] : memref<5x16xf32, #tpu.memory_space<vmem>>, vector<1x16xf32>
    %85 = vector.broadcast %84 : vector<1x16xf32> to vector<128x16xf32>
    %86 = arith.mulf %83, %85 : vector<128x16xf32>
    %c1_73 = arith.constant 1 : index
    %c0_74 = arith.constant 0 : index
    %87 = vector.load %arg11[%c1_73, %c0_74] : memref<5x16xf32, #tpu.memory_space<vmem>>, vector<1x16xf32>
    %88 = vector.broadcast %87 : vector<1x16xf32> to vector<128x16xf32>
    %89 = arith.addf %86, %88 : vector<128x16xf32>
    %cst_75 = arith.constant 0.000000e+00 : f32
    %90 = vector.broadcast %cst_75 : f32 to vector<128x16xf32>
    %91 = arith.cmpf ogt, %89, %90 : vector<128x16xf32>
    %c1_76 = arith.constant 1 : index
    %c0_77 = arith.constant 0 : index
    %92 = vector.load %arg12[%c1_76, %c0_77] : memref<5x16xf32, #tpu.memory_space<vmem>>, vector<1x16xf32>
    %93 = vector.broadcast %92 : vector<1x16xf32> to vector<128x16xf32>
    %94 = arith.mulf %93, %89 : vector<128x16xf32>
    %95 = arith.select %91, %89, %94 : vector<128x16xi1>, vector<128x16xf32>
    %96 = vector.shape_cast %95 : vector<128x16xf32> to vector<8x16x16xf32>
    %c8_78 = arith.constant 8 : index
    %c1_79 = arith.constant 1 : index
    %c32 = arith.constant 32 : index
    %97 = vector.load %arg14[%c8_78, %c1_79, %c32] : memref<16x18x80xf32, #tpu.memory_space<vmem>>, vector<8x16x16xf32>
    tpu.vector_store %arg14[%c8_78, %c1_79, %c32], %96 {strides = array<i32>} : memref<16x18x80xf32, #tpu.memory_space<vmem>>, vector<8x16x16xf32>,
    %c4 = arith.constant 4 : index
    %c0_80 = arith.constant 0 : index
    %c0_81 = arith.constant 0 : index
    %98 = vector.load %arg14[%c4, %c0_80, %c0_81] : memref<16x18x80xf32, #tpu.memory_space<vmem>>, vector<8x16x48xf32>
    %99 = vector.shape_cast %98 : vector<8x16x48xf32> to vector<128x48xf32>
    %c4_82 = arith.constant 4 : index
    %c1_83 = arith.constant 1 : index
    %c0_84 = arith.constant 0 : index
    %100 = vector.load %arg14[%c4_82, %c1_83, %c0_84] : memref<16x18x80xf32, #tpu.memory_space<vmem>>, vector<8x16x48xf32>
    %101 = vector.shape_cast %100 : vector<8x16x48xf32> to vector<128x48xf32>
    %c4_85 = arith.constant 4 : index
    %c2_86 = arith.constant 2 : index
    %c0_87 = arith.constant 0 : index
    %102 = vector.load %arg14[%c4_85, %c2_86, %c0_87] : memref<16x18x80xf32, #tpu.memory_space<vmem>>, vector<8x16x48xf32>
    %103 = vector.shape_cast %102 : vector<8x16x48xf32> to vector<128x48xf32>
    %c8_88 = arith.constant 8 : index
    %c0_89 = arith.constant 0 : index
    %c0_90 = arith.constant 0 : index
    %104 = vector.load %arg14[%c8_88, %c0_89, %c0_90] : memref<16x18x80xf32, #tpu.memory_space<vmem>>, vector<8x16x48xf32>
    %105 = vector.shape_cast %104 : vector<8x16x48xf32> to vector<128x48xf32>
    %c8_91 = arith.constant 8 : index
    %c1_92 = arith.constant 1 : index
    %c0_93 = arith.constant 0 : index
    %106 = vector.load %arg14[%c8_91, %c1_92, %c0_93] : memref<16x18x80xf32, #tpu.memory_space<vmem>>, vector<8x16x48xf32>
    %107 = vector.shape_cast %106 : vector<8x16x48xf32> to vector<128x48xf32>
    %c8_94 = arith.constant 8 : index
    %c2_95 = arith.constant 2 : index
    %c0_96 = arith.constant 0 : index
    %108 = vector.load %arg14[%c8_94, %c2_95, %c0_96] : memref<16x18x80xf32, #tpu.memory_space<vmem>>, vector<8x16x48xf32>
    %109 = vector.shape_cast %108 : vector<8x16x48xf32> to vector<128x48xf32>
    %110 = tpu.concatenate %99, %101, %103, %105, %107, %109 in 1 : vector<128x48xf32>, vector<128x48xf32>, vector<128x48xf32>, vector<128x48xf32>, vector<128x48xf32>, vector<128x48xf32> -> vector<128x288xf32>
    %c0_97 = arith.constant 0 : index
    %c0_98 = arith.constant 0 : index
    %111 = vector.load %arg4[%c0_97, %c0_98] : memref<288x16xf32, #tpu.memory_space<vmem>>, vector<288x16xf32>
    %cst_99 = arith.constant dense<0.000000e+00> : vector<128x16xf32>
    %112 = tpu.matmul %110, %111, %cst_99 {dimension_numbers = #tpu.dot_dimension_numbers<[1], [0], [0], [1], [0, 0, 1, 1], [], []>} : vector<128x288xf32>, vector<288x16xf32>, vector<128x16xf32> -> vector<128x16xf32>
    %cst_100 = arith.constant dense<0.000000e+00> : vector<16xf32>
    %113 = vector.multi_reduction <add>, %112, %cst_100 [0] : vector<128x16xf32> to vector<16xf32>
    %114 = vector.shape_cast %113 : vector<16xf32> to vector<1x16xf32>
    %cst_101 = arith.constant 1.280000e+02 : f32
    %115 = vector.broadcast %cst_101 : f32 to vector<1x16xf32>
    %116 = arith.divf %114, %115 : vector<1x16xf32>
    %117 = vector.broadcast %116 : vector<1x16xf32> to vector<128x16xf32>
    %118 = arith.subf %112, %117 : vector<128x16xf32>
    %119 = arith.mulf %118, %118 : vector<128x16xf32>
    %cst_102 = arith.constant dense<0.000000e+00> : vector<16xf32>
    %120 = vector.multi_reduction <add>, %119, %cst_102 [0] : vector<128x16xf32> to vector<16xf32>
    %121 = vector.shape_cast %120 : vector<16xf32> to vector<1x16xf32>
    %cst_103 = arith.constant 1.280000e+02 : f32
    %122 = vector.broadcast %cst_103 : f32 to vector<1x16xf32>
    %123 = arith.divf %121, %122 : vector<1x16xf32>
    %cst_104 = arith.constant 9.99999974E-6 : f32
    %124 = vector.broadcast %cst_104 : f32 to vector<1x16xf32>
    %125 = arith.addf %123, %124 : vector<1x16xf32>
    %126 = math.rsqrt %125 : vector<1x16xf32>
    %127 = vector.broadcast %126 : vector<1x16xf32> to vector<128x16xf32>
    %128 = arith.mulf %118, %127 : vector<128x16xf32>
    %c2_105 = arith.constant 2 : index
    %c0_106 = arith.constant 0 : index
    %129 = vector.load %arg10[%c2_105, %c0_106] : memref<5x16xf32, #tpu.memory_space<vmem>>, vector<1x16xf32>
    %130 = vector.broadcast %129 : vector<1x16xf32> to vector<128x16xf32>
    %131 = arith.mulf %128, %130 : vector<128x16xf32>
    %c2_107 = arith.constant 2 : index
    %c0_108 = arith.constant 0 : index
    %132 = vector.load %arg11[%c2_107, %c0_108] : memref<5x16xf32, #tpu.memory_space<vmem>>, vector<1x16xf32>
    %133 = vector.broadcast %132 : vector<1x16xf32> to vector<128x16xf32>
    %134 = arith.addf %131, %133 : vector<128x16xf32>
    %cst_109 = arith.constant 0.000000e+00 : f32
    %135 = vector.broadcast %cst_109 : f32 to vector<128x16xf32>
    %136 = arith.cmpf ogt, %134, %135 : vector<128x16xf32>
    %c2_110 = arith.constant 2 : index
    %c0_111 = arith.constant 0 : index
    %137 = vector.load %arg12[%c2_110, %c0_111] : memref<5x16xf32, #tpu.memory_space<vmem>>, vector<1x16xf32>
    %138 = vector.broadcast %137 : vector<1x16xf32> to vector<128x16xf32>
    %139 = arith.mulf %138, %134 : vector<128x16xf32>
    %140 = arith.select %136, %134, %139 : vector<128x16xi1>, vector<128x16xf32>
    %141 = vector.shape_cast %140 : vector<128x16xf32> to vector<8x16x16xf32>
    %c8_112 = arith.constant 8 : index
    %c1_113 = arith.constant 1 : index
    %c48 = arith.constant 48 : index
    %142 = vector.load %arg14[%c8_112, %c1_113, %c48] : memref<16x18x80xf32, #tpu.memory_space<vmem>>, vector<8x16x16xf32>
    tpu.vector_store %arg14[%c8_112, %c1_113, %c48], %141 {strides = array<i32>} : memref<16x18x80xf32, #tpu.memory_space<vmem>>, vector<8x16x16xf32>,
    %c0_114 = arith.constant 0 : index
    %c0_115 = arith.constant 0 : index
    %c0_116 = arith.constant 0 : index
    %143 = vector.load %arg14[%c0_114, %c0_115, %c0_116] : memref<16x18x80xf32, #tpu.memory_space<vmem>>, vector<8x16x64xf32>
    %144 = vector.shape_cast %143 : vector<8x16x64xf32> to vector<128x64xf32>
    %c0_117 = arith.constant 0 : index
    %c1_118 = arith.constant 1 : index
    %c0_119 = arith.constant 0 : index
    %145 = vector.load %arg14[%c0_117, %c1_118, %c0_119] : memref<16x18x80xf32, #tpu.memory_space<vmem>>, vector<8x16x64xf32>
    %146 = vector.shape_cast %145 : vector<8x16x64xf32> to vector<128x64xf32>
    %c0_120 = arith.constant 0 : index
    %c2_121 = arith.constant 2 : index
    %c0_122 = arith.constant 0 : index
    %147 = vector.load %arg14[%c0_120, %c2_121, %c0_122] : memref<16x18x80xf32, #tpu.memory_space<vmem>>, vector<8x16x64xf32>
    %148 = vector.shape_cast %147 : vector<8x16x64xf32> to vector<128x64xf32>
    %c8_123 = arith.constant 8 : index
    %c0_124 = arith.constant 0 : index
    %c0_125 = arith.constant 0 : index
    %149 = vector.load %arg14[%c8_123, %c0_124, %c0_125] : memref<16x18x80xf32, #tpu.memory_space<vmem>>, vector<8x16x64xf32>
    %150 = vector.shape_cast %149 : vector<8x16x64xf32> to vector<128x64xf32>
    %c8_126 = arith.constant 8 : index
    %c1_127 = arith.constant 1 : index
    %c0_128 = arith.constant 0 : index
    %151 = vector.load %arg14[%c8_126, %c1_127, %c0_128] : memref<16x18x80xf32, #tpu.memory_space<vmem>>, vector<8x16x64xf32>
    %152 = vector.shape_cast %151 : vector<8x16x64xf32> to vector<128x64xf32>
    %c8_129 = arith.constant 8 : index
    %c2_130 = arith.constant 2 : index
    %c0_131 = arith.constant 0 : index
    %153 = vector.load %arg14[%c8_129, %c2_130, %c0_131] : memref<16x18x80xf32, #tpu.memory_space<vmem>>, vector<8x16x64xf32>
    %154 = vector.shape_cast %153 : vector<8x16x64xf32> to vector<128x64xf32>
    %155 = tpu.concatenate %144, %146, %148, %150, %152, %154 in 1 : vector<128x64xf32>, vector<128x64xf32>, vector<128x64xf32>, vector<128x64xf32>, vector<128x64xf32>, vector<128x64xf32> -> vector<128x384xf32>
    %c0_132 = arith.constant 0 : index
    %c0_133 = arith.constant 0 : index
    %156 = vector.load %arg5[%c0_132, %c0_133] : memref<384x16xf32, #tpu.memory_space<vmem>>, vector<384x16xf32>
    %cst_134 = arith.constant dense<0.000000e+00> : vector<128x16xf32>
    %157 = tpu.matmul %155, %156, %cst_134 {dimension_numbers = #tpu.dot_dimension_numbers<[1], [0], [0], [1], [0, 0, 1, 1], [], []>} : vector<128x384xf32>, vector<384x16xf32>, vector<128x16xf32> -> vector<128x16xf32>
    %cst_135 = arith.constant dense<0.000000e+00> : vector<16xf32>
    %158 = vector.multi_reduction <add>, %157, %cst_135 [0] : vector<128x16xf32> to vector<16xf32>
    %159 = vector.shape_cast %158 : vector<16xf32> to vector<1x16xf32>
    %cst_136 = arith.constant 1.280000e+02 : f32
    %160 = vector.broadcast %cst_136 : f32 to vector<1x16xf32>
    %161 = arith.divf %159, %160 : vector<1x16xf32>
    %162 = vector.broadcast %161 : vector<1x16xf32> to vector<128x16xf32>
    %163 = arith.subf %157, %162 : vector<128x16xf32>
    %164 = arith.mulf %163, %163 : vector<128x16xf32>
    %cst_137 = arith.constant dense<0.000000e+00> : vector<16xf32>
    %165 = vector.multi_reduction <add>, %164, %cst_137 [0] : vector<128x16xf32> to vector<16xf32>
    %166 = vector.shape_cast %165 : vector<16xf32> to vector<1x16xf32>
    %cst_138 = arith.constant 1.280000e+02 : f32
    %167 = vector.broadcast %cst_138 : f32 to vector<1x16xf32>
    %168 = arith.divf %166, %167 : vector<1x16xf32>
    %cst_139 = arith.constant 9.99999974E-6 : f32
    %169 = vector.broadcast %cst_139 : f32 to vector<1x16xf32>
    %170 = arith.addf %168, %169 : vector<1x16xf32>
    %171 = math.rsqrt %170 : vector<1x16xf32>
    %172 = vector.broadcast %171 : vector<1x16xf32> to vector<128x16xf32>
    %173 = arith.mulf %163, %172 : vector<128x16xf32>
    %c3 = arith.constant 3 : index
    %c0_140 = arith.constant 0 : index
    %174 = vector.load %arg10[%c3, %c0_140] : memref<5x16xf32, #tpu.memory_space<vmem>>, vector<1x16xf32>
    %175 = vector.broadcast %174 : vector<1x16xf32> to vector<128x16xf32>
    %176 = arith.mulf %173, %175 : vector<128x16xf32>
    %c3_141 = arith.constant 3 : index
    %c0_142 = arith.constant 0 : index
    %177 = vector.load %arg11[%c3_141, %c0_142] : memref<5x16xf32, #tpu.memory_space<vmem>>, vector<1x16xf32>
    %178 = vector.broadcast %177 : vector<1x16xf32> to vector<128x16xf32>
    %179 = arith.addf %176, %178 : vector<128x16xf32>
    %cst_143 = arith.constant 0.000000e+00 : f32
    %180 = vector.broadcast %cst_143 : f32 to vector<128x16xf32>
    %181 = arith.cmpf ogt, %179, %180 : vector<128x16xf32>
    %c3_144 = arith.constant 3 : index
    %c0_145 = arith.constant 0 : index
    %182 = vector.load %arg12[%c3_144, %c0_145] : memref<5x16xf32, #tpu.memory_space<vmem>>, vector<1x16xf32>
    %183 = vector.broadcast %182 : vector<1x16xf32> to vector<128x16xf32>
    %184 = arith.mulf %183, %179 : vector<128x16xf32>
    %185 = arith.select %181, %179, %184 : vector<128x16xi1>, vector<128x16xf32>
    %186 = vector.shape_cast %185 : vector<128x16xf32> to vector<8x16x16xf32>
    %c8_146 = arith.constant 8 : index
    %c1_147 = arith.constant 1 : index
    %c64 = arith.constant 64 : index
    %187 = vector.load %arg14[%c8_146, %c1_147, %c64] : memref<16x18x80xf32, #tpu.memory_space<vmem>>, vector<8x16x16xf32>
    tpu.vector_store %arg14[%c8_146, %c1_147, %c64], %186 {strides = array<i32>} : memref<16x18x80xf32, #tpu.memory_space<vmem>>, vector<8x16x16xf32>,
    %c8_148 = arith.constant 8 : index
    %c0_149 = arith.constant 0 : index
    %c64_150 = arith.constant 64 : index
    %188 = vector.load %arg14[%c8_148, %c0_149, %c64_150] : memref<16x18x80xf32, #tpu.memory_space<vmem>>, vector<8x16x16xf32>
    %189 = vector.shape_cast %188 : vector<8x16x16xf32> to vector<128x16xf32>
    %c8_151 = arith.constant 8 : index
    %c1_152 = arith.constant 1 : index
    %c64_153 = arith.constant 64 : index
    %190 = vector.load %arg14[%c8_151, %c1_152, %c64_153] : memref<16x18x80xf32, #tpu.memory_space<vmem>>, vector<8x16x16xf32>
    %191 = vector.shape_cast %190 : vector<8x16x16xf32> to vector<128x16xf32>
    %c8_154 = arith.constant 8 : index
    %c2_155 = arith.constant 2 : index
    %c64_156 = arith.constant 64 : index
    %192 = vector.load %arg14[%c8_154, %c2_155, %c64_156] : memref<16x18x80xf32, #tpu.memory_space<vmem>>, vector<8x16x16xf32>
    %193 = vector.shape_cast %192 : vector<8x16x16xf32> to vector<128x16xf32>
    %194 = tpu.concatenate %189, %191, %193 in 1 : vector<128x16xf32>, vector<128x16xf32>, vector<128x16xf32> -> vector<128x48xf32>
    %c0_157 = arith.constant 0 : index
    %c0_158 = arith.constant 0 : index
    %c0_159 = arith.constant 0 : index
    %195 = vector.load %arg6[%c0_157, %c0_158, %c0_159] : memref<2x48x16xf32, #tpu.memory_space<vmem>>, vector<1x48x16xf32>
    %196 = vector.shape_cast %195 : vector<1x48x16xf32> to vector<48x16xf32>
    %cst_160 = arith.constant dense<0.000000e+00> : vector<128x16xf32>
    %197 = tpu.matmul %194, %196, %cst_160 {dimension_numbers = #tpu.dot_dimension_numbers<[1], [0], [0], [1], [0, 0, 1, 1], [], []>} : vector<128x48xf32>, vector<48x16xf32>, vector<128x16xf32> -> vector<128x16xf32>
    %c0_161 = arith.constant 0 : index
    %c0_162 = arith.constant 0 : index
    %198 = vector.load %arg7[%c0_161, %c0_162] : memref<2x16xf32, #tpu.memory_space<vmem>>, vector<1x16xf32>
    %199 = vector.broadcast %198 : vector<1x16xf32> to vector<128x16xf32>
    %200 = arith.addf %197, %199 : vector<128x16xf32>
    %c1_163 = arith.constant 1 : index
    %c0_164 = arith.constant 0 : index
    %c0_165 = arith.constant 0 : index
    %201 = vector.load %arg6[%c1_163, %c0_164, %c0_165] : memref<2x48x16xf32, #tpu.memory_space<vmem>>, vector<1x48x16xf32>
    %202 = vector.shape_cast %201 : vector<1x48x16xf32> to vector<48x16xf32>
    %cst_166 = arith.constant dense<0.000000e+00> : vector<128x16xf32>
    %203 = tpu.matmul %194, %202, %cst_166 {dimension_numbers = #tpu.dot_dimension_numbers<[1], [0], [0], [1], [0, 0, 1, 1], [], []>} : vector<128x48xf32>, vector<48x16xf32>, vector<128x16xf32> -> vector<128x16xf32>
    %c1_167 = arith.constant 1 : index
    %c0_168 = arith.constant 0 : index
    %204 = vector.load %arg7[%c1_167, %c0_168] : memref<2x16xf32, #tpu.memory_space<vmem>>, vector<1x16xf32>
    %205 = vector.broadcast %204 : vector<1x16xf32> to vector<128x16xf32>
    %206 = arith.addf %203, %205 : vector<128x16xf32>
    %cst_169 = arith.constant dense<0.000000e+00> : vector<16xf32>
    %207 = vector.multi_reduction <add>, %200, %cst_169 [0] : vector<128x16xf32> to vector<16xf32>
    %208 = vector.shape_cast %207 : vector<16xf32> to vector<1x16xf32>
    %cst_170 = arith.constant 1.280000e+02 : f32
    %209 = vector.broadcast %cst_170 : f32 to vector<1x16xf32>
    %210 = arith.divf %208, %209 : vector<1x16xf32>
    %cst_171 = arith.constant dense<0.000000e+00> : vector<16xf32>
    %211 = vector.multi_reduction <add>, %206, %cst_171 [0] : vector<128x16xf32> to vector<16xf32>
    %212 = vector.shape_cast %211 : vector<16xf32> to vector<1x16xf32>
    %cst_172 = arith.constant 1.280000e+02 : f32
    %213 = vector.broadcast %cst_172 : f32 to vector<1x16xf32>
    %214 = arith.divf %212, %213 : vector<1x16xf32>
    %215 = arith.addf %210, %214 : vector<1x16xf32>
    %cst_173 = arith.constant 5.000000e-01 : f32
    %216 = vector.broadcast %cst_173 : f32 to vector<1x16xf32>
    %217 = arith.mulf %216, %215 : vector<1x16xf32>
    %218 = vector.broadcast %217 : vector<1x16xf32> to vector<128x16xf32>
    %219 = arith.subf %200, %218 : vector<128x16xf32>
    %220 = vector.broadcast %217 : vector<1x16xf32> to vector<128x16xf32>
    %221 = arith.subf %206, %220 : vector<128x16xf32>
    %222 = arith.mulf %219, %219 : vector<128x16xf32>
    %cst_174 = arith.constant dense<0.000000e+00> : vector<16xf32>
    %223 = vector.multi_reduction <add>, %222, %cst_174 [0] : vector<128x16xf32> to vector<16xf32>
    %224 = vector.shape_cast %223 : vector<16xf32> to vector<1x16xf32>
    %cst_175 = arith.constant 1.280000e+02 : f32
    %225 = vector.broadcast %cst_175 : f32 to vector<1x16xf32>
    %226 = arith.divf %224, %225 : vector<1x16xf32>
    %227 = arith.mulf %221, %221 : vector<128x16xf32>
    %cst_176 = arith.constant dense<0.000000e+00> : vector<16xf32>
    %228 = vector.multi_reduction <add>, %227, %cst_176 [0] : vector<128x16xf32> to vector<16xf32>
    %229 = vector.shape_cast %228 : vector<16xf32> to vector<1x16xf32>
    %cst_177 = arith.constant 1.280000e+02 : f32
    %230 = vector.broadcast %cst_177 : f32 to vector<1x16xf32>
    %231 = arith.divf %229, %230 : vector<1x16xf32>
    %232 = arith.addf %226, %231 : vector<1x16xf32>
    %cst_178 = arith.constant 5.000000e-01 : f32
    %233 = vector.broadcast %cst_178 : f32 to vector<1x16xf32>
    %234 = arith.mulf %233, %232 : vector<1x16xf32>
    %cst_179 = arith.constant 9.99999974E-6 : f32
    %235 = vector.broadcast %cst_179 : f32 to vector<1x16xf32>
    %236 = arith.addf %234, %235 : vector<1x16xf32>
    %237 = math.rsqrt %236 : vector<1x16xf32>
    %c4_180 = arith.constant 4 : index
    %c0_181 = arith.constant 0 : index
    %238 = vector.load %arg10[%c4_180, %c0_181] : memref<5x16xf32, #tpu.memory_space<vmem>>, vector<1x16xf32>
    %c4_182 = arith.constant 4 : index
    %c0_183 = arith.constant 0 : index
    %239 = vector.load %arg11[%c4_182, %c0_183] : memref<5x16xf32, #tpu.memory_space<vmem>>, vector<1x16xf32>
    %c4_184 = arith.constant 4 : index
    %c0_185 = arith.constant 0 : index
    %240 = vector.load %arg12[%c4_184, %c0_185] : memref<5x16xf32, #tpu.memory_space<vmem>>, vector<1x16xf32>
    %241 = vector.broadcast %237 : vector<1x16xf32> to vector<128x16xf32>
    %242 = arith.mulf %219, %241 : vector<128x16xf32>
    %243 = vector.broadcast %238 : vector<1x16xf32> to vector<128x16xf32>
    %244 = arith.mulf %242, %243 : vector<128x16xf32>
    %245 = vector.broadcast %239 : vector<1x16xf32> to vector<128x16xf32>
    %246 = arith.addf %244, %245 : vector<128x16xf32>
    %cst_186 = arith.constant 0.000000e+00 : f32
    %247 = vector.broadcast %cst_186 : f32 to vector<128x16xf32>
    %248 = arith.cmpf ogt, %246, %247 : vector<128x16xf32>
    %249 = vector.broadcast %240 : vector<1x16xf32> to vector<128x16xf32>
    %250 = arith.mulf %249, %246 : vector<128x16xf32>
    %251 = arith.select %248, %246, %250 : vector<128x16xi1>, vector<128x16xf32>
    %252 = vector.shape_cast %251 : vector<128x16xf32> to vector<8x16x16xf32>
    %253 = vector.broadcast %237 : vector<1x16xf32> to vector<128x16xf32>
    %254 = arith.mulf %221, %253 : vector<128x16xf32>
    %255 = vector.broadcast %238 : vector<1x16xf32> to vector<128x16xf32>
    %256 = arith.mulf %254, %255 : vector<128x16xf32>
    %257 = vector.broadcast %239 : vector<1x16xf32> to vector<128x16xf32>
    %258 = arith.addf %256, %257 : vector<128x16xf32>
    %cst_187 = arith.constant 0.000000e+00 : f32
    %259 = vector.broadcast %cst_187 : f32 to vector<128x16xf32>
    %260 = arith.cmpf ogt, %258, %259 : vector<128x16xf32>
    %261 = vector.broadcast %240 : vector<1x16xf32> to vector<128x16xf32>
    %262 = arith.mulf %261, %258 : vector<128x16xf32>
    %263 = arith.select %260, %258, %262 : vector<128x16xi1>, vector<128x16xf32>
    %264 = vector.shape_cast %263 : vector<128x16xf32> to vector<8x16x16xf32>
    %265 = vector.extract_strided_slice %252 {offsets = [0, 1, 0], sizes = [8, 15, 16], strides = [1, 1, 1]} : vector<8x16x16xf32> to vector<8x15x16xf32>
    %cst_188 = arith.constant 0.000000e+00 : f32
    %266 = vector.broadcast %cst_188 : f32 to vector<8x1x16xf32>
    %267 = tpu.concatenate %265, %266 in 1 : vector<8x15x16xf32>, vector<8x1x16xf32> -> vector<8x16x16xf32>
    %268 = tpu.concatenate %252, %264 in 2 : vector<8x16x16xf32>, vector<8x16x16xf32> -> vector<8x16x32xf32>
    %269 = vector.shape_cast %268 : vector<8x16x32xf32> to vector<128x32xf32>
    %270 = tpu.concatenate %264, %267 in 2 : vector<8x16x16xf32>, vector<8x16x16xf32> -> vector<8x16x32xf32>
    %271 = vector.shape_cast %270 : vector<8x16x32xf32> to vector<128x32xf32>
    %c0_189 = arith.constant 0 : index
    %c0_190 = arith.constant 0 : index
    %c0_191 = arith.constant 0 : index
    %272 = vector.load %arg8[%c0_189, %c0_190, %c0_191] : memref<2x32x8xf32, #tpu.memory_space<vmem>>, vector<1x32x8xf32>
    %273 = vector.shape_cast %272 : vector<1x32x8xf32> to vector<32x8xf32>
    %cst_192 = arith.constant dense<0.000000e+00> : vector<128x8xf32>
    %274 = tpu.matmul %269, %273, %cst_192 {dimension_numbers = #tpu.dot_dimension_numbers<[1], [0], [0], [1], [0, 0, 1, 1], [], []>} : vector<128x32xf32>, vector<32x8xf32>, vector<128x8xf32> -> vector<128x8xf32>
    %c1_193 = arith.constant 1 : index
    %c0_194 = arith.constant 0 : index
    %c0_195 = arith.constant 0 : index
    %275 = vector.load %arg8[%c1_193, %c0_194, %c0_195] : memref<2x32x8xf32, #tpu.memory_space<vmem>>, vector<1x32x8xf32>
    %276 = vector.shape_cast %275 : vector<1x32x8xf32> to vector<32x8xf32>
    %cst_196 = arith.constant dense<0.000000e+00> : vector<128x8xf32>
    %277 = tpu.matmul %271, %276, %cst_196 {dimension_numbers = #tpu.dot_dimension_numbers<[1], [0], [0], [1], [0, 0, 1, 1], [], []>} : vector<128x32xf32>, vector<32x8xf32>, vector<128x8xf32> -> vector<128x8xf32>
    %278 = arith.addf %274, %277 : vector<128x8xf32>
    %c0_197 = arith.constant 0 : index
    %c0_198 = arith.constant 0 : index
    %279 = vector.load %arg9[%c0_197, %c0_198] : memref<1x8xf32, #tpu.memory_space<vmem>>, vector<1x8xf32>
    %280 = vector.broadcast %279 : vector<1x8xf32> to vector<128x8xf32>
    %281 = arith.addf %278, %280 : vector<128x8xf32>
    %282 = vector.shape_cast %281 : vector<128x8xf32> to vector<8x16x8xf32>
    %c0_199 = arith.constant 0 : index
    %c0_200 = arith.constant 0 : index
    %c0_201 = arith.constant 0 : index
    %c0_202 = arith.constant 0 : index
    %283 = vector.load %arg13[%c0_199, %c0_200, %c0_201, %c0_202] : memref<1x8x16x8xf32, #tpu.memory_space<vmem>>, vector<1x8x16x8xf32>
    %284 = vector.shape_cast %283 : vector<1x8x16x8xf32> to vector<8x16x8xf32>
    %285 = vector.shape_cast %282 : vector<8x16x8xf32> to vector<1x8x16x8xf32>
    tpu.vector_store %arg13[%c0_199, %c0_200, %c0_201, %c0_202], %285 {strides = array<i32>} : memref<1x8x16x8xf32, #tpu.memory_space<vmem>>, vector<1x8x16x8xf32>,
    return
  }
  func.func @transform_0(%arg0: i32) -> (i32, i32, i32, i32) {
    %c0_i32 = arith.constant 0 : i32
    %c0_i32_0 = arith.constant 0 : i32
    %c0_i32_1 = arith.constant 0 : i32
    %c0_i32_2 = arith.constant 0 : i32
    return %arg0, %c0_i32, %c0_i32_0, %c0_i32_1 : i32, i32, i32, i32
  }
  func.func @transform_1(%arg0: i32) -> (i32, i32) {
    %c0_i32 = arith.constant 0 : i32
    %c0_i32_0 = arith.constant 0 : i32
    %c0_i32_1 = arith.constant 0 : i32
    return %c0_i32, %c0_i32_0 : i32, i32
  }
  func.func @transform_2(%arg0: i32) -> (i32, i32) {
    %c0_i32 = arith.constant 0 : i32
    %c0_i32_0 = arith.constant 0 : i32
    %c0_i32_1 = arith.constant 0 : i32
    return %c0_i32, %c0_i32_0 : i32, i32
  }
  func.func @transform_3(%arg0: i32) -> (i32, i32) {
    %c0_i32 = arith.constant 0 : i32
    %c0_i32_0 = arith.constant 0 : i32
    %c0_i32_1 = arith.constant 0 : i32
    return %c0_i32, %c0_i32_0 : i32, i32
  }
  func.func @transform_4(%arg0: i32) -> (i32, i32) {
    %c0_i32 = arith.constant 0 : i32
    %c0_i32_0 = arith.constant 0 : i32
    %c0_i32_1 = arith.constant 0 : i32
    return %c0_i32, %c0_i32_0 : i32, i32
  }
  func.func @transform_5(%arg0: i32) -> (i32, i32, i32) {
    %c0_i32 = arith.constant 0 : i32
    %c0_i32_0 = arith.constant 0 : i32
    %c0_i32_1 = arith.constant 0 : i32
    %c0_i32_2 = arith.constant 0 : i32
    return %c0_i32, %c0_i32_0, %c0_i32_1 : i32, i32, i32
  }
  func.func @transform_6(%arg0: i32) -> (i32, i32) {
    %c0_i32 = arith.constant 0 : i32
    %c0_i32_0 = arith.constant 0 : i32
    %c0_i32_1 = arith.constant 0 : i32
    return %c0_i32, %c0_i32_0 : i32, i32
  }
  func.func @transform_7(%arg0: i32) -> (i32, i32, i32) {
    %c0_i32 = arith.constant 0 : i32
    %c0_i32_0 = arith.constant 0 : i32
    %c0_i32_1 = arith.constant 0 : i32
    %c0_i32_2 = arith.constant 0 : i32
    return %c0_i32, %c0_i32_0, %c0_i32_1 : i32, i32, i32
  }
  func.func @transform_8(%arg0: i32) -> (i32, i32) {
    %c0_i32 = arith.constant 0 : i32
    %c0_i32_0 = arith.constant 0 : i32
    %c0_i32_1 = arith.constant 0 : i32
    return %c0_i32, %c0_i32_0 : i32, i32
  }
  func.func @transform_9(%arg0: i32) -> (i32, i32) {
    %c0_i32 = arith.constant 0 : i32
    %c0_i32_0 = arith.constant 0 : i32
    %c0_i32_1 = arith.constant 0 : i32
    return %c0_i32, %c0_i32_0 : i32, i32
  }
  func.func @transform_10(%arg0: i32) -> (i32, i32) {
    %c0_i32 = arith.constant 0 : i32
    %c0_i32_0 = arith.constant 0 : i32
    %c0_i32_1 = arith.constant 0 : i32
    return %c0_i32, %c0_i32_0 : i32, i32
  }
  func.func @transform_11(%arg0: i32) -> (i32, i32) {
    %c0_i32 = arith.constant 0 : i32
    %c0_i32_0 = arith.constant 0 : i32
    %c0_i32_1 = arith.constant 0 : i32
    return %c0_i32, %c0_i32_0 : i32, i32
  }
  func.func @transform_12(%arg0: i32) -> (i32, i32, i32, i32) {
    %c0_i32 = arith.constant 0 : i32
    %c0_i32_0 = arith.constant 0 : i32
    %c0_i32_1 = arith.constant 0 : i32
    %c0_i32_2 = arith.constant 0 : i32
    return %arg0, %c0_i32, %c0_i32_0, %c0_i32_1 : i32, i32, i32, i32
  }
}

</mosaic_0001>

<bundles_post_ra>
// kernel: tpu_custom_call.1
= control target key start
LH: loop header
LB: loop body
LE: loop exit
PB: predicated region body
PF: predicated region fallthrough
CT: control target
= control target key end

     0   :  { %s6389_s21 = smov 0   ;;  %s10037_s0 = inlined_call_operand.vmem [shape: f32[2,8,16,16], index: 0, kind: input, shape index: {}]   ;;  %s10038_s1 = inlined_call_operand.vmem [shape: f32[96,16], index: 1, kind: input, shape index: {}]   ;;  %s10039_s2 = inlined_call_operand.vmem [shape: f32[192,16], index: 2, kind: input, shape index: {}]   ;;  %s10040_s3 = inlined_call_operand.vmem [shape: f32[288,16], index: 3, kind: input, shape index: {}]   ;;  %s10041_s4 = inlined_call_operand.vmem [shape: f32[384,16], index: 4, kind: input, shape index: {}]   ;;  %s10042_s5 = inlined_call_operand.vmem [shape: f32[2,48,16], index: 5, kind: input, shape index: {}]   ;;  %s10043_s6 = inlined_call_operand.vmem [shape: f32[2,16], index: 6, kind: input, shape index: {}]   ;;  %s10044_s7 = inlined_call_operand.vmem [shape: f32[2,32,8], index: 7, kind: input, shape index: {}]   ;;  %s10045_s8 = inlined_call_operand.vmem [shape: f32[1,8], index: 8, kind: input, shape index: {}]   ;;  %s10046_s9 = inlined_call_operand.vmem [shape: f32[5,16], index: 9, kind: input, shape index: {}]   ;;  %s10047_s10 = inlined_call_operand.vmem [shape: f32[5,16], index: 10, kind: input, shape index: {}]   ;;  %s10048_s11 = inlined_call_operand.vmem [shape: f32[5,16], index: 11, kind: input, shape index: {}]   ;;  %s10049_s12 = inlined_call_operand.vmem [shape: f32[2,8,16,8], index: 12, kind: output, shape index: {}]  }
   0x1 LB: > { %s5723_s22 = sadd.s32 4294967295, %s6313_s21   ;;  %p5727_p0 = scmp.ge.s32.totalorder %s6313_s21, 1  ;;  %s6313_s21 = sphi %s6389_s21, %s22_s21  }
   0x2   : > { %p362_p1 = scmp.lt.s32.totalorder %s6313_s21, 3 }
   0x4   : > { %p363_p2 = pnand %p5727_p0, %p362_p1 }
   0x5   : > { %p404_p3 = scmp.lt.s32.totalorder (!%p363_p2), %s5723_s22, 1  ;;  %s6316_s24 = smov (!%p363_p2), 16  }
   0x6   : > { %366 = sbr.rel (%p363_p2) target bundleno = 3698 (0xe72), region = 68  ;;  %s6317_s28 = smov (!%p363_p2), 32  }
   0x7   : > { %s6318_s29 = smov (!%p363_p2), 48   ;;  %s6319_s30 = smov (!%p363_p2), 64  }
   0x8   : > { %s6320_s13 = smov (!%p363_p2), 80   ;;  %s6322_s16 = smov (!%p363_p2), 96  }
   0x9   : > { %s6323_s26 = smov (!%p363_p2), 112  }
   0xb   : > { %vm414_vm0 = vcmask 654336   ;;  %v6315_v0 = vmov 0.0   ;;  %s10053_s22 = smov (!%p404_p3, %s5723_s22), 1  ;;  %vm441_vm1 = vcmask 647168   ;;  %vm474_vm2 = vcmask 130048   ;;  %v1002_v33 = vld [vmem:[%s10038_s1 + $0x58] sm:$0xff] }
   0xc   : > { %437 = vst.msk [vmem:[#allocation2 + $0xa8] sm:$0xff] %vm414_vm0, %v6315_v0  ;;  %s10050_s23 = sshll.u32 %s10053_s22, 7  ;;  %vm417_vm3 = vcmask 648192   ;;  %1056 = vmatpush.msra.mxu0 %v1002_v33  ;;  %v1001_v34 = vld [vmem:[%s10038_s1 + $0x50] sm:$0xff]  ;;  %v1000_v35 = vld [vmem:[%s10038_s1 + $0x48] sm:$0xff]  ;;  %5858 = vmatpush.msra.mxu1 %v1002_v33  ;;  %v999_v36 = vld [vmem:[%s10038_s1 + $0x40] sm:$0xff] }
   0xd   : > { %438 = vst.msk [vmem:[#allocation2 + $0xb0] sm:$0xff] %vm414_vm0, %v6315_v0  ;;  %s6430_s27 = scalar_lea.vmem %s10037_s0, %s10050_s23  ;;  %5859 = vmatpush.msra.mxu3 %v1002_v33  ;;  %v998_v40 = vld [vmem:[%s10038_s1 + $0x38] sm:$0xff]  ;;  %v997_v41 = vld [vmem:[%s10038_s1 + $0x30] sm:$0xff]  ;;  %v996_v42 = vld [vmem:[%s10038_s1 + $0x28] sm:$0xff]  ;;  %vm924_vm4 = vcmask 261120   ;;  %vm941_vm5 = vcmask 392192  }
   0xe   : > { %415 = vst.msk [vmem:[#allocation2] sm:$0xff] %vm414_vm0, %v6315_v0  ;;  %v458_v2 = vld [vmem:[%s6430_s27] sm:$0xff]  ;;  %v459_v6 = vld [vmem:[%s6430_s27 + $0x8] sm:$0xff]  ;;  %v460_v7 = vld [vmem:[%s6430_s27 + $0x10] sm:$0xff]  ;;  %1057 = vmatpush.msra.mxu0 %v1001_v34  ;;  %5860 = vmatpush.msra.mxu1 %v1001_v34  ;;  %vm958_vm6 = vcmask 523264   ;;  %vm1003_vm7 = vcmask 785408  }
   0xf   : > { %416 = vst.msk [vmem:[#allocation2 + $0x8] sm:$0xff] %vm414_vm0, %v6315_v0  ;;  %v461_v10 = vld [vmem:[%s6430_s27 + $0x18] sm:$0xff]  ;;  %v462_v14 = vld [vmem:[%s6430_s27 + $0x20] sm:$0xff]  ;;  %v463_v16 = vld [vmem:[%s6430_s27 + $0x28] sm:$0xff]  ;;  %5861 = vmatpush.msra.mxu3 %v1001_v34 }
  0x10   : > { %419 = vst.msk [vmem:[#allocation2 + $0x18] sm:$0xff] %vm414_vm0, %v6315_v0  ;;  %v464_v23 = vld [vmem:[%s6430_s27 + $0x30] sm:$0xff]  ;;  %v465_v24 = vld [vmem:[%s6430_s27 + $0x38] sm:$0xff]  ;;  %v466_v26 = vld [vmem:[%s6430_s27 + $0x40] sm:$0xff]  ;;  %1058 = vmatpush.msra.mxu0 %v1000_v35  ;;  %5862 = vmatpush.msra.mxu1 %v1000_v35 }
  0x11   : > { %420 = vst.msk [vmem:[#allocation2 + $0x20] sm:$0xff] %vm414_vm0, %v6315_v0  ;;  %v467_v30 = vld [vmem:[%s6430_s27 + $0x48] sm:$0xff]  ;;  %v468_v31 = vld [vmem:[%s6430_s27 + $0x50] sm:$0xff]  ;;  %5863 = vmatpush.msra.mxu3 %v1000_v35  ;;  %v469_v39 = vld [vmem:[%s6430_s27 + $0x58] sm:$0xff] }
  0x12   : > { %422 = vst.msk [vmem:[#allocation2 + $0x30] sm:$0xff] %vm414_vm0, %v6315_v0  ;;  %1059 = vmatpush.msra.mxu0 %v999_v36  ;;  %5864 = vmatpush.msra.mxu1 %v999_v36  ;;  %v995_v43 = vld [vmem:[%s10038_s1 + $0x20] sm:$0xff]  ;;  %v994_v47 = vld [vmem:[%s10038_s1 + $0x18] sm:$0xff]  ;;  %v993_v48 = vld [vmem:[%s10038_s1 + $0x10] sm:$0xff] }
  0x13   : > { %423 = vst.msk [vmem:[#allocation2 + $0x38] sm:$0xff] %vm414_vm0, %v6315_v0  ;;  %5865 = vmatpush.msra.mxu3 %v999_v36  ;;  %v992_v49 = vld [vmem:[%s10038_s1 + $0x8] sm:$0xff]  ;;  %v991_v50 = vld [vmem:[%s10038_s1] sm:$0xff]  ;;  %v473_v33 = vld [vmem:[%s6430_s27 + $0x78] sm:$0xff] }
  0x14   : > { %v508_v1 = vld [vmem:[#allocation2 + $0xa9] sm:$0xff]  ;;  %425 = vst.msk [vmem:[#allocation2 + $0x48] sm:$0xff] %vm414_vm0, %v6315_v0  ;;  %1060 = vmatpush.msra.mxu0 %v998_v40  ;;  %5866 = vmatpush.msra.mxu1 %v998_v40  ;;  %v470_v60 = vld [vmem:[%s6430_s27 + $0x60] sm:$0xff] }
  0x15   : > { %604 = vrot.lane.b32.xlu0 %v508_v1, %s6316_s24  ;;  %426 = vst.msk [vmem:[#allocation2 + $0x50] sm:$0xff] %vm414_vm0, %v6315_v0  ;;  %v524_v3 = vld [vmem:[#allocation2 + $0xaa] sm:$0xff]  ;;  %5867 = vmatpush.msra.mxu3 %v998_v40 }
  0x16   : > { %428 = vst.msk [vmem:[#allocation2 + $0x60] sm:$0xff] %vm414_vm0, %v6315_v0  ;;  %1061 = vmatpush.msra.mxu0 %v997_v41  ;;  %5868 = vmatpush.msra.mxu1 %v997_v41  ;;  %v492_v59 = vld [vmem:[#allocation2 + $0xa8] sm:$0xff] }
  0x17   : > { %429 = vst.msk [vmem:[#allocation2 + $0x68] sm:$0xff] %vm414_vm0, %v6315_v0  ;;  %5869 = vmatpush.msra.mxu3 %v997_v41 }
  0x18   : > { %431 = vst.msk [vmem:[#allocation2 + $0x78] sm:$0xff] %vm414_vm0, %v6315_v0  ;;  %1062 = vmatpush.msra.mxu0 %v996_v42  ;;  %5870 = vmatpush.msra.mxu1 %v996_v42 }
  0x19   : > { %432 = vst.msk [vmem:[#allocation2 + $0x80] sm:$0xff] %vm414_vm0, %v6315_v0  ;;  %5871 = vmatpush.msra.mxu3 %v996_v42 }
  0x1a   : > { %434 = vst.msk [vmem:[#allocation2 + $0x90] sm:$0xff] %vm414_vm0, %v6315_v0  ;;  %1063 = vmatpush.msra.mxu0 %v995_v43  ;;  %5872 = vmatpush.msra.mxu1 %v995_v43 }
  0x1b   : > { %435 = vst.msk [vmem:[#allocation2 + $0x98] sm:$0xff] %vm414_vm0, %v6315_v0  ;;  %5873 = vmatpush.msra.mxu3 %v995_v43 }
  0x1c   : > { %442 = vst.msk [vmem:[#allocation2 + $0xc0] sm:$0x1] %vm441_vm1, %v6315_v0  ;;  %1064 = vmatpush.msra.mxu0 %v994_v47  ;;  %5874 = vmatpush.msra.mxu1 %v994_v47 }
  0x1d   : > { %475 = vst.msk [vmem:[#allocation2 + $0xc1] sm:$0xff] %vm474_vm2, %v458_v2  ;;  %668 = vrot.lane.b32.xlu0 %v524_v3, %s6317_s28  ;;  %5875 = vmatpush.msra.mxu3 %v994_v47  ;;  %v471_v2 = vld [vmem:[%s6430_s27 + $0x68] sm:$0xff] }
  0x1e   : > { %443 = vst.msk [vmem:[#allocation2 + $0xd8] sm:$0x1] %vm441_vm1, %v6315_v0  ;;  %1065 = vmatpush.msra.mxu0 %v993_v48  ;;  %5876 = vmatpush.msra.mxu1 %v993_v48 }
  0x1f   : > { %444 = vst.msk [vmem:[#allocation2 + $0xf0] sm:$0x1] %vm441_vm1, %v6315_v0  ;;  %5877 = vmatpush.msra.mxu3 %v993_v48 }
  0x20   : > { %445 = vst.msk [vmem:[#allocation2 + $0x108] sm:$0x1] %vm441_vm1, %v6315_v0  ;;  %1066 = vmatpush.msra.mxu0 %v992_v49  ;;  %5878 = vmatpush.msra.mxu1 %v992_v49 }
  0x21   : > { %446 = vst.msk [vmem:[#allocation2 + $0x120] sm:$0x1] %vm441_vm1, %v6315_v0  ;;  %5879 = vmatpush.msra.mxu3 %v992_v49 }
  0x22   : > { %447 = vst.msk [vmem:[#allocation2 + $0x138] sm:$0x1] %vm441_vm1, %v6315_v0  ;;  %1067 = vmatpush.msra.mxu0 %v991_v50  ;;  %5880 = vmatpush.msra.mxu1 %v991_v50 }
  0x23   : > { %448 = vst.msk [vmem:[#allocation2 + $0x150] sm:$0x1] %vm441_vm1, %v6315_v0  ;;  %5881 = vmatpush.msra.mxu3 %v991_v50 }
  0x24   : > { %v6457_v4 = vld [vmem:[#allocation2 + $0xc0] sm:$0xff]  ;;  %449 = vst.msk [vmem:[#allocation2 + $0x168] sm:$0x1] %vm441_vm1, %v6315_v0 }
  0x25   : > { %732 = vrot.lane.b32.xlu1 %v6457_v4, %s6318_s29  ;;  %450 = vst.msk [vmem:[#allocation2 + $0xd1] sm:$0x1] %vm441_vm1, %v6315_v0  ;;  %v556_v5 = vld [vmem:[#allocation2 + $0xc1] sm:$0xff] }
  0x26   : > { %451 = vst.msk [vmem:[#allocation2 + $0xe9] sm:$0x1] %vm441_vm1, %v6315_v0 }
  0x27   : > { %452 = vst.msk [vmem:[#allocation2 + $0x101] sm:$0x1] %vm441_vm1, %v6315_v0 }
  0x28   : > { %453 = vst.msk [vmem:[#allocation2 + $0x119] sm:$0x1] %vm441_vm1, %v6315_v0 }
  0x29   : > { %454 = vst.msk [vmem:[#allocation2 + $0x131] sm:$0x1] %vm441_vm1, %v6315_v0 }
  0x2a   : > { %455 = vst.msk [vmem:[#allocation2 + $0x149] sm:$0x1] %vm441_vm1, %v6315_v0 }
  0x2b   : > { %456 = vst.msk [vmem:[#allocation2 + $0x161] sm:$0x1] %vm441_vm1, %v6315_v0 }
  0x2c   : > { %457 = vst.msk [vmem:[#allocation2 + $0x179] sm:$0x1] %vm441_vm1, %v6315_v0 }
  0x2d   : > { %439 = vst.msk [vmem:[#allocation2 + $0xb8] sm:$0x3] %vm417_vm3, %v6315_v0  ;;  %796 = vrot.lane.b32.xlu1 %v556_v5, %s6319_s30 }
  0x2e   : > { %418 = vst.msk [vmem:[#allocation2 + $0x10] sm:$0x3] %vm417_vm3, %v6315_v0 }
  0x2f   : > { %421 = vst.msk [vmem:[#allocation2 + $0x28] sm:$0x3] %vm417_vm3, %v6315_v0 }
  0x30   : > { %424 = vst.msk [vmem:[#allocation2 + $0x40] sm:$0x3] %vm417_vm3, %v6315_v0 }
  0x31   : > { %427 = vst.msk [vmem:[#allocation2 + $0x58] sm:$0x3] %vm417_vm3, %v6315_v0 }
  0x32   : > { %430 = vst.msk [vmem:[#allocation2 + $0x70] sm:$0x3] %vm417_vm3, %v6315_v0 }
  0x33   : > { %433 = vst.msk [vmem:[#allocation2 + $0x88] sm:$0x3] %vm417_vm3, %v6315_v0 }
  0x34   : > { %v509_v8 = vld [vmem:[#allocation2 + $0xb1] sm:$0xff]  ;;  %436 = vst.msk [vmem:[#allocation2 + $0xa0] sm:$0x3] %vm417_vm3, %v6315_v0 }
  0x35   : > { %v525_v9 = vld [vmem:[#allocation2 + $0xb2] sm:$0xff]  ;;  %606 = vrot.lane.b32.xlu2 %v509_v8, %s6316_s24  ;;  %476 = vst.msk [vmem:[#allocation2 + $0xc9] sm:$0xff] %vm474_vm2, %v459_v6 }
  0x36   : > { %670 = vrot.lane.b32.xlu0 %v525_v9, %s6317_s28  ;;  %477 = vst.msk [vmem:[#allocation2 + $0xd9] sm:$0xff] %vm474_vm2, %v460_v7 }
  0x37   : > { %478 = vst.msk [vmem:[#allocation2 + $0xe1] sm:$0xff] %vm474_vm2, %v461_v10 }
  0x38   : > { %479 = vst.msk [vmem:[#allocation2 + $0xf1] sm:$0xff] %vm474_vm2, %v462_v14 }
  0x39   : > { %480 = vst.msk [vmem:[#allocation2 + $0xf9] sm:$0xff] %vm474_vm2, %v463_v16 }
  0x3a   : > { %481 = vst.msk [vmem:[#allocation2 + $0x109] sm:$0xff] %vm474_vm2, %v464_v23 }
  0x3b   : > { %482 = vst.msk [vmem:[#allocation2 + $0x111] sm:$0xff] %vm474_vm2, %v465_v24 }
  0x3c   : > { %v572_v11 = vld [vmem:[#allocation2 + $0xc2] sm:$0xff]  ;;  %v573_v13 = vld [vmem:[#allocation2 + $0xca] sm:$0xff]  ;;  %483 = vst.msk [vmem:[#allocation2 + $0x121] sm:$0xff] %vm474_vm2, %v466_v26 }
  0x3d   : > { %v6504_v12 = vld [vmem:[#allocation2 + $0xc8] sm:$0xff]  ;;  %860 = vrot.lane.b32.xlu2 %v572_v11, %s6320_s13  ;;  %v6513_v17 = vld [vmem:[#allocation2 + $0xd8] sm:$0xff]  ;;  %484 = vst.msk [vmem:[#allocation2 + $0x129] sm:$0xff] %vm474_vm2, %v467_v30 }
  0x3e   : > { %734 = vrot.lane.b32.xlu1 %v6504_v12, %s6318_s29  ;;  %862 = vrot.lane.b32.xlu0 %v573_v13, %s6320_s13  ;;  %v557_v15 = vld [vmem:[#allocation2 + $0xc9] sm:$0xff]  ;;  %v558_v18 = vld [vmem:[#allocation2 + $0xd9] sm:$0xff]  ;;  %v559_v20 = vld [vmem:[#allocation2 + $0xe1] sm:$0xff]  ;;  %485 = vst.msk [vmem:[#allocation2 + $0x139] sm:$0xff] %vm474_vm2, %v468_v31 }
  0x3f   : > { %v574_v19 = vld [vmem:[#allocation2 + $0xda] sm:$0xff]  ;;  %v575_v22 = vld [vmem:[#allocation2 + $0xe2] sm:$0xff]  ;;  %v6536_v25 = vld [vmem:[#allocation2 + $0xf0] sm:$0xff]  ;;  %486 = vst.msk [vmem:[#allocation2 + $0x141] sm:$0xff] %vm474_vm2, %v469_v39 }
  0x40   : > { %v6526_v21 = vld [vmem:[#allocation2 + $0xe0] sm:$0xff]  ;;  %v576_v27 = vld [vmem:[#allocation2 + $0xf2] sm:$0xff]  ;;  %487 = vst.msk [vmem:[#allocation2 + $0x151] sm:$0xff] %vm474_vm2, %v470_v60 }
  0x41   : > { %v560_v28 = vld [vmem:[#allocation2 + $0xf1] sm:$0xff]  ;;  %v561_v32 = vld [vmem:[#allocation2 + $0xf9] sm:$0xff]  ;;  %v6569_v38 = vld [vmem:[#allocation2 + $0x109] sm:$0xff]  ;;  %488 = vst.msk [vmem:[#allocation2 + $0x159] sm:$0xff] %vm474_vm2, %v471_v2 }
  0x42   : > { %v6544_v29 = vld [vmem:[#allocation2 + $0xf8] sm:$0xff]  ;;  %v6589_v44 = vld [vmem:[#allocation2 + $0x108] sm:$0xff]  ;;  %v6613_v51 = vld [vmem:[#allocation2 + $0x110] sm:$0xff]  ;;  %490 = vst.msk [vmem:[#allocation2 + $0x171] sm:$0xff] %vm474_vm2, %v473_v33 }
  0x43   : > { %v577_v37 = vld [vmem:[#allocation2 + $0xfa] sm:$0xff]  ;;  %v6591_v45 = vld [vmem:[#allocation2 + $0x10a] sm:$0xff]  ;;  %v6633_v63 = vld [vmem:[#allocation2 + $0x112] sm:$0xff] }
  0x44   : > { %v6593_v46 = vld [vmem:[#allocation2 + $0x121] sm:$0xff]  ;;  %v563_v62 = vld [vmem:[#allocation2 + $0x111] sm:$0xff]  ;;  %v6647_v10 = vld [vmem:[#allocation2 + $0x129] sm:$0xff] }
  0x45   : > { %798 = vrot.lane.b32.xlu2 %v557_v15, %s6319_s30  ;;  %v6619_v54 = vld [vmem:[#allocation2 + $0x122] sm:$0xff]  ;;  %v6621_v55 = vld [vmem:[#allocation2 + $0x138] sm:$0xff] }
  0x46   : > { %608 = vrot.lane.b32.xlu1 %v556_v5, %s6316_s24  ;;  %736 = vrot.lane.b32.xlu0 %v6513_v17, %s6318_s29  ;;  %v6623_v56 = vld [vmem:[#allocation2 + $0x139] sm:$0xff]  ;;  %v6674_v31 = vld [vmem:[#allocation2 + $0x141] sm:$0xff] }
  0x47   : > { %v582_v9 = vld [vmem:[#allocation2 + $0x13a] sm:$0xff] }
  0x48   : > { %v6659_v16 = vld [vmem:[#allocation2 + $0x120] sm:$0xff] }
  0x4d   : > { %672 = vrot.lane.b32.xlu2 %v572_v11, %s6317_s28  ;;  %v6650_v11 = vld [vmem:[#allocation2 + $0x12a] sm:$0xff] }
  0x4e   : > { %800 = vrot.lane.b32.xlu1 %v558_v18, %s6319_s30  ;;  %610 = vrot.lane.b32.xlu0 %v557_v15, %s6316_s24 }
  0x55   : > { %864 = vrot.lane.b32.xlu2 %v574_v19, %s6320_s13 }
  0x56   : > { %674 = vrot.lane.b32.xlu1 %v573_v13, %s6317_s28  ;;  %802 = vrot.lane.b32.xlu0 %v559_v20, %s6319_s30  ;;  %v472_v13 = vld [vmem:[%s6430_s27 + $0x70] sm:$0xff] }
  0x57   : > { %489 = vst.msk [vmem:[#allocation2 + $0x169] sm:$0xff] %vm474_vm2, %v472_v13 }
  0x5d   : > { %738 = vrot.lane.b32.xlu2 %v6526_v21, %s6318_s29 }
  0x5e   : > { %866 = vrot.lane.b32.xlu1 %v575_v22, %s6320_s13  ;;  %676 = vrot.lane.b32.xlu0 %v574_v19, %s6317_s28 }
  0x65   : > { %612 = vrot.lane.b32.xlu2 %v558_v18, %s6316_s24  ;;  %v493_v18 = vld [vmem:[#allocation2 + $0xb0] sm:$0xff] }
  0x66   : > { %740 = vrot.lane.b32.xlu1 %v6536_v25, %s6318_s29  ;;  %868 = vrot.lane.b32.xlu0 %v576_v27, %s6320_s13 }
  0x6d   : > { %804 = vrot.lane.b32.xlu2 %v560_v28, %s6319_s30 }
  0x6e   : > { %614 = vrot.lane.b32.xlu1 %v559_v20, %s6316_s24  ;;  %742 = vrot.lane.b32.xlu0 %v6544_v29, %s6318_s29 }
  0x75   : > { %678 = vrot.lane.b32.xlu2 %v575_v22, %s6317_s28 }
  0x76   : > { %806 = vrot.lane.b32.xlu1 %v561_v32, %s6319_s30  ;;  %616 = vrot.lane.b32.xlu0 %v560_v28, %s6316_s24  ;;  %v6671_v28 = vld [vmem:[#allocation2 + $0x140] sm:$0xff] }
  0x7d   : > { %870 = vrot.lane.b32.xlu2 %v577_v37, %s6320_s13 }
  0x7e   : > { %680 = vrot.lane.b32.xlu1 %v576_v27, %s6317_s28  ;;  %808 = vrot.lane.b32.xlu0 %v6569_v38, %s6319_s30 }
  0x85   : > { %744 = vrot.lane.b32.xlu2 %v6589_v44, %s6318_s29 }
  0x86   : > { %872 = vrot.lane.b32.xlu1 %v6591_v45, %s6320_s13  ;;  %624 = vrot.lane.b32.xlu0 %v6593_v46, %s6316_s24 }
  0x87   : > { %v605_v53 = vpop.permute.xlu0 %604 }
  0x88   : > { %v908_v0 = vsel %vm474_vm2, %v492_v59, %v605_v53  ;;  %v554_v53 = vld [vmem:[#allocation2 + $0x168] sm:$0xff] }
  0x8d   : > { %618 = vrot.lane.b32.xlu2 %v561_v32, %s6316_s24  ;;  %v6677_v32 = vld [vmem:[#allocation2 + $0x142] sm:$0xff] }
  0x8e   : > { %682 = vrot.lane.b32.xlu1 %v577_v37, %s6317_s28  ;;  %746 = vrot.lane.b32.xlu0 %v6613_v51, %s6318_s29 }
  0x8f   : > { %v607_v52 = vpop.permute.xlu2 %606  ;;  %v669_v61 = vpop.permute.xlu0 %668 }
  0x90   : > { %v925_v1 = vsel %vm924_vm4, %v908_v0, %v669_v61  ;;  %v909_v19 = vsel %vm474_vm2, %v493_v18, %v607_v52 }
  0x95   : > { %688 = vrot.lane.b32.xlu2 %v6619_v54, %s6317_s28 }
  0x96   : > { %752 = vrot.lane.b32.xlu1 %v6621_v55, %s6318_s29  ;;  %816 = vrot.lane.b32.xlu0 %v6623_v56, %s6319_s30 }
  0x97   : > { %v861_v57 = vpop.permute.xlu2 %860  ;;  %v733_v58 = vpop.permute.xlu1 %732 }
  0x98   : > { %v942_v5 = vsel %vm941_vm5, %v925_v1, %v733_v58 }
  0x9d   : > { %810 = vrot.lane.b32.xlu2 %v563_v62, %s6319_s30 }
  0x9e   : > { %874 = vrot.lane.b32.xlu1 %v6633_v63, %s6320_s13  ;;  %620 = vrot.lane.b32.xlu0 %v6569_v38, %s6316_s24  ;;  %v522_v38 = vld [vmem:[#allocation2 + $0x151] sm:$0xff] }
  0x9f   : > { %v799_v3 = vpop.permute.xlu2 %798  ;;  %v797_v6 = vpop.permute.xlu1 %796 }
  0xa0   : > { %v959_v7 = vsel %vm958_vm6, %v942_v5, %v797_v6  ;;  %v586_v6 = vld [vmem:[#allocation2 + $0x16a] sm:$0xff] }
  0xa1   : > { %v975_v8 = vsel %vm414_vm0, %v959_v7, %v861_v57 }
  0xa2   : > { %5732 = vmatmul.msk.f32.vlgmr.msra.gmra.mxu0 %vm1003_vm7, %v975_v8 }
  0xa5   : > { %880 = vrot.lane.b32.xlu2 %v582_v9, %s6320_s13 }
  0xa6   : > { %626 = vrot.lane.b32.xlu1 %v6647_v10, %s6316_s24  ;;  %690 = vrot.lane.b32.xlu0 %v6650_v11, %s6317_s28 }
  0xa7   : > { %v673_v14 = vpop.permute.xlu2 %672 }
  0xa8   : > { %v671_v15 = vpop.permute.xlu0 %670 }
  0xa9   : > { %v926_v20 = vsel %vm924_vm4, %v909_v19, %v671_v15 }
  0xad   : > { %684 = vrot.lane.b32.xlu2 %v6591_v45, %s6317_s28 }
  0xae   : > { %748 = vrot.lane.b32.xlu1 %v6659_v16, %s6318_s29  ;;  %812 = vrot.lane.b32.xlu0 %v6593_v46, %s6319_s30 }
  0xaf   : > { %v865_v22 = vpop.permute.xlu2 %864 }
  0xb0   : > { %v735_v23 = vpop.permute.xlu1 %734  ;;  %v863_v26 = vpop.permute.xlu0 %862 }
  0xb1   : > { %v943_v24 = vsel %vm941_vm5, %v926_v20, %v735_v23 }
  0xb2   : > { %v960_v27 = vsel %vm958_vm6, %v943_v24, %v799_v3  ;;  %v555_v24 = vld [vmem:[#allocation2 + $0x170] sm:$0xff] }
  0xb3   : > { %v976_v30 = vsel %vm414_vm0, %v960_v27, %v863_v26  ;;  %v539_v26 = vld [vmem:[#allocation2 + $0x15a] sm:$0xff]  ;;  %v571_v27 = vld [vmem:[#allocation2 + $0x171] sm:$0xff] }
  0xb4   : > { %5733 = vmatmul.msk.f32.gmra.mxu0 %vm1003_vm7, %v976_v30 }
  0xb5   : > { %754 = vrot.lane.b32.xlu2 %v6671_v28, %s6318_s29 }
  0xb6   : > { %818 = vrot.lane.b32.xlu1 %v6674_v31, %s6319_s30  ;;  %882 = vrot.lane.b32.xlu0 %v6677_v32, %s6320_s13 }
  0xb7   : > { %v739_v34 = vpop.permute.xlu2 %738 }
  0xb8   : > { %v609_v35 = vpop.permute.xlu1 %608  ;;  %v737_v36 = vpop.permute.xlu0 %736 }
  0xb9   : > { %v910_v37 = vsel %vm474_vm2, %v6457_v4, %v609_v35  ;;  %v538_v4 = vld [vmem:[#allocation2 + $0x152] sm:$0xff] }
  0xba   : > { %v927_v39 = vsel %vm924_vm4, %v910_v37, %v673_v14  ;;  %v523_v14 = vld [vmem:[#allocation2 + $0x159] sm:$0xff] }
  0xbb   : > { %v944_v40 = vsel %vm941_vm5, %v927_v39, %v737_v36  ;;  %v6751_v35 = vld [vmem:[#allocation2 + $0x158] sm:$0xff] }
  0xbd   : > { %876 = vrot.lane.b32.xlu2 %v6619_v54, %s6320_s13  ;;  %v6706_v54 = vld [vmem:[#allocation2 + $0x128] sm:$0xff] }
  0xbe   : > { %632 = vrot.lane.b32.xlu1 %v522_v38, %s6316_s24  ;;  %622 = vrot.lane.b32.xlu0 %v563_v62, %s6316_s24  ;;  %v570_v62 = vld [vmem:[#allocation2 + $0x169] sm:$0xff] }
  0xbf   : > { %v613_v41 = vpop.permute.xlu2 %612 }
  0xc0   : > { %v801_v42 = vpop.permute.xlu1 %800  ;;  %v611_v45 = vpop.permute.xlu0 %610  ;;  %v912_v61 = vsel %vm474_vm2, %v6513_v17, %v613_v41  ;;  %v587_v41 = vld [vmem:[#allocation2 + $0x172] sm:$0xff] }
  0xc1   : > { %v961_v43 = vsel %vm958_vm6, %v944_v40, %v801_v42  ;;  %v911_v47 = vsel %vm474_vm2, %v6504_v12, %v611_v45 }
  0xc2   : > { %v977_v46 = vsel %vm414_vm0, %v961_v43, %v865_v22 }
  0xc3   : > { %5734 = vmatmul.msk.f32.gmra.mxu0 %vm1003_vm7, %v977_v46 }
  0xc5   : > { %696 = vrot.lane.b32.xlu2 %v538_v4, %s6317_s28 }
  0xc6   : > { %628 = vrot.lane.b32.xlu1 %v6623_v56, %s6316_s24  ;;  %686 = vrot.lane.b32.xlu0 %v6633_v63, %s6317_s28  ;;  %v6718_v63 = vld [vmem:[#allocation2 + $0x150] sm:$0xff] }
  0xc7   : > { %v805_v48 = vpop.permute.xlu2 %804 }
  0xc8   : > { %v675_v49 = vpop.permute.xlu1 %674  ;;  %v803_v50 = vpop.permute.xlu0 %802 }
  0xc9   : > { %v928_v52 = vsel %vm924_vm4, %v911_v47, %v675_v49 }
  0xca   : > { %v945_v57 = vsel %vm941_vm5, %v928_v52, %v739_v34 }
  0xcb   : > { %v962_v12 = vsel %vm958_vm6, %v945_v57, %v803_v50 }
  0xcd   : > { %760 = vrot.lane.b32.xlu2 %v554_v53, %s6318_s29 }
  0xce   : > { %692 = vrot.lane.b32.xlu1 %v582_v9, %s6317_s28  ;;  %750 = vrot.lane.b32.xlu0 %v6706_v54, %s6318_s29 }
  0xcf   : > { %v679_v56 = vpop.permute.xlu2 %678 }
  0xd0   : > { %v867_v58 = vpop.permute.xlu1 %866  ;;  %v677_v59 = vpop.permute.xlu0 %676 }
  0xd1   : > { %v978_v60 = vsel %vm414_vm0, %v962_v12, %v867_v58  ;;  %v929_v0 = vsel %vm924_vm4, %v912_v61, %v677_v59 }
  0xd2   : > { %5735 = vmatmul.msk.f32.gmra.mxu0 %vm1003_vm7, %v978_v60 }
  0xd5   : > { %824 = vrot.lane.b32.xlu2 %v570_v62, %s6319_s30 }
  0xd6   : > { %756 = vrot.lane.b32.xlu1 %v6718_v63, %s6318_s29  ;;  %814 = vrot.lane.b32.xlu0 %v6647_v10, %s6319_s30 }
  0xd7   : > { %v871_v1 = vpop.permute.xlu2 %870 }
  0xd8   : > { %v741_v2 = vpop.permute.xlu1 %740  ;;  %v869_v5 = vpop.permute.xlu0 %868 }
  0xd9   : > { %v946_v3 = vsel %vm941_vm5, %v929_v0, %v741_v2 }
  0xda   : > { %v963_v17 = vsel %vm958_vm6, %v946_v3, %v805_v48 }
  0xdb   : > { %v979_v7 = vsel %vm414_vm0, %v963_v17, %v869_v5 }
  0xdc   : > { %5736 = vmatmul.msk.f32.gmra.mxu0 %vm1003_vm7, %v979_v7 }
  0xdd   : > { %888 = vrot.lane.b32.xlu2 %v586_v6, %s6320_s13 }
  0xde   : > { %820 = vrot.lane.b32.xlu1 %v522_v38, %s6319_s30  ;;  %884 = vrot.lane.b32.xlu0 %v538_v4, %s6320_s13 }
  0xdf   : > { %v745_v8 = vpop.permute.xlu2 %744 }
  0xe0   : > { %v615_v9 = vpop.permute.xlu1 %614  ;;  %v743_v10 = vpop.permute.xlu0 %742 }
  0xe1   : > { %v913_v13 = vsel %vm474_vm2, %v6526_v21, %v615_v9 }
  0xe2   : > { %v930_v15 = vsel %vm924_vm4, %v913_v13, %v679_v56 }
  0xe3   : > { %v947_v18 = vsel %vm941_vm5, %v930_v15, %v743_v10 }
  0xe5   : > { %878 = vrot.lane.b32.xlu2 %v6650_v11, %s6320_s13 }
  0xe6   : > { %634 = vrot.lane.b32.xlu1 %v523_v14, %s6316_s24  ;;  %630 = vrot.lane.b32.xlu0 %v6674_v31, %s6316_s24 }
  0xe7   : > { %v619_v19 = vpop.permute.xlu2 %618 }
  0xe8   : > { %v807_v20 = vpop.permute.xlu1 %806  ;;  %v617_v23 = vpop.permute.xlu0 %616  ;;  %v915_v46 = vsel %vm474_vm2, %v6544_v29, %v619_v19 }
  0xe9   : > { %v964_v22 = vsel %vm958_vm6, %v947_v18, %v807_v20  ;;  %v914_v11 = vsel %vm474_vm2, %v6536_v25, %v617_v23 }
  0xea   : > { %v980_v21 = vsel %vm414_vm0, %v964_v22, %v871_v1 }
  0xeb   : > { %5737 = vmatmul.msk.f32.gmra.mxu0 %vm1003_vm7, %v980_v21 }
  0xed   : > { %698 = vrot.lane.b32.xlu2 %v539_v26, %s6317_s28 }
  0xee   : > { %762 = vrot.lane.b32.xlu1 %v555_v24, %s6318_s29  ;;  %826 = vrot.lane.b32.xlu0 %v571_v27, %s6319_s30 }
  0xef   : > { %v689_v30 = vpop.permute.xlu2 %688 }
  0xf0   : > { %v681_v31 = vpop.permute.xlu1 %680  ;;  %v809_v33 = vpop.permute.xlu0 %808 }
  0xf1   : > { %v931_v34 = vsel %vm924_vm4, %v914_v11, %v681_v31 }
  0xf2   : > { %v948_v36 = vsel %vm941_vm5, %v931_v34, %v745_v8 }
  0xf3   : > { %v965_v25 = vsel %vm958_vm6, %v948_v36, %v809_v33 }
  0xf5   : > { %694 = vrot.lane.b32.xlu2 %v6677_v32, %s6317_s28 }
  0xf6   : > { %758 = vrot.lane.b32.xlu1 %v6751_v35, %s6318_s29  ;;  %822 = vrot.lane.b32.xlu0 %v523_v14, %s6319_s30 }
  0xf7   : > { %v811_v37 = vpop.permute.xlu2 %810 }
  0xf8   : > { %v873_v38 = vpop.permute.xlu1 %872  ;;  %v625_v39 = vpop.permute.xlu0 %624 }
  0xf9   : > { %v981_v40 = vsel %vm414_vm0, %v965_v25, %v873_v38  ;;  %v918_v32 = vsel %vm474_vm2, %v6659_v16, %v625_v39 }
  0xfa   : > { %5738 = vmatmul.msk.f32.gmra.mxu0 %vm1003_vm7, %v981_v40  ;;  %v935_v47 = vsel %vm924_vm4, %v918_v32, %v689_v30 }
  0xfd   : > { %890 = vrot.lane.b32.xlu2 %v587_v41, %s6320_s13 }
  0xfe   : > { %886 = vrot.lane.b32.xlu1 %v539_v26, %s6320_s13 }
  0xff   : > { %v881_v42 = vpop.permute.xlu2 %880 }
 0x100   : > { %v683_v43 = vpop.permute.xlu1 %682  ;;  %v747_v45 = vpop.permute.xlu0 %746 }
 0x101   : > { %v932_v52 = vsel %vm924_vm4, %v915_v46, %v683_v43 }
 0x102   : > { %v949_v16 = vsel %vm941_vm5, %v932_v52, %v747_v45 }
 0x103   : > { %v966_v29 = vsel %vm958_vm6, %v949_v16, %v811_v37 }
 0x107   : > { %v685_v4 = vpop.permute.xlu2 %684 }
 0x108   : > { %v753_v48 = vpop.permute.xlu1 %752  ;;  %v817_v50 = vpop.permute.xlu0 %816 }
 0x109   : > { %v952_v49 = vsel %vm941_vm5, %v935_v47, %v753_v48 }
 0x10a   : > { %v969_v53 = vsel %vm958_vm6, %v952_v49, %v817_v50 }
 0x10b   : > { %v985_v57 = vsel %vm414_vm0, %v969_v53, %v881_v42 }
 0x10c   : > { %5742 = vmatmul.msk.f32.vlgmr.msra.gmra.mxu1 %vm1003_vm7, %v985_v57 }
 0x10f   : > { %v755_v12 = vpop.permute.xlu2 %754 }
 0x110   : > { %v875_v56 = vpop.permute.xlu1 %874  ;;  %v621_v58 = vpop.permute.xlu0 %620 }
 0x111   : > { %v982_v59 = vsel %vm414_vm0, %v966_v29, %v875_v56  ;;  %v916_v0 = vsel %vm474_vm2, %v6589_v44, %v621_v58 }
 0x112   : > { %5739 = vmatmul.msk.f32.gmra.mxu0 %vm1003_vm7, %v982_v59  ;;  %v933_v2 = vsel %vm924_vm4, %v916_v0, %v685_v4 }
 0x117   : > { %v877_v60 = vpop.permute.xlu2 %876 }
 0x118   : > { %v627_v61 = vpop.permute.xlu1 %626  ;;  %v691_v62 = vpop.permute.xlu0 %690 }
 0x119   : > { %v919_v6 = vsel %vm474_vm2, %v6706_v54, %v627_v61 }
 0x11a   : > { %v936_v9 = vsel %vm924_vm4, %v919_v6, %v691_v62 }
 0x11b   : > { %v953_v44 = vsel %vm941_vm5, %v936_v9, %v755_v12 }
 0x11f   : > { %v697_v1 = vpop.permute.xlu2 %696 }
 0x120   : > { %v749_v3 = vpop.permute.xlu1 %748  ;;  %v813_v17 = vpop.permute.xlu0 %812 }
 0x121   : > { %v950_v5 = vsel %vm941_vm5, %v933_v2, %v749_v3 }
 0x122   : > { %v967_v7 = vsel %vm958_vm6, %v950_v5, %v813_v17 }
 0x123   : > { %v983_v8 = vsel %vm414_vm0, %v967_v7, %v877_v60 }
 0x124   : > { %5740 = vmatmul.msk.f32.gmra.mxu0 %vm1003_vm7, %v983_v8 }
 0x127   : > { %v761_v10 = vpop.permute.xlu2 %760 }
 0x128   : > { %v819_v13 = vpop.permute.xlu1 %818  ;;  %v883_v15 = vpop.permute.xlu0 %882 }
 0x129   : > { %v970_v14 = vsel %vm958_vm6, %v953_v44, %v819_v13 }
 0x12a   : > { %v986_v18 = vsel %vm414_vm0, %v970_v14, %v883_v15 }
 0x12b   : > { %5743 = vmatmul.msk.f32.gmra.mxu1 %vm1003_vm7, %v986_v18 }
 0x12f   : > { %v825_v54 = vpop.permute.xlu2 %824 }
 0x130   : > { %v633_v19 = vpop.permute.xlu1 %632  ;;  %v623_v22 = vpop.permute.xlu0 %622 }
 0x131   : > { %v922_v20 = vsel %vm474_vm2, %v6718_v63, %v633_v19  ;;  %v917_v63 = vsel %vm474_vm2, %v6613_v51, %v623_v22 }
 0x132   : > { %v939_v23 = vsel %vm924_vm4, %v922_v20, %v697_v1  ;;  %v6827_v1 = vpop.f32.mrf.mxu0 }
 0x133   : > { %v956_v21 = vsel %vm941_vm5, %v939_v23, %v761_v10  ;;  %v1117_v9 = vsel %vm474_vm2, %v6827_v1, 0.0 }
 0x134   : > { %v973_v24 = vsel %vm958_vm6, %v956_v21, %v825_v54 }
 0x137   : > { %v889_v26 = vpop.permute.xlu2 %888 }
 0x138   : > { %v629_v27 = vpop.permute.xlu1 %628  ;;  %v989_v11 = vsel %vm414_vm0, %v973_v24, %v889_v26  ;;  %v687_v30 = vpop.permute.xlu0 %686 }
 0x139   : > { %5746 = vmatmul.msk.f32.vlgmr.msra.gmra.mxu3 %vm1003_vm7, %v989_v11  ;;  %v934_v36 = vsel %vm924_vm4, %v917_v63, %v687_v30  ;;  %v920_v42 = vsel %vm474_vm2, %v6621_v55, %v629_v27 }
 0x13a   : > { %v6829_v2 = vpop.f32.mrf.mxu0 }
 0x13b   : > { %v1118_v8 = vsel %vm474_vm2, %v6829_v2, 0.0 }
 0x13c   : > { %v1119_v44 = vadd.f32 %v1118_v8, %v1117_v9 }
 0x13f   : > { %v879_v34 = vpop.permute.xlu2 %878 }
 0x140   : > { %v693_v31 = vpop.permute.xlu1 %692  ;;  %v751_v33 = vpop.permute.xlu0 %750 }
 0x141   : > { %v951_v37 = vsel %vm941_vm5, %v934_v36, %v751_v33  ;;  %v937_v43 = vsel %vm924_vm4, %v920_v42, %v693_v31 }
 0x142   : > { %v6831_v3 = vpop.f32.mrf.mxu0 }
 0x143   : > { %v1120_v10 = vsel %vm474_vm2, %v6831_v3, 0.0 }
 0x144   : > { %v1121_v14 = vadd.f32 %v1120_v10, %v1119_v44 }
 0x147   : > { %v699_v41 = vpop.permute.xlu2 %698 }
 0x148   : > { %v757_v25 = vpop.permute.xlu1 %756  ;;  %v815_v38 = vpop.permute.xlu0 %814 }
 0x149   : > { %v968_v39 = vsel %vm958_vm6, %v951_v37, %v815_v38  ;;  %v954_v51 = vsel %vm941_vm5, %v937_v43, %v757_v25  ;;  %v6321_v38 = vmov 128.0  }
 0x14a   : > { %v984_v40 = vsel %vm414_vm0, %v968_v39, %v879_v34  ;;  %6295 = vrcp.f32 %v6321_v38 }
 0x14b   : > { %5741 = vmatmul.msk.f32.gmra.mxu0 %vm1003_vm7, %v984_v40 }
 0x14f   : > { %v695_v47 = vpop.permute.xlu2 %694  ;;  %v6833_v5 = vpop.f32.mrf.mxu0 }
 0x150   : > { %v821_v45 = vpop.permute.xlu1 %820  ;;  %v885_v46 = vpop.permute.xlu0 %884  ;;  %v1122_v13 = vsel %vm474_vm2, %v6833_v5, 0.0 }
 0x151   : > { %v971_v32 = vsel %vm958_vm6, %v954_v51, %v821_v45  ;;  %v1123_v54 = vadd.f32 %v1122_v13, %v1121_v14  ;;  %v6296_v43 = vpop.eup %6295 }
 0x152   : > { %v987_v4 = vsel %vm414_vm0, %v971_v32, %v885_v46  ;;  %v1155_v46 = vmul.f32 128.0, %v6296_v43  ;;  %vm1159_vm8 = vweird.f32 %v6296_v43 }
 0x153   : > { %5744 = vmatmul.msk.f32.gmra.mxu1 %vm1003_vm7, %v987_v4 }
 0x157   : > { %v891_v53 = vpop.permute.xlu2 %890 }
 0x158   : > { %v635_v48 = vpop.permute.xlu1 %634  ;;  %v631_v49 = vpop.permute.xlu0 %630 }
 0x159   : > { %v923_v50 = vsel %vm474_vm2, %v6751_v35, %v635_v48  ;;  %v921_v58 = vsel %vm474_vm2, %v6671_v28, %v631_v49  ;;  %v6835_v28 = vpop.f32.mrf.mxu0 }
 0x15a   : > { %v940_v55 = vsel %vm924_vm4, %v923_v50, %v699_v41  ;;  %v938_v59 = vsel %vm924_vm4, %v921_v58, %v695_v47  ;;  %v1124_v18 = vsel %vm474_vm2, %v6835_v28, 0.0 }
 0x15b   : > { %v1125_v22 = vadd.f32 %v1124_v18, %v1123_v54 }
 0x160   : > { %v763_v52 = vpop.permute.xlu1 %762  ;;  %v827_v16 = vpop.permute.xlu0 %826 }
 0x161   : > { %v957_v57 = vsel %vm941_vm5, %v940_v55, %v763_v52  ;;  %v1156_v55 = vsub.f32 1.0, %v1155_v46 }
 0x162   : > { %v974_v12 = vsel %vm958_vm6, %v957_v57, %v827_v16 }
 0x163   : > { %v990_v56 = vsel %vm414_vm0, %v974_v12, %v891_v53  ;;  %v1157_v57 = vmul.f32 %v6296_v43, %v1156_v55 }
 0x164   : > { %5747 = vmatmul.msk.f32.gmra.mxu3 %vm1003_vm7, %v990_v56 }
 0x165   : > { %v1158_v56 = vadd.f32 %v6296_v43, %v1157_v57 }
 0x168   : > { %v759_v29 = vpop.permute.xlu1 %758  ;;  %v823_v60 = vpop.permute.xlu0 %822 }
 0x169   : > { %v955_v35 = vsel %vm941_vm5, %v938_v59, %v759_v29  ;;  %v6837_v17 = vpop.f32.mrf.mxu0  ;;  %v6888_v59 = vsel %vm1159_vm8, %v6296_v43, %v1158_v56 }
 0x16a   : > { %v972_v61 = vsel %vm958_vm6, %v955_v35, %v823_v60  ;;  %v1126_v20 = vsel %vm474_vm2, %v6837_v17, 0.0 }
 0x16b   : > { %v1127_v21 = vadd.f32 %v1126_v20, %v1125_v22 }
 0x170   : > { %v887_v62 = vpop.permute.xlu1 %886 }
 0x171   : > { %v988_v0 = vsel %vm414_vm0, %v972_v61, %v887_v62 }
 0x172   : > { %5745 = vmatmul.msk.f32.gmra.mxu1 %vm1003_vm7, %v988_v0 }
 0x177   : > { %v6839_v6 = vpop.f32.mrf.mxu0 }
 0x178   : > { %v1128_v23 = vsel %vm474_vm2, %v6839_v6, 0.0 }
 0x179   : > { %v1129_v26 = vadd.f32 %v1128_v23, %v1127_v21 }
 0x189   : > { %v6855_v19 = vpop.f32.mrf.mxu1 }
 0x18a   : > { %v1136_v36 = vsel %vm474_vm2, %v6855_v19, 0.0 }
 0x18f   : > { %v6841_v7 = vpop.f32.mrf.mxu0 }
 0x190   : > { %v1130_v24 = vsel %vm474_vm2, %v6841_v7, 0.0 }
 0x191   : > { %v1131_v30 = vadd.f32 %v1130_v24, %v1129_v26 }
 0x1a1   : > { %v6851_v15 = vpop.f32.mrf.mxu0 }
 0x1a2   : > { %v1132_v11 = vsel %vm474_vm2, %v6851_v15, 0.0 }
 0x1a3   : > { %v1133_v34 = vadd.f32 %v1132_v11, %v1131_v30 }
 0x1a8   : > { %v6867_v31 = vpop.f32.mrf.mxu1 }
 0x1a9   : > { %v1138_v40 = vsel %vm474_vm2, %v6867_v31, 0.0 }
 0x1bc   : > { %v6875_v39 = vpop.f32.mrf.mxu3 }
 0x1bd   : > { %v1144_v48 = vsel %vm474_vm2, %v6875_v39, 0.0 }
 0x1c8   : > { %v6863_v27 = vpop.f32.mrf.mxu0 }
 0x1c9   : > { %v1134_v33 = vsel %vm474_vm2, %v6863_v27, 0.0 }
 0x1ca   : > { %v1135_v63 = vadd.f32 %v1134_v33, %v1133_v34 }
 0x1cc   : > { %v1137_v25 = vadd.f32 %v1136_v36, %v1135_v63 }
 0x1ce   : > { %v1139_v41 = vadd.f32 %v1138_v40, %v1137_v25 }
 0x1d0   : > { %v6873_v37 = vpop.f32.mrf.mxu1 }
 0x1d1   : > { %v1140_v42 = vsel %vm474_vm2, %v6873_v37, 0.0 }
 0x1d2   : > { %v1141_v51 = vadd.f32 %v1140_v42, %v1139_v41 }
 0x1e7   : > { %v6882_v4 = vpop.f32.mrf.mxu3 }
 0x1e8   : > { %v1146_v50 = vsel %vm474_vm2, %v6882_v4, 0.0 }
 0x1ef   : > { %v1108_v45 = vpop.f32.mrf.mxu1 }
 0x1f0   : > { %v1142_v32 = vsel %vm474_vm2, %v1108_v45, 0.0 }
 0x1f1   : > { %v1143_v47 = vadd.f32 %v1142_v32, %v1141_v51 }
 0x1f3   : > { %v1145_v49 = vadd.f32 %v1144_v48, %v1143_v47 }
 0x1f5   : > { %v1147_v52 = vadd.f32 %v1146_v50, %v1145_v49 }
 0x1f7   : > { %v1148_v53 = vrot.slane %v1147_v52, 4 }
 0x1f9   : > { %v1149_v16 = vadd.f32 %v1148_v53, %v1147_v52 }
 0x1fb   : > { %v1150_v12 = vrot.slane %v1149_v16, 2 }
 0x1fd   : > { %v1151_v29 = vadd.f32 %v1150_v12, %v1149_v16 }
 0x1ff   : > { %v1152_v58 = vrot.slane %v1151_v29, 1 }
 0x201   : > { %v1153_v35 = vadd.f32 %v1152_v58, %v1151_v29 }
 0x203   : > { %v1161_v60 = vmul.f32 %v6888_v59, %v1153_v35 }
 0x205   : > { %v6892_v61 = vsub.f32 %v6827_v1, %v1161_v60  ;;  %v6895_v62 = vsub.f32 %v6829_v2, %v1161_v60  ;;  %v6898_v0 = vsub.f32 %v6831_v3, %v1161_v60  ;;  %v6901_v8 = vsub.f32 %v6833_v5, %v1161_v60 }
 0x206   : > { %v6908_v44 = vsub.f32 %v6835_v28, %v1161_v60  ;;  %v6913_v2 = vsub.f32 %v6837_v17, %v1161_v60  ;;  %v6920_v18 = vsub.f32 %v6839_v6, %v1161_v60  ;;  %v6926_v17 = vsub.f32 %v6841_v7, %v1161_v60 }
 0x207   : > { %v1178_v9 = vmul.f32 %v6892_v61, %v6892_v61  ;;  %v1179_v10 = vmul.f32 %v6895_v62, %v6895_v62  ;;  %v1180_v1 = vmul.f32 %v6898_v0, %v6898_v0  ;;  %v1181_v3 = vmul.f32 %v6901_v8, %v6901_v8 }
 0x208   : > { %v1182_v28 = vmul.f32 %v6908_v44, %v6908_v44  ;;  %v1183_v22 = vmul.f32 %v6913_v2, %v6913_v2  ;;  %v6932_v24 = vsub.f32 %v6851_v15, %v1161_v60  ;;  %v1184_v6 = vmul.f32 %v6920_v18, %v6920_v18 }
 0x209   : > { %v1194_v5 = vsel %vm474_vm2, %v1178_v9, 0.0  ;;  %v1195_v13 = vsel %vm474_vm2, %v1179_v10, 0.0  ;;  %v1197_v54 = vsel %vm474_vm2, %v1180_v1, 0.0  ;;  %v1199_v23 = vsel %vm474_vm2, %v1181_v3, 0.0 }
 0x20a   : > { %v1196_v14 = vadd.f32 %v1195_v13, %v1194_v5  ;;  %v1201_v26 = vsel %vm474_vm2, %v1182_v28, 0.0  ;;  %v6938_v30 = vsub.f32 %v6863_v27, %v1161_v60  ;;  %v1185_v7 = vmul.f32 %v6926_v17, %v6926_v17 }
 0x20b   : > { %v1203_v33 = vsel %vm474_vm2, %v1183_v22, 0.0  ;;  %v6944_v63 = vsub.f32 %v6855_v19, %v1161_v60  ;;  %v1186_v15 = vmul.f32 %v6932_v24, %v6932_v24  ;;  %v1205_v36 = vsel %vm474_vm2, %v1184_v6, 0.0 }
 0x20c   : > { %v1198_v20 = vadd.f32 %v1197_v54, %v1196_v14  ;;  %v6950_v38 = vsub.f32 %v6867_v31, %v1161_v60  ;;  %v1187_v27 = vmul.f32 %v6938_v30, %v6938_v30  ;;  %v1207_v40 = vsel %vm474_vm2, %v1185_v7, 0.0 }
 0x20d   : > { %v6956_v42 = vsub.f32 %v6873_v37, %v1161_v60  ;;  %v1188_v19 = vmul.f32 %v6944_v63, %v6944_v63  ;;  %v1209_v43 = vsel %vm474_vm2, %v1186_v15, 0.0  ;;  %v1175_v32 = vsub.f32 %v1108_v45, %v1161_v60 }
 0x20e   : > { %v1200_v21 = vadd.f32 %v1199_v23, %v1198_v20  ;;  %v1189_v31 = vmul.f32 %v6950_v38, %v6950_v38  ;;  %v1211_v46 = vsel %vm474_vm2, %v1187_v27, 0.0  ;;  %v6965_v48 = vsub.f32 %v6875_v39, %v1161_v60 }
 0x20f   : > { %v1190_v37 = vmul.f32 %v6956_v42, %v6956_v42  ;;  %v1213_v49 = vsel %vm474_vm2, %v1188_v19, 0.0  ;;  %v6971_v55 = vsub.f32 %v6882_v4, %v1161_v60  ;;  %v1191_v52 = vmul.f32 %v1175_v32, %v1175_v32 }
 0x210   : > { %v1202_v11 = vadd.f32 %v1201_v26, %v1200_v21  ;;  %v1215_v45 = vsel %vm474_vm2, %v1189_v31, 0.0  ;;  %v1192_v57 = vmul.f32 %v6965_v48, %v6965_v48  ;;  %v6986_v26 = vld [vmem:[%s10046_s9] ss:$0 sm:$0xff] }
 0x211   : > { %v1217_v16 = vsel %vm474_vm2, %v1190_v37, 0.0  ;;  %v1193_v12 = vmul.f32 %v6971_v55, %v6971_v55  ;;  %v1219_v56 = vsel %vm474_vm2, %v1191_v52, 0.0  ;;  %v1446_v52 = vld [vmem:[#allocation2 + $0xb1] sm:$0xff] }
 0x212   : > { %v1204_v34 = vadd.f32 %v1203_v33, %v1202_v11  ;;  %v1221_v58 = vsel %vm474_vm2, %v1192_v57, 0.0 }
 0x213   : > { %v1223_v35 = vsel %vm474_vm2, %v1193_v12, 0.0 }
 0x214   : > { %v1206_v25 = vadd.f32 %v1205_v36, %v1204_v34  ;;  %v6996_v34 = vld [vmem:[%s10047_s10] ss:$0 sm:$0xff] }
 0x216   : > { %v1208_v41 = vadd.f32 %v1207_v40, %v1206_v25 }
 0x218   : > { %v1210_v51 = vadd.f32 %v1209_v43, %v1208_v41 }
 0x21a   : > { %v1212_v47 = vadd.f32 %v1211_v46, %v1210_v51 }
 0x21c   : > { %v1214_v50 = vadd.f32 %v1213_v49, %v1212_v47 }
 0x21e   : > { %v1216_v53 = vadd.f32 %v1215_v45, %v1214_v50  ;;  %v1445_v50 = vld [vmem:[#allocation2 + $0xa9] sm:$0xff]  ;;  %v1459_v45 = vld [vmem:[#allocation2 + $0x92] sm:$0xff] }
 0x220   : > { %v1218_v39 = vadd.f32 %v1217_v16, %v1216_v53  ;;  %v1460_v53 = vld [vmem:[#allocation2 + $0x9a] sm:$0xff] }
 0x221   : > { %v5912_v12 = vpack.i.bf16 %v1460_v53, %v1459_v45 }
 0x222   : > { %v1220_v29 = vadd.f32 %v1219_v56, %v1218_v39 }
 0x224   : > { %v1222_v4 = vadd.f32 %v1221_v58, %v1220_v29 }
 0x226   : > { %v1224_v60 = vadd.f32 %v1223_v35, %v1222_v4 }
 0x228   : > { %v1225_v9 = vrot.slane %v1224_v60, 4 }
 0x22a   : > { %v1226_v10 = vadd.f32 %v1225_v9, %v1224_v60 }
 0x22c   : > { %v1227_v1 = vrot.slane %v1226_v10, 2 }
 0x22e   : > { %v1228_v3 = vadd.f32 %v1227_v1, %v1226_v10 }
 0x230   : > { %v1229_v5 = vrot.slane %v1228_v3, 1 }
 0x232   : > { %v1230_v13 = vadd.f32 %v1229_v5, %v1228_v3 }
 0x234   : > { %v1231_v14 = vmul.f32 %v1230_v13, %v6888_v59 }
 0x236   : > { %v1232_v28 = vadd.f32 1e-05, %v1231_v14  ;;  %v1443_v14 = vld [vmem:[#allocation2 + $0x91] sm:$0xff] }
 0x238   : > { %6297 = vrsqrt.f32 %v1232_v28  ;;  %vm1239_vm10 = vweird.f32 %v1232_v28 }
 0x23e   : > { %v6298_v54 = vpop.eup %6297 }
 0x23f   : > { %v1234_v20 = vmul.f32 %v6298_v54, %v1232_v28  ;;  %vm1240_vm9 = vweird.f32 %v6298_v54  ;;  %v1444_v28 = vld [vmem:[#allocation2 + $0x99] sm:$0xff] }
 0x240   : > { %vm1241_vm11 = vmor %vm1239_vm10, %vm1240_vm9 }
 0x241   : > { %v1235_v22 = vmul.f32 %v6298_v54, %v1234_v20 }
 0x243   : > { %v1236_v23 = vmul.f32 0.5, %v1235_v22 }
 0x245   : > { %v1237_v21 = vsub.f32 1.5, %v1236_v23 }
 0x247   : > { %v1238_v6 = vmul.f32 %v6298_v54, %v1237_v21 }
 0x249   : > { %v6988_v11 = vsel %vm1241_vm11, %v6298_v54, %v1238_v6 }
 0x24a   : > { %v1256_v7 = vmul.f32 %v6988_v11, %v1175_v32  ;;  %v1245_v33 = vmul.f32 %v6988_v11, %v6898_v0  ;;  %v1244_v15 = vmul.f32 %v6988_v11, %v6895_v62  ;;  %v1243_v36 = vmul.f32 %v6988_v11, %v6892_v61  ;;  %v7009_v0 = vld [vmem:[%s10048_s11] ss:$0 sm:$0xff] }
 0x24b   : > { %v1246_v25 = vmul.f32 %v6988_v11, %v6901_v8  ;;  %v1248_v51 = vmul.f32 %v6988_v11, %v6913_v2  ;;  %v1247_v47 = vmul.f32 %v6988_v11, %v6908_v44  ;;  %v5917_v44 = vpack.i.bf16 %v1446_v52, %v1445_v50 }
 0x24c   : > { %v1274_v27 = vmul.f32 %v6986_v26, %v1256_v7  ;;  %v1263_v40 = vmul.f32 %v6986_v26, %v1245_v33  ;;  %v1262_v41 = vmul.f32 %v6986_v26, %v1244_v15  ;;  %v1261_v19 = vmul.f32 %v6986_v26, %v1243_v36 }
 0x24d   : > { %v1264_v8 = vmul.f32 %v6986_v26, %v1246_v25  ;;  %v1266_v16 = vmul.f32 %v6986_v26, %v1248_v51  ;;  %v1265_v39 = vmul.f32 %v6986_v26, %v1247_v47  ;;  %v1251_v56 = vmul.f32 %v6988_v11, %v6932_v24  ;;  %v1462_v51 = vld [vmem:[#allocation2 + $0xb2] sm:$0xff] }
 0x24e   : > { %v1281_v62 = vadd.f32 %v6996_v34, %v1263_v40  ;;  %v1280_v61 = vadd.f32 %v6996_v34, %v1262_v41  ;;  %v1279_v43 = vadd.f32 %v6996_v34, %v1261_v19  ;;  %v1258_v29 = vmul.f32 %v6988_v11, %v6971_v55 }
 0x24f   : > { %v1282_v57 = vadd.f32 %v6996_v34, %v1264_v8  ;;  %v1284_v4 = vadd.f32 %v6996_v34, %v1266_v16  ;;  %v1250_v35 = vmul.f32 %v6988_v11, %v6926_v17  ;;  %v1254_v60 = vmul.f32 %v6988_v11, %v6950_v38  ;;  %v1461_v8 = vld [vmem:[#allocation2 + $0xaa] sm:$0xff] }
 0x250   : > { %vm1297_vm12 = vcmp.gt.f32.partialorder %v1281_v62, 0.0  ;;  %v1315_v32 = vmul.f32 %v7009_v0, %v1281_v62  ;;  %vm1296_vm13 = vcmp.gt.f32.partialorder %v1280_v61, 0.0  ;;  %v1314_v31 = vmul.f32 %v7009_v0, %v1280_v61 }
 0x251   : > { %vm1295_vm14 = vcmp.gt.f32.partialorder %v1279_v43, 0.0  ;;  %v1313_v46 = vmul.f32 %v7009_v0, %v1279_v43  ;;  %v1316_v58 = vmul.f32 %v7009_v0, %v1282_v57  ;;  %vm1298_vm15 = vcmp.gt.f32.partialorder %v1282_v57, 0.0 }
 0x252   : > { %v1331_v37 = vsel %vm1297_vm12, %v1281_v62, %v1315_v32  ;;  %v1330_v49 = vsel %vm1296_vm13, %v1280_v61, %v1314_v31  ;;  %v1269_v9 = vmul.f32 %v6986_v26, %v1251_v56  ;;  %v1276_v10 = vmul.f32 %v6986_v26, %v1258_v29 }
 0x253   : > { %1365 = vrot.lane.b32.xlu1 %v1331_v37, %s6316_s24  ;;  %1363 = vrot.lane.b32.xlu0 %v1330_v49, %s6316_s24  ;;  %v1329_v2 = vsel %vm1295_vm14, %v1279_v43, %v1313_v46  ;;  %v1292_v24 = vadd.f32 %v6996_v34, %v1274_v27  ;;  %v1283_v1 = vadd.f32 %v6996_v34, %v1265_v39  ;;  %vm1300_vm0 = vcmp.gt.f32.partialorder %v1284_v4, 0.0 }
 0x254   : > { %1361 = vrot.lane.b32.xlu2 %v1329_v2, %s6316_s24  ;;  %v1272_v55 = vmul.f32 %v6986_v26, %v1254_v60  ;;  %v1287_v3 = vadd.f32 %v6996_v34, %v1269_v9  ;;  %v1294_v5 = vadd.f32 %v6996_v34, %v1276_v10  ;;  %v1332_v17 = vsel %vm1298_vm15, %v1282_v57, %v1316_v58 }
 0x255   : > { %v1268_v38 = vmul.f32 %v6986_v26, %v1250_v35  ;;  %v1318_v13 = vmul.f32 %v7009_v0, %v1284_v4  ;;  %vm1299_vm1 = vcmp.gt.f32.partialorder %v1283_v1, 0.0  ;;  %v1317_v20 = vmul.f32 %v7009_v0, %v1283_v1 }
 0x256   : > { %vm1303_vm3 = vcmp.gt.f32.partialorder %v1287_v3, 0.0  ;;  %v1321_v54 = vmul.f32 %v7009_v0, %v1287_v3  ;;  %vm1310_vm8 = vcmp.gt.f32.partialorder %v1294_v5, 0.0  ;;  %v1328_v22 = vmul.f32 %v7009_v0, %v1294_v5 }
 0x257   : > { %v1290_v23 = vadd.f32 %v6996_v34, %v1272_v55  ;;  %vm1308_vm9 = vcmp.gt.f32.partialorder %v1292_v24, 0.0  ;;  %v1326_v6 = vmul.f32 %v7009_v0, %v1292_v24  ;;  %v1257_v7 = vmul.f32 %v6988_v11, %v6965_v48 }
 0x258   : > { %v7056_v21 = vsel %vm1303_vm3, %v1287_v3, %v1321_v54  ;;  %v5907_v33 = vpack.i.bf16 %v1444_v28, %v1443_v14  ;;  %v7061_v15 = vsel %vm1310_vm8, %v1294_v5, %v1328_v22  ;;  %v1286_v25 = vadd.f32 %v6996_v34, %v1268_v38 }
 0x259   : > { %vm1306_vm10 = vcmp.gt.f32.partialorder %v1290_v23, 0.0  ;;  %v1324_v36 = vmul.f32 %v7009_v0, %v1290_v23  ;;  %v7065_v27 = vsel %vm1308_vm9, %v1292_v24, %v1326_v6  ;;  %v1275_v40 = vmul.f32 %v6986_v26, %v1257_v7 }
 0x25a   : > { %v1334_v41 = vsel %vm1300_vm0, %v1284_v4, %v1318_v13  ;;  %v1333_v19 = vsel %vm1299_vm1, %v1283_v1, %v1317_v20  ;;  %v1253_v62 = vmul.f32 %v6988_v11, %v6944_v63  ;;  %v1249_v61 = vmul.f32 %v6988_v11, %v6920_v18 }
 0x25b   : > { %5918 = vrot.lane.b32.xlu1 %v5917_v44, %s6317_s28  ;;  %5913 = vrot.lane.b32.xlu0 %v5912_v12, %s6319_s30  ;;  %v7072_v48 = vsel %vm1306_vm10, %v1290_v23, %v1324_v36  ;;  %v1293_v43 = vadd.f32 %v6996_v34, %v1275_v40  ;;  %v1320_v63 = vmul.f32 %v7009_v0, %v1286_v25  ;;  %vm1302_vm12 = vcmp.gt.f32.partialorder %v1286_v25, 0.0 }
 0x25c   : > { %1367 = vrot.lane.b32.xlu2 %v1332_v17, %s6316_s24  ;;  %v1271_v31 = vmul.f32 %v6986_v26, %v1253_v62  ;;  %v1267_v46 = vmul.f32 %v6986_v26, %v1249_v61  ;;  %v5922_v37 = vpack.i.bf16 %v1462_v51, %v1461_v8  ;;  %v1255_v50 = vmul.f32 %v6988_v11, %v6956_v42 }
 0x25d   : > { %vm1309_vm11 = vcmp.gt.f32.partialorder %v1293_v43, 0.0  ;;  %v1327_v32 = vmul.f32 %v7009_v0, %v1293_v43  ;;  %v1336_v18 = vsel %vm1302_vm12, %v1286_v25, %v1320_v63  ;;  %v1252_v52 = vmul.f32 %v6988_v11, %v6938_v30  ;;  %v1858_v63 = vld [vmem:[%s10039_s2 + $0x78] sm:$0xff] }
 0x25e   : > { %v1289_v49 = vadd.f32 %v6996_v34, %v1271_v31  ;;  %v1285_v2 = vadd.f32 %v6996_v34, %v1267_v46  ;;  %v1273_v53 = vmul.f32 %v6986_v26, %v1255_v50  ;;  %vm1409_vm1 = vcmask 261248   ;;  %v1857_v31 = vld [vmem:[%s10039_s2 + $0x70] sm:$0xff]  ;;  %1915 = vmatpush.msrb.mxu1 %v1858_v63  ;;  %v1855_v50 = vld [vmem:[%s10039_s2 + $0x60] sm:$0xff]  ;;  %v1428_v63 = vld [vmem:[#allocation2 + $0x98] sm:$0xff] }
 0x25f   : > { %v7084_v47 = vsel %vm1309_vm11, %v1293_v43, %v1327_v32  ;;  %v1270_v16 = vmul.f32 %v6986_v26, %v1252_v52  ;;  %v1865_v52 = vld [vmem:[%s10039_s2 + $0xb0] sm:$0xff] }
 0x260   : > { %v1323_v45 = vmul.f32 %v7009_v0, %v1289_v49  ;;  %vm1305_vm13 = vcmp.gt.f32.partialorder %v1289_v49, 0.0  ;;  %v1319_v57 = vmul.f32 %v7009_v0, %v1285_v2  ;;  %vm1301_vm14 = vcmp.gt.f32.partialorder %v1285_v2, 0.0  ;;  %1916 = vmatpush.msrb.mxu1 %v1857_v31 }
 0x261   : > { %v1291_v39 = vadd.f32 %v6996_v34, %v1273_v53  ;;  %v1288_v30 = vadd.f32 %v6996_v34, %v1270_v16  ;;  %v1864_v53 = vld [vmem:[%s10039_s2 + $0xa8] sm:$0xff] }
 0x262   : > { %v1339_v42 = vsel %vm1305_vm13, %v1289_v49, %v1323_v45  ;;  %v1335_v44 = vsel %vm1301_vm14, %v1285_v2, %v1319_v57  ;;  %v1856_v49 = vld [vmem:[%s10039_s2 + $0x68] sm:$0xff]  ;;  %v1866_v2 = vld [vmem:[%s10039_s2 + $0xb8] sm:$0xff]  ;;  %v1853_v57 = vld [vmem:[%s10039_s2 + $0x50] sm:$0xff] }
 0x263   : > { %1371 = vrot.lane.b32.xlu1 %v1334_v41, %s6316_s24  ;;  %1369 = vrot.lane.b32.xlu0 %v1333_v19, %s6316_s24  ;;  %v1325_v11 = vmul.f32 %v7009_v0, %v1291_v39  ;;  %vm1307_vm15 = vcmp.gt.f32.partialorder %v1291_v39, 0.0  ;;  %v1322_v12 = vmul.f32 %v7009_v0, %v1288_v30  ;;  %vm1304_vm0 = vcmp.gt.f32.partialorder %v1288_v30, 0.0  ;;  %v1854_v45 = vld [vmem:[%s10039_s2 + $0x58] sm:$0xff] }
 0x264   : > { %5908 = vrot.lane.b32.xlu2 %v5907_v33, %s6317_s28  ;;  %1917 = vmatpush.msrb.mxu1 %v1856_v49 }
 0x265   : > { %v1341_v56 = vsel %vm1307_vm15, %v1291_v39, %v1325_v11  ;;  %v1338_v26 = vsel %vm1304_vm0, %v1288_v30, %v1322_v12  ;;  %1988 = vmatpush.msrb.mxu0 %v1866_v2  ;;  %5882 = vmatpush.msra.mxu2 %v1866_v2  ;;  %v1863_v39 = vld [vmem:[%s10039_s2 + $0xa0] sm:$0xff]  ;;  %v1862_v30 = vld [vmem:[%s10039_s2 + $0x98] sm:$0xff] }
 0x266   : > { %1918 = vmatpush.msrb.mxu1 %v1855_v50  ;;  %v1850_v12 = vld [vmem:[%s10039_s2 + $0x38] sm:$0xff] }
 0x267   : > { %1989 = vmatpush.msrb.mxu0 %v1865_v52  ;;  %5883 = vmatpush.msra.mxu2 %v1865_v52  ;;  %v1429_v52 = vld [vmem:[#allocation2 + $0xa8] sm:$0xff] }
 0x268   : > { %1919 = vmatpush.msrb.mxu1 %v1854_v45 }
 0x269   : > { %1990 = vmatpush.msrb.mxu0 %v1864_v53  ;;  %5884 = vmatpush.msra.mxu2 %v1864_v53 }
 0x26a   : > { %1920 = vmatpush.msrb.mxu1 %v1853_v57 }
 0x26b   : > { %1375 = vrot.lane.b32.xlu0 %v1336_v18, %s6316_s24  ;;  %1991 = vmatpush.msrb.mxu0 %v1863_v39 }
 0x26c   : > { %5923 = vrot.lane.b32.xlu2 %v5922_v37, %s6319_s30  ;;  %5885 = vmatpush.msra.mxu2 %v1863_v39 }
 0x26d   : > { %1992 = vmatpush.msrb.mxu0 %v1862_v30 }
 0x26e   : > { %5886 = vmatpush.msra.mxu2 %v1862_v30 }
 0x273   : > { %1381 = vrot.lane.b32.xlu0 %v1339_v42, %s6316_s24  ;;  %v1852_v42 = vld [vmem:[%s10039_s2 + $0x48] sm:$0xff] }
 0x274   : > { %1373 = vrot.lane.b32.xlu2 %v1335_v44, %s6316_s24  ;;  %v1851_v44 = vld [vmem:[%s10039_s2 + $0x40] sm:$0xff]  ;;  %1921 = vmatpush.msrb.mxu1 %v1852_v42 }
 0x276   : > { %1922 = vmatpush.msrb.mxu1 %v1851_v44 }
 0x278   : > { %1923 = vmatpush.msrb.mxu1 %v1850_v12 }
 0x27b   : > { %1385 = vrot.lane.b32.xlu0 %v1341_v56, %s6316_s24 }
 0x27c   : > { %1379 = vrot.lane.b32.xlu2 %v1338_v26, %s6316_s24  ;;  %v1861_v26 = vld [vmem:[%s10039_s2 + $0x90] sm:$0xff] }
 0x27d   : > { %1993 = vmatpush.msrb.mxu0 %v1861_v26  ;;  %5887 = vmatpush.msra.mxu2 %v1861_v26 }
 0x2ae   : > { %v1362_v29 = vpop.permute.xlu2 %1361 }
 0x2af   : > { %1410 = vst.msk [vmem:[#allocation2 + $0xc1] sm:$0xff] %vm1409_vm1, %v1362_v29  ;;  %v1849_v29 = vld [vmem:[%s10039_s2 + $0x30] sm:$0xff] }
 0x2b0   : > { %1924 = vmatpush.msrb.mxu1 %v1849_v29  ;;  %v1430_v29 = vld [vmem:[#allocation2 + $0xb0] sm:$0xff] }
 0x2b6   : > { %v1368_v58 = vpop.permute.xlu2 %1367  ;;  %v7118_v10 = vld [vmem:[#allocation2 + $0xc0] sm:$0xff] }
 0x2b7   : > { %1413 = vst.msk [vmem:[#allocation2 + $0xe1] sm:$0xff] %vm1409_vm1, %v1368_v58  ;;  %v7126_v5 = vld [vmem:[#allocation2 + $0xc1] sm:$0xff] }
 0x2b8   : > { %v1860_v58 = vld [vmem:[%s10039_s2 + $0x88] sm:$0xff] }
 0x2b9   : > { %1994 = vmatpush.msrb.mxu0 %v1860_v58  ;;  %5888 = vmatpush.msra.mxu2 %v1860_v58 }
 0x2be   : > { %v7108_v34 = vpop.permute.xlu2 %5908  ;;  %v7151_v36 = vld [vmem:[#allocation2 + $0xe1] sm:$0xff] }
 0x2bf   : > { %v1510_v43 = vld [vmem:[#allocation2 + $0xe2] sm:$0xff] }
 0x2c5   : > { %v1366_v4 = vpop.permute.xlu1 %1365  ;;  %v1364_v35 = vpop.permute.xlu0 %1363 }
 0x2c6   : > { %1412 = vst.msk [vmem:[#allocation2 + $0xd9] sm:$0xff] %vm1409_vm1, %v1366_v4  ;;  %v7111_v0 = vpop.permute.xlu2 %5923  ;;  %v1848_v4 = vld [vmem:[%s10039_s2 + $0x28] sm:$0xff] }
 0x2c7   : > { %1411 = vst.msk [vmem:[#allocation2 + $0xc9] sm:$0xff] %vm1409_vm1, %v1364_v35  ;;  %v1859_v35 = vld [vmem:[%s10039_s2 + $0x80] sm:$0xff]  ;;  %1925 = vmatpush.msrb.mxu1 %v1848_v4  ;;  %v5925_v45 = vunpack.i.l.bf16 %v7111_v0  ;;  %v5926_v58 = vunpack.i.h.bf16 %v7111_v0 }
 0x2c8   : > { %1995 = vmatpush.msrb.mxu0 %v1859_v35  ;;  %5889 = vmatpush.msra.mxu2 %v1859_v35 }
 0x2cd   : > { %v7114_v60 = vpop.permute.xlu1 %5918  ;;  %v7116_v9 = vpop.permute.xlu0 %5913  ;;  %v7120_v24 = vld [vmem:[#allocation2 + $0xd8] sm:$0xff]  ;;  %v7122_v1 = vld [vmem:[#allocation2 + $0xe0] sm:$0xff] }
 0x2ce   : > { %v1374_v55 = vpop.permute.xlu2 %1373  ;;  %v7124_v3 = vld [vmem:[#allocation2 + $0xc8] sm:$0xff]  ;;  %v5932_v14 = vpack.i.bf16 %v7122_v1, %v7120_v24  ;;  %v7148_v33 = vld [vmem:[#allocation2 + $0xd9] sm:$0xff]  ;;  %v5916_v31 = vunpack.i.h.bf16 %v7116_v9  ;;  %v5920_v2 = vunpack.i.l.bf16 %v7114_v60 }
 0x2cf   : > { %v7128_v17 = vld [vmem:[#allocation2 + $0xc9] sm:$0xff]  ;;  %1416 = vst.msk [vmem:[#allocation2 + $0x109] sm:$0xff] %vm1409_vm1, %v1374_v55  ;;  %v5927_v38 = vpack.i.bf16 %v7124_v3, %v7118_v10  ;;  %v5952_v25 = vpack.i.bf16 %v7151_v36, %v7148_v33  ;;  %v1847_v55 = vld [vmem:[%s10039_s2 + $0x20] sm:$0xff] }
 0x2d0   : > { %v5937_v13 = vpack.i.bf16 %v7128_v17, %v7126_v5  ;;  %5933 = vrot.lane.b32.xlu0 %v5932_v14, %s6322_s16  ;;  %v1463_v20 = vld [vmem:[#allocation2 + $0xc2] sm:$0xff]  ;;  %v1464_v22 = vld [vmem:[#allocation2 + $0xca] sm:$0xff]  ;;  %1926 = vmatpush.msrb.mxu1 %v1847_v55 }
 0x2d1   : > { %5928 = vrot.lane.b32.xlu1 %v5927_v38, %s6322_s16  ;;  %v5942_v6 = vpack.i.bf16 %v1464_v22, %v1463_v20  ;;  %v1846_v38 = vld [vmem:[%s10039_s2 + $0x18] sm:$0xff]  ;;  %v1844_v14 = vld [vmem:[%s10039_s2 + $0x8] sm:$0xff] }
 0x2d2   : > { %5938 = vrot.lane.b32.xlu2 %v5937_v13, %s6317_s28  ;;  %v1845_v13 = vld [vmem:[%s10039_s2 + $0x10] sm:$0xff]  ;;  %1927 = vmatpush.msrb.mxu1 %v1846_v38 }
 0x2d4   : > { %1928 = vmatpush.msrb.mxu1 %v1845_v13 }
 0x2d5   : > { %v1372_v28 = vpop.permute.xlu1 %1371  ;;  %v1370_v54 = vpop.permute.xlu0 %1369 }
 0x2d6   : > { %1415 = vst.msk [vmem:[#allocation2 + $0xf9] sm:$0xff] %vm1409_vm1, %v1372_v28  ;;  %v1380_v23 = vpop.permute.xlu2 %1379  ;;  %v7236_v11 = vld [vmem:[#allocation2 + $0x109] sm:$0xff]  ;;  %v1843_v28 = vld [vmem:[%s10039_s2] sm:$0xff]  ;;  %1929 = vmatpush.msrb.mxu1 %v1844_v14 }
 0x2d7   : > { %1414 = vst.msk [vmem:[#allocation2 + $0xf1] sm:$0xff] %vm1409_vm1, %v1370_v54 }
 0x2d8   : > { %1419 = vst.msk [vmem:[#allocation2 + $0x129] sm:$0xff] %vm1409_vm1, %v1380_v23  ;;  %5943 = vrot.lane.b32.xlu0 %v5942_v6, %s6319_s30  ;;  %1930 = vmatpush.msrb.mxu1 %v1843_v28  ;;  %v5910_v6 = vunpack.i.l.bf16 %v7108_v34 }
 0x2d9   : > { %1377 = vrot.lane.b32.xlu1 %v7056_v21, %s6316_s24 }
 0x2da   : > { %1391 = vrot.lane.b32.xlu2 %v7061_v15, %s6316_s24  ;;  %v1509_v15 = vld [vmem:[#allocation2 + $0xda] sm:$0xff] }
 0x2db   : > { %v5957_v46 = vpack.i.bf16 %v1510_v43, %v1509_v15 }
 0x2dd   : > { %v1376_v7 = vpop.permute.xlu0 %1375  ;;  %v7180_v51 = vld [vmem:[#allocation2 + $0xfa] sm:$0xff] }
 0x2de   : > { %1417 = vst.msk [vmem:[#allocation2 + $0x111] sm:$0xff] %vm1409_vm1, %v1376_v7  ;;  %v7164_v40 = vld [vmem:[#allocation2 + $0xf0] sm:$0xff]  ;;  %v7166_v41 = vld [vmem:[#allocation2 + $0xf8] sm:$0xff] }
 0x2df   : > { %v5947_v61 = vpack.i.bf16 %v7166_v41, %v7164_v40  ;;  %v1467_v8 = vld [vmem:[#allocation2 + $0xf2] sm:$0xff] }
 0x2e0   : > { %5953 = vrot.lane.b32.xlu0 %v5952_v25, %s6317_s28  ;;  %v5972_v32 = vpack.i.bf16 %v7180_v51, %v1467_v8  ;;  %v7193_v37 = vld [vmem:[#allocation2 + $0xf1] sm:$0xff]  ;;  %v7195_v18 = vld [vmem:[#allocation2 + $0xf9] sm:$0xff]  ;;  %v5915_v25 = vunpack.i.l.bf16 %v7116_v9  ;;  %v1781_v9 = vsel %vm924_vm4, %v1429_v52, %v5920_v2 }
 0x2e1   : > { %1383 = vrot.lane.b32.xlu1 %v7072_v48, %s6316_s24  ;;  %v7171_v48 = vld [vmem:[#allocation2 + $0x108] sm:$0xff]  ;;  %v1427_v7 = vld [vmem:[#allocation2 + $0x90] sm:$0xff]  ;;  %v1797_v12 = vsel %vm958_vm6, %v1781_v9, %v5925_v45 }
 0x2e2   : > { %1731 = vrot.lane.b32.xlu2 %v1463_v20, %s6317_s28 }
 0x2e5   : > { %v1382_v21 = vpop.permute.xlu0 %1381  ;;  %v7168_v19 = vld [vmem:[#allocation2 + $0x110] sm:$0xff] }
 0x2e6   : > { %1420 = vst.msk [vmem:[#allocation2 + $0x139] sm:$0xff] %vm1409_vm1, %v1382_v21  ;;  %v7222_v16 = vld [vmem:[#allocation2 + $0x111] sm:$0xff]  ;;  %v1779_v21 = vsel %vm924_vm4, %v1427_v7, %v5910_v6 }
 0x2e7   : > { %v5982_v56 = vpack.i.bf16 %v7222_v16, %v7236_v11 }
 0x2e8   : > { %1735 = vrot.lane.b32.xlu0 %v1509_v15, %s6317_s28 }
 0x2e9   : > { %1387 = vrot.lane.b32.xlu1 %v7065_v27, %s6316_s24  ;;  %v5962_v27 = vpack.i.bf16 %v7168_v19, %v7171_v48 }
 0x2ea   : > { %1733 = vrot.lane.b32.xlu2 %v1464_v22, %s6317_s28 }
 0x2ed   : > { %v1386_v62 = vpop.permute.xlu0 %1385 }
 0x2ee   : > { %1422 = vst.msk [vmem:[#allocation2 + $0x151] sm:$0xff] %vm1409_vm1, %v1386_v62 }
 0x2f0   : > { %1737 = vrot.lane.b32.xlu0 %v1510_v43, %s6317_s28 }
 0x2f1   : > { %5948 = vrot.lane.b32.xlu1 %v5947_v61, %s6322_s16 }
 0x2f2   : > { %5963 = vrot.lane.b32.xlu2 %v5962_v27, %s6322_s16 }
 0x2f9   : > { %1389 = vrot.lane.b32.xlu1 %v7084_v47, %s6316_s24  ;;  %v5967_v47 = vpack.i.bf16 %v7195_v18, %v7193_v37 }
 0x2fa   : > { %5973 = vrot.lane.b32.xlu2 %v5972_v32, %s6319_s30 }
 0x301   : > { %5958 = vrot.lane.b32.xlu1 %v5957_v46, %s6319_s30 }
 0x309   : > { %5968 = vrot.lane.b32.xlu1 %v5967_v47, %s6317_s28 }
 0x311   : > { %1739 = vrot.lane.b32.xlu1 %v1467_v8, %s6317_s28  ;;  %v5911_v8 = vunpack.i.h.bf16 %v7108_v34 }
 0x313   : > { %v1780_v47 = vsel %vm924_vm4, %v1428_v63, %v5911_v8 }
 0x319   : > { %5983 = vrot.lane.b32.xlu1 %v5982_v56, %s6317_s28  ;;  %v5921_v56 = vunpack.i.h.bf16 %v7114_v60 }
 0x31b   : > { %v1782_v35 = vsel %vm924_vm4, %v1430_v29, %v5921_v56 }
 0x31c   : > { %v1798_v60 = vsel %vm958_vm6, %v1782_v35, %v5926_v58 }
 0x32c   : > { %v7274_v54 = vpop.permute.xlu2 %5938 }
 0x334   : > { %v1392_v20 = vpop.permute.xlu2 %1391 }
 0x335   : > { %1425 = vst.msk [vmem:[#allocation2 + $0x171] sm:$0xff] %vm1409_vm1, %v1392_v20  ;;  %v1469_v20 = vld [vmem:[#allocation2 + $0x10a] sm:$0xff] }
 0x33c   : > { %v1732_v22 = vpop.permute.xlu2 %1731 }
 0x33d   : > { %v1827_v23 = vsel %vm924_vm4, %v7126_v5, %v1732_v22  ;;  %v1795_v5 = vsel %vm958_vm6, %v1779_v21, %v5915_v25  ;;  %v1470_v22 = vld [vmem:[#allocation2 + $0x112] sm:$0xff] }
 0x33e   : > { %5748 = vmatmul.msk.f32.vlgmr.msrb.gmra.mxu0 %vm958_vm6, %v1827_v23  ;;  %v5940_v23 = vunpack.i.l.bf16 %v7274_v54  ;;  %v5987_v25 = vpack.i.bf16 %v1470_v22, %v1469_v20  ;;  %v7334_v21 = vld [vmem:[#allocation2 + $0x138] sm:$0xff] }
 0x342   : > { %v5934_v27 = vpop.permute.xlu0 %5933 }
 0x343   : > { %v5929_v15 = vpop.permute.xlu1 %5928  ;;  %v5935_v53 = vunpack.i.l.bf16 %v5934_v27  ;;  %v5936_v4 = vunpack.i.h.bf16 %v5934_v27 }
 0x344   : > { %v1734_v62 = vpop.permute.xlu2 %1733  ;;  %v5930_v61 = vunpack.i.l.bf16 %v5929_v15  ;;  %v5931_v46 = vunpack.i.h.bf16 %v5929_v15 }
 0x345   : > { %v1828_v43 = vsel %vm924_vm4, %v7128_v17, %v1734_v62  ;;  %v1796_v17 = vsel %vm958_vm6, %v1780_v47, %v5916_v31  ;;  %v1813_v26 = vsel %vm1003_vm7, %v1797_v12, %v5935_v53  ;;  %v1814_v28 = vsel %vm1003_vm7, %v1798_v60, %v5936_v4  ;;  %v1487_v31 = vld [vmem:[#allocation2 + $0x150] sm:$0xff] }
 0x346   : > { %5749 = vmatmul.msk.f32.gmra.mxu0 %vm958_vm6, %v1828_v43  ;;  %v1811_v32 = vsel %vm1003_vm7, %v1795_v5, %v5930_v61  ;;  %v1812_v34 = vsel %vm1003_vm7, %v1796_v17, %v5931_v46  ;;  %v1783_v61 = vsel %vm924_vm4, %v7118_v10, %v5940_v23  ;;  %v1522_v23 = vld [vmem:[#allocation2 + $0x172] sm:$0xff] }
 0x347   : > { %1931 = vmatmul.f32.vlgmr.msrb.gmra.mxu1 %v1811_v32  ;;  %v5941_v32 = vunpack.i.h.bf16 %v7274_v54 }
 0x34a   : > { %v7292_v50 = vpop.permute.xlu0 %5943 }
 0x34b   : > { %v1378_v49 = vpop.permute.xlu1 %1377  ;;  %v5945_v6 = vunpack.i.l.bf16 %v7292_v50  ;;  %v5946_v63 = vunpack.i.h.bf16 %v7292_v50 }
 0x34c   : > { %1418 = vst.msk [vmem:[#allocation2 + $0x121] sm:$0xff] %vm1409_vm1, %v1378_v49  ;;  %v5964_v45 = vpop.permute.xlu2 %5963 }
 0x34d   : > { %v1799_v43 = vsel %vm958_vm6, %v1783_v61, %v5945_v6  ;;  %v5965_v56 = vunpack.i.l.bf16 %v5964_v45  ;;  %v5966_v60 = vunpack.i.h.bf16 %v5964_v45 }
 0x34f   : > { %1934 = vmatmul.f32.gmra.mxu1 %v1812_v34  ;;  %v7361_v34 = vld [vmem:[#allocation2 + $0x129] sm:$0xff] }
 0x352   : > { %v7304_v44 = vpop.permute.xlu0 %5953 }
 0x353   : > { %v1384_v57 = vpop.permute.xlu1 %1383  ;;  %v7299_v42 = vld [vmem:[#allocation2 + $0x120] sm:$0xff]  ;;  %v7301_v39 = vld [vmem:[#allocation2 + $0x128] sm:$0xff]  ;;  %v5955_v2 = vunpack.i.l.bf16 %v7304_v44  ;;  %v5956_v58 = vunpack.i.h.bf16 %v7304_v44 }
 0x354   : > { %1421 = vst.msk [vmem:[#allocation2 + $0x141] sm:$0xff] %vm1409_vm1, %v1384_v57  ;;  %v5977_v30 = vpack.i.bf16 %v7301_v39, %v7299_v42  ;;  %v7358_v50 = vld [vmem:[#allocation2 + $0x121] sm:$0xff]  ;;  %v1472_v57 = vld [vmem:[#allocation2 + $0x12a] sm:$0xff] }
 0x355   : > { %v1471_v52 = vld [vmem:[#allocation2 + $0x122] sm:$0xff]  ;;  %v5997_v53 = vpack.i.bf16 %v7361_v34, %v7358_v50 }
 0x356   : > { %5978 = vrot.lane.b32.xlu0 %v5977_v30, %s6322_s16  ;;  %v6002_v12 = vpack.i.bf16 %v1472_v57, %v1471_v52 }
 0x357   : > { %1937 = vmatmul.f32.gmra.mxu1 %v1813_v26  ;;  %v1785_v26 = vsel %vm924_vm4, %v7120_v24, %v5955_v2 }
 0x35a   : > { %v1736_v14 = vpop.permute.xlu0 %1735 }
 0x35b   : > { %v1388_v55 = vpop.permute.xlu1 %1387  ;;  %v7314_v38 = vld [vmem:[#allocation2 + $0x13a] sm:$0xff]  ;;  %v7316_v13 = vld [vmem:[#allocation2 + $0x142] sm:$0xff]  ;;  %v1829_v0 = vsel %vm924_vm4, %v7148_v33, %v1736_v14 }
 0x35c   : > { %1423 = vst.msk [vmem:[#allocation2 + $0x159] sm:$0xff] %vm1409_vm1, %v1388_v55  ;;  %1751 = vrot.lane.b32.xlu2 %v7314_v38, %s6317_s28  ;;  %1753 = vrot.lane.b32.xlu1 %v7316_v13, %s6317_s28  ;;  %v7332_v7 = vld [vmem:[#allocation2 + $0x140] sm:$0xff] }
 0x35d   : > { %5750 = vmatmul.msk.f32.gmra.mxu0 %vm958_vm6, %v1829_v0  ;;  %v1786_v0 = vsel %vm924_vm4, %v7122_v1, %v5956_v58  ;;  %v1503_v58 = vld [vmem:[#allocation2 + $0x151] sm:$0xff] }
 0x35e   : > { %1741 = vrot.lane.b32.xlu0 %v7180_v51, %s6317_s28  ;;  %v5992_v51 = vpack.i.bf16 %v7332_v7, %v7334_v21 }
 0x35f   : > { %1940 = vmatmul.f32.gmra.mxu1 %v1814_v28 }
 0x362   : > { %v1738_v62 = vpop.permute.xlu0 %1737 }
 0x363   : > { %v5949_v33 = vpop.permute.xlu1 %5948  ;;  %v1830_v27 = vsel %vm924_vm4, %v7151_v36, %v1738_v62  ;;  %v1488_v8 = vld [vmem:[#allocation2 + $0x158] sm:$0xff]  ;;  %v1784_v36 = vsel %vm924_vm4, %v7124_v3, %v5941_v32 }
 0x364   : > { %v5950_v15 = vunpack.i.l.bf16 %v5949_v33  ;;  %5988 = vrot.lane.b32.xlu2 %v5987_v25, %s6319_s30  ;;  %1745 = vrot.lane.b32.xlu1 %v1470_v22, %s6317_s28  ;;  %v5951_v46 = vunpack.i.h.bf16 %v5949_v33  ;;  %v6007_v10 = vpack.i.bf16 %v1488_v8, %v1487_v31  ;;  %v1519_v49 = vld [vmem:[#allocation2 + $0x152] sm:$0xff]  ;;  %v1800_v17 = vsel %vm958_vm6, %v1784_v36, %v5946_v63  ;;  %v1520_v14 = vld [vmem:[#allocation2 + $0x15a] sm:$0xff]  ;;  %v5974_v25 = vpop.permute.xlu2 %5973 }
 0x365   : > { %5751 = vmatmul.msk.f32.gmra.mxu0 %vm958_vm6, %v1830_v27  ;;  %v5975_v61 = vunpack.i.l.bf16 %v5974_v25 }
 0x366   : > { %5993 = vrot.lane.b32.xlu0 %v5992_v51, %s6322_s16  ;;  %v1815_v5 = vsel %vm1003_vm7, %v1799_v43, %v5950_v15  ;;  %v1816_v54 = vsel %vm1003_vm7, %v1800_v17, %v5951_v46 }
 0x367   : > { %1943 = vmatmul.f32.gmra.mxu1 %v1815_v5 }
 0x36b   : > { %v1390_v47 = vpop.permute.xlu1 %1389 }
 0x36c   : > { %1424 = vst.msk [vmem:[#allocation2 + $0x169] sm:$0xff] %vm1409_vm1, %v1390_v47  ;;  %1743 = vrot.lane.b32.xlu2 %v1469_v20, %s6317_s28  ;;  %6008 = vrot.lane.b32.xlu1 %v6007_v10, %s6322_s16  ;;  %v1458_v20 = vld [vmem:[#allocation2 + $0x141] sm:$0xff]  ;;  %v5976_v47 = vunpack.i.h.bf16 %v5974_v25 }
 0x36e   : > { %1755 = vrot.lane.b32.xlu0 %v1519_v49, %s6317_s28 }
 0x36f   : > { %1946 = vmatmul.f32.gmra.mxu1 %v1816_v54 }
 0x373   : > { %v5959_v3 = vpop.permute.xlu1 %5958  ;;  %v1521_v9 = vld [vmem:[#allocation2 + $0x16a] sm:$0xff] }
 0x374   : > { %v5960_v30 = vunpack.i.l.bf16 %v5959_v3  ;;  %5998 = vrot.lane.b32.xlu2 %v5997_v53, %s6317_s28  ;;  %1759 = vrot.lane.b32.xlu1 %v1521_v9, %s6317_s28  ;;  %v5961_v35 = vunpack.i.h.bf16 %v5959_v3  ;;  %v1489_v22 = vld [vmem:[#allocation2 + $0x168] sm:$0xff]  ;;  %v1490_v6 = vld [vmem:[#allocation2 + $0x170] sm:$0xff] }
 0x376   : > { %6003 = vrot.lane.b32.xlu0 %v6002_v12, %s6319_s30  ;;  %v1801_v29 = vsel %vm958_vm6, %v1785_v26, %v5960_v30  ;;  %v1802_v24 = vsel %vm958_vm6, %v1786_v0, %v5961_v35 }
 0x377   : > { %v1817_v4 = vsel %vm1003_vm7, %v1801_v29, %v5965_v56  ;;  %v1818_v44 = vsel %vm1003_vm7, %v1802_v24, %v5966_v60 }
 0x378   : > { %1949 = vmatmul.f32.gmra.mxu1 %v1817_v4 }
 0x37b   : > { %v5969_v55 = vpop.permute.xlu1 %5968 }
 0x37c   : > { %1757 = vrot.lane.b32.xlu2 %v1520_v14, %s6317_s28  ;;  %1631 = vrot.lane.b32.xlu1 %v7314_v38, %s6319_s30  ;;  %v1457_v38 = vld [vmem:[#allocation2 + $0x139] sm:$0xff]  ;;  %v5970_v15 = vunpack.i.l.bf16 %v5969_v55  ;;  %v5971_v8 = vunpack.i.h.bf16 %v5969_v55 }
 0x37e   : > { %1747 = vrot.lane.b32.xlu0 %v1471_v52, %s6317_s28  ;;  %v1787_v51 = vsel %vm924_vm4, %v7164_v40, %v5970_v15  ;;  %v1788_v10 = vsel %vm924_vm4, %v7166_v41, %v5971_v8 }
 0x37f   : > { %v1804_v17 = vsel %vm958_vm6, %v1788_v10, %v5976_v47 }
 0x380   : > { %1952 = vmatmul.f32.gmra.mxu1 %v1818_v44  ;;  %v1504_v44 = vld [vmem:[#allocation2 + $0x159] sm:$0xff] }
 0x383   : > { %v1740_v28 = vpop.permute.xlu1 %1739 }
 0x384   : > { %1749 = vrot.lane.b32.xlu2 %v1472_v57, %s6317_s28  ;;  %1569 = vrot.lane.b32.xlu1 %v1458_v20, %s6317_s28  ;;  %v1831_v1 = vsel %vm924_vm4, %v7193_v37, %v1740_v28 }
 0x385   : > { %5752 = vmatmul.msk.f32.gmra.mxu0 %vm958_vm6, %v1831_v1 }
 0x386   : > { %1567 = vrot.lane.b32.xlu0 %v1457_v38, %s6317_s28 }
 0x38b   : > { %v5984_v62 = vpop.permute.xlu1 %5983 }
 0x38c   : > { %1695 = vrot.lane.b32.xlu2 %v1489_v22, %s6322_s16  ;;  %v5985_v2 = vunpack.i.l.bf16 %v5984_v62  ;;  %v5986_v12 = vunpack.i.h.bf16 %v5984_v62 }
 0x38e   : > { %1761 = vrot.lane.b32.xlu0 %v1522_v23, %s6317_s28  ;;  %v1789_v3 = vsel %vm924_vm4, %v7171_v48, %v5985_v2  ;;  %v1790_v48 = vsel %vm924_vm4, %v7168_v19, %v5986_v12 }
 0x394   : > { %1633 = vrot.lane.b32.xlu2 %v7316_v13, %s6319_s30  ;;  %v1803_v13 = vsel %vm958_vm6, %v1787_v51, %v5975_v61 }
 0x396   : > { %1697 = vrot.lane.b32.xlu0 %v1490_v6, %s6322_s16 }
 0x3b6   : > { %v1752_v33 = vpop.permute.xlu2 %1751 }
 0x3b7   : > { %v1837_v37 = vsel %vm924_vm4, %v1457_v38, %v1752_v33 }
 0x3b8   : > { %5758 = vmatmul.msk.f32.vlgmr.msra.gmra.mxu2 %vm958_vm6, %v1837_v37  ;;  %v1505_v37 = vld [vmem:[#allocation2 + $0x169] sm:$0xff] }
 0x3be   : > { %v5989_v27 = vpop.permute.xlu2 %5988 }
 0x3bf   : > { %v5990_v52 = vunpack.i.l.bf16 %v5989_v27  ;;  %v5991_v56 = vunpack.i.h.bf16 %v5989_v27 }
 0x3c1   : > { %v1806_v35 = vsel %vm958_vm6, %v1790_v48, %v5991_v56 }
 0x3c6   : > { %v1744_v49 = vpop.permute.xlu2 %1743 }
 0x3c7   : > { %v1833_v41 = vsel %vm924_vm4, %v7236_v11, %v1744_v49 }
 0x3c8   : > { %v5979_v43 = vpop.permute.xlu0 %5978 }
 0x3c9   : > { %v5980_v5 = vunpack.i.l.bf16 %v5979_v43  ;;  %v5981_v31 = vunpack.i.h.bf16 %v5979_v43 }
 0x3cb   : > { %v1819_v32 = vsel %vm1003_vm7, %v1803_v13, %v5980_v5  ;;  %v1820_v54 = vsel %vm1003_vm7, %v1804_v17, %v5981_v31 }
 0x3cc   : > { %1955 = vmatmul.f32.gmra.mxu1 %v1819_v32  ;;  %v1932_v32 = vpop.f32.mrf.mxu1 }
 0x3ce   : > { %v1754_v63 = vpop.permute.xlu1 %1753  ;;  %v5999_v30 = vpop.permute.xlu2 %5998 }
 0x3cf   : > { %v1838_v46 = vsel %vm924_vm4, %v1458_v20, %v1754_v63  ;;  %v6000_v0 = vunpack.i.l.bf16 %v5999_v30  ;;  %v6001_v38 = vunpack.i.h.bf16 %v5999_v30 }
 0x3d0   : > { %v1742_v36 = vpop.permute.xlu0 %1741  ;;  %5759 = vmatmul.msk.f32.gmra.mxu2 %vm958_vm6, %v1838_v46  ;;  %v1506_v46 = vld [vmem:[#allocation2 + $0x171] sm:$0xff] }
 0x3d1   : > { %v1832_v40 = vsel %vm924_vm4, %v7195_v18, %v1742_v36  ;;  %v1805_v18 = vsel %vm958_vm6, %v1789_v3, %v5990_v52  ;;  %v1791_v19 = vsel %vm924_vm4, %v7299_v42, %v6000_v0  ;;  %v1792_v15 = vsel %vm924_vm4, %v7301_v39, %v6001_v38 }
 0x3d2   : > { %5753 = vmatmul.msk.f32.gmra.mxu0 %vm958_vm6, %v1832_v40 }
 0x3d4   : > { %1958 = vmatmul.f32.gmra.mxu1 %v1820_v54 }
 0x3d6   : > { %v1746_v9 = vpop.permute.xlu1 %1745  ;;  %v1758_v24 = vpop.permute.xlu2 %1757 }
 0x3d7   : > { %v1834_v11 = vsel %vm924_vm4, %v7222_v16, %v1746_v9  ;;  %v1840_v28 = vsel %vm924_vm4, %v1504_v44, %v1758_v24 }
 0x3d8   : > { %v5994_v45 = vpop.permute.xlu0 %5993 }
 0x3d9   : > { %v5995_v53 = vunpack.i.l.bf16 %v5994_v45  ;;  %v5996_v26 = vunpack.i.h.bf16 %v5994_v45  ;;  %v1997_v45 = vpop.f32.mrf.mxu0 }
 0x3da   : > { %5754 = vmatmul.msk.f32.gmra.mxu0 %vm958_vm6, %v1833_v41 }
 0x3db   : > { %v1821_v57 = vsel %vm1003_vm7, %v1805_v18, %v5995_v53  ;;  %v1822_v55 = vsel %vm1003_vm7, %v1806_v35, %v5996_v26  ;;  %v7453_v35 = vadd.f32 %v1997_v45, %v1932_v32 }
 0x3dc   : > { %1961 = vmatmul.f32.gmra.mxu1 %v1821_v57 }
 0x3de   : > { %v6009_v14 = vpop.permute.xlu1 %6008  ;;  %v1750_v25 = vpop.permute.xlu2 %1749 }
 0x3df   : > { %v6010_v20 = vunpack.i.l.bf16 %v6009_v14  ;;  %v6011_v61 = vunpack.i.h.bf16 %v6009_v14 }
 0x3e0   : > { %v1756_v29 = vpop.permute.xlu0 %1755 }
 0x3e1   : > { %v1839_v4 = vsel %vm924_vm4, %v1503_v58, %v1756_v29  ;;  %v2000_v41 = vpop.f32.mrf.mxu0 }
 0x3e2   : > { %5755 = vmatmul.msk.f32.gmra.mxu0 %vm958_vm6, %v1834_v11  ;;  %5760 = vmatmul.msk.f32.gmra.mxu2 %vm958_vm6, %v1839_v4 }
 0x3e4   : > { %1964 = vmatmul.f32.gmra.mxu1 %v1822_v55 }
 0x3e6   : > { %v1760_v6 = vpop.permute.xlu1 %1759  ;;  %v1696_v13 = vpop.permute.xlu2 %1695 }
 0x3e7   : > { %v1841_v51 = vsel %vm924_vm4, %v1505_v37, %v1760_v6 }
 0x3e8   : > { %v6004_v60 = vpop.permute.xlu0 %6003 }
 0x3e9   : > { %v6005_v16 = vunpack.i.l.bf16 %v6004_v60  ;;  %v6006_v23 = vunpack.i.h.bf16 %v6004_v60  ;;  %v2003_v9 = vpop.f32.mrf.mxu0  ;;  %v2045_v60 = vsel %vm474_vm2, %v7453_v35, 0.0 }
 0x3ea   : > { %5761 = vmatmul.msk.f32.gmra.mxu2 %vm958_vm6, %v1840_v28 }
 0x3eb   : > { %v1807_v1 = vsel %vm958_vm6, %v1791_v19, %v6005_v16  ;;  %v1808_v42 = vsel %vm958_vm6, %v1792_v15, %v6006_v23 }
 0x3ec   : > { %v1823_v22 = vsel %vm1003_vm7, %v1807_v1, %v6010_v20  ;;  %v1824_v27 = vsel %vm1003_vm7, %v1808_v42, %v6011_v61 }
 0x3ed   : > { %1967 = vmatmul.f32.gmra.mxu1 %v1823_v22 }
 0x3ee   : > { %v1632_v43 = vpop.permute.xlu1 %1631  ;;  %v1634_v36 = vpop.permute.xlu2 %1633 }
 0x3f0   : > { %v1748_v33 = vpop.permute.xlu0 %1747 }
 0x3f1   : > { %v1835_v62 = vsel %vm924_vm4, %v7358_v50, %v1748_v33  ;;  %v1836_v50 = vsel %vm924_vm4, %v7361_v34, %v1750_v25  ;;  %v2006_v57 = vpop.f32.mrf.mxu0 }
 0x3f2   : > { %5756 = vmatmul.msk.f32.gmra.mxu0 %vm958_vm6, %v1835_v62  ;;  %5762 = vmatmul.msk.f32.gmra.mxu2 %vm958_vm6, %v1841_v51 }
 0x3f5   : > { %1970 = vmatmul.f32.gmra.mxu1 %v1824_v27 }
 0x3f6   : > { %v1570_v47 = vpop.permute.xlu1 %1569 }
 0x3f7   : > { %v1794_v34 = vsel %vm924_vm4, %v7332_v7, %v1570_v47 }
 0x3f8   : > { %v1568_v5 = vpop.permute.xlu0 %1567  ;;  %v1810_v49 = vsel %vm958_vm6, %v1794_v34, %v1634_v36 }
 0x3f9   : > { %v1793_v39 = vsel %vm924_vm4, %v7334_v21, %v1568_v5  ;;  %v1935_v21 = vpop.f32.mrf.mxu1 }
 0x3fa   : > { %5757 = vmatmul.msk.f32.gmra.mxu0 %vm958_vm6, %v1836_v50  ;;  %v1809_v8 = vsel %vm958_vm6, %v1793_v39, %v1632_v43  ;;  %v7451_v48 = vadd.f32 %v2000_v41, %v1935_v21 }
 0x3fb   : > { %v1825_v63 = vsel %vm1003_vm7, %v1809_v8, %v1696_v13 }
 0x3fc   : > { %v2046_v0 = vsel %vm474_vm2, %v7451_v48, 0.0 }
 0x3fd   : > { %1973 = vmatmul.f32.gmra.mxu1 %v1825_v63  ;;  %v2047_v28 = vadd.f32 %v2046_v0, %v2045_v60 }
 0x400   : > { %v1762_v31 = vpop.permute.xlu0 %1761 }
 0x401   : > { %v1842_v10 = vsel %vm924_vm4, %v1506_v46, %v1762_v31  ;;  %v1938_v54 = vpop.f32.mrf.mxu1 }
 0x402   : > { %5763 = vmatmul.msk.f32.gmra.mxu2 %vm958_vm6, %v1842_v10  ;;  %v2009_v12 = vpop.f32.mrf.mxu0  ;;  %v7455_v55 = vadd.f32 %v2003_v9, %v1938_v54 }
 0x404   : > { %v2048_v44 = vsel %vm474_vm2, %v7455_v55, 0.0 }
 0x405   : > { %v2049_v22 = vadd.f32 %v2048_v44, %v2047_v28 }
 0x408   : > { %v1698_v40 = vpop.permute.xlu0 %1697 }
 0x409   : > { %v1826_v17 = vsel %vm1003_vm7, %v1810_v49, %v1698_v40  ;;  %v1941_v2 = vpop.f32.mrf.mxu1 }
 0x40a   : > { %1976 = vmatmul.f32.gmra.mxu1 %v1826_v17  ;;  %v7459_v24 = vadd.f32 %v2006_v57, %v1941_v2 }
 0x40c   : > { %v2050_v1 = vsel %vm474_vm2, %v7459_v24, 0.0 }
 0x40d   : > { %v2051_v25 = vadd.f32 %v2050_v1, %v2049_v22 }
 0x411   : > { %v1944_v52 = vpop.f32.mrf.mxu1 }
 0x412   : > { %v7465_v16 = vadd.f32 %v2009_v12, %v1944_v52 }
 0x414   : > { %v2052_v23 = vsel %vm474_vm2, %v7465_v16, 0.0 }
 0x415   : > { %v2053_v62 = vadd.f32 %v2052_v23, %v2051_v25 }
 0x419   : > { %v1947_v53 = vpop.f32.mrf.mxu1 }
 0x421   : > { %v1950_v3 = vpop.f32.mrf.mxu1 }
 0x429   : > { %v1953_v18 = vpop.f32.mrf.mxu1 }
 0x43b   : > { %v2027_v29 = vpop.f32.mrf.mxu2 }
 0x449   : > { %v1956_v30 = vpop.f32.mrf.mxu1 }
 0x44f   : > { %v2012_v56 = vpop.f32.mrf.mxu0 }
 0x450   : > { %v2013_v38 = vadd.f32 %v2012_v56, %v1947_v53 }
 0x451   : > { %v1959_v7 = vpop.f32.mrf.mxu1 }
 0x452   : > { %v2054_v37 = vsel %vm474_vm2, %v2013_v38, 0.0 }
 0x453   : > { %v2030_v4 = vpop.f32.mrf.mxu2  ;;  %v2055_v61 = vadd.f32 %v2054_v37, %v2053_v62 }
 0x457   : > { %v2015_v58 = vpop.f32.mrf.mxu0 }
 0x458   : > { %v2016_v6 = vadd.f32 %v2015_v58, %v1950_v3 }
 0x459   : > { %v1962_v26 = vpop.f32.mrf.mxu1 }
 0x45a   : > { %v2056_v51 = vsel %vm474_vm2, %v2016_v6, 0.0  ;;  %v2028_v32 = vadd.f32 %v2027_v29, %v1962_v26 }
 0x45b   : > { %v2057_v43 = vadd.f32 %v2056_v51, %v2055_v61 }
 0x45c   : > { %v2064_v21 = vsel %vm474_vm2, %v2028_v32, 0.0 }
 0x45f   : > { %v2018_v14 = vpop.f32.mrf.mxu0 }
 0x460   : > { %v2019_v15 = vadd.f32 %v2018_v14, %v1953_v18 }
 0x461   : > { %v1965_v11 = vpop.f32.mrf.mxu1 }
 0x462   : > { %v2058_v27 = vsel %vm474_vm2, %v2019_v15, 0.0  ;;  %v7478_v46 = vadd.f32 %v2030_v4, %v1965_v11 }
 0x463   : > { %v2059_v13 = vadd.f32 %v2058_v27, %v2057_v43 }
 0x464   : > { %v2066_v40 = vsel %vm474_vm2, %v7478_v46, 0.0 }
 0x465   : > { %v2033_v20 = vpop.f32.mrf.mxu2 }
 0x46a   : > { %v1968_v19 = vpop.f32.mrf.mxu1 }
 0x46b   : > { %v7482_v34 = vadd.f32 %v2033_v20, %v1968_v19 }
 0x46d   : > { %v2036_v5 = vpop.f32.mrf.mxu2  ;;  %v2068_v2 = vsel %vm474_vm2, %v7482_v34, 0.0 }
 0x46f   : > { %v2021_v33 = vpop.f32.mrf.mxu0 }
 0x470   : > { %v7473_v42 = vadd.f32 %v2021_v33, %v1956_v30 }
 0x472   : > { %v1971_v39 = vpop.f32.mrf.mxu1  ;;  %v2060_v50 = vsel %vm474_vm2, %v7473_v42, 0.0 }
 0x473   : > { %v2061_v31 = vadd.f32 %v2060_v50, %v2059_v13  ;;  %v2037_v52 = vadd.f32 %v2036_v5, %v1971_v39 }
 0x475   : > { %v2039_v49 = vpop.f32.mrf.mxu2  ;;  %v2070_v53 = vsel %vm474_vm2, %v2037_v52, 0.0 }
 0x477   : > { %v2024_v8 = vpop.f32.mrf.mxu0 }
 0x478   : > { %v2025_v63 = vadd.f32 %v2024_v8, %v1959_v7 }
 0x47a   : > { %v2062_v10 = vsel %vm474_vm2, %v2025_v63, 0.0  ;;  %v1974_v54 = vpop.f32.mrf.mxu1 }
 0x47b   : > { %v2063_v47 = vadd.f32 %v2062_v10, %v2061_v31  ;;  %v2040_v41 = vadd.f32 %v2039_v49, %v1974_v54 }
 0x47d   : > { %v2065_v36 = vadd.f32 %v2064_v21, %v2063_v47  ;;  %v2072_v57 = vsel %vm474_vm2, %v2040_v41, 0.0 }
 0x47f   : > { %v2067_v17 = vadd.f32 %v2066_v40, %v2065_v36 }
 0x481   : > { %v2069_v45 = vadd.f32 %v2068_v2, %v2067_v17 }
 0x483   : > { %v2071_v3 = vadd.f32 %v2070_v53, %v2069_v45 }
 0x485   : > { %v2042_v9 = vpop.f32.mrf.mxu2  ;;  %v2073_v12 = vadd.f32 %v2072_v57, %v2071_v3 }
 0x487   : > { %v1977_v18 = vpop.f32.mrf.mxu1 }
 0x488   : > { %v2043_v30 = vadd.f32 %v2042_v9, %v1977_v18 }
 0x48a   : > { %v2074_v7 = vsel %vm474_vm2, %v2043_v30, 0.0 }
 0x48b   : > { %v2075_v56 = vadd.f32 %v2074_v7, %v2073_v12 }
 0x48d   : > { %v2076_v26 = vrot.slane %v2075_v56, 4 }
 0x48f   : > { %v2077_v29 = vadd.f32 %v2076_v26, %v2075_v56 }
 0x491   : > { %v2078_v58 = vrot.slane %v2077_v29, 2 }
 0x493   : > { %v2079_v11 = vadd.f32 %v2078_v58, %v2077_v29 }
 0x495   : > { %v2080_v4 = vrot.slane %v2079_v11, 1 }
 0x497   : > { %v2081_v14 = vadd.f32 %v2080_v4, %v2079_v11 }
 0x499   : > { %v2082_v0 = vmul.f32 %v2081_v14, %v6888_v59 }
 0x49b   : > { %v7493_v60 = vsub.f32 %v7453_v35, %v2082_v0  ;;  %v7496_v44 = vsub.f32 %v7451_v48, %v2082_v0  ;;  %v7499_v28 = vsub.f32 %v7455_v55, %v2082_v0  ;;  %v7502_v20 = vsub.f32 %v7459_v24, %v2082_v0 }
 0x49c   : > { %v7509_v22 = vsub.f32 %v7465_v16, %v2082_v0  ;;  %v7513_v48 = vsub.f32 %v2013_v38, %v2082_v0  ;;  %v7519_v33 = vsub.f32 %v2016_v6, %v2082_v0  ;;  %v7524_v51 = vsub.f32 %v2019_v15, %v2082_v0 }
 0x49d   : > { %v2099_v19 = vmul.f32 %v7493_v60, %v7493_v60  ;;  %v2100_v1 = vmul.f32 %v7496_v44, %v7496_v44  ;;  %v2101_v35 = vmul.f32 %v7499_v28, %v7499_v28  ;;  %v2102_v55 = vmul.f32 %v7502_v20, %v7502_v20 }
 0x49e   : > { %v2103_v37 = vmul.f32 %v7509_v22, %v7509_v22  ;;  %v2104_v38 = vmul.f32 %v7513_v48, %v7513_v48  ;;  %v7530_v43 = vsub.f32 %v7473_v42, %v2082_v0  ;;  %v2105_v6 = vmul.f32 %v7519_v33, %v7519_v33 }
 0x49f   : > { %v2115_v24 = vsel %vm474_vm2, %v2099_v19, 0.0  ;;  %v2116_v23 = vsel %vm474_vm2, %v2100_v1, 0.0  ;;  %v2118_v16 = vsel %vm474_vm2, %v2101_v35, 0.0  ;;  %v2120_v61 = vsel %vm474_vm2, %v2102_v55, 0.0 }
 0x4a0   : > { %v2117_v25 = vadd.f32 %v2116_v23, %v2115_v24  ;;  %v2122_v5 = vsel %vm474_vm2, %v2103_v37, 0.0  ;;  %v7535_v50 = vsub.f32 %v2025_v63, %v2082_v0  ;;  %v2106_v15 = vmul.f32 %v7524_v51, %v7524_v51 }
 0x4a1   : > { %v2124_v13 = vsel %vm474_vm2, %v2104_v38, 0.0  ;;  %v7540_v31 = vsub.f32 %v2028_v32, %v2082_v0  ;;  %v2107_v42 = vmul.f32 %v7530_v43, %v7530_v43  ;;  %v2126_v10 = vsel %vm474_vm2, %v2105_v6, 0.0 }
 0x4a2   : > { %v2119_v62 = vadd.f32 %v2118_v16, %v2117_v25  ;;  %v7546_v21 = vsub.f32 %v7478_v46, %v2082_v0  ;;  %v2108_v63 = vmul.f32 %v7535_v50, %v7535_v50  ;;  %v2128_v36 = vsel %vm474_vm2, %v2106_v15, 0.0 }
 0x4a3   : > { %v7552_v49 = vsub.f32 %v7482_v34, %v2082_v0  ;;  %v2109_v32 = vmul.f32 %v7540_v31, %v7540_v31  ;;  %v2130_v17 = vsel %vm474_vm2, %v2107_v42, 0.0  ;;  %v7557_v2 = vsub.f32 %v2037_v52, %v2082_v0 }
 0x4a4   : > { %v2121_v27 = vadd.f32 %v2120_v61, %v2119_v62  ;;  %v2110_v46 = vmul.f32 %v7546_v21, %v7546_v21  ;;  %v2132_v45 = vsel %vm474_vm2, %v2108_v63, 0.0  ;;  %v7562_v3 = vsub.f32 %v2040_v41, %v2082_v0 }
 0x4a5   : > { %v2111_v34 = vmul.f32 %v7552_v49, %v7552_v49  ;;  %v2134_v9 = vsel %vm474_vm2, %v2109_v32, 0.0  ;;  %v2098_v57 = vsub.f32 %v2043_v30, %v2082_v0  ;;  %v2112_v12 = vmul.f32 %v7557_v2, %v7557_v2 }
 0x4a6   : > { %v2123_v39 = vadd.f32 %v2122_v5, %v2121_v27  ;;  %v2136_v52 = vsel %vm474_vm2, %v2110_v46, 0.0  ;;  %v2113_v56 = vmul.f32 %v7562_v3, %v7562_v3  ;;  %v7580_v5 = vld [vmem:[%s10046_s9 + $0x1] ss:$0 sm:$0xff] }
 0x4a7   : > { %v2138_v26 = vsel %vm474_vm2, %v2111_v34, 0.0  ;;  %v2114_v29 = vmul.f32 %v2098_v57, %v2098_v57  ;;  %v2140_v58 = vsel %vm474_vm2, %v2112_v12, 0.0  ;;  %v2384_v12 = vld [vmem:[#allocation2 + $0x92] sm:$0xff] }
 0x4a8   : > { %v2125_v8 = vadd.f32 %v2124_v13, %v2123_v39  ;;  %v2142_v4 = vsel %vm474_vm2, %v2113_v56, 0.0  ;;  %v2381_v56 = vld [vmem:[#allocation2 + $0x6a] sm:$0xff] }
 0x4a9   : > { %v2144_v30 = vsel %vm474_vm2, %v2114_v29, 0.0 }
 0x4aa   : > { %v2127_v47 = vadd.f32 %v2126_v10, %v2125_v8  ;;  %v7590_v8 = vld [vmem:[%s10047_s10 + $0x1] ss:$0 sm:$0xff] }
 0x4ac   : > { %v2129_v40 = vadd.f32 %v2128_v36, %v2127_v47  ;;  %v7601_v36 = vld [vmem:[%s10048_s11 + $0x1] ss:$0 sm:$0xff] }
 0x4ae   : > { %v2131_v54 = vadd.f32 %v2130_v17, %v2129_v40 }
 0x4b0   : > { %v2133_v53 = vadd.f32 %v2132_v45, %v2131_v54 }
 0x4b2   : > { %v2135_v18 = vadd.f32 %v2134_v9, %v2133_v53 }
 0x4b4   : > { %v2137_v7 = vadd.f32 %v2136_v52, %v2135_v18  ;;  %v2382_v18 = vld [vmem:[#allocation2 + $0x7a] sm:$0xff] }
 0x4b5   : > { %v2385_v52 = vld [vmem:[#allocation2 + $0x9a] sm:$0xff] }
 0x4b6   : > { %v2139_v41 = vadd.f32 %v2138_v26, %v2137_v7  ;;  %v2380_v7 = vld [vmem:[#allocation2 + $0x62] sm:$0xff]  ;;  %v6032_v29 = vpack.i.bf16 %v2385_v52, %v2384_v12 }
 0x4b8   : > { %v2141_v11 = vadd.f32 %v2140_v58, %v2139_v41 }
 0x4ba   : > { %v2143_v14 = vadd.f32 %v2142_v4, %v2141_v11  ;;  %v6012_v4 = vpack.i.bf16 %v2381_v56, %v2380_v7 }
 0x4bc   : > { %v2145_v0 = vadd.f32 %v2144_v30, %v2143_v14  ;;  %v2366_v14 = vld [vmem:[#allocation2 + $0x79] sm:$0xff]  ;;  %v2367_v30 = vld [vmem:[#allocation2 + $0x81] sm:$0xff] }
 0x4be   : > { %v2146_v19 = vrot.slane %v2145_v0, 4 }
 0x4c0   : > { %v2147_v1 = vadd.f32 %v2146_v19, %v2145_v0 }
 0x4c2   : > { %v2148_v35 = vrot.slane %v2147_v1, 2 }
 0x4c4   : > { %v2149_v55 = vadd.f32 %v2148_v35, %v2147_v1 }
 0x4c6   : > { %v2150_v24 = vrot.slane %v2149_v55, 1 }
 0x4c8   : > { %v2151_v23 = vadd.f32 %v2150_v24, %v2149_v55  ;;  %v2369_v24 = vld [vmem:[#allocation2 + $0x99] sm:$0xff] }
 0x4ca   : > { %v2152_v25 = vmul.f32 %v2151_v23, %v6888_v59 }
 0x4cc   : > { %v2153_v37 = vadd.f32 1e-05, %v2152_v25 }
 0x4ce   : > { %6299 = vrsqrt.f32 %v2153_v37  ;;  %vm2160_vm8 = vweird.f32 %v2153_v37 }
 0x4d4   : > { %v6300_v16 = vpop.eup %6299 }
 0x4d5   : > { %v2155_v62 = vmul.f32 %v6300_v16, %v2153_v37  ;;  %vm2161_vm3 = vweird.f32 %v6300_v16 }
 0x4d6   : > { %vm2162_vm9 = vmor %vm2160_vm8, %vm2161_vm3 }
 0x4d7   : > { %v2156_v38 = vmul.f32 %v6300_v16, %v2155_v62 }
 0x4d9   : > { %v2157_v61 = vmul.f32 0.5, %v2156_v38 }
 0x4db   : > { %v2158_v27 = vsub.f32 1.5, %v2157_v61 }
 0x4dd   : > { %v2159_v6 = vmul.f32 %v6300_v16, %v2158_v27 }
 0x4df   : > { %v7582_v39 = vsel %vm2162_vm9, %v6300_v16, %v2159_v6 }
 0x4e0   : > { %v2179_v15 = vmul.f32 %v7582_v39, %v2098_v57  ;;  %v2166_v13 = vmul.f32 %v7582_v39, %v7499_v28  ;;  %v2165_v42 = vmul.f32 %v7582_v39, %v7496_v44  ;;  %v2164_v10 = vmul.f32 %v7582_v39, %v7493_v60  ;;  %v2383_v57 = vld [vmem:[#allocation2 + $0x82] sm:$0xff] }
 0x4e1   : > { %v2167_v45 = vmul.f32 %v7582_v39, %v7502_v20  ;;  %v2176_v20 = vmul.f32 %v7582_v39, %v7552_v49  ;;  %v6022_v41 = vpack.i.bf16 %v2383_v57, %v2382_v18  ;;  %v2175_v11 = vmul.f32 %v7582_v39, %v7546_v21 }
 0x4e2   : > { %v2197_v47 = vmul.f32 %v7580_v5, %v2179_v15  ;;  %v2184_v63 = vmul.f32 %v7580_v5, %v2166_v13  ;;  %v2183_v28 = vmul.f32 %v7580_v5, %v2165_v42  ;;  %v2182_v40 = vmul.f32 %v7580_v5, %v2164_v10 }
 0x4e3   : > { %v2185_v26 = vmul.f32 %v7580_v5, %v2167_v45  ;;  %v2194_v58 = vmul.f32 %v7580_v5, %v2176_v20  ;;  %v2169_v0 = vmul.f32 %v7582_v39, %v7513_v48  ;;  %v2168_v1 = vmul.f32 %v7582_v39, %v7509_v22  ;;  %v2368_v48 = vld [vmem:[#allocation2 + $0x91] sm:$0xff]  ;;  %v2364_v45 = vld [vmem:[#allocation2 + $0x61] sm:$0xff] }
 0x4e4   : > { %v2202_v32 = vadd.f32 %v7590_v8, %v2184_v63  ;;  %v2201_v44 = vadd.f32 %v7590_v8, %v2183_v28  ;;  %v2200_v17 = vadd.f32 %v7590_v8, %v2182_v40  ;;  %v2193_v35 = vmul.f32 %v7580_v5, %v2175_v11 }
 0x4e5   : > { %v2203_v19 = vadd.f32 %v7590_v8, %v2185_v26  ;;  %v2212_v49 = vadd.f32 %v7590_v8, %v2194_v58  ;;  %v2178_v55 = vmul.f32 %v7582_v39, %v7562_v3  ;;  %v6027_v21 = vpack.i.bf16 %v2367_v30, %v2366_v14 }
 0x4e6   : > { %vm2218_vm10 = vcmp.gt.f32.partialorder %v2202_v32, 0.0  ;;  %v2236_v60 = vmul.f32 %v7601_v36, %v2202_v32  ;;  %vm2217_vm11 = vcmp.gt.f32.partialorder %v2201_v44, 0.0  ;;  %v2235_v54 = vmul.f32 %v7601_v36, %v2201_v44 }
 0x4e7   : > { %vm2216_vm12 = vcmp.gt.f32.partialorder %v2200_v17, 0.0  ;;  %v2234_v46 = vmul.f32 %v7601_v36, %v2200_v17  ;;  %v2187_v23 = vmul.f32 %v7580_v5, %v2169_v0  ;;  %vm2228_vm13 = vcmp.gt.f32.partialorder %v2212_v49, 0.0 }
 0x4e8   : > { %v2252_v53 = vsel %vm2218_vm10, %v2202_v32, %v2236_v60  ;;  %v2251_v34 = vsel %vm2217_vm11, %v2201_v44, %v2235_v54  ;;  %v2246_v22 = vmul.f32 %v7601_v36, %v2212_v49  ;;  %v2211_v25 = vadd.f32 %v7590_v8, %v2193_v35  ;;  %v2860_v35 = vld [vmem:[%s10040_s3 + $0x78] sm:$0xff] }
 0x4e9   : > { %2286 = vrot.lane.b32.xlu0 %v2252_v53, %s6317_s28  ;;  %2284 = vrot.lane.b32.xlu2 %v2251_v34, %s6317_s28  ;;  %v2250_v9 = vsel %vm2216_vm12, %v2200_v17, %v2234_v46  ;;  %v2237_v37 = vmul.f32 %v7601_v36, %v2203_v19  ;;  %v2186_v3 = vmul.f32 %v7580_v5, %v2168_v1  ;;  %vm2219_vm15 = vcmp.gt.f32.partialorder %v2203_v19, 0.0 }
 0x4ea   : > { %2282 = vrot.lane.b32.xlu1 %v2250_v9, %s6317_s28  ;;  %v2196_v16 = vmul.f32 %v7580_v5, %v2178_v55  ;;  %v2177_v62 = vmul.f32 %v7582_v39, %v7557_v2  ;;  %v7642_v38 = vsel %vm2228_vm13, %v2212_v49, %v2246_v22  ;;  %vm2227_vm14 = vcmp.gt.f32.partialorder %v2211_v25, 0.0  ;;  %2913 = vmatpush.msrb.mxu3 %v2860_v35  ;;  %v2857_v55 = vld [vmem:[%s10040_s3 + $0x60] sm:$0xff]  ;;  %v2386_v35 = vld [vmem:[#allocation2 + $0xaa] sm:$0xff] }
 0x4eb   : > { %v2245_v61 = vmul.f32 %v7601_v36, %v2211_v25  ;;  %v2215_v27 = vadd.f32 %v7590_v8, %v2197_v47  ;;  %v6037_v6 = vpack.i.bf16 %v2369_v24, %v2368_v48  ;;  %v2170_v42 = vmul.f32 %v7582_v39, %v7519_v33  ;;  %v2855_v48 = vld [vmem:[%s10040_s3 + $0x50] sm:$0xff]  ;;  %v2853_v22 = vld [vmem:[%s10040_s3 + $0x40] sm:$0xff] }
 0x4ec   : > { %v2214_v15 = vadd.f32 %v7590_v8, %v2196_v16  ;;  %v2195_v13 = vmul.f32 %v7580_v5, %v2177_v62  ;;  %v2205_v63 = vadd.f32 %v7590_v8, %v2187_v23  ;;  %v2253_v40 = vsel %vm2219_vm15, %v2203_v19, %v2237_v37  ;;  %v2854_v23 = vld [vmem:[%s10040_s3 + $0x48] sm:$0xff]  ;;  %v2851_v37 = vld [vmem:[%s10040_s3 + $0x30] sm:$0xff]  ;;  %v2849_v62 = vld [vmem:[%s10040_s3 + $0x20] sm:$0xff] }
 0x4ed   : > { %v7650_v10 = vsel %vm2227_vm14, %v2211_v25, %v2245_v61  ;;  %vm2231_vm0 = vcmp.gt.f32.partialorder %v2215_v27, 0.0  ;;  %v2249_v2 = vmul.f32 %v7601_v36, %v2215_v27  ;;  %v2204_v32 = vadd.f32 %v7590_v8, %v2186_v3  ;;  %v2852_v25 = vld [vmem:[%s10040_s3 + $0x38] sm:$0xff]  ;;  %v2850_v16 = vld [vmem:[%s10040_s3 + $0x28] sm:$0xff] }
 0x4ee   : > { %vm2230_vm1 = vcmp.gt.f32.partialorder %v2214_v15, 0.0  ;;  %v2248_v28 = vmul.f32 %v7601_v36, %v2214_v15  ;;  %v2213_v47 = vadd.f32 %v7590_v8, %v2195_v13  ;;  %v2172_v44 = vmul.f32 %v7582_v39, %v7530_v43  ;;  %v2365_v43 = vld [vmem:[#allocation2 + $0x69] sm:$0xff]  ;;  %v2848_v61 = vld [vmem:[%s10040_s3 + $0x18] sm:$0xff]  ;;  %v2845_v13 = vld [vmem:[%s10040_s3] sm:$0xff] }
 0x4ef   : > { %v7659_v17 = vsel %vm2231_vm0, %v2215_v27, %v2249_v2  ;;  %v2171_v33 = vmul.f32 %v7582_v39, %v7524_v51  ;;  %v2239_v46 = vmul.f32 %v7601_v36, %v2205_v63  ;;  %vm2221_vm8 = vcmp.gt.f32.partialorder %v2205_v63, 0.0  ;;  %v2847_v27 = vld [vmem:[%s10040_s3 + $0x10] sm:$0xff] }
 0x4f0   : > { %v7665_v60 = vsel %vm2230_vm1, %v2214_v15, %v2248_v28  ;;  %vm2229_vm3 = vcmp.gt.f32.partialorder %v2213_v47, 0.0  ;;  %v2247_v54 = vmul.f32 %v7601_v36, %v2213_v47  ;;  %v2238_v34 = vmul.f32 %v7601_v36, %v2204_v32  ;;  %v2846_v15 = vld [vmem:[%s10040_s3 + $0x8] sm:$0xff] }
 0x4f1   : > { %6023 = vrot.lane.b32.xlu0 %v6022_v41, %s6322_s16  ;;  %6033 = vrot.lane.b32.xlu2 %v6032_v29, %s6322_s16  ;;  %v2188_v9 = vmul.f32 %v7580_v5, %v2170_v42  ;;  %v2190_v51 = vmul.f32 %v7580_v5, %v2172_v44  ;;  %vm2220_vm9 = vcmp.gt.f32.partialorder %v2204_v32, 0.0  ;;  %v2189_v18 = vmul.f32 %v7580_v5, %v2171_v33 }
 0x4f2   : > { %6013 = vrot.lane.b32.xlu1 %v6012_v4, %s6322_s16  ;;  %v7670_v53 = vsel %vm2229_vm3, %v2213_v47, %v2247_v54  ;;  %v6017_v57 = vpack.i.bf16 %v2365_v43, %v2364_v45  ;;  %v2255_v12 = vsel %vm2221_vm8, %v2205_v63, %v2239_v46  ;;  %v2254_v52 = vsel %vm2220_vm9, %v2204_v32, %v2238_v34 }
 0x4f3   : > { %v2206_v7 = vadd.f32 %v7590_v8, %v2188_v9  ;;  %v2208_v56 = vadd.f32 %v7590_v8, %v2190_v51  ;;  %v2173_v26 = vmul.f32 %v7582_v39, %v7535_v50  ;;  %v2207_v20 = vadd.f32 %v7590_v8, %v2189_v18 }
 0x4f4   : > { %v2174_v41 = vmul.f32 %v7582_v39, %v7540_v31  ;;  %vm2330_vm15 = vcmask 392448   ;;  %vm2828_vm0 = vcmask 916480  }
 0x4f5   : > { %v2240_v29 = vmul.f32 %v7601_v36, %v2206_v7  ;;  %v2242_v58 = vmul.f32 %v7601_v36, %v2208_v56  ;;  %v2191_v11 = vmul.f32 %v7580_v5, %v2173_v26  ;;  %vm2222_vm10 = vcmp.gt.f32.partialorder %v2206_v7, 0.0 }
 0x4f6   : > { %vm2224_vm11 = vcmp.gt.f32.partialorder %v2208_v56, 0.0  ;;  %v2241_v50 = vmul.f32 %v7601_v36, %v2207_v20  ;;  %v2192_v4 = vmul.f32 %v7580_v5, %v2174_v41  ;;  %vm2223_vm12 = vcmp.gt.f32.partialorder %v2207_v20, 0.0 }
 0x4f7   : > { %v2256_v14 = vsel %vm2222_vm10, %v2206_v7, %v2240_v29  ;;  %v2258_v30 = vsel %vm2224_vm11, %v2208_v56, %v2242_v58  ;;  %v2209_v0 = vadd.f32 %v7590_v8, %v2191_v11  ;;  %v2349_v11 = vld [vmem:[#allocation2 + $0x68] sm:$0xff] }
 0x4f8   : > { %v2257_v31 = vsel %vm2223_vm12, %v2207_v20, %v2241_v50  ;;  %v2210_v39 = vadd.f32 %v7590_v8, %v2192_v4  ;;  %v2859_v8 = vld [vmem:[%s10040_s3 + $0x70] sm:$0xff] }
 0x4f9   : > { %6028 = vrot.lane.b32.xlu0 %v6027_v21, %s6318_s29  ;;  %6038 = vrot.lane.b32.xlu2 %v6037_v6, %s6318_s29  ;;  %v2243_v19 = vmul.f32 %v7601_v36, %v2209_v0  ;;  %vm2225_vm13 = vcmp.gt.f32.partialorder %v2209_v0, 0.0  ;;  %v2856_v21 = vld [vmem:[%s10040_s3 + $0x58] sm:$0xff] }
 0x4fa   : > { %2288 = vrot.lane.b32.xlu1 %v2253_v40, %s6317_s28  ;;  %v2244_v1 = vmul.f32 %v7601_v36, %v2210_v39  ;;  %vm2226_vm14 = vcmp.gt.f32.partialorder %v2210_v39, 0.0  ;;  %2914 = vmatpush.msrb.mxu3 %v2859_v8  ;;  %v2858_v36 = vld [vmem:[%s10040_s3 + $0x68] sm:$0xff]  ;;  %v2387_v8 = vld [vmem:[#allocation2 + $0xb2] sm:$0xff] }
 0x4fb   : > { %v2259_v5 = vsel %vm2225_vm13, %v2209_v0, %v2243_v19 }
 0x4fc   : > { %v2260_v49 = vsel %vm2226_vm14, %v2210_v39, %v2244_v1  ;;  %2915 = vmatpush.msrb.mxu3 %v2858_v36 }
 0x4fe   : > { %2916 = vmatpush.msrb.mxu3 %v2857_v55 }
 0x500   : > { %2917 = vmatpush.msrb.mxu3 %v2856_v21  ;;  %v2350_v21 = vld [vmem:[#allocation2 + $0x78] sm:$0xff] }
 0x501   : > { %2292 = vrot.lane.b32.xlu0 %v2255_v12, %s6317_s28  ;;  %2290 = vrot.lane.b32.xlu2 %v2254_v52, %s6317_s28  ;;  %v2348_v52 = vld [vmem:[#allocation2 + $0x60] sm:$0xff] }
 0x502   : > { %6018 = vrot.lane.b32.xlu1 %v6017_v57, %s6318_s29  ;;  %2918 = vmatpush.msrb.mxu3 %v2855_v48 }
 0x504   : > { %2919 = vmatpush.msrb.mxu3 %v2854_v23  ;;  %v6062_v23 = vpack.i.bf16 %v2387_v8, %v2386_v35  ;;  %v2871_v35 = vld [vmem:[%s10040_s3 + $0xd0] sm:$0xff]  ;;  %v2870_v8 = vld [vmem:[%s10040_s3 + $0xc8] sm:$0xff] }
 0x506   : > { %2920 = vmatpush.msrb.mxu3 %v2853_v22 }
 0x508   : > { %2921 = vmatpush.msrb.mxu3 %v2852_v25 }
 0x509   : > { %2294 = vrot.lane.b32.xlu0 %v2256_v14, %s6317_s28  ;;  %2298 = vrot.lane.b32.xlu2 %v2258_v30, %s6317_s28 }
 0x50a   : > { %2296 = vrot.lane.b32.xlu1 %v2257_v31, %s6317_s28  ;;  %2922 = vmatpush.msrb.mxu3 %v2851_v37 }
 0x50c   : > { %2923 = vmatpush.msrb.mxu3 %v2850_v16 }
 0x50e   : > { %2924 = vmatpush.msrb.mxu3 %v2849_v62 }
 0x510   : > { %2925 = vmatpush.msrb.mxu3 %v2848_v61 }
 0x511   : > { %2300 = vrot.lane.b32.xlu0 %v2259_v5, %s6317_s28 }
 0x512   : > { %2302 = vrot.lane.b32.xlu1 %v2260_v49, %s6317_s28  ;;  %2926 = vmatpush.msrb.mxu3 %v2847_v27  ;;  %v2351_v27 = vld [vmem:[#allocation2 + $0x80] sm:$0xff] }
 0x514   : > { %2927 = vmatpush.msrb.mxu3 %v2846_v15 }
 0x516   : > { %2928 = vmatpush.msrb.mxu3 %v2845_v13 }
 0x543   : > { %v2285_v24 = vpop.permute.xlu2 %2284 }
 0x544   : > { %2332 = vst.msk [vmem:[#allocation2 + $0xc9] sm:$0xff] %vm2330_vm15, %v2285_v24 }
 0x54b   : > { %v7731_v3 = vpop.permute.xlu2 %6033  ;;  %v2413_v34 = vld [vmem:[#allocation2 + $0xc9] sm:$0xff] }
 0x54c   : > { %v7789_v26 = vld [vmem:[#allocation2 + $0xca] sm:$0xff] }
 0x553   : > { %v7745_v6 = vpop.permute.xlu2 %6038 }
 0x55b   : > { %v2287_v42 = vpop.permute.xlu0 %2286  ;;  %v2291_v2 = vpop.permute.xlu2 %2290 }
 0x55c   : > { %v2283_v63 = vpop.permute.xlu1 %2282  ;;  %2333 = vst.msk [vmem:[#allocation2 + $0xd9] sm:$0xff] %vm2330_vm15, %v2287_v42 }
 0x55d   : > { %2331 = vst.msk [vmem:[#allocation2 + $0xc1] sm:$0xff] %vm2330_vm15, %v2283_v63  ;;  %v6040_v63 = vunpack.i.l.bf16 %v7745_v6 }
 0x55e   : > { %2335 = vst.msk [vmem:[#allocation2 + $0xf1] sm:$0xff] %vm2330_vm15, %v2291_v2 }
 0x563   : > { %v7756_v28 = vpop.permute.xlu0 %6023  ;;  %v2299_v47 = vpop.permute.xlu2 %2298  ;;  %v7782_v57 = vld [vmem:[#allocation2 + $0xd8] sm:$0xff] }
 0x564   : > { %v7758_v40 = vpop.permute.xlu1 %6013  ;;  %v7760_v32 = vld [vmem:[#allocation2 + $0xc2] sm:$0xff]  ;;  %2339 = vst.msk [vmem:[#allocation2 + $0x121] sm:$0xff] %vm2330_vm15, %v2299_v47  ;;  %v2414_v31 = vld [vmem:[#allocation2 + $0xd9] sm:$0xff]  ;;  %v6025_v22 = vunpack.i.l.bf16 %v7756_v28  ;;  %v6026_v15 = vunpack.i.h.bf16 %v7756_v28 }
 0x565   : > { %v7763_v44 = vld [vmem:[#allocation2 + $0xc0] sm:$0xff]  ;;  %v7765_v33 = vld [vmem:[#allocation2 + $0xc8] sm:$0xff]  ;;  %2716 = vrot.lane.b32.xlu0 %v7760_v32, %s6323_s26  ;;  %v7798_v4 = vld [vmem:[#allocation2 + $0xf0] sm:$0xff]  ;;  %v6016_v1 = vunpack.i.h.bf16 %v7758_v40 }
 0x566   : > { %v6042_v54 = vpack.i.bf16 %v7765_v33, %v7763_v44  ;;  %v2412_v46 = vld [vmem:[#allocation2 + $0xc1] sm:$0xff]  ;;  %v2416_v24 = vld [vmem:[#allocation2 + $0xf1] sm:$0xff] }
 0x567   : > { %v7777_v9 = vpack.i.bf16 %v2413_v34, %v2412_v46  ;;  %v2352_v46 = vld [vmem:[#allocation2 + $0x90] sm:$0xff] }
 0x568   : > { %6043 = vrot.lane.b32.xlu2 %v6042_v54, %s6316_s24  ;;  %v2768_v34 = vsel %vm941_vm5, %v2352_v46, %v6040_v63  ;;  %v2877_v63 = vld [vmem:[%s10040_s3 + $0x100] sm:$0xff] }
 0x56b   : > { %v7772_v45 = vpop.permute.xlu0 %6028  ;;  %v2420_v46 = vld [vmem:[#allocation2 + $0x121] sm:$0xff] }
 0x56c   : > { %v2289_v43 = vpop.permute.xlu1 %2288  ;;  %v6030_v36 = vunpack.i.l.bf16 %v7772_v45  ;;  %v6031_v61 = vunpack.i.h.bf16 %v7772_v45  ;;  %v6035_v45 = vunpack.i.l.bf16 %v7731_v3 }
 0x56d   : > { %2334 = vst.msk [vmem:[#allocation2 + $0xe1] sm:$0xff] %vm2330_vm15, %v2289_v43  ;;  %2306 = vrot.lane.b32.xlu0 %v7642_v38, %s6317_s28  ;;  %v6015_v38 = vunpack.i.l.bf16 %v7758_v40 }
 0x56e   : > { %v2766_v16 = vsel %vm941_vm5, %v2350_v21, %v6030_v36  ;;  %v2767_v42 = vsel %vm941_vm5, %v2351_v27, %v6031_v61  ;;  %v2864_v61 = vld [vmem:[%s10040_s3 + $0x98] sm:$0xff]  ;;  %v2879_v27 = vld [vmem:[%s10040_s3 + $0x110] sm:$0xff] }
 0x56f   : > { %v2782_v62 = vsel %vm1003_vm7, %v2766_v16, %v6025_v22  ;;  %v2783_v2 = vsel %vm1003_vm7, %v2767_v42, %v6026_v15  ;;  %v2878_v42 = vld [vmem:[%s10040_s3 + $0x108] sm:$0xff] }
 0x570   : > { %6048 = vrot.lane.b32.xlu2 %v7777_v9, %s6319_s30 }
 0x573   : > { %v2293_v51 = vpop.permute.xlu0 %2292 }
 0x574   : > { %2336 = vst.msk [vmem:[#allocation2 + $0xf9] sm:$0xff] %vm2330_vm15, %v2293_v51  ;;  %v6019_v18 = vpop.permute.xlu1 %6018  ;;  %v7784_v12 = vld [vmem:[#allocation2 + $0xe0] sm:$0xff] }
 0x575   : > { %v6020_v7 = vunpack.i.l.bf16 %v6019_v18  ;;  %v6052_v56 = vpack.i.bf16 %v7784_v12, %v7782_v57  ;;  %v6021_v29 = vunpack.i.h.bf16 %v6019_v18  ;;  %v2415_v58 = vld [vmem:[#allocation2 + $0xe1] sm:$0xff]  ;;  %v2876_v18 = vld [vmem:[%s10040_s3 + $0xf8] sm:$0xff] }
 0x576   : > { %v7806_v39 = vpack.i.bf16 %v2415_v58, %v2414_v31  ;;  %v7811_v5 = vld [vmem:[#allocation2 + $0xda] sm:$0xff]  ;;  %2978 = vmatpush.msrb.mxu2 %v2876_v18  ;;  %v6092_v31 = vpack.i.bf16 %v7789_v26, %v7760_v32  ;;  %v2862_v18 = vld [vmem:[%s10040_s3 + $0x88] sm:$0xff] }
 0x577   : > { %6053 = vrot.lane.b32.xlu1 %v6052_v56, %s6316_s24  ;;  %v2764_v20 = vsel %vm941_vm5, %v2348_v52, %v6020_v7  ;;  %v2765_v19 = vsel %vm941_vm5, %v2349_v11, %v6021_v29  ;;  %v2875_v52 = vld [vmem:[%s10040_s3 + $0xf0] sm:$0xff]  ;;  %v2784_v7 = vsel %vm1003_vm7, %v2768_v34, %v6035_v45  ;;  %v2874_v29 = vld [vmem:[%s10040_s3 + $0xe8] sm:$0xff] }
 0x578   : > { %2718 = vrot.lane.b32.xlu2 %v7789_v26, %s6323_s26  ;;  %v2780_v41 = vsel %vm1003_vm7, %v2764_v20, %v6015_v38  ;;  %v2781_v49 = vsel %vm1003_vm7, %v2765_v19, %v6016_v1  ;;  %v2370_v56 = vld [vmem:[#allocation2 + $0xa9] sm:$0xff]  ;;  %v2371_v20 = vld [vmem:[#allocation2 + $0xb1] sm:$0xff]  ;;  %2979 = vmatpush.msrb.mxu2 %v2875_v52  ;;  %v2861_v52 = vld [vmem:[%s10040_s3 + $0x80] sm:$0xff] }
 0x579   : > { %2929 = vmatmul.f32.vlgmr.msrb.gmra.mxu3 %v2780_v41  ;;  %v6041_v41 = vunpack.i.h.bf16 %v7745_v6  ;;  %v2872_v26 = vld [vmem:[%s10040_s3 + $0xd8] sm:$0xff] }
 0x57a   : > { %2980 = vmatpush.msrb.mxu2 %v2874_v29 }
 0x57b   : > { %v2295_v50 = vpop.permute.xlu0 %2294  ;;  %v7800_v14 = vld [vmem:[#allocation2 + $0xf8] sm:$0xff] }
 0x57c   : > { %2337 = vst.msk [vmem:[#allocation2 + $0x109] sm:$0xff] %vm2330_vm15, %v2295_v50  ;;  %v2297_v30 = vpop.permute.xlu1 %2296  ;;  %v6067_v0 = vpack.i.bf16 %v7800_v14, %v7798_v4  ;;  %v2417_v55 = vld [vmem:[#allocation2 + $0xf9] sm:$0xff] }
 0x57d   : > { %2338 = vst.msk [vmem:[#allocation2 + $0x111] sm:$0xff] %vm2330_vm15, %v2297_v30  ;;  %v7823_v37 = vpack.i.bf16 %v2417_v55, %v2416_v24  ;;  %v7837_v13 = vld [vmem:[#allocation2 + $0xfa] sm:$0xff]  ;;  %v7862_v51 = vld [vmem:[#allocation2 + $0xf2] sm:$0xff]  ;;  %v6077_v30 = vpack.i.bf16 %v2371_v20, %v2370_v56 }
 0x57e   : > { %6068 = vrot.lane.b32.xlu0 %v6067_v0, %s6316_s24  ;;  %v2353_v50 = vld [vmem:[#allocation2 + $0x98] sm:$0xff]  ;;  %v6036_v0 = vunpack.i.h.bf16 %v7731_v3  ;;  %v2869_v55 = vld [vmem:[%s10040_s3 + $0xc0] sm:$0xff] }
 0x57f   : > { %6058 = vrot.lane.b32.xlu1 %v7806_v39, %s6319_s30  ;;  %v2769_v19 = vsel %vm941_vm5, %v2353_v50, %v6041_v41  ;;  %v2404_v24 = vld [vmem:[#allocation2 + $0x120] sm:$0xff] }
 0x580   : > { %2720 = vrot.lane.b32.xlu2 %v7811_v5, %s6323_s26  ;;  %v2785_v32 = vsel %vm1003_vm7, %v2769_v19, %v6036_v0 }
 0x581   : > { %2932 = vmatmul.f32.gmra.mxu3 %v2781_v49  ;;  %v2873_v49 = vld [vmem:[%s10040_s3 + $0xe0] sm:$0xff] }
 0x582   : > { %2981 = vmatpush.msrb.mxu2 %v2873_v49 }
 0x583   : > { %v2301_v48 = vpop.permute.xlu0 %2300  ;;  %v7852_v47 = vld [vmem:[#allocation2 + $0x108] sm:$0xff] }
 0x584   : > { %2340 = vst.msk [vmem:[#allocation2 + $0x129] sm:$0xff] %vm2330_vm15, %v2301_v48  ;;  %v2303_v25 = vpop.permute.xlu1 %2302  ;;  %v7854_v54 = vld [vmem:[#allocation2 + $0x110] sm:$0xff]  ;;  %2982 = vmatpush.msrb.mxu2 %v2872_v26  ;;  %v2868_v48 = vld [vmem:[%s10040_s3 + $0xb8] sm:$0xff] }
 0x585   : > { %2341 = vst.msk [vmem:[#allocation2 + $0x139] sm:$0xff] %vm2330_vm15, %v2303_v25  ;;  %v7857_v43 = vld [vmem:[#allocation2 + $0x10a] sm:$0xff]  ;;  %v7912_v36 = vld [vmem:[#allocation2 + $0x112] sm:$0xff] }
 0x586   : > { %6073 = vrot.lane.b32.xlu0 %v7823_v37, %s6319_s30  ;;  %v7882_v58 = vld [vmem:[#allocation2 + $0x109] sm:$0xff]  ;;  %v7884_v11 = vld [vmem:[#allocation2 + $0x111] sm:$0xff]  ;;  %2983 = vmatpush.msrb.mxu2 %v2871_v35 }
 0x587   : > { %6063 = vrot.lane.b32.xlu1 %v6062_v23, %s6322_s16  ;;  %v6087_v6 = vpack.i.bf16 %v7884_v11, %v7882_v58  ;;  %v2866_v25 = vld [vmem:[%s10040_s3 + $0xa8] sm:$0xff] }
 0x588   : > { %2304 = vrot.lane.b32.xlu2 %v7650_v10, %s6317_s28  ;;  %v7842_v10 = vld [vmem:[#allocation2 + $0xe2] sm:$0xff]  ;;  %2984 = vmatpush.msrb.mxu2 %v2870_v8 }
 0x589   : > { %2935 = vmatmul.f32.gmra.mxu3 %v2782_v62  ;;  %v2865_v62 = vld [vmem:[%s10040_s3 + $0xa0] sm:$0xff]  ;;  %v6112_v34 = vpack.i.bf16 %v7842_v10, %v7811_v5 }
 0x58a   : > { %2985 = vmatpush.msrb.mxu2 %v2869_v55 }
 0x58b   : > { %v2405_v21 = vld [vmem:[#allocation2 + $0x128] sm:$0xff] }
 0x58c   : > { %2986 = vmatpush.msrb.mxu2 %v2868_v48  ;;  %v6097_v23 = vpack.i.bf16 %v2405_v21, %v2404_v24  ;;  %v2436_v16 = vld [vmem:[#allocation2 + $0x122] sm:$0xff]  ;;  %v2422_v8 = vld [vmem:[#allocation2 + $0x139] sm:$0xff] }
 0x58d   : > { %v2406_v55 = vld [vmem:[#allocation2 + $0x138] sm:$0xff] }
 0x58e   : > { %2726 = vrot.lane.b32.xlu0 %v7837_v13, %s6323_s26 }
 0x58f   : > { %2722 = vrot.lane.b32.xlu1 %v7842_v10, %s6323_s26 }
 0x590   : > { %2310 = vrot.lane.b32.xlu2 %v7665_v60, %s6317_s28  ;;  %v6082_v60 = vpack.i.bf16 %v7854_v54, %v7852_v47 }
 0x591   : > { %2938 = vmatmul.f32.gmra.mxu3 %v2783_v2  ;;  %v2863_v2 = vld [vmem:[%s10040_s3 + $0x90] sm:$0xff] }
 0x596   : > { %2728 = vrot.lane.b32.xlu0 %v7857_v43, %s6323_s26 }
 0x597   : > { %2724 = vrot.lane.b32.xlu1 %v7862_v51, %s6323_s26 }
 0x598   : > { %6083 = vrot.lane.b32.xlu2 %v6082_v60, %s6316_s24 }
 0x599   : > { %2941 = vmatmul.f32.gmra.mxu3 %v2784_v7  ;;  %v2437_v7 = vld [vmem:[#allocation2 + $0x12a] sm:$0xff] }
 0x59e   : > { %6093 = vrot.lane.b32.xlu0 %v6092_v31, %s6322_s16 }
 0x59f   : > { %6078 = vrot.lane.b32.xlu1 %v6077_v30, %s6318_s29 }
 0x5a0   : > { %6088 = vrot.lane.b32.xlu2 %v6087_v6, %s6319_s30 }
 0x5a1   : > { %2944 = vmatmul.f32.gmra.mxu3 %v2785_v32 }
 0x5a6   : > { %6103 = vrot.lane.b32.xlu0 %v7777_v9, %s6318_s29  ;;  %v2867_v9 = vld [vmem:[%s10040_s3 + $0xb0] sm:$0xff] }
 0x5a7   : > { %2308 = vrot.lane.b32.xlu1 %v7670_v53, %s6317_s28  ;;  %v2880_v53 = vld [vmem:[%s10040_s3 + $0x118] sm:$0xff]  ;;  %2987 = vmatpush.msrb.mxu2 %v2867_v9 }
 0x5a8   : > { %2730 = vrot.lane.b32.xlu2 %v7912_v36, %s6323_s26  ;;  %3055 = vmatpush.msra.mxu0 %v2880_v53 }
 0x5a9   : > { %2988 = vmatpush.msrb.mxu2 %v2866_v25 }
 0x5aa   : > { %3056 = vmatpush.msra.mxu0 %v2879_v27 }
 0x5ab   : > { %2989 = vmatpush.msrb.mxu2 %v2865_v62 }
 0x5ac   : > { %3057 = vmatpush.msra.mxu0 %v2878_v42 }
 0x5ad   : > { %2990 = vmatpush.msrb.mxu2 %v2864_v61  ;;  %v6132_v61 = vpack.i.bf16 %v7837_v13, %v7862_v51 }
 0x5ae   : > { %2312 = vrot.lane.b32.xlu0 %v7659_v17, %s6317_s28  ;;  %v2421_v17 = vld [vmem:[#allocation2 + $0x129] sm:$0xff]  ;;  %3058 = vmatpush.msra.mxu0 %v2877_v63 }
 0x5af   : > { %6098 = vrot.lane.b32.xlu1 %v6097_v23, %s6316_s24  ;;  %v6107_v60 = vpack.i.bf16 %v2421_v17, %v2420_v46  ;;  %2991 = vmatpush.msrb.mxu2 %v2863_v2 }
 0x5b0   : > { %2732 = vrot.lane.b32.xlu2 %v2436_v16, %s6323_s26 }
 0x5b1   : > { %2992 = vmatpush.msrb.mxu2 %v2862_v18 }
 0x5b3   : > { %2993 = vmatpush.msrb.mxu2 %v2861_v52 }
 0x5b7   : > { %6108 = vrot.lane.b32.xlu1 %v6107_v60, %s6319_s30 }
 0x5b8   : > { %6113 = vrot.lane.b32.xlu2 %v6112_v34, %s6322_s16 }
 0x5bf   : > { %2734 = vrot.lane.b32.xlu1 %v2437_v7, %s6323_s26 }
 0x5c2   : > { %v6044_v5 = vpop.permute.xlu2 %6043 }
 0x5c3   : > { %v6045_v20 = vunpack.i.l.bf16 %v6044_v5  ;;  %v6046_v19 = vunpack.i.h.bf16 %v6044_v5 }
 0x5c5   : > { %v2796_v29 = vsel %vm474_vm2, %v6015_v38, %v6045_v20  ;;  %v2797_v49 = vsel %vm474_vm2, %v6016_v1, %v6046_v19 }
 0x5c7   : > { %6123 = vrot.lane.b32.xlu1 %v7806_v39, %s6318_s29 }
 0x5ca   : > { %v6049_v10 = vpop.permute.xlu2 %6048 }
 0x5cb   : > { %v6050_v41 = vunpack.i.l.bf16 %v6049_v10  ;;  %v6051_v39 = vunpack.i.h.bf16 %v6049_v10 }
 0x5cd   : > { %v2812_v30 = vsel %vm958_vm6, %v2796_v29, %v6050_v41  ;;  %v2813_v26 = vsel %vm958_vm6, %v2797_v49, %v6051_v39 }
 0x5d2   : > { %v2719_v56 = vpop.permute.xlu2 %2718 }
 0x5d3   : > { %v2830_v38 = vsel %vm2828_vm0, %v2813_v26, %v2719_v56 }
 0x5d7   : > { %v2717_v50 = vpop.permute.xlu0 %2716 }
 0x5d8   : > { %5764 = vmatmul.msk.f32.vlgmr.msra.gmra.mxu0 %vm924_vm4, %v2717_v50  ;;  %v2829_v31 = vsel %vm2828_vm0, %v2812_v30, %v2717_v50 }
 0x5d9   : > { %2994 = vmatmul.f32.vlgmr.msrb.gmra.mxu2 %v2829_v31 }
 0x5da   : > { %v2721_v6 = vpop.permute.xlu2 %2720 }
 0x5df   : > { %v2307_v32 = vpop.permute.xlu0 %2306 }
 0x5e0   : > { %2343 = vst.msk [vmem:[#allocation2 + $0x151] sm:$0xff] %vm2330_vm15, %v2307_v32  ;;  %5765 = vmatmul.msk.f32.gmra.mxu0 %vm924_vm4, %v2719_v56 }
 0x5e1   : > { %2997 = vmatmul.f32.gmra.mxu2 %v2830_v38 }
 0x5e2   : > { %v2305_v35 = vpop.permute.xlu2 %2304 }
 0x5e3   : > { %2342 = vst.msk [vmem:[#allocation2 + $0x141] sm:$0xff] %vm2330_vm15, %v2305_v35 }
 0x5e8   : > { %5766 = vmatmul.msk.f32.gmra.mxu0 %vm924_vm4, %v2721_v6 }
 0x5e9   : > { %v6054_v21 = vpop.permute.xlu1 %6053 }
 0x5ea   : > { %v2311_v40 = vpop.permute.xlu2 %2310  ;;  %v2439_v1 = vld [vmem:[#allocation2 + $0x142] sm:$0xff]  ;;  %v6055_v23 = vunpack.i.l.bf16 %v6054_v21  ;;  %v2438_v27 = vld [vmem:[#allocation2 + $0x13a] sm:$0xff] }
 0x5eb   : > { %v2423_v48 = vld [vmem:[#allocation2 + $0x141] sm:$0xff]  ;;  %2345 = vst.msk [vmem:[#allocation2 + $0x169] sm:$0xff] %vm2330_vm15, %v2311_v40  ;;  %2738 = vrot.lane.b32.xlu1 %v2439_v1, %s6323_s26 }
 0x5ec   : > { %v2407_v9 = vld [vmem:[#allocation2 + $0x140] sm:$0xff]  ;;  %v6127_v53 = vpack.i.bf16 %v2423_v48, %v2422_v8  ;;  %v2798_v17 = vsel %vm474_vm2, %v6025_v22, %v6055_v23 }
 0x5ed   : > { %v6117_v24 = vpack.i.bf16 %v2407_v9, %v2406_v55  ;;  %v2355_v55 = vld [vmem:[#allocation2 + $0xb0] sm:$0xff] }
 0x5ee   : > { %6128 = vrot.lane.b32.xlu2 %v6127_v53, %s6319_s30 }
 0x5ef   : > { %6118 = vrot.lane.b32.xlu0 %v6117_v24, %s6316_s24 }
 0x5f0   : > { %v6069_v25 = vpop.permute.xlu0 %6068 }
 0x5f1   : > { %v6059_v16 = vpop.permute.xlu1 %6058  ;;  %v6070_v52 = vunpack.i.l.bf16 %v6069_v25  ;;  %v6071_v41 = vunpack.i.h.bf16 %v6069_v25 }
 0x5f2   : > { %v6060_v62 = vunpack.i.l.bf16 %v6059_v16  ;;  %v6061_v60 = vunpack.i.h.bf16 %v6059_v16  ;;  %v6084_v5 = vpop.permute.xlu2 %6083 }
 0x5f3   : > { %6143 = vrot.lane.b32.xlu1 %v7823_v37, %s6318_s29  ;;  %v6056_v37 = vunpack.i.h.bf16 %v6054_v21  ;;  %v2800_v56 = vsel %vm474_vm2, %v6035_v45, %v6070_v52  ;;  %v2801_v30 = vsel %vm474_vm2, %v6036_v0, %v6071_v41  ;;  %v2354_v45 = vld [vmem:[#allocation2 + $0xa8] sm:$0xff]  ;;  %v6085_v26 = vunpack.i.l.bf16 %v6084_v5 }
 0x5f4   : > { %v2814_v42 = vsel %vm958_vm6, %v2798_v17, %v6060_v62  ;;  %v6086_v24 = vunpack.i.h.bf16 %v6084_v5 }
 0x5f5   : > { %v2831_v2 = vsel %vm2828_vm0, %v2814_v42, %v2721_v6  ;;  %v2799_v13 = vsel %vm474_vm2, %v6026_v15, %v6056_v37  ;;  %v2424_v42 = vld [vmem:[#allocation2 + $0x151] sm:$0xff] }
 0x5f6   : > { %6133 = vrot.lane.b32.xlu2 %v6132_v61, %s6322_s16  ;;  %3000 = vmatmul.f32.gmra.mxu2 %v2831_v2  ;;  %v2815_v22 = vsel %vm958_vm6, %v2799_v13, %v6061_v60  ;;  %v2408_v2 = vld [vmem:[#allocation2 + $0x150] sm:$0xff] }
 0x5f7   : > { %2736 = vrot.lane.b32.xlu0 %v2438_v27, %s6323_s26 }
 0x5f8   : > { %v6074_v63 = vpop.permute.xlu0 %6073 }
 0x5f9   : > { %v6064_v46 = vpop.permute.xlu1 %6063  ;;  %v6075_v7 = vunpack.i.l.bf16 %v6074_v63  ;;  %v6076_v29 = vunpack.i.h.bf16 %v6074_v63 }
 0x5fa   : > { %v6089_v19 = vpop.permute.xlu2 %6088  ;;  %v6065_v39 = vunpack.i.l.bf16 %v6064_v46  ;;  %v6066_v21 = vunpack.i.h.bf16 %v6064_v46 }
 0x5fb   : > { %v2816_v28 = vsel %vm958_vm6, %v2800_v56, %v6075_v7  ;;  %v2817_v6 = vsel %vm958_vm6, %v2801_v30, %v6076_v29  ;;  %v6090_v35 = vunpack.i.l.bf16 %v6089_v19  ;;  %v6091_v23 = vunpack.i.h.bf16 %v6089_v19  ;;  %v2426_v19 = vld [vmem:[#allocation2 + $0x169] sm:$0xff] }
 0x5fc   : > { %v2802_v0 = vsel %vm474_vm2, %v6065_v39, %v6085_v26  ;;  %v2803_v16 = vsel %vm474_vm2, %v6066_v21, %v6086_v24 }
 0x5fd   : > { %v2818_v48 = vsel %vm958_vm6, %v2802_v0, %v6090_v35  ;;  %v2819_v17 = vsel %vm958_vm6, %v2803_v16, %v6091_v23 }
 0x600   : > { %v2727_v34 = vpop.permute.xlu0 %2726 }
 0x601   : > { %v2723_v51 = vpop.permute.xlu1 %2722  ;;  %v2834_v32 = vsel %vm2828_vm0, %v2817_v6, %v2727_v34 }
 0x602   : > { %5767 = vmatmul.msk.f32.gmra.mxu0 %vm924_vm4, %v2723_v51  ;;  %v2832_v18 = vsel %vm2828_vm0, %v2815_v22, %v2723_v51  ;;  %v2731_v62 = vpop.permute.xlu2 %2730 }
 0x603   : > { %3003 = vmatmul.f32.gmra.mxu2 %v2832_v18  ;;  %v2836_v37 = vsel %vm2828_vm0, %v2819_v17, %v2731_v62 }
 0x608   : > { %v2729_v10 = vpop.permute.xlu0 %2728 }
 0x609   : > { %v2725_v20 = vpop.permute.xlu1 %2724  ;;  %v2835_v9 = vsel %vm2828_vm0, %v2818_v48, %v2729_v10 }
 0x60a   : > { %5768 = vmatmul.msk.f32.gmra.mxu0 %vm924_vm4, %v2725_v20  ;;  %v2833_v15 = vsel %vm2828_vm0, %v2816_v28, %v2725_v20 }
 0x60b   : > { %3006 = vmatmul.f32.gmra.mxu2 %v2833_v15 }
 0x610   : > { %v8010_v50 = vpop.permute.xlu0 %6093 }
 0x611   : > { %v6079_v31 = vpop.permute.xlu1 %6078  ;;  %v6095_v18 = vunpack.i.l.bf16 %v8010_v50  ;;  %v6096_v15 = vunpack.i.h.bf16 %v8010_v50  ;;  %v2410_v50 = vld [vmem:[#allocation2 + $0x168] sm:$0xff] }
 0x612   : > { %v6080_v49 = vunpack.i.l.bf16 %v6079_v31  ;;  %5769 = vmatmul.msk.f32.gmra.mxu0 %vm924_vm4, %v2727_v34  ;;  %v6081_v8 = vunpack.i.h.bf16 %v6079_v31 }
 0x613   : > { %3009 = vmatmul.f32.gmra.mxu2 %v2834_v32 }
 0x614   : > { %v2770_v38 = vsel %vm941_vm5, %v2354_v45, %v6080_v49  ;;  %v2771_v53 = vsel %vm941_vm5, %v2355_v55, %v6081_v8 }
 0x615   : > { %v2786_v3 = vsel %vm1003_vm7, %v2770_v38, %v6065_v39  ;;  %v2787_v25 = vsel %vm1003_vm7, %v2771_v53, %v6066_v21 }
 0x616   : > { %2947 = vmatmul.f32.gmra.mxu3 %v2786_v3 }
 0x618   : > { %v6104_v40 = vpop.permute.xlu0 %6103 }
 0x619   : > { %v2309_v1 = vpop.permute.xlu1 %2308  ;;  %v6105_v61 = vunpack.i.l.bf16 %v6104_v40  ;;  %v6106_v7 = vunpack.i.h.bf16 %v6104_v40 }
 0x61a   : > { %2344 = vst.msk [vmem:[#allocation2 + $0x159] sm:$0xff] %vm2330_vm15, %v2309_v1  ;;  %5770 = vmatmul.msk.f32.gmra.mxu0 %vm924_vm4, %v2729_v10  ;;  %v2733_v10 = vpop.permute.xlu2 %2732 }
 0x61b   : > { %3012 = vmatmul.f32.gmra.mxu2 %v2835_v9  ;;  %v2772_v22 = vsel %vm941_vm5, %v7763_v44, %v6105_v61  ;;  %v6152_v44 = vpack.i.bf16 %v7912_v36, %v7857_v43  ;;  %v2773_v28 = vsel %vm941_vm5, %v7765_v33, %v6106_v7 }
 0x61c   : > { %v2788_v52 = vsel %vm1003_vm7, %v2772_v22, %v6095_v18  ;;  %v2789_v31 = vsel %vm1003_vm7, %v2773_v28, %v6096_v15 }
 0x61e   : > { %2950 = vmatmul.f32.gmra.mxu3 %v2787_v25 }
 0x620   : > { %v2313_v27 = vpop.permute.xlu0 %2312 }
 0x621   : > { %2346 = vst.msk [vmem:[#allocation2 + $0x171] sm:$0xff] %vm2330_vm15, %v2313_v27  ;;  %v6099_v63 = vpop.permute.xlu1 %6098  ;;  %v2441_v46 = vld [vmem:[#allocation2 + $0x15a] sm:$0xff]  ;;  %v2440_v41 = vld [vmem:[#allocation2 + $0x152] sm:$0xff] }
 0x622   : > { %v2425_v60 = vld [vmem:[#allocation2 + $0x159] sm:$0xff]  ;;  %5771 = vmatmul.msk.f32.gmra.mxu0 %vm924_vm4, %v2731_v62  ;;  %2742 = vrot.lane.b32.xlu1 %v2441_v46, %s6323_s26  ;;  %v6100_v5 = vunpack.i.l.bf16 %v6099_v63  ;;  %v6101_v43 = vunpack.i.h.bf16 %v6099_v63  ;;  %v6114_v26 = vpop.permute.xlu2 %6113 }
 0x623   : > { %v2409_v34 = vld [vmem:[#allocation2 + $0x158] sm:$0xff]  ;;  %v6147_v13 = vpack.i.bf16 %v2425_v60, %v2424_v42  ;;  %3015 = vmatmul.f32.gmra.mxu2 %v2836_v37  ;;  %v6115_v3 = vunpack.i.l.bf16 %v6114_v26  ;;  %v6116_v1 = vunpack.i.h.bf16 %v6114_v26 }
 0x624   : > { %v6137_v51 = vpack.i.bf16 %v2409_v34, %v2408_v2  ;;  %v2804_v29 = vsel %vm474_vm2, %v6095_v18, %v6100_v5  ;;  %v2805_v39 = vsel %vm474_vm2, %v6096_v15, %v6101_v43 }
 0x625   : > { %6148 = vrot.lane.b32.xlu2 %v6147_v13, %s6319_s30 }
 0x626   : > { %6138 = vrot.lane.b32.xlu0 %v6137_v51, %s6316_s24  ;;  %2953 = vmatmul.f32.gmra.mxu3 %v2788_v52 }
 0x628   : > { %v2411_v36 = vld [vmem:[#allocation2 + $0x170] sm:$0xff] }
 0x629   : > { %v6109_v56 = vpop.permute.xlu1 %6108  ;;  %v6157_v45 = vpack.i.bf16 %v2411_v36, %v2410_v50  ;;  %v2442_v8 = vld [vmem:[#allocation2 + $0x16a] sm:$0xff]  ;;  %v2443_v48 = vld [vmem:[#allocation2 + $0x172] sm:$0xff] }
 0x62a   : > { %v6110_v20 = vunpack.i.l.bf16 %v6109_v56  ;;  %5772 = vmatmul.msk.f32.gmra.mxu0 %vm924_vm4, %v2733_v10  ;;  %2488 = vrot.lane.b32.xlu1 %v7882_v58, %s6318_s29  ;;  %v6111_v33 = vunpack.i.h.bf16 %v6109_v56 }
 0x62c   : > { %v2820_v30 = vsel %vm958_vm6, %v2804_v29, %v6110_v20  ;;  %v2821_v49 = vsel %vm958_vm6, %v2805_v39, %v6111_v33 }
 0x62d   : > { %6153 = vrot.lane.b32.xlu2 %v6152_v44, %s6322_s16  ;;  %v2837_v58 = vsel %vm2828_vm0, %v2820_v30, %v2733_v10 }
 0x62e   : > { %2740 = vrot.lane.b32.xlu0 %v2440_v41, %s6323_s26  ;;  %2956 = vmatmul.f32.gmra.mxu3 %v2789_v31 }
 0x62f   : > { %3018 = vmatmul.f32.gmra.mxu2 %v2837_v58 }
 0x631   : > { %v2735_v6 = vpop.permute.xlu1 %2734 }
 0x632   : > { %2490 = vrot.lane.b32.xlu1 %v7884_v11, %s6318_s29  ;;  %5773 = vmatmul.msk.f32.gmra.mxu0 %vm924_vm4, %v2735_v6  ;;  %v2838_v32 = vsel %vm2828_vm0, %v2821_v49, %v2735_v6  ;;  %v2427_v11 = vld [vmem:[#allocation2 + $0x171] sm:$0xff] }
 0x635   : > { %2680 = vrot.lane.b32.xlu2 %v2426_v19, %s6319_s30 }
 0x636   : > { %6158 = vrot.lane.b32.xlu0 %v6157_v45, %s6316_s24 }
 0x637   : > { %3021 = vmatmul.f32.gmra.mxu2 %v2838_v32 }
 0x639   : > { %v6124_v38 = vpop.permute.xlu1 %6123 }
 0x63a   : > { %v6125_v35 = vunpack.i.l.bf16 %v6124_v38  ;;  %v6126_v40 = vunpack.i.h.bf16 %v6124_v38 }
 0x63c   : > { %v2774_v0 = vsel %vm941_vm5, %v7782_v57, %v6125_v35  ;;  %v2775_v21 = vsel %vm941_vm5, %v7784_v12, %v6126_v40  ;;  %v2930_v35 = vpop.f32.mrf.mxu3 }
 0x63d   : > { %2682 = vrot.lane.b32.xlu2 %v2427_v11, %s6319_s30  ;;  %v2790_v55 = vsel %vm1003_vm7, %v2774_v0, %v6115_v3  ;;  %v2791_v9 = vsel %vm1003_vm7, %v2775_v21, %v6116_v1 }
 0x63e   : > { %2744 = vrot.lane.b32.xlu0 %v2442_v8, %s6323_s26  ;;  %2959 = vmatmul.f32.gmra.mxu3 %v2790_v55 }
 0x646   : > { %2746 = vrot.lane.b32.xlu0 %v2443_v48, %s6323_s26  ;;  %2962 = vmatmul.f32.gmra.mxu3 %v2791_v9  ;;  %v2933_v9 = vpop.f32.mrf.mxu3  ;;  %s10051_s26 = sshll.u32 %s10053_s22, 7 }
 0x648   : > { %v6129_v53 = vpop.permute.xlu2 %6128 }
 0x649   : > { %v6130_v62 = vunpack.i.l.bf16 %v6129_v53  ;;  %v6131_v13 = vunpack.i.h.bf16 %v6129_v53 }
 0x650   : > { %v6134_v16 = vpop.permute.xlu2 %6133 }
 0x651   : > { %v6135_v42 = vunpack.i.l.bf16 %v6134_v16  ;;  %v6136_v18 = vunpack.i.h.bf16 %v6134_v16 }
 0x65c   : > { %v2995_v40 = vpop.f32.mrf.mxu2 }
 0x65d   : > { %v2739_v24 = vpop.permute.xlu1 %2738 }
 0x661   : > { %v6119_v23 = vpop.permute.xlu0 %6118 }
 0x662   : > { %v6120_v25 = vunpack.i.l.bf16 %v6119_v23  ;;  %v6121_v27 = vunpack.i.h.bf16 %v6119_v23 }
 0x664   : > { %v2806_v57 = vsel %vm474_vm2, %v6115_v3, %v6120_v25  ;;  %v2807_v34 = vsel %vm474_vm2, %v6116_v1, %v6121_v27  ;;  %v3060_v3 = vpop.f32.mrf.mxu0  ;;  %v2998_v23 = vpop.f32.mrf.mxu2 }
 0x665   : > { %v6144_v61 = vpop.permute.xlu1 %6143  ;;  %v2822_v2 = vsel %vm958_vm6, %v2806_v57, %v6130_v62  ;;  %v2823_v51 = vsel %vm958_vm6, %v2807_v34, %v6131_v13  ;;  %v2936_v25 = vpop.f32.mrf.mxu3 }
 0x666   : > { %v6145_v17 = vunpack.i.l.bf16 %v6144_v61  ;;  %v6146_v60 = vunpack.i.h.bf16 %v6144_v61  ;;  %v2840_v52 = vsel %vm2828_vm0, %v2823_v51, %v2739_v24 }
 0x668   : > { %v2776_v46 = vsel %vm941_vm5, %v7798_v4, %v6145_v17  ;;  %v2777_v22 = vsel %vm941_vm5, %v7800_v14, %v6146_v60 }
 0x669   : > { %v2737_v12 = vpop.permute.xlu0 %2736  ;;  %v2792_v37 = vsel %vm1003_vm7, %v2776_v46, %v6135_v42  ;;  %v2793_v4 = vsel %vm1003_vm7, %v2777_v22, %v6136_v18 }
 0x66a   : > { %5774 = vmatmul.msk.f32.gmra.mxu0 %vm924_vm4, %v2737_v12  ;;  %v2839_v63 = vsel %vm2828_vm0, %v2822_v2, %v2737_v12  ;;  %2965 = vmatmul.f32.gmra.mxu3 %v2792_v37 }
 0x66b   : > { %3024 = vmatmul.f32.gmra.mxu2 %v2839_v63 }
 0x66c   : > { %v3063_v53 = vpop.f32.mrf.mxu0 }
 0x66d   : > { %v2939_v61 = vpop.f32.mrf.mxu3 }
 0x672   : > { %5775 = vmatmul.msk.f32.gmra.mxu0 %vm924_vm4, %v2739_v24  ;;  %2968 = vmatmul.f32.gmra.mxu3 %v2793_v4 }
 0x673   : > { %3027 = vmatmul.f32.gmra.mxu2 %v2840_v52 }
 0x674   : > { %v3066_v16 = vpop.f32.mrf.mxu0 }
 0x679   : > { %v3001_v57 = vpop.f32.mrf.mxu2 }
 0x67f   : > { %v6149_v7 = vpop.permute.xlu2 %6148  ;;  %v3069_v62 = vpop.f32.mrf.mxu0 }
 0x680   : > { %v6150_v28 = vunpack.i.l.bf16 %v6149_v7  ;;  %v6151_v33 = vunpack.i.h.bf16 %v6149_v7 }
 0x686   : > { %v3004_v27 = vpop.f32.mrf.mxu2 }
 0x687   : > { %v6154_v20 = vpop.permute.xlu2 %6153  ;;  %v3072_v17 = vpop.f32.mrf.mxu0 }
 0x688   : > { %v6155_v15 = vunpack.i.l.bf16 %v6154_v20  ;;  %v6156_v6 = vunpack.i.h.bf16 %v6154_v20 }
 0x68e   : > { %v3007_v12 = vpop.f32.mrf.mxu2 }
 0x68f   : > { %v2681_v26 = vpop.permute.xlu2 %2680  ;;  %v3075_v2 = vpop.f32.mrf.mxu0 }
 0x694   : > { %v2743_v5 = vpop.permute.xlu1 %2742 }
 0x696   : > { %v3010_v46 = vpop.f32.mrf.mxu2 }
 0x697   : > { %v2683_v21 = vpop.permute.xlu2 %2682  ;;  %v3078_v37 = vpop.f32.mrf.mxu0 }
 0x698   : > { %v6139_v10 = vpop.permute.xlu0 %6138 }
 0x699   : > { %v6140_v56 = vunpack.i.l.bf16 %v6139_v10  ;;  %v6141_v14 = vunpack.i.h.bf16 %v6139_v10 }
 0x69b   : > { %v2808_v44 = vsel %vm474_vm2, %v6135_v42, %v6140_v56  ;;  %v2809_v36 = vsel %vm474_vm2, %v6136_v18, %v6141_v14  ;;  %v2942_v42 = vpop.f32.mrf.mxu3 }
 0x69c   : > { %v2489_v41 = vpop.permute.xlu1 %2488  ;;  %v2824_v58 = vsel %vm958_vm6, %v2808_v44, %v6150_v28  ;;  %v2825_v45 = vsel %vm958_vm6, %v2809_v36, %v6151_v33 }
 0x69d   : > { %v2778_v29 = vsel %vm941_vm5, %v7852_v47, %v2489_v41  ;;  %v2842_v32 = vsel %vm2828_vm0, %v2825_v45, %v2743_v5  ;;  %v2999_v41 = vadd.f32 %v2998_v23, %v2933_v9 }
 0x69e   : > { %v2794_v31 = vsel %vm1003_vm7, %v2778_v29, %v6155_v15  ;;  %v3013_v34 = vpop.f32.mrf.mxu2  ;;  %v2996_v29 = vadd.f32 %v2995_v40, %v2930_v35 }
 0x69f   : > { %2971 = vmatmul.f32.gmra.mxu3 %v2794_v31  ;;  %v3081_v13 = vpop.f32.mrf.mxu0  ;;  %v8106_v31 = vadd.f32 %v3063_v53, %v2999_v41 }
 0x6a0   : > { %v2741_v30 = vpop.permute.xlu0 %2740  ;;  %v8108_v33 = vadd.f32 %v3060_v3, %v2996_v29 }
 0x6a1   : > { %5776 = vmatmul.msk.f32.gmra.mxu0 %vm924_vm4, %v2741_v30  ;;  %v2841_v43 = vsel %vm2828_vm0, %v2824_v58, %v2741_v30  ;;  %v3002_v30 = vadd.f32 %v3001_v57, %v2936_v25  ;;  %v3005_v58 = vadd.f32 %v3004_v27, %v2939_v61  ;;  %v3109_v45 = vsel %vm474_vm2, %v8106_v31, 0.0 }
 0x6a2   : > { %3030 = vmatmul.f32.gmra.mxu2 %v2841_v43 }
 0x6a3   : > { %v2945_v63 = vpop.f32.mrf.mxu3 }
 0x6a4   : > { %v2491_v50 = vpop.permute.xlu1 %2490 }
 0x6a5   : > { %v2779_v47 = vsel %vm941_vm5, %v7854_v54, %v2491_v50  ;;  %v3008_v50 = vadd.f32 %v3007_v12, %v2942_v42 }
 0x6a6   : > { %v2795_v39 = vsel %vm1003_vm7, %v2779_v47, %v6156_v6  ;;  %v3016_v22 = vpop.f32.mrf.mxu2  ;;  %v8114_v47 = vadd.f32 %v3069_v62, %v3005_v58 }
 0x6a7   : > { %2974 = vmatmul.f32.gmra.mxu3 %v2795_v39  ;;  %v3084_v18 = vpop.f32.mrf.mxu0 }
 0x6a8   : > { %v6159_v19 = vpop.permute.xlu0 %6158  ;;  %v3113_v3 = vsel %vm474_vm2, %v8114_v47, 0.0 }
 0x6a9   : > { %v6160_v49 = vunpack.i.l.bf16 %v6159_v19  ;;  %5777 = vmatmul.msk.f32.gmra.mxu0 %vm924_vm4, %v2743_v5  ;;  %v6161_v0 = vunpack.i.h.bf16 %v6159_v19  ;;  %v3011_v19 = vadd.f32 %v3010_v46, %v2945_v63 }
 0x6aa   : > { %3033 = vmatmul.f32.gmra.mxu2 %v2842_v32 }
 0x6ab   : > { %v2810_v38 = vsel %vm474_vm2, %v6155_v15, %v6160_v49  ;;  %v2811_v55 = vsel %vm474_vm2, %v6156_v6, %v6161_v0  ;;  %v2948_v60 = vpop.f32.mrf.mxu3  ;;  %v8110_v6 = vadd.f32 %v3066_v16, %v3002_v30  ;;  %v3108_v49 = vsel %vm474_vm2, %v8108_v33, 0.0 }
 0x6ac   : > { %v2826_v8 = vsel %vm958_vm6, %v2810_v38, %v2681_v26  ;;  %v2827_v48 = vsel %vm958_vm6, %v2811_v55, %v2683_v21  ;;  %v8120_v26 = vadd.f32 %v3072_v17, %v3008_v50  ;;  %v3014_v38 = vadd.f32 %v3013_v34, %v2948_v60 }
 0x6ad   : > { %v3111_v32 = vsel %vm474_vm2, %v8110_v6, 0.0  ;;  %v3110_v35 = vadd.f32 %v3109_v45, %v3108_v49 }
 0x6ae   : > { %v8128_v55 = vadd.f32 %v3078_v37, %v3014_v38 }
 0x6af   : > { %v3087_v7 = vpop.f32.mrf.mxu0  ;;  %v3112_v0 = vadd.f32 %v3111_v32, %v3110_v35 }
 0x6b0   : > { %v2745_v11 = vpop.permute.xlu0 %2744  ;;  %v3119_v16 = vsel %vm474_vm2, %v8128_v55, 0.0 }
 0x6b1   : > { %5778 = vmatmul.msk.f32.gmra.mxu0 %vm924_vm4, %v2745_v11  ;;  %v2843_v54 = vsel %vm2828_vm0, %v2826_v8, %v2745_v11  ;;  %v8124_v11 = vadd.f32 %v3075_v2, %v3011_v19  ;;  %v3114_v21 = vadd.f32 %v3113_v3, %v3112_v0 }
 0x6b2   : > { %3036 = vmatmul.f32.gmra.mxu2 %v2843_v54  ;;  %v3019_v4 = vpop.f32.mrf.mxu2  ;;  %v3115_v54 = vsel %vm474_vm2, %v8120_v26, 0.0 }
 0x6b3   : > { %v2951_v51 = vpop.f32.mrf.mxu3  ;;  %v3117_v9 = vsel %vm474_vm2, %v8124_v11, 0.0  ;;  %v3116_v23 = vadd.f32 %v3115_v54, %v3114_v21 }
 0x6b4   : > { %v3017_v8 = vadd.f32 %v3016_v22, %v2951_v51 }
 0x6b5   : > { %v3118_v61 = vadd.f32 %v3117_v9, %v3116_v23 }
 0x6b6   : > { %v8132_v53 = vadd.f32 %v3081_v13, %v3017_v8 }
 0x6b7   : > { %v3120_v12 = vadd.f32 %v3119_v16, %v3118_v61 }
 0x6b8   : > { %v2747_v1 = vpop.permute.xlu0 %2746  ;;  %v3121_v27 = vsel %vm474_vm2, %v8132_v53, 0.0 }
 0x6b9   : > { %5779 = vmatmul.msk.f32.gmra.mxu0 %vm924_vm4, %v2747_v1  ;;  %v2844_v24 = vsel %vm2828_vm0, %v2827_v48, %v2747_v1  ;;  %v3122_v37 = vadd.f32 %v3121_v27, %v3120_v12 }
 0x6ba   : > { %3039 = vmatmul.f32.gmra.mxu2 %v2844_v24  ;;  %v3022_v10 = vpop.f32.mrf.mxu2 }
 0x6bb   : > { %v2954_v52 = vpop.f32.mrf.mxu3 }
 0x6bc   : > { %v3020_v40 = vadd.f32 %v3019_v4, %v2954_v52 }
 0x6be   : > { %v8136_v57 = vadd.f32 %v3084_v18, %v3020_v40 }
 0x6c0   : > { %v3123_v2 = vsel %vm474_vm2, %v8136_v57, 0.0 }
 0x6c1   : > { %v3124_v22 = vadd.f32 %v3123_v2, %v3122_v37 }
 0x6c3   : > { %v2957_v5 = vpop.f32.mrf.mxu3 }
 0x6c4   : > { %v3023_v24 = vadd.f32 %v3022_v10, %v2957_v5 }
 0x6c6   : > { %v8140_v17 = vadd.f32 %v3087_v7, %v3023_v24 }
 0x6c8   : > { %v3125_v34 = vsel %vm474_vm2, %v8140_v17, 0.0 }
 0x6c9   : > { %v3126_v10 = vadd.f32 %v3125_v34, %v3124_v22 }
 0x6cb   : > { %v2960_v56 = vpop.f32.mrf.mxu3 }
 0x6d3   : > { %v2963_v28 = vpop.f32.mrf.mxu3 }
 0x6e7   : > { %v3090_v20 = vpop.f32.mrf.mxu0 }
 0x6ed   : > { %v2966_v43 = vpop.f32.mrf.mxu3 }
 0x6ee   : > { %v3025_v44 = vpop.f32.mrf.mxu2 }
 0x6ef   : > { %v3093_v15 = vpop.f32.mrf.mxu0  ;;  %v3026_v62 = vadd.f32 %v3025_v44, %v2960_v56 }
 0x6f1   : > { %v8144_v63 = vadd.f32 %v3090_v20, %v3026_v62 }
 0x6f3   : > { %v3127_v4 = vsel %vm474_vm2, %v8144_v63, 0.0 }
 0x6f4   : > { %v3128_v44 = vadd.f32 %v3127_v4, %v3126_v10 }
 0x6f5   : > { %v2969_v1 = vpop.f32.mrf.mxu3 }
 0x6f6   : > { %v3028_v14 = vpop.f32.mrf.mxu2 }
 0x6f7   : > { %v3029_v42 = vadd.f32 %v3028_v14, %v2963_v28 }
 0x6f9   : > { %v8148_v13 = vadd.f32 %v3093_v15, %v3029_v42 }
 0x6fb   : > { %v3129_v56 = vsel %vm474_vm2, %v8148_v13, 0.0 }
 0x6fc   : > { %v3130_v41 = vadd.f32 %v3129_v56, %v3128_v44 }
 0x71e   : > { %v3096_v36 = vpop.f32.mrf.mxu0 }
 0x722   : > { %v2972_v60 = vpop.f32.mrf.mxu3 }
 0x725   : > { %v3031_v39 = vpop.f32.mrf.mxu2 }
 0x726   : > { %v3099_v48 = vpop.f32.mrf.mxu0  ;;  %v3032_v46 = vadd.f32 %v3031_v39, %v2966_v43 }
 0x728   : > { %v8152_v7 = vadd.f32 %v3096_v36, %v3032_v46 }
 0x72a   : > { %v3131_v28 = vsel %vm474_vm2, %v8152_v7, 0.0  ;;  %v2975_v30 = vpop.f32.mrf.mxu3 }
 0x72b   : > { %v3132_v29 = vadd.f32 %v3131_v28, %v3130_v41 }
 0x72d   : > { %v3034_v25 = vpop.f32.mrf.mxu2 }
 0x72e   : > { %v3035_v51 = vadd.f32 %v3034_v25, %v2969_v1  ;;  %v3102_v18 = vpop.f32.mrf.mxu0 }
 0x730   : > { %v8156_v20 = vadd.f32 %v3099_v48, %v3035_v51 }
 0x732   : > { %v3133_v14 = vsel %vm474_vm2, %v8156_v20, 0.0 }
 0x733   : > { %v3134_v50 = vadd.f32 %v3133_v14, %v3132_v29 }
 0x735   : > { %v3037_v52 = vpop.f32.mrf.mxu2 }
 0x736   : > { %v3038_v5 = vadd.f32 %v3037_v52, %v2972_v60  ;;  %v3105_v45 = vpop.f32.mrf.mxu0 }
 0x738   : > { %v8160_v15 = vadd.f32 %v3102_v18, %v3038_v5 }
 0x73a   : > { %v3135_v43 = vsel %vm474_vm2, %v8160_v15, 0.0 }
 0x73b   : > { %v3136_v39 = vadd.f32 %v3135_v43, %v3134_v50 }
 0x73d   : > { %v3040_v58 = vpop.f32.mrf.mxu2 }
 0x73e   : > { %v3041_v36 = vadd.f32 %v3040_v58, %v2975_v30 }
 0x740   : > { %v3106_v19 = vadd.f32 %v3105_v45, %v3041_v36 }
 0x742   : > { %v3137_v49 = vsel %vm474_vm2, %v3106_v19, 0.0 }
 0x743   : > { %v3138_v32 = vadd.f32 %v3137_v49, %v3136_v39 }
 0x745   : > { %v3139_v38 = vrot.slane %v3138_v32, 4 }
 0x747   : > { %v3140_v35 = vadd.f32 %v3139_v38, %v3138_v32 }
 0x749   : > { %v3141_v3 = vrot.slane %v3140_v35, 2 }
 0x74b   : > { %v3142_v8 = vadd.f32 %v3141_v3, %v3140_v35 }
 0x74d   : > { %v3143_v0 = vrot.slane %v3142_v8, 1 }
 0x74f   : > { %v3144_v54 = vadd.f32 %v3143_v0, %v3142_v8 }
 0x751   : > { %v3145_v40 = vmul.f32 %v3144_v54, %v6888_v59 }
 0x753   : > { %v8169_v21 = vsub.f32 %v8108_v33, %v3145_v40  ;;  %v8172_v1 = vsub.f32 %v8106_v31, %v3145_v40  ;;  %v8175_v48 = vsub.f32 %v8110_v6, %v3145_v40  ;;  %v8178_v9 = vsub.f32 %v8114_v47, %v3145_v40 }
 0x754   : > { %v8185_v25 = vsub.f32 %v8120_v26, %v3145_v40  ;;  %v8190_v31 = vsub.f32 %v8124_v11, %v3145_v40  ;;  %v8197_v61 = vsub.f32 %v8128_v55, %v3145_v40  ;;  %v8203_v11 = vsub.f32 %v8132_v53, %v3145_v40 }
 0x755   : > { %v3162_v24 = vmul.f32 %v8169_v21, %v8169_v21  ;;  %v3163_v23 = vmul.f32 %v8172_v1, %v8172_v1  ;;  %v3164_v33 = vmul.f32 %v8175_v48, %v8175_v48  ;;  %v3165_v6 = vmul.f32 %v8178_v9, %v8178_v9 }
 0x756   : > { %v3166_v26 = vmul.f32 %v8185_v25, %v8185_v25  ;;  %v3167_v12 = vmul.f32 %v8190_v31, %v8190_v31  ;;  %v8209_v37 = vsub.f32 %v8136_v57, %v3145_v40  ;;  %v3168_v55 = vmul.f32 %v8197_v61, %v8197_v61 }
 0x757   : > { %v3178_v47 = vsel %vm474_vm2, %v3162_v24, 0.0  ;;  %v3179_v16 = vsel %vm474_vm2, %v3163_v23, 0.0  ;;  %v3181_v27 = vsel %vm474_vm2, %v3164_v33, 0.0  ;;  %v3183_v2 = vsel %vm474_vm2, %v3165_v6, 0.0 }
 0x758   : > { %v3180_v62 = vadd.f32 %v3179_v16, %v3178_v47  ;;  %v3185_v60 = vsel %vm474_vm2, %v3166_v26, 0.0  ;;  %v8215_v51 = vsub.f32 %v8140_v17, %v3145_v40  ;;  %v3169_v53 = vmul.f32 %v8203_v11, %v8203_v11 }
 0x759   : > { %v3187_v22 = vsel %vm474_vm2, %v3167_v12, 0.0  ;;  %v8221_v52 = vsub.f32 %v8144_v63, %v3145_v40  ;;  %v3170_v57 = vmul.f32 %v8209_v37, %v8209_v37  ;;  %v3189_v4 = vsel %vm474_vm2, %v3168_v55, 0.0 }
 0x75a   : > { %v3182_v42 = vadd.f32 %v3181_v27, %v3180_v62  ;;  %v8227_v10 = vsub.f32 %v8148_v13, %v3145_v40  ;;  %v3171_v17 = vmul.f32 %v8215_v51, %v8215_v51  ;;  %v3191_v56 = vsel %vm474_vm2, %v3169_v53, 0.0 }
 0x75b   : > { %v8233_v28 = vsub.f32 %v8152_v7, %v3145_v40  ;;  %v3172_v63 = vmul.f32 %v8221_v52, %v8221_v52  ;;  %v3193_v41 = vsel %vm474_vm2, %v3170_v57, 0.0  ;;  %v8239_v29 = vsub.f32 %v8156_v20, %v3145_v40 }
 0x75c   : > { %v3184_v46 = vadd.f32 %v3183_v2, %v3182_v42  ;;  %v3173_v13 = vmul.f32 %v8227_v10, %v8227_v10  ;;  %v3195_v30 = vsel %vm474_vm2, %v3171_v17, 0.0  ;;  %v8245_v43 = vsub.f32 %v8160_v15, %v3145_v40 }
 0x75d   : > { %v3174_v7 = vmul.f32 %v8233_v28, %v8233_v28  ;;  %v3197_v36 = vsel %vm474_vm2, %v3172_v63, 0.0  ;;  %v3161_v45 = vsub.f32 %v3106_v19, %v3145_v40  ;;  %v3175_v20 = vmul.f32 %v8239_v29, %v8239_v29 }
 0x75e   : > { %v3186_v34 = vadd.f32 %v3185_v60, %v3184_v46  ;;  %v3199_v39 = vsel %vm474_vm2, %v3173_v13, 0.0  ;;  %v3176_v32 = vmul.f32 %v8245_v43, %v8245_v43  ;;  %v8263_v60 = vld [vmem:[%s10046_s9 + $0x2] ss:$0 sm:$0xff] }
 0x75f   : > { %v3201_v38 = vsel %vm474_vm2, %v3174_v7, 0.0  ;;  %v3177_v35 = vmul.f32 %v3161_v45, %v3161_v45  ;;  %v3203_v3 = vsel %vm474_vm2, %v3175_v20, 0.0 }
 0x760   : > { %v3188_v18 = vadd.f32 %v3187_v22, %v3186_v34  ;;  %v3205_v0 = vsel %vm474_vm2, %v3176_v32, 0.0 }
 0x761   : > { %v3207_v19 = vsel %vm474_vm2, %v3177_v35, 0.0 }
 0x762   : > { %v3190_v5 = vadd.f32 %v3189_v4, %v3188_v18  ;;  %v8273_v18 = vld [vmem:[%s10047_s10 + $0x2] ss:$0 sm:$0xff] }
 0x764   : > { %v3192_v44 = vadd.f32 %v3191_v56, %v3190_v5 }
 0x766   : > { %v3194_v14 = vadd.f32 %v3193_v41, %v3192_v44 }
 0x768   : > { %v3196_v58 = vadd.f32 %v3195_v30, %v3194_v14 }
 0x76a   : > { %v3198_v50 = vadd.f32 %v3197_v36, %v3196_v58 }
 0x76c   : > { %v3200_v49 = vadd.f32 %v3199_v39, %v3198_v50 }
 0x76e   : > { %v3202_v15 = vadd.f32 %v3201_v38, %v3200_v49 }
 0x770   : > { %v3204_v8 = vadd.f32 %v3203_v3, %v3202_v15 }
 0x772   : > { %v3206_v54 = vadd.f32 %v3205_v0, %v3204_v8 }
 0x774   : > { %v3208_v40 = vadd.f32 %v3207_v19, %v3206_v54 }
 0x776   : > { %v3209_v24 = vrot.slane %v3208_v40, 4 }
 0x778   : > { %v3210_v23 = vadd.f32 %v3209_v24, %v3208_v40 }
 0x77a   : > { %v3211_v33 = vrot.slane %v3210_v23, 2 }
 0x77c   : > { %v3212_v6 = vadd.f32 %v3211_v33, %v3210_v23 }
 0x77e   : > { %v3213_v47 = vrot.slane %v3212_v6, 1 }
 0x780   : > { %v3214_v16 = vadd.f32 %v3213_v47, %v3212_v6 }
 0x782   : > { %v3215_v62 = vmul.f32 %v3214_v16, %v6888_v59 }
 0x784   : > { %v3216_v26 = vadd.f32 1e-05, %v3215_v62 }
 0x786   : > { %6301 = vrsqrt.f32 %v3216_v26  ;;  %vm3223_vm1 = vweird.f32 %v3216_v26 }
 0x78c   : > { %v6302_v27 = vpop.eup %6301 }
 0x78d   : > { %v3218_v42 = vmul.f32 %v6302_v27, %v3216_v26  ;;  %vm3224_vm7 = vweird.f32 %v6302_v27 }
 0x78e   : > { %vm3225_vm3 = vmor %vm3223_vm1, %vm3224_vm7 }
 0x78f   : > { %v3219_v12 = vmul.f32 %v6302_v27, %v3218_v42 }
 0x791   : > { %v3220_v2 = vmul.f32 0.5, %v3219_v12 }
 0x793   : > { %v3221_v46 = vsub.f32 1.5, %v3220_v2 }
 0x795   : > { %v3222_v55 = vmul.f32 %v6302_v27, %v3221_v46 }
 0x797   : > { %v8265_v34 = vsel %vm3225_vm3, %v6302_v27, %v3222_v55 }
 0x798   : > { %v3242_v53 = vmul.f32 %v8265_v34, %v3161_v45  ;;  %v3229_v22 = vmul.f32 %v8265_v34, %v8175_v48  ;;  %v3228_v57 = vmul.f32 %v8265_v34, %v8172_v1  ;;  %v3227_v4 = vmul.f32 %v8265_v34, %v8169_v21  ;;  %v8292_v21 = vld [vmem:[%s10048_s11 + $0x2] ss:$0 sm:$0xff] }
 0x799   : > { %v3232_v5 = vmul.f32 %v8265_v34, %v8190_v31  ;;  %v3231_v17 = vmul.f32 %v8265_v34, %v8185_v25  ;;  %v3230_v48 = vmul.f32 %v8265_v34, %v8178_v9  ;;  %v3234_v56 = vmul.f32 %v8265_v34, %v8203_v11 }
 0x79a   : > { %v3260_v44 = vmul.f32 %v8263_v60, %v3242_v53  ;;  %v3247_v63 = vmul.f32 %v8263_v60, %v3229_v22  ;;  %v3246_v1 = vmul.f32 %v8263_v60, %v3228_v57  ;;  %v3245_v31 = vmul.f32 %v8263_v60, %v3227_v4 }
 0x79b   : > { %v3250_v25 = vmul.f32 %v8263_v60, %v3232_v5  ;;  %v3249_v9 = vmul.f32 %v8263_v60, %v3231_v17  ;;  %v3248_v41 = vmul.f32 %v8263_v60, %v3230_v48  ;;  %v3252_v30 = vmul.f32 %v8263_v60, %v3234_v56 }
 0x79c   : > { %v3265_v11 = vadd.f32 %v8273_v18, %v3247_v63  ;;  %v3264_v14 = vadd.f32 %v8273_v18, %v3246_v1  ;;  %v3263_v13 = vadd.f32 %v8273_v18, %v3245_v31  ;;  %v3233_v50 = vmul.f32 %v8265_v34, %v8197_v61 }
 0x79d   : > { %v3268_v58 = vadd.f32 %v8273_v18, %v3250_v25  ;;  %v3267_v7 = vadd.f32 %v8273_v18, %v3249_v9  ;;  %v3266_v36 = vadd.f32 %v8273_v18, %v3248_v41  ;;  %v3270_v8 = vadd.f32 %v8273_v18, %v3252_v30 }
 0x79e   : > { %vm3281_vm8 = vcmp.gt.f32.partialorder %v3265_v11, 0.0  ;;  %v3299_v45 = vmul.f32 %v8292_v21, %v3265_v11  ;;  %vm3280_vm9 = vcmp.gt.f32.partialorder %v3264_v14, 0.0  ;;  %v3298_v20 = vmul.f32 %v8292_v21, %v3264_v14 }
 0x79f   : > { %vm3279_vm10 = vcmp.gt.f32.partialorder %v3263_v13, 0.0  ;;  %v3297_v39 = vmul.f32 %v8292_v21, %v3263_v13  ;;  %vm3284_vm11 = vcmp.gt.f32.partialorder %v3268_v58, 0.0  ;;  %v3302_v49 = vmul.f32 %v8292_v21, %v3268_v58 }
 0x7a0   : > { %v3315_v32 = vsel %vm3281_vm8, %v3265_v11, %v3299_v45  ;;  %v3314_v38 = vsel %vm3280_vm9, %v3264_v14, %v3298_v20  ;;  %v3301_v15 = vmul.f32 %v8292_v21, %v3267_v7  ;;  %vm3283_vm12 = vcmp.gt.f32.partialorder %v3267_v7, 0.0 }
 0x7a1   : > { %3349 = vrot.lane.b32.xlu0 %v3315_v32, %s6318_s29  ;;  %3347 = vrot.lane.b32.xlu2 %v3314_v38, %s6318_s29  ;;  %v3313_v61 = vsel %vm3279_vm10, %v3263_v13, %v3297_v39  ;;  %v3318_v35 = vsel %vm3284_vm11, %v3268_v58, %v3302_v49  ;;  %v3300_v3 = vmul.f32 %v8292_v21, %v3266_v36  ;;  %vm3282_vm13 = vcmp.gt.f32.partialorder %v3266_v36, 0.0 }
 0x7a2   : > { %3345 = vrot.lane.b32.xlu1 %v3313_v61, %s6318_s29  ;;  %v3251_v0 = vmul.f32 %v8263_v60, %v3233_v50  ;;  %v3236_v54 = vmul.f32 %v8265_v34, %v8215_v51  ;;  %v3235_v19 = vmul.f32 %v8265_v34, %v8209_v37  ;;  %v3239_v40 = vmul.f32 %v8265_v34, %v8233_v28  ;;  %v3426_v61 = vld [vmem:[#allocation2 + $0x1] sm:$0xff] }
 0x7a3   : > { %v3317_v24 = vsel %vm3283_vm12, %v3267_v7, %v3301_v15  ;;  %v3237_v33 = vmul.f32 %v8265_v34, %v8221_v52  ;;  %v3238_v6 = vmul.f32 %v8265_v34, %v8227_v10  ;;  %v3278_v37 = vadd.f32 %v8273_v18, %v3260_v44  ;;  %v3427_v7 = vld [vmem:[#allocation2 + $0x9] sm:$0xff] }
 0x7a4   : > { %v3269_v23 = vadd.f32 %v8273_v18, %v3251_v0  ;;  %v3254_v47 = vmul.f32 %v8263_v60, %v3236_v54  ;;  %v3253_v16 = vmul.f32 %v8263_v60, %v3235_v19  ;;  %v3257_v51 = vmul.f32 %v8263_v60, %v3239_v40 }
 0x7a5   : > { %v3316_v62 = vsel %vm3282_vm13, %v3266_v36, %v3300_v3  ;;  %v3304_v28 = vmul.f32 %v8292_v21, %v3270_v8  ;;  %v3255_v26 = vmul.f32 %v8263_v60, %v3237_v33  ;;  %v3256_v27 = vmul.f32 %v8263_v60, %v3238_v6  ;;  %v3430_v33 = vld [vmem:[#allocation2 + $0x31] sm:$0xff] }
 0x7a6   : > { %v3303_v52 = vmul.f32 %v8292_v21, %v3269_v23  ;;  %v3272_v42 = vadd.f32 %v8273_v18, %v3254_v47  ;;  %v3271_v10 = vadd.f32 %v8273_v18, %v3253_v16  ;;  %v3275_v12 = vadd.f32 %v8273_v18, %v3257_v51  ;;  %v3428_v47 = vld [vmem:[#allocation2 + $0x19] sm:$0xff] }
 0x7a7   : > { %v3273_v2 = vadd.f32 %v8273_v18, %v3255_v26  ;;  %v3274_v46 = vadd.f32 %v8273_v18, %v3256_v27  ;;  %vm3294_vm14 = vcmp.gt.f32.partialorder %v3278_v37, 0.0  ;;  %v3312_v55 = vmul.f32 %v8292_v21, %v3278_v37  ;;  %v3433_v27 = vld [vmem:[#allocation2 + $0x51] sm:$0xff] }
 0x7a8   : > { %vm3288_vm15 = vcmp.gt.f32.partialorder %v3272_v42, 0.0  ;;  %v3306_v53 = vmul.f32 %v8292_v21, %v3272_v42  ;;  %vm3287_vm0 = vcmp.gt.f32.partialorder %v3271_v10, 0.0  ;;  %v3305_v22 = vmul.f32 %v8292_v21, %v3271_v10 }
 0x7a9   : > { %3355 = vrot.lane.b32.xlu0 %v3318_v35, %s6318_s29  ;;  %3353 = vrot.lane.b32.xlu2 %v3317_v24, %s6318_s29  ;;  %vm3291_vm7 = vcmp.gt.f32.partialorder %v3275_v12, 0.0  ;;  %v3309_v57 = vmul.f32 %v8292_v21, %v3275_v12  ;;  %vm3289_vm1 = vcmp.gt.f32.partialorder %v3273_v2, 0.0  ;;  %v3307_v4 = vmul.f32 %v8292_v21, %v3273_v2 }
 0x7aa   : > { %3351 = vrot.lane.b32.xlu1 %v3316_v62, %s6318_s29  ;;  %v3322_v5 = vsel %vm3288_vm15, %v3272_v42, %v3306_v53  ;;  %v8351_v17 = vsel %vm3287_vm0, %v3271_v10, %v3305_v22  ;;  %vm3290_vm3 = vcmp.gt.f32.partialorder %v3274_v46, 0.0  ;;  %v3308_v48 = vmul.f32 %v8292_v21, %v3274_v46  ;;  %v3429_v62 = vld [vmem:[#allocation2 + $0x21] sm:$0xff]  ;;  %v3431_v42 = vld [vmem:[#allocation2 + $0x39] sm:$0xff] }
 0x7ab   : > { %v8354_v56 = vsel %vm3291_vm7, %v3275_v12, %v3309_v57  ;;  %v8356_v44 = vsel %vm3289_vm1, %v3273_v2, %v3307_v4  ;;  %v8359_v63 = vsel %vm3294_vm14, %v3278_v37, %v3312_v55  ;;  %v3240_v1 = vmul.f32 %v8265_v34, %v8239_v29  ;;  %v3793_v55 = vld [vmem:[%s10041_s4 + $0x178] sm:$0xff]  ;;  %v3432_v4 = vld [vmem:[#allocation2 + $0x49] sm:$0xff] }
 0x7ac   : > { %vm3286_vm8 = vcmp.gt.f32.partialorder %v3270_v8, 0.0  ;;  %vm3285_vm9 = vcmp.gt.f32.partialorder %v3269_v23, 0.0  ;;  %v8363_v31 = vsel %vm3290_vm3, %v3274_v46, %v3308_v48  ;;  %v3241_v25 = vmul.f32 %v8265_v34, %v8245_v43  ;;  %v3777_v46 = vld [vmem:[%s10041_s4 + $0xf8] sm:$0xff]  ;;  %3924 = vmatpush.msra.mxu2 %v3793_v55  ;;  %v3792_v48 = vld [vmem:[%s10041_s4 + $0x170] sm:$0xff] }
 0x7ad   : > { %v3258_v9 = vmul.f32 %v8263_v60, %v3240_v1  ;;  %v3320_v11 = vsel %vm3286_vm8, %v3270_v8, %v3304_v28  ;;  %v3319_v14 = vsel %vm3285_vm9, %v3269_v23, %v3303_v52  ;;  %vm3393_vm12 = vcmask 523648   ;;  %3859 = vmatpush.msra.mxu3 %v3777_v46  ;;  %v3442_v46 = vld [vmem:[#allocation2 + $0x2] sm:$0xff] }
 0x7ae   : > { %v3259_v41 = vmul.f32 %v8263_v60, %v3241_v25  ;;  %3925 = vmatpush.msra.mxu2 %v3792_v48  ;;  %v3759_v25 = vld [vmem:[%s10041_s4 + $0x68] sm:$0xff] }
 0x7af   : > { %v3276_v13 = vadd.f32 %v8273_v18, %v3258_v9  ;;  %v3774_v9 = vld [vmem:[%s10041_s4 + $0xe0] sm:$0xff] }
 0x7b0   : > { %v3277_v29 = vadd.f32 %v8273_v18, %v3259_v41  ;;  %v3790_v41 = vld [vmem:[%s10041_s4 + $0x160] sm:$0xff] }
 0x7b1   : > { %3359 = vrot.lane.b32.xlu0 %v3320_v11, %s6318_s29  ;;  %3357 = vrot.lane.b32.xlu2 %v3319_v14, %s6318_s29  ;;  %vm3292_vm10 = vcmp.gt.f32.partialorder %v3276_v13, 0.0  ;;  %v3310_v30 = vmul.f32 %v8292_v21, %v3276_v13  ;;  %v3773_v11 = vld [vmem:[%s10041_s4 + $0xd8] sm:$0xff] }
 0x7b2   : > { %vm3293_vm11 = vcmp.gt.f32.partialorder %v3277_v29, 0.0  ;;  %v3311_v43 = vmul.f32 %v8292_v21, %v3277_v29  ;;  %v3789_v14 = vld [vmem:[%s10041_s4 + $0x158] sm:$0xff] }
 0x7b3   : > { %v8375_v34 = vsel %vm3292_vm10, %v3276_v13, %v3310_v30  ;;  %v3772_v13 = vld [vmem:[%s10041_s4 + $0xd0] sm:$0xff] }
 0x7b4   : > { %v8377_v58 = vsel %vm3293_vm11, %v3277_v29, %v3311_v43  ;;  %v3788_v29 = vld [vmem:[%s10041_s4 + $0x150] sm:$0xff]  ;;  %v3758_v43 = vld [vmem:[%s10041_s4 + $0x60] sm:$0xff] }
 0x7fb   : > { %v3348_v60 = vpop.permute.xlu2 %3347 }
 0x7fc   : > { %3395 = vst.msk [vmem:[#allocation2 + $0xc9] sm:$0xff] %vm3393_vm12, %v3348_v60  ;;  %v3770_v60 = vld [vmem:[%s10041_s4 + $0xc0] sm:$0xff] }
 0x803   : > { %v3354_v36 = vpop.permute.xlu2 %3353  ;;  %v3491_v50 = vld [vmem:[#allocation2 + $0xca] sm:$0xff] }
 0x804   : > { %v6172_v45 = vpack.i.bf16 %v3427_v7, %v3491_v50  ;;  %3398 = vst.msk [vmem:[#allocation2 + $0xf1] sm:$0xff] %vm3393_vm12, %v3354_v36  ;;  %v3786_v7 = vld [vmem:[%s10041_s4 + $0x140] sm:$0xff]  ;;  %v3757_v36 = vld [vmem:[%s10041_s4 + $0x58] sm:$0xff] }
 0x805   : > { %v3769_v50 = vld [vmem:[%s10041_s4 + $0xb8] sm:$0xff] }
 0x806   : > { %6173 = vrot.lane.b32.xlu2 %v6172_v45, %s6319_s30  ;;  %v3756_v45 = vld [vmem:[%s10041_s4 + $0x50] sm:$0xff] }
 0x80b   : > { %v3358_v18 = vpop.permute.xlu2 %3357  ;;  %v3462_v8 = vld [vmem:[#allocation2 + $0xf0] sm:$0xff] }
 0x80c   : > { %3400 = vst.msk [vmem:[#allocation2 + $0x109] sm:$0xff] %vm3393_vm12, %v3358_v18  ;;  %v3785_v18 = vld [vmem:[%s10041_s4 + $0x138] sm:$0xff] }
 0x80e   : > { %3363 = vrot.lane.b32.xlu2 %v3322_v5, %s6318_s29  ;;  %v3761_v5 = vld [vmem:[%s10041_s4 + $0x78] sm:$0xff] }
 0x80f   : > { %3794 = vmatpush.msra.mxu1 %v3761_v5 }
 0x813   : > { %v3350_v21 = vpop.permute.xlu0 %3349  ;;  %v3464_v22 = vld [vmem:[#allocation2 + $0x108] sm:$0xff] }
 0x814   : > { %3396 = vst.msk [vmem:[#allocation2 + $0xd9] sm:$0xff] %vm3393_vm12, %v3350_v21  ;;  %v3346_v20 = vpop.permute.xlu1 %3345  ;;  %v3768_v21 = vld [vmem:[%s10041_s4 + $0xb0] sm:$0xff] }
 0x815   : > { %3394 = vst.msk [vmem:[#allocation2 + $0xc1] sm:$0xff] %vm3393_vm12, %v3346_v20  ;;  %v3784_v20 = vld [vmem:[%s10041_s4 + $0x130] sm:$0xff] }
 0x81b   : > { %v3356_v39 = vpop.permute.xlu0 %3355  ;;  %v3460_v19 = vld [vmem:[#allocation2 + $0xd8] sm:$0xff] }
 0x81c   : > { %3399 = vst.msk [vmem:[#allocation2 + $0xf9] sm:$0xff] %vm3393_vm12, %v3356_v39  ;;  %v3352_v49 = vpop.permute.xlu1 %3351  ;;  %v3458_v32 = vld [vmem:[#allocation2 + $0xc0] sm:$0xff]  ;;  %v3459_v35 = vld [vmem:[#allocation2 + $0xc8] sm:$0xff] }
 0x81d   : > { %v3490_v38 = vld [vmem:[#allocation2 + $0xc2] sm:$0xff]  ;;  %3397 = vst.msk [vmem:[#allocation2 + $0xe1] sm:$0xff] %vm3393_vm12, %v3352_v49  ;;  %v6167_v24 = vpack.i.bf16 %v3459_v35, %v3426_v61 }
 0x81e   : > { %v6162_v15 = vpack.i.bf16 %v3490_v38, %v3458_v32  ;;  %v3755_v49 = vld [vmem:[%s10041_s4 + $0x48] sm:$0xff]  ;;  %v3766_v61 = vld [vmem:[%s10041_s4 + $0xa0] sm:$0xff] }
 0x81f   : > { %v3767_v32 = vld [vmem:[%s10041_s4 + $0xa8] sm:$0xff]  ;;  %v3782_v35 = vld [vmem:[%s10041_s4 + $0x120] sm:$0xff] }
 0x820   : > { %6163 = vrot.lane.b32.xlu1 %v6162_v15, %s6319_s30  ;;  %v3783_v38 = vld [vmem:[%s10041_s4 + $0x128] sm:$0xff]  ;;  %v3754_v15 = vld [vmem:[%s10041_s4 + $0x40] sm:$0xff] }
 0x823   : > { %v3360_v3 = vpop.permute.xlu0 %3359  ;;  %v3494_v0 = vld [vmem:[#allocation2 + $0xf2] sm:$0xff]  ;;  %v3495_v10 = vld [vmem:[#allocation2 + $0xfa] sm:$0xff] }
 0x824   : > { %3401 = vst.msk [vmem:[#allocation2 + $0x111] sm:$0xff] %vm3393_vm12, %v3360_v3  ;;  %v6192_v54 = vpack.i.bf16 %v3494_v0, %v3462_v8  ;;  %v3492_v40 = vld [vmem:[#allocation2 + $0xda] sm:$0xff]  ;;  %v3493_v28 = vld [vmem:[#allocation2 + $0xe2] sm:$0xff]  ;;  %v6202_v2 = vpack.i.bf16 %v3431_v42, %v3495_v10 }
 0x825   : > { %v6177_v23 = vpack.i.bf16 %v3492_v40, %v3460_v19  ;;  %v3463_v6 = vld [vmem:[#allocation2 + $0xf8] sm:$0xff]  ;;  %v3461_v16 = vld [vmem:[#allocation2 + $0xe0] sm:$0xff]  ;;  %v6187_v26 = vpack.i.bf16 %v3429_v62, %v3493_v28  ;;  %v3764_v19 = vld [vmem:[%s10041_s4 + $0x90] sm:$0xff] }
 0x826   : > { %6193 = vrot.lane.b32.xlu2 %v6192_v54, %s6319_s30  ;;  %v6197_v51 = vpack.i.bf16 %v3463_v6, %v3430_v33  ;;  %v6182_v37 = vpack.i.bf16 %v3461_v16, %v3428_v47  ;;  %v3753_v3 = vld [vmem:[%s10041_s4 + $0x38] sm:$0xff]  ;;  %v3752_v54 = vld [vmem:[%s10041_s4 + $0x30] sm:$0xff]  ;;  %v3751_v6 = vld [vmem:[%s10041_s4 + $0x28] sm:$0xff] }
 0x827   : > { %6178 = vrot.lane.b32.xlu0 %v6177_v23, %s6319_s30  ;;  %v3765_v8 = vld [vmem:[%s10041_s4 + $0x98] sm:$0xff]  ;;  %v3435_v40 = vld [vmem:[#allocation2 + $0x69] sm:$0xff]  ;;  %v3778_v62 = vld [vmem:[%s10041_s4 + $0x100] sm:$0xff] }
 0x828   : > { %6168 = vrot.lane.b32.xlu1 %v6167_v24, %s6319_s30  ;;  %v3781_v0 = vld [vmem:[%s10041_s4 + $0x118] sm:$0xff]  ;;  %v3780_v24 = vld [vmem:[%s10041_s4 + $0x110] sm:$0xff]  ;;  %v3763_v47 = vld [vmem:[%s10041_s4 + $0x88] sm:$0xff] }
 0x829   : > { %v3779_v16 = vld [vmem:[%s10041_s4 + $0x108] sm:$0xff]  ;;  %v3749_v28 = vld [vmem:[%s10041_s4 + $0x18] sm:$0xff] }
 0x82b   : > { %v3497_v52 = vld [vmem:[#allocation2 + $0x112] sm:$0xff]  ;;  %v3496_v53 = vld [vmem:[#allocation2 + $0x10a] sm:$0xff] }
 0x82c   : > { %v6217_v12 = vpack.i.bf16 %v3433_v27, %v3497_v52  ;;  %v6207_v57 = vpack.i.bf16 %v3496_v53, %v3464_v22  ;;  %v3747_v27 = vld [vmem:[%s10041_s4 + $0x8] sm:$0xff]  ;;  %v3746_v52 = vld [vmem:[%s10041_s4] sm:$0xff] }
 0x82d   : > { %v3474_v22 = vld [vmem:[#allocation2 + $0xc1] sm:$0xff] }
 0x82e   : > { %6198 = vrot.lane.b32.xlu2 %v6197_v51, %s6319_s30  ;;  %v3750_v51 = vld [vmem:[%s10041_s4 + $0x20] sm:$0xff] }
 0x82f   : > { %6183 = vrot.lane.b32.xlu0 %v6182_v37, %s6319_s30  ;;  %v3762_v37 = vld [vmem:[%s10041_s4 + $0x80] sm:$0xff] }
 0x830   : > { %3361 = vrot.lane.b32.xlu1 %v8351_v17, %s6318_s29  ;;  %v3776_v17 = vld [vmem:[%s10041_s4 + $0xf0] sm:$0xff] }
 0x831   : > { %3860 = vmatpush.msra.mxu3 %v3776_v17 }
 0x836   : > { %3369 = vrot.lane.b32.xlu2 %v8354_v56, %s6318_s29  ;;  %v3465_v56 = vld [vmem:[#allocation2 + $0x110] sm:$0xff] }
 0x837   : > { %3365 = vrot.lane.b32.xlu0 %v8356_v44, %s6318_s29  ;;  %v3760_v44 = vld [vmem:[%s10041_s4 + $0x70] sm:$0xff]  ;;  %v6212_v1 = vpack.i.bf16 %v3465_v56, %v3432_v4 }
 0x838   : > { %6188 = vrot.lane.b32.xlu1 %v6187_v26, %s6319_s30  ;;  %3795 = vmatpush.msra.mxu1 %v3760_v44  ;;  %v3748_v26 = vld [vmem:[%s10041_s4 + $0x10] sm:$0xff]  ;;  %v3410_v44 = vld [vmem:[#allocation2] sm:$0xff] }
 0x83a   : > { %3796 = vmatpush.msra.mxu1 %v3759_v25 }
 0x83c   : > { %3797 = vmatpush.msra.mxu1 %v3758_v43 }
 0x83e   : > { %6218 = vrot.lane.b32.xlu2 %v6217_v12, %s6319_s30  ;;  %3798 = vmatpush.msra.mxu1 %v3757_v36 }
 0x83f   : > { %6203 = vrot.lane.b32.xlu0 %v6202_v2, %s6319_s30 }
 0x840   : > { %3367 = vrot.lane.b32.xlu1 %v8363_v31, %s6318_s29  ;;  %v3791_v31 = vld [vmem:[%s10041_s4 + $0x168] sm:$0xff]  ;;  %3799 = vmatpush.msra.mxu1 %v3756_v45  ;;  %v3476_v45 = vld [vmem:[#allocation2 + $0xd9] sm:$0xff] }
 0x841   : > { %3926 = vmatpush.msra.mxu2 %v3791_v31 }
 0x842   : > { %3800 = vmatpush.msra.mxu1 %v3755_v49 }
 0x843   : > { %3927 = vmatpush.msra.mxu2 %v3790_v41  ;;  %v3475_v41 = vld [vmem:[#allocation2 + $0xc9] sm:$0xff] }
 0x844   : > { %3801 = vmatpush.msra.mxu1 %v3754_v15  ;;  %v3445_v15 = vld [vmem:[#allocation2 + $0x22] sm:$0xff] }
 0x845   : > { %3928 = vmatpush.msra.mxu2 %v3789_v14 }
 0x846   : > { %3375 = vrot.lane.b32.xlu2 %v8359_v63, %s6318_s29  ;;  %v3775_v63 = vld [vmem:[%s10041_s4 + $0xe8] sm:$0xff]  ;;  %3802 = vmatpush.msra.mxu1 %v3753_v3 }
 0x847   : > { %3371 = vrot.lane.b32.xlu0 %v8375_v34, %s6318_s29  ;;  %3861 = vmatpush.msra.mxu3 %v3775_v63  ;;  %v3771_v34 = vld [vmem:[%s10041_s4 + $0xc8] sm:$0xff] }
 0x848   : > { %6208 = vrot.lane.b32.xlu1 %v6207_v57, %s6319_s30  ;;  %3929 = vmatpush.msra.mxu2 %v3788_v29  ;;  %v3443_v63 = vld [vmem:[#allocation2 + $0xa] sm:$0xff]  ;;  %v3477_v3 = vld [vmem:[#allocation2 + $0xe1] sm:$0xff] }
 0x849   : > { %3862 = vmatpush.msra.mxu3 %v3774_v9  ;;  %3803 = vmatpush.msra.mxu1 %v3752_v54 }
 0x84b   : > { %3863 = vmatpush.msra.mxu3 %v3773_v11  ;;  %3804 = vmatpush.msra.mxu1 %v3751_v6 }
 0x84d   : > { %3864 = vmatpush.msra.mxu3 %v3772_v13  ;;  %3805 = vmatpush.msra.mxu1 %v3750_v51  ;;  %v3446_v51 = vld [vmem:[#allocation2 + $0x32] sm:$0xff] }
 0x84f   : > { %3865 = vmatpush.msra.mxu3 %v3771_v34  ;;  %3806 = vmatpush.msra.mxu1 %v3749_v28 }
 0x850   : > { %6213 = vrot.lane.b32.xlu1 %v6212_v1, %s6319_s30 }
 0x851   : > { %3866 = vmatpush.msra.mxu3 %v3770_v60  ;;  %3807 = vmatpush.msra.mxu1 %v3748_v26  ;;  %v3411_v60 = vld [vmem:[#allocation2 + $0x8] sm:$0xff]  ;;  %v3478_v26 = vld [vmem:[#allocation2 + $0xf1] sm:$0xff] }
 0x853   : > { %3867 = vmatpush.msra.mxu3 %v3769_v50  ;;  %3808 = vmatpush.msra.mxu1 %v3747_v27 }
 0x855   : > { %3868 = vmatpush.msra.mxu3 %v3768_v21  ;;  %3809 = vmatpush.msra.mxu1 %v3746_v52  ;;  %v3437_v52 = vld [vmem:[#allocation2 + $0x81] sm:$0xff] }
 0x857   : > { %3869 = vmatpush.msra.mxu3 %v3767_v32 }
 0x858   : > { %3373 = vrot.lane.b32.xlu1 %v8377_v58, %s6318_s29  ;;  %v3787_v58 = vld [vmem:[%s10041_s4 + $0x148] sm:$0xff] }
 0x859   : > { %3930 = vmatpush.msra.mxu2 %v3787_v58  ;;  %3870 = vmatpush.msra.mxu3 %v3766_v61 }
 0x85b   : > { %3931 = vmatpush.msra.mxu2 %v3786_v7  ;;  %3871 = vmatpush.msra.mxu3 %v3765_v8  ;;  %v3444_v7 = vld [vmem:[#allocation2 + $0x1a] sm:$0xff] }
 0x85d   : > { %3932 = vmatpush.msra.mxu2 %v3785_v18  ;;  %3872 = vmatpush.msra.mxu3 %v3764_v19  ;;  %v3434_v19 = vld [vmem:[#allocation2 + $0x61] sm:$0xff] }
 0x85f   : > { %3933 = vmatpush.msra.mxu2 %v3784_v20  ;;  %3873 = vmatpush.msra.mxu3 %v3763_v47  ;;  %v3412_v20 = vld [vmem:[#allocation2 + $0x18] sm:$0xff] }
 0x860   : > { %v8459_v30 = vpop.permute.xlu2 %6173 }
 0x861   : > { %3934 = vmatpush.msra.mxu2 %v3783_v38  ;;  %3874 = vmatpush.msra.mxu3 %v3762_v37  ;;  %v6175_v17 = vunpack.i.l.bf16 %v8459_v30  ;;  %v6176_v14 = vunpack.i.h.bf16 %v8459_v30 }
 0x863   : > { %3935 = vmatpush.msra.mxu2 %v3782_v35  ;;  %v3731_v11 = vsel %vm958_vm6, %v3475_v41, %v6175_v17  ;;  %v3699_v36 = vsel %vm958_vm6, %v3411_v60, %v6176_v14  ;;  %v3439_v41 = vld [vmem:[#allocation2 + $0x99] sm:$0xff] }
 0x865   : > { %3936 = vmatpush.msra.mxu2 %v3781_v0 }
 0x867   : > { %3937 = vmatpush.msra.mxu2 %v3780_v24 }
 0x868   : > { %v3364_v39 = vpop.permute.xlu2 %3363 }
 0x869   : > { %3403 = vst.msk [vmem:[#allocation2 + $0x129] sm:$0xff] %vm3393_vm12, %v3364_v39  ;;  %3938 = vmatpush.msra.mxu2 %v3779_v16  ;;  %v3413_v16 = vld [vmem:[#allocation2 + $0x20] sm:$0xff] }
 0x86b   : > { %3939 = vmatpush.msra.mxu2 %v3778_v62 }
 0x870   : > { %v3499_v23 = vld [vmem:[#allocation2 + $0x12a] sm:$0xff] }
 0x871   : > { %v6232_v33 = vpack.i.bf16 %v3435_v40, %v3499_v23 }
 0x873   : > { %6233 = vrot.lane.b32.xlu1 %v6232_v33, %s6319_s30 }
 0x880   : > { %v8562_v42 = vpop.permute.xlu2 %6193 }
 0x881   : > { %v6195_v24 = vunpack.i.l.bf16 %v8562_v42  ;;  %v6196_v33 = vunpack.i.h.bf16 %v8562_v42 }
 0x883   : > { %v3718_v28 = vsel %vm958_vm6, %v3446_v51, %v6195_v24  ;;  %v3734_v27 = vsel %vm958_vm6, %v3478_v26, %v6196_v33  ;;  %v3440_v24 = vld [vmem:[#allocation2 + $0xa9] sm:$0xff] }
 0x884   : > { %v3417_v33 = vld [vmem:[#allocation2 + $0x50] sm:$0xff] }
 0x888   : > { %v8564_v10 = vpop.permute.xlu2 %6198 }
 0x889   : > { %v6200_v42 = vunpack.i.l.bf16 %v8564_v10 }
 0x890   : > { %v3370_v12 = vpop.permute.xlu2 %3369 }
 0x891   : > { %3406 = vst.msk [vmem:[#allocation2 + $0x151] sm:$0xff] %vm3393_vm12, %v3370_v12 }
 0x892   : > { %v6164_v2 = vpop.permute.xlu1 %6163 }
 0x893   : > { %v6166_v55 = vunpack.i.h.bf16 %v6164_v2  ;;  %v6165_v53 = vunpack.i.l.bf16 %v6164_v2  ;;  %v3436_v2 = vld [vmem:[#allocation2 + $0x79] sm:$0xff] }
 0x895   : > { %v3714_v57 = vsel %vm958_vm6, %v3442_v46, %v6165_v53  ;;  %v3730_v4 = vsel %vm958_vm6, %v3474_v22, %v6166_v55  ;;  %v3414_v46 = vld [vmem:[#allocation2 + $0x30] sm:$0xff]  ;;  %v6201_v55 = vunpack.i.h.bf16 %v8564_v10 }
 0x896   : > { %3875 = vmatmul.f32.vlgmr.msra.gmra.mxu3 %v3714_v57  ;;  %3940 = vmatmul.f32.vlgmr.msra.gmra.mxu2 %v3730_v4 }
 0x898   : > { %v8569_v5 = vpop.permute.xlu2 %6218  ;;  %v3470_v14 = vld [vmem:[#allocation2 + $0x150] sm:$0xff] }
 0x899   : > { %v6179_v48 = vpop.permute.xlu0 %6178 }
 0x89a   : > { %v6169_v56 = vpop.permute.xlu1 %6168  ;;  %v6180_v13 = vunpack.i.l.bf16 %v6179_v48  ;;  %v6181_v43 = vunpack.i.h.bf16 %v6179_v48 }
 0x89b   : > { %v6171_v1 = vunpack.i.h.bf16 %v6169_v56  ;;  %v6170_v31 = vunpack.i.l.bf16 %v6169_v56 }
 0x89c   : > { %v3716_v50 = vsel %vm958_vm6, %v3444_v7, %v6180_v13  ;;  %v3732_v30 = vsel %vm958_vm6, %v3476_v45, %v6181_v43  ;;  %v3438_v13 = vld [vmem:[#allocation2 + $0x91] sm:$0xff] }
 0x89d   : > { %v3698_v25 = vsel %vm958_vm6, %v3410_v44, %v6170_v31  ;;  %v3715_v9 = vsel %vm958_vm6, %v3443_v63, %v6171_v1  ;;  %v3447_v63 = vld [vmem:[#allocation2 + $0x3a] sm:$0xff]  ;;  %v3702_v31 = vsel %vm958_vm6, %v3414_v46, %v6200_v42 }
 0x89e   : > { %3810 = vmatmul.f32.vlgmr.msra.gmra.mxu1 %v3698_v25  ;;  %3878 = vmatmul.f32.gmra.mxu3 %v3715_v9  ;;  %v3479_v25 = vld [vmem:[#allocation2 + $0xf9] sm:$0xff]  ;;  %v3719_v10 = vsel %vm958_vm6, %v3447_v63, %v6201_v55 }
 0x89f   : > { %3943 = vmatmul.f32.gmra.mxu2 %v3731_v11 }
 0x8a0   : > { %v3376_v29 = vpop.permute.xlu2 %3375 }
 0x8a1   : > { %3409 = vst.msk [vmem:[#allocation2 + $0x171] sm:$0xff] %vm3393_vm12, %v3376_v29  ;;  %v6184_v34 = vpop.permute.xlu0 %6183  ;;  %v3415_v29 = vld [vmem:[#allocation2 + $0x38] sm:$0xff] }
 0x8a2   : > { %v3362_v58 = vpop.permute.xlu1 %3361  ;;  %v6186_v18 = vunpack.i.h.bf16 %v6184_v34  ;;  %v6185_v21 = vunpack.i.l.bf16 %v6184_v34 }
 0x8a3   : > { %3402 = vst.msk [vmem:[#allocation2 + $0x121] sm:$0xff] %vm3393_vm12, %v3362_v58 }
 0x8a4   : > { %v3700_v8 = vsel %vm958_vm6, %v3412_v20, %v6185_v21  ;;  %v3717_v0 = vsel %vm958_vm6, %v3445_v15, %v6186_v18  ;;  %v3480_v20 = vld [vmem:[#allocation2 + $0x109] sm:$0xff] }
 0x8a6   : > { %3813 = vmatmul.f32.gmra.mxu1 %v3699_v36  ;;  %3881 = vmatmul.f32.gmra.mxu3 %v3716_v50 }
 0x8a7   : > { %3946 = vmatmul.f32.gmra.mxu2 %v3732_v30  ;;  %v3448_v30 = vld [vmem:[#allocation2 + $0x4a] sm:$0xff] }
 0x8a9   : > { %v3366_v39 = vpop.permute.xlu0 %3365 }
 0x8aa   : > { %v6189_v49 = vpop.permute.xlu1 %6188  ;;  %v3466_v32 = vld [vmem:[#allocation2 + $0x120] sm:$0xff]  ;;  %3404 = vst.msk [vmem:[#allocation2 + $0x139] sm:$0xff] %vm3393_vm12, %v3366_v39  ;;  %v3467_v40 = vld [vmem:[#allocation2 + $0x128] sm:$0xff] }
 0x8ab   : > { %v3498_v38 = vld [vmem:[#allocation2 + $0x122] sm:$0xff]  ;;  %v6190_v61 = vunpack.i.l.bf16 %v6189_v49  ;;  %v6191_v23 = vunpack.i.h.bf16 %v6189_v49  ;;  %v6227_v37 = vpack.i.bf16 %v3467_v40, %v3434_v19 }
 0x8ac   : > { %v6222_v35 = vpack.i.bf16 %v3498_v38, %v3466_v32  ;;  %v6220_v38 = vunpack.i.l.bf16 %v8569_v5  ;;  %v3482_v42 = vld [vmem:[#allocation2 + $0x121] sm:$0xff] }
 0x8ad   : > { %v3733_v54 = vsel %vm958_vm6, %v3477_v3, %v6190_v61  ;;  %v3701_v62 = vsel %vm958_vm6, %v3413_v16, %v6191_v23  ;;  %v3449_v3 = vld [vmem:[#allocation2 + $0x52] sm:$0xff]  ;;  %v6221_v23 = vunpack.i.h.bf16 %v8569_v5 }
 0x8ae   : > { %6223 = vrot.lane.b32.xlu0 %v6222_v35, %s6319_s30  ;;  %3816 = vmatmul.f32.gmra.mxu1 %v3700_v8  ;;  %v3416_v35 = vld [vmem:[#allocation2 + $0x48] sm:$0xff]  ;;  %v3505_v8 = vld [vmem:[#allocation2 + $0x172] sm:$0xff] }
 0x8af   : > { %3884 = vmatmul.f32.gmra.mxu3 %v3717_v0  ;;  %3949 = vmatmul.f32.gmra.mxu2 %v3733_v54  ;;  %v3481_v54 = vld [vmem:[#allocation2 + $0x111] sm:$0xff] }
 0x8b0   : > { %v3737_v40 = vsel %vm958_vm6, %v3481_v54, %v6220_v38  ;;  %v3421_v38 = vld [vmem:[#allocation2 + $0x80] sm:$0xff] }
 0x8b1   : > { %v6204_v6 = vpop.permute.xlu0 %6203  ;;  %v3468_v12 = vld [vmem:[#allocation2 + $0x138] sm:$0xff] }
 0x8b2   : > { %v3368_v47 = vpop.permute.xlu1 %3367  ;;  %v6205_v53 = vunpack.i.l.bf16 %v6204_v6  ;;  %v6206_v11 = vunpack.i.h.bf16 %v6204_v6 }
 0x8b3   : > { %3405 = vst.msk [vmem:[#allocation2 + $0x141] sm:$0xff] %vm3393_vm12, %v3368_v47 }
 0x8b4   : > { %v3735_v9 = vsel %vm958_vm6, %v3479_v25, %v6205_v53  ;;  %v3703_v21 = vsel %vm958_vm6, %v3415_v29, %v6206_v11 }
 0x8b6   : > { %6228 = vrot.lane.b32.xlu0 %v6227_v37, %s6319_s30  ;;  %3819 = vmatmul.f32.gmra.mxu1 %v3701_v62  ;;  %v3705_v62 = vsel %vm958_vm6, %v3417_v33, %v6221_v23  ;;  %v3422_v23 = vld [vmem:[#allocation2 + $0x90] sm:$0xff]  ;;  %v3455_v33 = vld [vmem:[#allocation2 + $0x9a] sm:$0xff] }
 0x8b7   : > { %3887 = vmatmul.f32.gmra.mxu3 %v3718_v28  ;;  %3952 = vmatmul.f32.gmra.mxu2 %v3734_v27  ;;  %v3441_v28 = vld [vmem:[#allocation2 + $0xb1] sm:$0xff]  ;;  %v3450_v27 = vld [vmem:[#allocation2 + $0x62] sm:$0xff] }
 0x8b9   : > { %v3372_v22 = vpop.permute.xlu0 %3371 }
 0x8ba   : > { %v6209_v57 = vpop.permute.xlu1 %6208  ;;  %v3501_v4 = vld [vmem:[#allocation2 + $0x142] sm:$0xff]  ;;  %v3500_v17 = vld [vmem:[#allocation2 + $0x13a] sm:$0xff]  ;;  %3407 = vst.msk [vmem:[#allocation2 + $0x159] sm:$0xff] %vm3393_vm12, %v3372_v22 }
 0x8bb   : > { %v3469_v48 = vld [vmem:[#allocation2 + $0x140] sm:$0xff]  ;;  %v6247_v56 = vpack.i.bf16 %v3437_v52, %v3501_v4  ;;  %v6237_v44 = vpack.i.bf16 %v3500_v17, %v3468_v12  ;;  %v6211_v43 = vunpack.i.h.bf16 %v6209_v57  ;;  %v6210_v34 = vunpack.i.l.bf16 %v6209_v57  ;;  %v3451_v57 = vld [vmem:[#allocation2 + $0x6a] sm:$0xff] }
 0x8bc   : > { %v6242_v1 = vpack.i.bf16 %v3469_v48, %v3436_v2  ;;  %v3418_v22 = vld [vmem:[#allocation2 + $0x60] sm:$0xff] }
 0x8bd   : > { %6248 = vrot.lane.b32.xlu1 %v6247_v56, %s6319_s30  ;;  %6238 = vrot.lane.b32.xlu2 %v6237_v44, %s6319_s30  ;;  %v3720_v39 = vsel %vm958_vm6, %v3448_v30, %v6210_v34  ;;  %v3736_v49 = vsel %vm958_vm6, %v3480_v20, %v6211_v43  ;;  %v3483_v44 = vld [vmem:[#allocation2 + $0x129] sm:$0xff] }
 0x8be   : > { %6243 = vrot.lane.b32.xlu0 %v6242_v1, %s6319_s30  ;;  %3822 = vmatmul.f32.gmra.mxu1 %v3702_v31 }
 0x8bf   : > { %3890 = vmatmul.f32.gmra.mxu3 %v3719_v10  ;;  %3955 = vmatmul.f32.gmra.mxu2 %v3735_v9  ;;  %v3419_v9 = vld [vmem:[#allocation2 + $0x68] sm:$0xff] }
 0x8c1   : > { %v3503_v60 = vld [vmem:[#allocation2 + $0x15a] sm:$0xff]  ;;  %v3502_v7 = vld [vmem:[#allocation2 + $0x152] sm:$0xff] }
 0x8c2   : > { %v6214_v58 = vpop.permute.xlu1 %6213  ;;  %v3471_v36 = vld [vmem:[#allocation2 + $0x158] sm:$0xff]  ;;  %v6262_v50 = vpack.i.bf16 %v3439_v41, %v3503_v60  ;;  %v6252_v45 = vpack.i.bf16 %v3502_v7, %v3470_v14 }
 0x8c3   : > { %v6257_v18 = vpack.i.bf16 %v3471_v36, %v3438_v13  ;;  %v6215_v32 = vunpack.i.l.bf16 %v6214_v58  ;;  %v6216_v15 = vunpack.i.h.bf16 %v6214_v58  ;;  %v3452_v41 = vld [vmem:[#allocation2 + $0x7a] sm:$0xff] }
 0x8c4   : > { %v3484_v13 = vld [vmem:[#allocation2 + $0x139] sm:$0xff] }
 0x8c5   : > { %6263 = vrot.lane.b32.xlu1 %v6262_v50, %s6319_s30  ;;  %6253 = vrot.lane.b32.xlu2 %v6252_v45, %s6319_s30  ;;  %v3704_v0 = vsel %vm958_vm6, %v3416_v35, %v6215_v32  ;;  %v3721_v19 = vsel %vm958_vm6, %v3449_v3, %v6216_v15  ;;  %v3420_v36 = vld [vmem:[#allocation2 + $0x78] sm:$0xff]  ;;  %v3453_v50 = vld [vmem:[#allocation2 + $0x82] sm:$0xff] }
 0x8c6   : > { %6258 = vrot.lane.b32.xlu0 %v6257_v18, %s6319_s30  ;;  %3825 = vmatmul.f32.gmra.mxu1 %v3703_v21  ;;  %v3485_v18 = vld [vmem:[#allocation2 + $0x141] sm:$0xff]  ;;  %v3454_v15 = vld [vmem:[#allocation2 + $0x92] sm:$0xff] }
 0x8c7   : > { %3893 = vmatmul.f32.gmra.mxu3 %v3720_v39  ;;  %3958 = vmatmul.f32.gmra.mxu2 %v3736_v49  ;;  %v3486_v3 = vld [vmem:[#allocation2 + $0x151] sm:$0xff] }
 0x8ca   : > { %v3374_v61 = vpop.permute.xlu1 %3373 }
 0x8cb   : > { %3408 = vst.msk [vmem:[#allocation2 + $0x169] sm:$0xff] %vm3393_vm12, %v3374_v61 }
 0x8cd   : > { %3680 = vrot.lane.b32.xlu1 %v3505_v8, %s6319_s30 }
 0x8ce   : > { %3828 = vmatmul.f32.gmra.mxu1 %v3704_v0 }
 0x8cf   : > { %3896 = vmatmul.f32.gmra.mxu3 %v3721_v19  ;;  %3961 = vmatmul.f32.gmra.mxu2 %v3737_v40 }
 0x8d2   : > { %v3473_v6 = vld [vmem:[#allocation2 + $0x170] sm:$0xff]  ;;  %v3472_v47 = vld [vmem:[#allocation2 + $0x168] sm:$0xff] }
 0x8d3   : > { %v3504_v16 = vld [vmem:[#allocation2 + $0x16a] sm:$0xff]  ;;  %v6272_v51 = vpack.i.bf16 %v3473_v6, %v3440_v24 }
 0x8d4   : > { %v6267_v37 = vpack.i.bf16 %v3504_v16, %v3472_v47  ;;  %v3487_v16 = vld [vmem:[#allocation2 + $0x159] sm:$0xff] }
 0x8d5   : > { %6273 = vrot.lane.b32.xlu0 %v6272_v51, %s6319_s30 }
 0x8d6   : > { %6268 = vrot.lane.b32.xlu2 %v6267_v37, %s6319_s30  ;;  %3831 = vmatmul.f32.gmra.mxu1 %v3705_v62 }
 0x8de   : > { %3552 = vrot.lane.b32.xlu2 %v3441_v28, %s6319_s30 }
 0x8e5   : > { %v6234_v46 = vpop.permute.xlu1 %6233 }
 0x8e6   : > { %v6235_v55 = vunpack.i.l.bf16 %v6234_v46  ;;  %v6236_v31 = vunpack.i.h.bf16 %v6234_v46 }
 0x8e8   : > { %v3739_v1 = vsel %vm958_vm6, %v3483_v44, %v6235_v55  ;;  %v3707_v11 = vsel %vm958_vm6, %v3419_v9, %v6236_v31 }
 0x917   : > { %v6239_v63 = vpop.permute.xlu2 %6238 }
 0x918   : > { %v6240_v25 = vunpack.i.l.bf16 %v6239_v63  ;;  %v6241_v10 = vunpack.i.h.bf16 %v6239_v63 }
 0x91a   : > { %v3724_v14 = vsel %vm958_vm6, %v3452_v41, %v6240_v25  ;;  %v3740_v43 = vsel %vm958_vm6, %v3484_v13, %v6241_v10  ;;  %v3425_v10 = vld [vmem:[#allocation2 + $0xb0] sm:$0xff] }
 0x91f   : > { %v6254_v21 = vpop.permute.xlu2 %6253 }
 0x920   : > { %v6224_v26 = vpop.permute.xlu0 %6223  ;;  %v6255_v39 = vunpack.i.l.bf16 %v6254_v21  ;;  %v6256_v32 = vunpack.i.h.bf16 %v6254_v21 }
 0x921   : > { %v6226_v52 = vunpack.i.h.bf16 %v6224_v26  ;;  %v6225_v5 = vunpack.i.l.bf16 %v6224_v26 }
 0x922   : > { %v3726_v35 = vsel %vm958_vm6, %v3454_v15, %v6255_v39  ;;  %v3742_v0 = vsel %vm958_vm6, %v3486_v3, %v6256_v32 }
 0x923   : > { %v3722_v12 = vsel %vm958_vm6, %v3450_v27, %v6225_v5  ;;  %v3738_v2 = vsel %vm958_vm6, %v3482_v42, %v6226_v52  ;;  %v3423_v27 = vld [vmem:[#allocation2 + $0x98] sm:$0xff]  ;;  %v3456_v52 = vld [vmem:[#allocation2 + $0xaa] sm:$0xff] }
 0x924   : > { %3899 = vmatmul.f32.gmra.mxu3 %v3722_v12  ;;  %3964 = vmatmul.f32.gmra.mxu2 %v3738_v2  ;;  %v3488_v12 = vld [vmem:[#allocation2 + $0x169] sm:$0xff] }
 0x928   : > { %v6229_v53 = vpop.permute.xlu0 %6228 }
 0x929   : > { %v6231_v4 = vunpack.i.h.bf16 %v6229_v53  ;;  %v6230_v17 = vunpack.i.l.bf16 %v6229_v53 }
 0x92b   : > { %v3706_v48 = vsel %vm958_vm6, %v3418_v22, %v6230_v17  ;;  %v3723_v56 = vsel %vm958_vm6, %v3451_v57, %v6231_v4  ;;  %v3876_v22 = vpop.f32.mrf.mxu3  ;;  %v3424_v57 = vld [vmem:[#allocation2 + $0xa8] sm:$0xff]  ;;  %v3457_v4 = vld [vmem:[#allocation2 + $0xb2] sm:$0xff]  ;;  %v3941_v17 = vpop.f32.mrf.mxu2 }
 0x92c   : > { %3834 = vmatmul.f32.gmra.mxu1 %v3706_v48  ;;  %3902 = vmatmul.f32.gmra.mxu3 %v3723_v56  ;;  %v3811_v56 = vpop.f32.mrf.mxu1 }
 0x92d   : > { %3967 = vmatmul.f32.gmra.mxu2 %v3739_v1  ;;  %v3489_v1 = vld [vmem:[#allocation2 + $0x171] sm:$0xff] }
 0x92f   : > { %v6249_v34 = vpop.permute.xlu1 %6248 }
 0x930   : > { %v6244_v29 = vpop.permute.xlu0 %6243  ;;  %v6250_v7 = vunpack.i.l.bf16 %v6249_v34  ;;  %v6251_v49 = vunpack.i.h.bf16 %v6249_v34  ;;  %v6269_v51 = vpop.permute.xlu2 %6268 }
 0x931   : > { %v6246_v58 = vunpack.i.h.bf16 %v6244_v29  ;;  %v6245_v60 = vunpack.i.l.bf16 %v6244_v29  ;;  %v6270_v62 = vunpack.i.l.bf16 %v6269_v51  ;;  %v6271_v26 = vunpack.i.h.bf16 %v6269_v51 }
 0x932   : > { %v3741_v20 = vsel %vm958_vm6, %v3485_v18, %v6250_v7  ;;  %v3709_v61 = vsel %vm958_vm6, %v3421_v38, %v6251_v49 }
 0x933   : > { %v3708_v45 = vsel %vm958_vm6, %v3420_v36, %v6245_v60  ;;  %v3725_v30 = vsel %vm958_vm6, %v3453_v50, %v6246_v58  ;;  %v3728_v42 = vsel %vm958_vm6, %v3456_v52, %v6270_v62  ;;  %v3744_v46 = vsel %vm958_vm6, %v3488_v12, %v6271_v26  ;;  %v3879_v41 = vpop.f32.mrf.mxu3 }
 0x934   : > { %3837 = vmatmul.f32.gmra.mxu1 %v3707_v11  ;;  %3905 = vmatmul.f32.gmra.mxu3 %v3724_v14  ;;  %v3944_v11 = vpop.f32.mrf.mxu2  ;;  %v3814_v14 = vpop.f32.mrf.mxu1 }
 0x935   : > { %3970 = vmatmul.f32.gmra.mxu2 %v3740_v43 }
 0x937   : > { %v6264_v54 = vpop.permute.xlu1 %6263 }
 0x938   : > { %v6259_v8 = vpop.permute.xlu0 %6258  ;;  %v6265_v24 = vunpack.i.l.bf16 %v6264_v54  ;;  %v6266_v28 = vunpack.i.h.bf16 %v6264_v54  ;;  %v3553_v25 = vpop.permute.xlu2 %3552 }
 0x939   : > { %v6261_v19 = vunpack.i.h.bf16 %v6259_v8  ;;  %v6260_v40 = vunpack.i.l.bf16 %v6259_v8  ;;  %v3713_v9 = vsel %vm958_vm6, %v3425_v10, %v3553_v25 }
 0x93a   : > { %v3743_v37 = vsel %vm958_vm6, %v3487_v16, %v6265_v24  ;;  %v3711_v5 = vsel %vm958_vm6, %v3423_v27, %v6266_v28 }
 0x93b   : > { %v3710_v6 = vsel %vm958_vm6, %v3422_v23, %v6260_v40  ;;  %v3727_v47 = vsel %vm958_vm6, %v3455_v33, %v6261_v19  ;;  %v3882_v13 = vpop.f32.mrf.mxu3  ;;  %v3880_v23 = vadd.f32 %v3879_v41, %v3814_v14 }
 0x93c   : > { %3840 = vmatmul.f32.gmra.mxu1 %v3708_v45  ;;  %3908 = vmatmul.f32.gmra.mxu3 %v3725_v30  ;;  %v3947_v29 = vpop.f32.mrf.mxu2  ;;  %v3817_v43 = vpop.f32.mrf.mxu1 }
 0x93d   : > { %3973 = vmatmul.f32.gmra.mxu2 %v3741_v20  ;;  %v3883_v16 = vadd.f32 %v3882_v13, %v3817_v43  ;;  %v8643_v51 = vadd.f32 %v3944_v11, %v3880_v23 }
 0x93f   : > { %v3681_v48 = vpop.permute.xlu1 %3680  ;;  %v8647_v28 = vadd.f32 %v3947_v29, %v3883_v16  ;;  %v3990_v52 = vsel %vm474_vm2, %v8643_v51, 0.0 }
 0x940   : > { %v3745_v31 = vsel %vm958_vm6, %v3489_v1, %v3681_v48 }
 0x943   : > { %v3885_v34 = vpop.f32.mrf.mxu3 }
 0x944   : > { %3843 = vmatmul.f32.gmra.mxu1 %v3709_v61  ;;  %3911 = vmatmul.f32.gmra.mxu3 %v3726_v35  ;;  %v3950_v58 = vpop.f32.mrf.mxu2  ;;  %v3820_v60 = vpop.f32.mrf.mxu1 }
 0x945   : > { %3976 = vmatmul.f32.gmra.mxu2 %v3742_v0 }
 0x947   : > { %v6274_v2 = vpop.permute.xlu0 %6273 }
 0x948   : > { %v6276_v55 = vunpack.i.h.bf16 %v6274_v2  ;;  %v6275_v53 = vunpack.i.l.bf16 %v6274_v2 }
 0x94a   : > { %v3712_v44 = vsel %vm958_vm6, %v3424_v57, %v6275_v53  ;;  %v3729_v63 = vsel %vm958_vm6, %v3457_v4, %v6276_v55  ;;  %v3992_v55 = vsel %vm474_vm2, %v8647_v28, 0.0 }
 0x94b   : > { %v3888_v7 = vpop.f32.mrf.mxu3 }
 0x94c   : > { %3846 = vmatmul.f32.gmra.mxu1 %v3710_v6  ;;  %3914 = vmatmul.f32.gmra.mxu3 %v3727_v47  ;;  %v3953_v36 = vpop.f32.mrf.mxu2  ;;  %v3823_v50 = vpop.f32.mrf.mxu1  ;;  %v3877_v47 = vadd.f32 %v3876_v22, %v3811_v56 }
 0x94d   : > { %3979 = vmatmul.f32.gmra.mxu2 %v3743_v37  ;;  %v3886_v37 = vadd.f32 %v3885_v34, %v3820_v60  ;;  %v3889_v26 = vadd.f32 %v3888_v7, %v3823_v50 }
 0x94e   : > { %v8645_v62 = vadd.f32 %v3941_v17, %v3877_v47 }
 0x94f   : > { %v8657_v53 = vadd.f32 %v3953_v36, %v3889_v26 }
 0x953   : > { %v3891_v45 = vpop.f32.mrf.mxu3 }
 0x954   : > { %3849 = vmatmul.f32.gmra.mxu1 %v3711_v5  ;;  %3917 = vmatmul.f32.gmra.mxu3 %v3728_v42  ;;  %v3956_v30 = vpop.f32.mrf.mxu2  ;;  %v3826_v18 = vpop.f32.mrf.mxu1  ;;  %v8651_v5 = vadd.f32 %v3950_v58, %v3886_v37 }
 0x955   : > { %3982 = vmatmul.f32.gmra.mxu2 %v3744_v46  ;;  %v3892_v42 = vadd.f32 %v3891_v45, %v3826_v18  ;;  %v3989_v46 = vsel %vm474_vm2, %v8645_v62, 0.0 }
 0x956   : > { %v3991_v57 = vadd.f32 %v3990_v52, %v3989_v46  ;;  %v3994_v4 = vsel %vm474_vm2, %v8651_v5, 0.0 }
 0x957   : > { %v8661_v17 = vadd.f32 %v3956_v30, %v3892_v42 }
 0x958   : > { %v3993_v56 = vadd.f32 %v3992_v55, %v3991_v57 }
 0x959   : > { %v3998_v10 = vsel %vm474_vm2, %v8661_v17, 0.0 }
 0x95b   : > { %v3894_v21 = vpop.f32.mrf.mxu3 }
 0x95c   : > { %3852 = vmatmul.f32.gmra.mxu1 %v3712_v44  ;;  %3920 = vmatmul.f32.gmra.mxu3 %v3729_v63  ;;  %v3959_v20 = vpop.f32.mrf.mxu2  ;;  %v3829_v39 = vpop.f32.mrf.mxu1  ;;  %v3996_v44 = vsel %vm474_vm2, %v8657_v53, 0.0 }
 0x95d   : > { %3985 = vmatmul.f32.gmra.mxu2 %v3745_v31  ;;  %v3895_v22 = vadd.f32 %v3894_v21, %v3829_v39  ;;  %v3995_v31 = vadd.f32 %v3994_v4, %v3993_v56 }
 0x95f   : > { %v8665_v63 = vadd.f32 %v3959_v20, %v3895_v22  ;;  %v3997_v14 = vadd.f32 %v3996_v44, %v3995_v31 }
 0x961   : > { %v4000_v29 = vsel %vm474_vm2, %v8665_v63, 0.0  ;;  %v3999_v58 = vadd.f32 %v3998_v10, %v3997_v14 }
 0x963   : > { %v3897_v49 = vpop.f32.mrf.mxu3  ;;  %v4001_v50 = vadd.f32 %v4000_v29, %v3999_v58 }
 0x964   : > { %3855 = vmatmul.f32.gmra.mxu1 %v3713_v9  ;;  %v3962_v32 = vpop.f32.mrf.mxu2  ;;  %v3832_v38 = vpop.f32.mrf.mxu1 }
 0x965   : > { %v3898_v48 = vadd.f32 %v3897_v49, %v3832_v38 }
 0x967   : > { %v8669_v9 = vadd.f32 %v3962_v32, %v3898_v48 }
 0x969   : > { %v4002_v60 = vsel %vm474_vm2, %v8669_v9, 0.0 }
 0x96a   : > { %v4003_v21 = vadd.f32 %v4002_v60, %v4001_v50 }
 0x9a7   : > { %v3900_v15 = vpop.f32.mrf.mxu3  ;;  %v3965_v61 = vpop.f32.mrf.mxu2 }
 0x9a9   : > { %v3835_v35 = vpop.f32.mrf.mxu1 }
 0x9aa   : > { %v3901_v1 = vadd.f32 %v3900_v15, %v3835_v35 }
 0x9ac   : > { %v8673_v43 = vadd.f32 %v3965_v61, %v3901_v1 }
 0x9ae   : > { %v4004_v45 = vsel %vm474_vm2, %v8673_v43, 0.0 }
 0x9af   : > { %v3903_v3 = vpop.f32.mrf.mxu3  ;;  %v4005_v38 = vadd.f32 %v4004_v45, %v4003_v21 }
 0x9b0   : > { %v3968_v8 = vpop.f32.mrf.mxu2 }
 0x9b1   : > { %v3838_v0 = vpop.f32.mrf.mxu1 }
 0x9b2   : > { %v3904_v41 = vadd.f32 %v3903_v3, %v3838_v0 }
 0x9b4   : > { %v8677_v7 = vadd.f32 %v3968_v8, %v3904_v41 }
 0x9b6   : > { %v4006_v39 = vsel %vm474_vm2, %v8677_v7, 0.0 }
 0x9b7   : > { %v3906_v54 = vpop.f32.mrf.mxu3  ;;  %v4007_v0 = vadd.f32 %v4006_v39, %v4005_v38 }
 0x9b8   : > { %v3971_v19 = vpop.f32.mrf.mxu2 }
 0x9b9   : > { %v3841_v40 = vpop.f32.mrf.mxu1 }
 0x9ba   : > { %v3907_v34 = vadd.f32 %v3906_v54, %v3841_v40 }
 0x9bc   : > { %v8681_v30 = vadd.f32 %v3971_v19, %v3907_v34 }
 0x9be   : > { %v4008_v35 = vsel %vm474_vm2, %v8681_v30, 0.0 }
 0x9bf   : > { %v3909_v24 = vpop.f32.mrf.mxu3  ;;  %v4009_v40 = vadd.f32 %v4008_v35, %v4007_v0 }
 0x9c0   : > { %v3974_v33 = vpop.f32.mrf.mxu2 }
 0x9c1   : > { %v3844_v6 = vpop.f32.mrf.mxu1 }
 0x9c2   : > { %v3910_v36 = vadd.f32 %v3909_v24, %v3844_v6 }
 0x9c4   : > { %v8685_v49 = vadd.f32 %v3974_v33, %v3910_v36 }
 0x9c6   : > { %v4010_v54 = vsel %vm474_vm2, %v8685_v49, 0.0 }
 0x9c7   : > { %v3912_v27 = vpop.f32.mrf.mxu3  ;;  %v4011_v33 = vadd.f32 %v4010_v54, %v4009_v40 }
 0x9c8   : > { %v3977_v12 = vpop.f32.mrf.mxu2 }
 0x9c9   : > { %v3847_v2 = vpop.f32.mrf.mxu1 }
 0x9ca   : > { %v3913_v18 = vadd.f32 %v3912_v27, %v3847_v2 }
 0x9cc   : > { %v8689_v3 = vadd.f32 %v3977_v12, %v3913_v18 }
 0x9ce   : > { %v4012_v24 = vsel %vm474_vm2, %v8689_v3, 0.0 }
 0x9cf   : > { %v3915_v25 = vpop.f32.mrf.mxu3  ;;  %v4013_v47 = vadd.f32 %v4012_v24, %v4011_v33 }
 0x9d0   : > { %v3980_v11 = vpop.f32.mrf.mxu2 }
 0x9d1   : > { %v3850_v13 = vpop.f32.mrf.mxu1 }
 0x9d2   : > { %v3916_v32 = vadd.f32 %v3915_v25, %v3850_v13 }
 0x9d4   : > { %v8693_v19 = vadd.f32 %v3980_v11, %v3916_v32 }
 0x9d6   : > { %v4014_v6 = vsel %vm474_vm2, %v8693_v19, 0.0 }
 0x9d7   : > { %v3918_v20 = vpop.f32.mrf.mxu3  ;;  %v4015_v52 = vadd.f32 %v4014_v6, %v4013_v47 }
 0x9d8   : > { %v3983_v15 = vpop.f32.mrf.mxu2 }
 0x9d9   : > { %v3853_v61 = vpop.f32.mrf.mxu1 }
 0x9da   : > { %v3919_v8 = vadd.f32 %v3918_v20, %v3853_v61 }
 0x9dc   : > { %v8697_v23 = vadd.f32 %v3983_v15, %v3919_v8 }
 0x9de   : > { %v4016_v26 = vsel %vm474_vm2, %v8697_v23, 0.0 }
 0x9df   : > { %v3921_v16 = vpop.f32.mrf.mxu3  ;;  %v4017_v2 = vadd.f32 %v4016_v26, %v4015_v52 }
 0x9e0   : > { %v3986_v42 = vpop.f32.mrf.mxu2 }
 0x9e1   : > { %v3856_v37 = vpop.f32.mrf.mxu1 }
 0x9e2   : > { %v3922_v27 = vadd.f32 %v3921_v16, %v3856_v37 }
 0x9e4   : > { %v3987_v12 = vadd.f32 %v3986_v42, %v3922_v27 }
 0x9e6   : > { %v4018_v46 = vsel %vm474_vm2, %v3987_v12, 0.0 }
 0x9e7   : > { %v4019_v55 = vadd.f32 %v4018_v46, %v4017_v2 }
 0x9e9   : > { %v4020_v22 = vrot.slane %v4019_v55, 4 }
 0x9eb   : > { %v4021_v57 = vadd.f32 %v4020_v22, %v4019_v55 }
 0x9ed   : > { %v4022_v4 = vrot.slane %v4021_v57, 2 }
 0x9ef   : > { %v4023_v48 = vadd.f32 %v4022_v4, %v4021_v57 }
 0x9f1   : > { %v4024_v56 = vrot.slane %v4023_v48, 1 }
 0x9f3   : > { %v4025_v44 = vadd.f32 %v4024_v56, %v4023_v48 }
 0x9f5   : > { %v4026_v1 = vmul.f32 %v4025_v44, %v6888_v59 }
 0x9f7   : > { %v8706_v31 = vsub.f32 %v8645_v62, %v4026_v1  ;;  %v8709_v25 = vsub.f32 %v8643_v51, %v4026_v1  ;;  %v8712_v10 = vsub.f32 %v8647_v28, %v4026_v1  ;;  %v8715_v41 = vsub.f32 %v8651_v5, %v4026_v1 }
 0x9f8   : > { %v8722_v13 = vsub.f32 %v8657_v53, %v4026_v1  ;;  %v8727_v51 = vsub.f32 %v8661_v17, %v4026_v1  ;;  %v8734_v58 = vsub.f32 %v8665_v63, %v4026_v1  ;;  %v8740_v17 = vsub.f32 %v8669_v9, %v4026_v1 }
 0x9f9   : > { %v4043_v11 = vmul.f32 %v8706_v31, %v8706_v31  ;;  %v4044_v14 = vmul.f32 %v8709_v25, %v8709_v25  ;;  %v4045_v62 = vmul.f32 %v8712_v10, %v8712_v10  ;;  %v4046_v28 = vmul.f32 %v8715_v41, %v8715_v41 }
 0x9fa   : > { %v4047_v53 = vmul.f32 %v8722_v13, %v8722_v13  ;;  %v4048_v50 = vmul.f32 %v8727_v51, %v8727_v51  ;;  %v8746_v21 = vsub.f32 %v8673_v43, %v4026_v1  ;;  %v4049_v63 = vmul.f32 %v8734_v58, %v8734_v58 }
 0x9fb   : > { %v4059_v5 = vsel %vm474_vm2, %v4043_v11, 0.0  ;;  %v4060_v29 = vsel %vm474_vm2, %v4044_v14, 0.0  ;;  %v4062_v60 = vsel %vm474_vm2, %v4045_v62, 0.0  ;;  %v4064_v45 = vsel %vm474_vm2, %v4046_v28, 0.0 }
 0x9fc   : > { %v4061_v34 = vadd.f32 %v4060_v29, %v4059_v5  ;;  %v4066_v20 = vsel %vm474_vm2, %v4047_v53, 0.0  ;;  %v8752_v32 = vsub.f32 %v8677_v7, %v4026_v1  ;;  %v4050_v9 = vmul.f32 %v8740_v17, %v8740_v17 }
 0x9fd   : > { %v4068_v38 = vsel %vm474_vm2, %v4048_v50, 0.0  ;;  %v8758_v61 = vsub.f32 %v8681_v30, %v4026_v1  ;;  %v4051_v43 = vmul.f32 %v8746_v21, %v8746_v21  ;;  %v4070_v35 = vsel %vm474_vm2, %v4049_v63, 0.0 }
 0x9fe   : > { %v4063_v36 = vadd.f32 %v4062_v60, %v4061_v34  ;;  %v8764_v0 = vsub.f32 %v8685_v49, %v4026_v1  ;;  %v4052_v7 = vmul.f32 %v8752_v32, %v8752_v32  ;;  %v4072_v54 = vsel %vm474_vm2, %v4050_v9, 0.0 }
 0x9ff   : > { %v8770_v24 = vsub.f32 %v8689_v3, %v4026_v1  ;;  %v4053_v30 = vmul.f32 %v8758_v61, %v8758_v61  ;;  %v4074_v33 = vsel %vm474_vm2, %v4051_v43, 0.0  ;;  %v8776_v47 = vsub.f32 %v8693_v19, %v4026_v1 }
 0xa00   : > { %v4065_v18 = vadd.f32 %v4064_v45, %v4063_v36  ;;  %v4054_v49 = vmul.f32 %v8764_v0, %v8764_v0  ;;  %v4076_v16 = vsel %vm474_vm2, %v4052_v7, 0.0  ;;  %v8782_v26 = vsub.f32 %v8697_v23, %v4026_v1 }
 0xa01   : > { %v4055_v3 = vmul.f32 %v8770_v24, %v8770_v24  ;;  %v4078_v27 = vsel %vm474_vm2, %v4053_v30, 0.0  ;;  %v4042_v42 = vsub.f32 %v3987_v12, %v4026_v1  ;;  %v4056_v19 = vmul.f32 %v8776_v47, %v8776_v47 }
 0xa02   : > { %v4067_v39 = vadd.f32 %v4066_v20, %v4065_v18  ;;  %v4080_v2 = vsel %vm474_vm2, %v4054_v49, 0.0  ;;  %v4057_v55 = vmul.f32 %v8782_v26, %v8782_v26  ;;  %v8800_v20 = vld [vmem:[%s10046_s9 + $0x3] ss:$0 sm:$0xff] }
 0xa03   : > { %v4082_v22 = vsel %vm474_vm2, %v4055_v3, 0.0  ;;  %v4058_v57 = vmul.f32 %v4042_v42, %v4042_v42  ;;  %v4084_v4 = vsel %vm474_vm2, %v4056_v19, 0.0 }
 0xa04   : > { %v4069_v15 = vadd.f32 %v4068_v38, %v4067_v39  ;;  %v4086_v56 = vsel %vm474_vm2, %v4057_v55, 0.0 }
 0xa05   : > { %v4088_v12 = vsel %vm474_vm2, %v4058_v57, 0.0 }
 0xa06   : > { %v4071_v8 = vadd.f32 %v4070_v35, %v4069_v15  ;;  %v8810_v15 = vld [vmem:[%s10047_s10 + $0x3] ss:$0 sm:$0xff] }
 0xa08   : > { %v4073_v40 = vadd.f32 %v4072_v54, %v4071_v8 }
 0xa0a   : > { %v4075_v6 = vadd.f32 %v4074_v33, %v4073_v40 }
 0xa0c   : > { %v4077_v37 = vadd.f32 %v4076_v16, %v4075_v6 }
 0xa0e   : > { %v4079_v52 = vadd.f32 %v4078_v27, %v4077_v37 }
 0xa10   : > { %v4081_v46 = vadd.f32 %v4080_v2, %v4079_v52 }
 0xa12   : > { %v4083_v23 = vadd.f32 %v4082_v22, %v4081_v46 }
 0xa14   : > { %v4085_v48 = vadd.f32 %v4084_v4, %v4083_v23 }
 0xa16   : > { %v4087_v44 = vadd.f32 %v4086_v56, %v4085_v48 }
 0xa18   : > { %v4089_v1 = vadd.f32 %v4088_v12, %v4087_v44 }
 0xa1a   : > { %v4090_v11 = vrot.slane %v4089_v1, 4 }
 0xa1c   : > { %v4091_v14 = vadd.f32 %v4090_v11, %v4089_v1 }
 0xa1e   : > { %v4092_v62 = vrot.slane %v4091_v14, 2 }
 0xa20   : > { %v4093_v28 = vadd.f32 %v4092_v62, %v4091_v14 }
 0xa22   : > { %v4094_v5 = vrot.slane %v4093_v28, 1 }
 0xa24   : > { %v4095_v29 = vadd.f32 %v4094_v5, %v4093_v28 }
 0xa26   : > { %v4096_v34 = vmul.f32 %v4095_v29, %v6888_v59 }
 0xa28   : > { %v4097_v53 = vadd.f32 1e-05, %v4096_v34 }
 0xa2a   : > { %6303 = vrsqrt.f32 %v4097_v53  ;;  %vm4104_vm13 = vweird.f32 %v4097_v53 }
 0xa30   : > { %v6304_v60 = vpop.eup %6303 }
 0xa31   : > { %v4099_v36 = vmul.f32 %v6304_v60, %v4097_v53  ;;  %vm4105_vm6 = vweird.f32 %v6304_v60 }
 0xa32   : > { %vm4106_vm14 = vmor %vm4104_vm13, %vm4105_vm6 }
 0xa33   : > { %v4100_v50 = vmul.f32 %v6304_v60, %v4099_v36 }
 0xa35   : > { %v4101_v45 = vmul.f32 0.5, %v4100_v50 }
 0xa37   : > { %v4102_v18 = vsub.f32 1.5, %v4101_v45 }
 0xa39   : > { %v4103_v63 = vmul.f32 %v6304_v60, %v4102_v18 }
 0xa3b   : > { %v8802_v39 = vsel %vm4106_vm14, %v6304_v60, %v4103_v63 }
 0xa3c   : > { %v4123_v9 = vmul.f32 %v8802_v39, %v4042_v42  ;;  %v4110_v38 = vmul.f32 %v8802_v39, %v8712_v10  ;;  %v4109_v43 = vmul.f32 %v8802_v39, %v8709_v25  ;;  %v4108_v35 = vmul.f32 %v8802_v39, %v8706_v31  ;;  %v8827_v25 = vld [vmem:[%s10048_s11 + $0x3] ss:$0 sm:$0xff] }
 0xa3d   : > { %v4113_v8 = vmul.f32 %v8802_v39, %v8727_v51  ;;  %v4112_v7 = vmul.f32 %v8802_v39, %v8722_v13  ;;  %v4111_v10 = vmul.f32 %v8802_v39, %v8715_v41  ;;  %v4114_v16 = vmul.f32 %v8802_v39, %v8734_v58 }
 0xa3e   : > { %v4141_v54 = vmul.f32 %v8800_v20, %v4123_v9  ;;  %v4128_v40 = vmul.f32 %v8800_v20, %v4110_v38  ;;  %v4127_v31 = vmul.f32 %v8800_v20, %v4109_v43  ;;  %v4126_v30 = vmul.f32 %v8800_v20, %v4108_v35 }
 0xa3f   : > { %v4131_v51 = vmul.f32 %v8800_v20, %v4113_v8  ;;  %v4130_v6 = vmul.f32 %v8800_v20, %v4112_v7  ;;  %v4129_v49 = vmul.f32 %v8800_v20, %v4111_v10  ;;  %v4115_v46 = vmul.f32 %v8802_v39, %v8740_v17 }
 0xa40   : > { %v4146_v13 = vadd.f32 %v8810_v15, %v4128_v40  ;;  %v4145_v33 = vadd.f32 %v8810_v15, %v4127_v31  ;;  %v4144_v41 = vadd.f32 %v8810_v15, %v4126_v30  ;;  %v4132_v22 = vmul.f32 %v8800_v20, %v4114_v16 }
 0xa41   : > { %v4149_v52 = vadd.f32 %v8810_v15, %v4131_v51  ;;  %v4148_v2 = vadd.f32 %v8810_v15, %v4130_v6  ;;  %v4147_v55 = vadd.f32 %v8810_v15, %v4129_v49  ;;  %v4117_v57 = vmul.f32 %v8802_v39, %v8752_v32 }
 0xa42   : > { %vm4162_vm15 = vcmp.gt.f32.partialorder %v4146_v13, 0.0  ;;  %v4180_v37 = vmul.f32 %v8827_v25, %v4146_v13  ;;  %vm4161_vm0 = vcmp.gt.f32.partialorder %v4145_v33, 0.0  ;;  %v4179_v3 = vmul.f32 %v8827_v25, %v4145_v33 }
 0xa43   : > { %vm4160_vm7 = vcmp.gt.f32.partialorder %v4144_v41, 0.0  ;;  %v4178_v27 = vmul.f32 %v8827_v25, %v4144_v41  ;;  %v4183_v23 = vmul.f32 %v8827_v25, %v4149_v52  ;;  %vm4165_vm1 = vcmp.gt.f32.partialorder %v4149_v52, 0.0 }
 0xa44   : > { %v4196_v42 = vsel %vm4162_vm15, %v4146_v13, %v4180_v37  ;;  %v4195_v19 = vsel %vm4161_vm0, %v4145_v33, %v4179_v3  ;;  %v4182_v4 = vmul.f32 %v8827_v25, %v4148_v2  ;;  %v4133_v17 = vmul.f32 %v8800_v20, %v4115_v46 }
 0xa45   : > { %4230 = vrot.lane.b32.xlu2 %v4196_v42, %s6319_s30  ;;  %4228 = vrot.lane.b32.xlu1 %v4195_v19, %s6319_s30  ;;  %v4194_v58 = vsel %vm4160_vm7, %v4144_v41, %v4178_v27  ;;  %vm4164_vm3 = vcmp.gt.f32.partialorder %v4148_v2, 0.0  ;;  %v4181_v48 = vmul.f32 %v8827_v25, %v4147_v55  ;;  %v4135_v56 = vmul.f32 %v8800_v20, %v4117_v57 }
 0xa46   : > { %4226 = vrot.lane.b32.xlu0 %v4194_v58, %s6319_s30  ;;  %vm4163_vm8 = vcmp.gt.f32.partialorder %v4147_v55, 0.0  ;;  %v4150_v44 = vadd.f32 %v8810_v15, %v4132_v22  ;;  %v4199_v12 = vsel %vm4165_vm1, %v4149_v52, %v4183_v23  ;;  %v4119_v1 = vmul.f32 %v8802_v39, %v8764_v0 }
 0xa47   : > { %v4198_v11 = vsel %vm4164_vm3, %v4148_v2, %v4182_v4  ;;  %v4151_v32 = vadd.f32 %v8810_v15, %v4133_v17  ;;  %v4116_v14 = vmul.f32 %v8802_v39, %v8746_v21  ;;  %v4122_v62 = vmul.f32 %v8802_v39, %v8782_v26 }
 0xa48   : > { %v4197_v28 = vsel %vm4163_vm8, %v4147_v55, %v4181_v48  ;;  %v4153_v5 = vadd.f32 %v8810_v15, %v4135_v56  ;;  %v4118_v29 = vmul.f32 %v8802_v39, %v8758_v61  ;;  %v4184_v0 = vmul.f32 %v8827_v25, %v4150_v44 }
 0xa49   : > { %vm4166_vm9 = vcmp.gt.f32.partialorder %v4150_v44, 0.0  ;;  %v4137_v21 = vmul.f32 %v8800_v20, %v4119_v1  ;;  %v4185_v34 = vmul.f32 %v8827_v25, %v4151_v32  ;;  %v4134_v26 = vmul.f32 %v8800_v20, %v4116_v14 }
 0xa4a   : > { %v4140_v53 = vmul.f32 %v8800_v20, %v4122_v62  ;;  %vm4167_vm10 = vcmp.gt.f32.partialorder %v4151_v32, 0.0  ;;  %v4187_v60 = vmul.f32 %v8827_v25, %v4153_v5  ;;  %v4136_v36 = vmul.f32 %v8800_v20, %v4118_v29 }
 0xa4b   : > { %v4159_v61 = vadd.f32 %v8810_v15, %v4141_v54  ;;  %v4200_v50 = vsel %vm4166_vm9, %v4150_v44, %v4184_v0  ;;  %vm4169_vm11 = vcmp.gt.f32.partialorder %v4153_v5, 0.0  ;;  %v4120_v45 = vmul.f32 %v8802_v39, %v8770_v24 }
 0xa4c   : > { %v4158_v18 = vadd.f32 %v8810_v15, %v4140_v53  ;;  %v4155_v63 = vadd.f32 %v8810_v15, %v4137_v21  ;;  %v4121_v9 = vmul.f32 %v8802_v39, %v8776_v47  ;;  %v4201_v43 = vsel %vm4167_vm10, %v4151_v32, %v4185_v34  ;;  %v4568_v53 = vld [vmem:[%s10042_s5 + $0x28] sm:$0xff] }
 0xa4d   : > { %4236 = vrot.lane.b32.xlu2 %v4199_v12, %s6319_s30  ;;  %4234 = vrot.lane.b32.xlu1 %v4198_v11, %s6319_s30  ;;  %vm4175_vm12 = vcmp.gt.f32.partialorder %v4159_v61, 0.0  ;;  %v4193_v38 = vmul.f32 %v8827_v25, %v4159_v61  ;;  %v4152_v35 = vadd.f32 %v8810_v15, %v4134_v26  ;;  %v4203_v24 = vsel %vm4169_vm11, %v4153_v5, %v4187_v60  ;;  %v5801_v60 = vld [vmem:[%s10042_s5 + $0x58] sm:$0xff] }
 0xa4e   : > { %4232 = vrot.lane.b32.xlu0 %v4197_v28, %s6319_s30  ;;  %vm4174_vm6 = vcmp.gt.f32.partialorder %v4158_v18, 0.0  ;;  %v4192_v8 = vmul.f32 %v8827_v25, %v4158_v18  ;;  %v4154_v7 = vadd.f32 %v8810_v15, %v4136_v36  ;;  %v4189_v39 = vmul.f32 %v8827_v25, %v4155_v63  ;;  %4629 = vmatpush.msrb.mxu0 %v4568_v53 }
 0xa4f   : > { %v8892_v10 = vsel %vm4175_vm12, %v4159_v61, %v4193_v38  ;;  %v4186_v54 = vmul.f32 %v8827_v25, %v4152_v35  ;;  %v4138_v40 = vmul.f32 %v8800_v20, %v4120_v45  ;;  %v4139_v31 = vmul.f32 %v8800_v20, %v4121_v9  ;;  %4703 = vmatpush.msrb.mxu1 %v5801_v60 }
 0xa50   : > { %v8895_v47 = vsel %vm4174_vm6, %v4158_v18, %v4192_v8  ;;  %vm4171_vm13 = vcmp.gt.f32.partialorder %v4155_v63, 0.0  ;;  %vm4168_vm14 = vcmp.gt.f32.partialorder %v4152_v35, 0.0  ;;  %v4188_v30 = vmul.f32 %v8827_v25, %v4154_v7 }
 0xa51   : > { %vm4170_vm15 = vcmp.gt.f32.partialorder %v4154_v7, 0.0  ;;  %v4205_v51 = vsel %vm4171_vm13, %v4155_v63, %v4189_v39  ;;  %v4202_v13 = vsel %vm4168_vm14, %v4152_v35, %v4186_v54  ;;  %v4156_v33 = vadd.f32 %v8810_v15, %v4138_v40  ;;  %v5800_v35 = vld [vmem:[%s10042_s5 + $0x50] sm:$0xff]  ;;  %v4566_v54 = vld [vmem:[%s10042_s5 + $0x18] sm:$0xff]  ;;  %v5799_v40 = vld [vmem:[%s10042_s5 + $0x48] sm:$0xff] }
 0xa52   : > { %v4157_v41 = vadd.f32 %v8810_v15, %v4139_v31  ;;  %v4204_v6 = vsel %vm4170_vm15, %v4154_v7, %v4188_v30  ;;  %vm4274_vm1 = vcmask 654848   ;;  %4704 = vmatpush.msrb.mxu1 %v5800_v35  ;;  %v4565_v31 = vld [vmem:[%s10042_s5 + $0x10] sm:$0xff]  ;;  %v5798_v30 = vld [vmem:[%s10042_s5 + $0x40] sm:$0xff]  ;;  %vm5203_vm9 = vcmask 1046528  }
 0xa53   : > { %v4190_v20 = vmul.f32 %v8827_v25, %v4156_v33  ;;  %vm4172_vm0 = vcmp.gt.f32.partialorder %v4156_v33, 0.0 }
 0xa54   : > { %v4191_v49 = vmul.f32 %v8827_v25, %v4157_v41  ;;  %vm4173_vm7 = vcmp.gt.f32.partialorder %v4157_v41, 0.0  ;;  %4705 = vmatpush.msrb.mxu1 %v5799_v40 }
 0xa55   : > { %4238 = vrot.lane.b32.xlu2 %v4200_v50, %s6319_s30  ;;  %4240 = vrot.lane.b32.xlu1 %v4201_v43, %s6319_s30  ;;  %v4206_v16 = vsel %vm4172_vm0, %v4156_v33, %v4190_v20  ;;  %v4567_v43 = vld [vmem:[%s10042_s5 + $0x20] sm:$0xff]  ;;  %v4564_v33 = vld [vmem:[%s10042_s5 + $0x8] sm:$0xff] }
 0xa56   : > { %4244 = vrot.lane.b32.xlu0 %v4203_v24, %s6319_s30  ;;  %v4207_v37 = vsel %vm4173_vm7, %v4157_v41, %v4191_v49  ;;  %4630 = vmatpush.msrb.mxu0 %v4567_v43  ;;  %v5797_v41 = vld [vmem:[%s10042_s5 + $0x38] sm:$0xff]  ;;  %v5796_v20 = vld [vmem:[%s10042_s5 + $0x30] sm:$0xff] }
 0xa57   : > { %4706 = vmatpush.msrb.mxu1 %v5798_v30 }
 0xa58   : > { %4631 = vmatpush.msrb.mxu0 %v4566_v54 }
 0xa59   : > { %4707 = vmatpush.msrb.mxu1 %v5797_v41 }
 0xa5a   : > { %4632 = vmatpush.msrb.mxu0 %v4565_v31 }
 0xa5b   : > { %4708 = vmatpush.msrb.mxu1 %v5796_v20 }
 0xa5c   : > { %4633 = vmatpush.msrb.mxu0 %v4564_v33 }
 0xa5d   : > { %4248 = vrot.lane.b32.xlu2 %v4205_v51, %s6319_s30  ;;  %4242 = vrot.lane.b32.xlu1 %v4202_v13, %s6319_s30 }
 0xa5e   : > { %4246 = vrot.lane.b32.xlu0 %v4204_v6, %s6319_s30  ;;  %v4563_v6 = vld [vmem:[%s10042_s5] sm:$0xff] }
 0xa5f   : > { %4634 = vmatpush.msrb.mxu0 %v4563_v6 }
 0xa65   : > { %4250 = vrot.lane.b32.xlu2 %v4206_v16, %s6319_s30  ;;  %4252 = vrot.lane.b32.xlu1 %v4207_v37, %s6319_s30 }
 0xa9f   : > { %v4231_v15 = vpop.permute.xlu2 %4230 }
 0xaa0   : > { %4277 = vst.msk [vmem:[#allocation2 + $0xd9] sm:$0xff] %vm4274_vm1, %v4231_v15 }
 0xaa7   : > { %v4237_v3 = vpop.permute.xlu2 %4236  ;;  %v4293_v17 = vld [vmem:[#allocation2 + $0xd8] sm:$0xff] }
 0xaa8   : > { %4280 = vst.msk [vmem:[#allocation2 + $0xf9] sm:$0xff] %vm4274_vm1, %v4237_v3  ;;  %v4309_v28 = vld [vmem:[#allocation2 + $0xd9] sm:$0xff] }
 0xaaf   : > { %v4239_v27 = vpop.permute.xlu2 %4238  ;;  %v4328_v21 = vld [vmem:[#allocation2 + $0xfa] sm:$0xff] }
 0xab0   : > { %4281 = vst.msk [vmem:[#allocation2 + $0x109] sm:$0xff] %vm4274_vm1, %v4239_v27  ;;  %v4312_v34 = vld [vmem:[#allocation2 + $0xf9] sm:$0xff] }
 0xab7   : > { %v4249_v52 = vpop.permute.xlu2 %4248  ;;  %v4229_v25 = vpop.permute.xlu1 %4228  ;;  %v4313_v61 = vld [vmem:[#allocation2 + $0x109] sm:$0xff] }
 0xab8   : > { %v4227_v42 = vpop.permute.xlu0 %4226  ;;  %4276 = vst.msk [vmem:[#allocation2 + $0xc9] sm:$0xff] %vm4274_vm1, %v4229_v25  ;;  %v4297_v50 = vld [vmem:[#allocation2 + $0x108] sm:$0xff] }
 0xab9   : > { %4275 = vst.msk [vmem:[#allocation2 + $0xc1] sm:$0xff] %vm4274_vm1, %v4227_v42 }
 0xaba   : > { %4286 = vst.msk [vmem:[#allocation2 + $0x141] sm:$0xff] %vm4274_vm1, %v4249_v52 }
 0xabf   : > { %v4251_v19 = vpop.permute.xlu2 %4250  ;;  %v4235_v2 = vpop.permute.xlu1 %4234  ;;  %v4324_v4 = vld [vmem:[#allocation2 + $0xca] sm:$0xff] }
 0xac0   : > { %v4233_v46 = vpop.permute.xlu0 %4232  ;;  %v4307_v58 = vld [vmem:[#allocation2 + $0xc1] sm:$0xff]  ;;  %4279 = vst.msk [vmem:[#allocation2 + $0xf1] sm:$0xff] %vm4274_vm1, %v4235_v2  ;;  %v4308_v11 = vld [vmem:[#allocation2 + $0xc9] sm:$0xff] }
 0xac1   : > { %v4292_v55 = vld [vmem:[#allocation2 + $0xc8] sm:$0xff]  ;;  %v4291_v22 = vld [vmem:[#allocation2 + $0xc0] sm:$0xff]  ;;  %4419 = vrot.lane.b32.xlu1 %v4307_v58, %s6320_s13  ;;  %4278 = vst.msk [vmem:[#allocation2 + $0xe1] sm:$0xff] %vm4274_vm1, %v4233_v46 }
 0xac2   : > { %4357 = vrot.lane.b32.xlu2 %v4292_v55, %s6319_s30  ;;  %4287 = vst.msk [vmem:[#allocation2 + $0x151] sm:$0xff] %vm4274_vm1, %v4251_v19  ;;  %4355 = vrot.lane.b32.xlu0 %v4291_v22, %s6319_s30  ;;  %v4323_v48 = vld [vmem:[#allocation2 + $0xc2] sm:$0xff] }
 0xac3   : > { %v4318_v51 = vld [vmem:[#allocation2 + $0x141] sm:$0xff] }
 0xac4   : > { %v4334_v52 = vld [vmem:[#allocation2 + $0x142] sm:$0xff] }
 0xac7   : > { %v4241_v23 = vpop.permute.xlu1 %4240  ;;  %v4295_v62 = vld [vmem:[#allocation2 + $0xf0] sm:$0xff]  ;;  %v4296_v26 = vld [vmem:[#allocation2 + $0xf8] sm:$0xff] }
 0xac8   : > { %4282 = vst.msk [vmem:[#allocation2 + $0x111] sm:$0xff] %vm4274_vm1, %v4241_v23  ;;  %v4245_v57 = vpop.permute.xlu0 %4244  ;;  %v4325_v12 = vld [vmem:[#allocation2 + $0xda] sm:$0xff]  ;;  %v4311_v5 = vld [vmem:[#allocation2 + $0xf1] sm:$0xff]  ;;  %v4326_v0 = vld [vmem:[#allocation2 + $0xe2] sm:$0xff] }
 0xac9   : > { %4284 = vst.msk [vmem:[#allocation2 + $0x129] sm:$0xff] %vm4274_vm1, %v4245_v57  ;;  %4485 = vrot.lane.b32.xlu1 %v4324_v4, %s6322_s16  ;;  %v4294_v1 = vld [vmem:[#allocation2 + $0xe0] sm:$0xff]  ;;  %v4327_v29 = vld [vmem:[#allocation2 + $0xf2] sm:$0xff] }
 0xaca   : > { %4359 = vrot.lane.b32.xlu2 %v4293_v17, %s6319_s30  ;;  %4483 = vrot.lane.b32.xlu0 %v4323_v48, %s6322_s16  ;;  %v4310_v14 = vld [vmem:[#allocation2 + $0xe1] sm:$0xff]  ;;  %v4319_v49 = vld [vmem:[#allocation2 + $0x151] sm:$0xff] }
 0xacb   : > { %v4303_v16 = vld [vmem:[#allocation2 + $0x150] sm:$0xff] }
 0xacf   : > { %v4243_v56 = vpop.permute.xlu1 %4242  ;;  %v4298_v36 = vld [vmem:[#allocation2 + $0x110] sm:$0xff] }
 0xad0   : > { %4283 = vst.msk [vmem:[#allocation2 + $0x121] sm:$0xff] %vm4274_vm1, %v4243_v56  ;;  %v4247_v44 = vpop.permute.xlu0 %4246  ;;  %v4330_v18 = vld [vmem:[#allocation2 + $0x112] sm:$0xff]  ;;  %v4329_v63 = vld [vmem:[#allocation2 + $0x10a] sm:$0xff] }
 0xad1   : > { %4285 = vst.msk [vmem:[#allocation2 + $0x139] sm:$0xff] %vm4274_vm1, %v4247_v44  ;;  %4361 = vrot.lane.b32.xlu1 %v4294_v1, %s6319_s30  ;;  %v4314_v38 = vld [vmem:[#allocation2 + $0x111] sm:$0xff]  ;;  %v4316_v8 = vld [vmem:[#allocation2 + $0x129] sm:$0xff] }
 0xad2   : > { %4487 = vrot.lane.b32.xlu2 %v4325_v12, %s6322_s16  ;;  %4421 = vrot.lane.b32.xlu0 %v4308_v11, %s6320_s13  ;;  %v4332_v13 = vld [vmem:[#allocation2 + $0x12a] sm:$0xff] }
 0xad7   : > { %v4253_v32 = vpop.permute.xlu1 %4252  ;;  %v4299_v45 = vld [vmem:[#allocation2 + $0x120] sm:$0xff]  ;;  %v4300_v24 = vld [vmem:[#allocation2 + $0x128] sm:$0xff] }
 0xad8   : > { %4288 = vst.msk [vmem:[#allocation2 + $0x159] sm:$0xff] %vm4274_vm1, %v4253_v32  ;;  %v4331_v9 = vld [vmem:[#allocation2 + $0x122] sm:$0xff]  ;;  %v4301_v39 = vld [vmem:[#allocation2 + $0x138] sm:$0xff] }
 0xad9   : > { %4363 = vrot.lane.b32.xlu1 %v4295_v62, %s6319_s30  ;;  %v4315_v7 = vld [vmem:[#allocation2 + $0x121] sm:$0xff] }
 0xada   : > { %4425 = vrot.lane.b32.xlu2 %v4310_v14, %s6320_s13  ;;  %4423 = vrot.lane.b32.xlu0 %v4309_v28, %s6320_s13  ;;  %v4333_v37 = vld [vmem:[#allocation2 + $0x13a] sm:$0xff] }
 0xadf   : > { %v4320_v15 = vld [vmem:[#allocation2 + $0x159] sm:$0xff] }
 0xae0   : > { %v4304_v3 = vld [vmem:[#allocation2 + $0x158] sm:$0xff] }
 0xae1   : > { %4491 = vrot.lane.b32.xlu1 %v4327_v29, %s6322_s16  ;;  %v4335_v25 = vld [vmem:[#allocation2 + $0x152] sm:$0xff]  ;;  %v4336_v46 = vld [vmem:[#allocation2 + $0x15a] sm:$0xff] }
 0xae2   : > { %4427 = vrot.lane.b32.xlu2 %v4311_v5, %s6320_s13  ;;  %4489 = vrot.lane.b32.xlu0 %v4326_v0, %s6322_s16 }
 0xae9   : > { %4429 = vrot.lane.b32.xlu1 %v4312_v34, %s6320_s13 }
 0xaea   : > { %4493 = vrot.lane.b32.xlu2 %v4328_v21, %s6322_s16  ;;  %4365 = vrot.lane.b32.xlu0 %v4296_v26, %s6319_s30 }
 0xaf1   : > { %4431 = vrot.lane.b32.xlu1 %v4313_v61, %s6320_s13 }
 0xaf2   : > { %4369 = vrot.lane.b32.xlu2 %v4298_v36, %s6319_s30  ;;  %4367 = vrot.lane.b32.xlu0 %v4297_v50, %s6319_s30 }
 0xaf9   : > { %4497 = vrot.lane.b32.xlu1 %v4330_v18, %s6322_s16 }
 0xafa   : > { %4371 = vrot.lane.b32.xlu2 %v4299_v45, %s6319_s30  ;;  %4495 = vrot.lane.b32.xlu0 %v4329_v63, %s6322_s16 }
 0xb01   : > { %4254 = vrot.lane.b32.xlu1 %v8895_v47, %s6319_s30  ;;  %v4317_v47 = vld [vmem:[#allocation2 + $0x139] sm:$0xff] }
 0xb02   : > { %4499 = vrot.lane.b32.xlu2 %v4331_v9, %s6322_s16  ;;  %4433 = vrot.lane.b32.xlu0 %v4314_v38, %s6320_s13 }
 0xb09   : > { %4373 = vrot.lane.b32.xlu1 %v4300_v24, %s6319_s30 }
 0xb0a   : > { %4437 = vrot.lane.b32.xlu2 %v4316_v8, %s6320_s13  ;;  %4435 = vrot.lane.b32.xlu0 %v4315_v7, %s6320_s13 }
 0xb11   : > { %4375 = vrot.lane.b32.xlu1 %v4301_v39, %s6319_s30 }
 0xb12   : > { %4439 = vrot.lane.b32.xlu2 %v4317_v47, %s6320_s13  ;;  %4256 = vrot.lane.b32.xlu0 %v8892_v10, %s6319_s30  ;;  %v4302_v10 = vld [vmem:[#allocation2 + $0x140] sm:$0xff] }
 0xb19   : > { %4377 = vrot.lane.b32.xlu1 %v4302_v10, %s6319_s30 }
 0xb1a   : > { %4441 = vrot.lane.b32.xlu2 %v4318_v51, %s6320_s13  ;;  %4501 = vrot.lane.b32.xlu0 %v4332_v13, %s6322_s16 }
 0xb1c   : > { %v4358_v27 = vpop.permute.xlu2 %4357 }
 0xb21   : > { %4379 = vrot.lane.b32.xlu1 %v4303_v16, %s6319_s30 }
 0xb22   : > { %4443 = vrot.lane.b32.xlu2 %v4319_v49, %s6320_s13  ;;  %4503 = vrot.lane.b32.xlu0 %v4333_v37, %s6322_s16 }
 0xb24   : > { %v4360_v42 = vpop.permute.xlu2 %4359 }
 0xb29   : > { %4381 = vrot.lane.b32.xlu1 %v4304_v3, %s6319_s30 }
 0xb2a   : > { %4445 = vrot.lane.b32.xlu2 %v4320_v15, %s6320_s13  ;;  %4505 = vrot.lane.b32.xlu0 %v4334_v52, %s6322_s16 }
 0xb2c   : > { %v4488_v23 = vpop.permute.xlu2 %4487 }
 0xb32   : > { %4507 = vrot.lane.b32.xlu0 %v4335_v25, %s6322_s16 }
 0xb33   : > { %v4420_v19 = vpop.permute.xlu1 %4419 }
 0xb34   : > { %v4356_v2 = vpop.permute.xlu0 %4355  ;;  %v4426_v44 = vpop.permute.xlu2 %4425 }
 0xb35   : > { %v4531_v55 = vsel %vm474_vm2, %v4356_v2, %v4420_v19 }
 0xb3a   : > { %4509 = vrot.lane.b32.xlu0 %v4336_v46, %s6322_s16 }
 0xb3b   : > { %v4486_v58 = vpop.permute.xlu1 %4485 }
 0xb3c   : > { %v4484_v22 = vpop.permute.xlu0 %4483  ;;  %v4428_v14 = vpop.permute.xlu2 %4427 }
 0xb3d   : > { %v4547_v57 = vsel %vm924_vm4, %v4531_v55, %v4484_v22 }
 0xb3e   : > { %5780 = vmatmul.msk.f32.vlgmr.msrb.gmra.mxu0 %vm941_vm5, %v4547_v57  ;;  %5802 = vmatmul.msk.f32.vlgmr.msrb.gmra.mxu1 %vm941_vm5, %v4547_v57 }
 0xb43   : > { %v4362_v4 = vpop.permute.xlu1 %4361 }
 0xb44   : > { %v4422_v17 = vpop.permute.xlu0 %4421  ;;  %v4534_v28 = vsel %vm474_vm2, %v4362_v4, %v4426_v44  ;;  %v4494_v0 = vpop.permute.xlu2 %4493 }
 0xb45   : > { %v4532_v48 = vsel %vm474_vm2, %v4358_v27, %v4422_v17 }
 0xb46   : > { %v4548_v56 = vsel %vm924_vm4, %v4532_v48, %v4486_v58 }
 0xb47   : > { %5781 = vmatmul.msk.f32.gmra.mxu0 %vm941_vm5, %v4548_v56  ;;  %5803 = vmatmul.msk.f32.gmra.mxu1 %vm941_vm5, %v4548_v56 }
 0xb4b   : > { %v4364_v12 = vpop.permute.xlu1 %4363 }
 0xb4c   : > { %v4424_v1 = vpop.permute.xlu0 %4423  ;;  %v4535_v26 = vsel %vm474_vm2, %v4364_v12, %v4428_v14  ;;  %v4370_v50 = vpop.permute.xlu2 %4369  ;;  %v9079_v14 = vld [vmem:[%s10043_s6 + $0x1] ss:$0 sm:$0xff] }
 0xb4d   : > { %v4533_v11 = vsel %vm474_vm2, %v4360_v42, %v4424_v1 }
 0xb4e   : > { %v4549_v32 = vsel %vm924_vm4, %v4533_v11, %v4488_v23 }
 0xb4f   : > { %5782 = vmatmul.msk.f32.gmra.mxu0 %vm941_vm5, %v4549_v32  ;;  %5804 = vmatmul.msk.f32.gmra.mxu1 %vm941_vm5, %v4549_v32  ;;  %v9074_v32 = vld [vmem:[%s10043_s6] ss:$0 sm:$0xff] }
 0xb53   : > { %v4492_v62 = vpop.permute.xlu1 %4491 }
 0xb54   : > { %v4490_v5 = vpop.permute.xlu0 %4489  ;;  %v4551_v53 = vsel %vm924_vm4, %v4535_v26, %v4492_v62  ;;  %v4372_v43 = vpop.permute.xlu2 %4371 }
 0xb55   : > { %v4550_v29 = vsel %vm924_vm4, %v4534_v28, %v4490_v5 }
 0xb57   : > { %5783 = vmatmul.msk.f32.gmra.mxu0 %vm941_vm5, %v4550_v29  ;;  %5805 = vmatmul.msk.f32.gmra.mxu1 %vm941_vm5, %v4550_v29 }
 0xb5b   : > { %v4430_v21 = vpop.permute.xlu1 %4429 }
 0xb5c   : > { %v4366_v34 = vpop.permute.xlu0 %4365  ;;  %v4500_v47 = vpop.permute.xlu2 %4499 }
 0xb5d   : > { %v4536_v60 = vsel %vm474_vm2, %v4366_v34, %v4430_v21 }
 0xb5e   : > { %v4552_v45 = vsel %vm924_vm4, %v4536_v60, %v4494_v0 }
 0xb5f   : > { %5784 = vmatmul.msk.f32.gmra.mxu0 %vm941_vm5, %v4551_v53  ;;  %5806 = vmatmul.msk.f32.gmra.mxu1 %vm941_vm5, %v4551_v53 }
 0xb63   : > { %v4432_v36 = vpop.permute.xlu1 %4431 }
 0xb64   : > { %v4368_v61 = vpop.permute.xlu0 %4367  ;;  %v4438_v10 = vpop.permute.xlu2 %4437 }
 0xb65   : > { %v4537_v63 = vsel %vm474_vm2, %v4368_v61, %v4432_v36 }
 0xb67   : > { %5785 = vmatmul.msk.f32.gmra.mxu0 %vm941_vm5, %v4552_v45  ;;  %5807 = vmatmul.msk.f32.gmra.mxu1 %vm941_vm5, %v4552_v45 }
 0xb6b   : > { %v4498_v18 = vpop.permute.xlu1 %4497 }
 0xb6c   : > { %v4496_v9 = vpop.permute.xlu0 %4495  ;;  %v4440_v37 = vpop.permute.xlu2 %4439 }
 0xb6d   : > { %v4553_v38 = vsel %vm924_vm4, %v4537_v63, %v4496_v9 }
 0xb6f   : > { %5786 = vmatmul.msk.f32.gmra.mxu0 %vm941_vm5, %v4553_v38  ;;  %5808 = vmatmul.msk.f32.gmra.mxu1 %vm941_vm5, %v4553_v38 }
 0xb73   : > { %v4255_v35 = vpop.permute.xlu1 %4254 }
 0xb74   : > { %4289 = vst.msk [vmem:[#allocation2 + $0x169] sm:$0xff] %vm4274_vm1, %v4255_v35  ;;  %v4434_v8 = vpop.permute.xlu0 %4433  ;;  %v4442_v19 = vpop.permute.xlu2 %4441 }
 0xb75   : > { %v4538_v24 = vsel %vm474_vm2, %v4370_v50, %v4434_v8 }
 0xb76   : > { %v4554_v7 = vsel %vm924_vm4, %v4538_v24, %v4498_v18 }
 0xb77   : > { %5787 = vmatmul.msk.f32.gmra.mxu0 %vm941_vm5, %v4554_v7  ;;  %5809 = vmatmul.msk.f32.gmra.mxu1 %vm941_vm5, %v4554_v7 }
 0xb7b   : > { %v4321_v39 = vld [vmem:[#allocation2 + $0x169] sm:$0xff]  ;;  %v4374_v51 = vpop.permute.xlu1 %4373 }
 0xb7c   : > { %v4305_v54 = vld [vmem:[#allocation2 + $0x168] sm:$0xff]  ;;  %v4436_v40 = vpop.permute.xlu0 %4435  ;;  %4447 = vrot.lane.b32.xlu2 %v4321_v39, %s6320_s13  ;;  %v4540_v41 = vsel %vm474_vm2, %v4374_v51, %v4438_v10  ;;  %v4444_v22 = vpop.permute.xlu2 %4443 }
 0xb7d   : > { %4383 = vrot.lane.b32.xlu1 %v4305_v54, %s6319_s30  ;;  %v4539_v31 = vsel %vm474_vm2, %v4372_v43, %v4436_v40 }
 0xb7e   : > { %v4555_v30 = vsel %vm924_vm4, %v4539_v31, %v4500_v47 }
 0xb7f   : > { %5788 = vmatmul.msk.f32.gmra.mxu0 %vm941_vm5, %v4555_v30  ;;  %5810 = vmatmul.msk.f32.gmra.mxu1 %vm941_vm5, %v4555_v30 }
 0xb83   : > { %v4376_v33 = vpop.permute.xlu1 %4375 }
 0xb84   : > { %v4257_v13 = vpop.permute.xlu0 %4256  ;;  %v4541_v3 = vsel %vm474_vm2, %v4376_v33, %v4440_v37  ;;  %v4446_v48 = vpop.permute.xlu2 %4445 }
 0xb85   : > { %4290 = vst.msk [vmem:[#allocation2 + $0x171] sm:$0xff] %vm4274_vm1, %v4257_v13 }
 0xb8b   : > { %v4378_v25 = vpop.permute.xlu1 %4377 }
 0xb8c   : > { %v4502_v6 = vpop.permute.xlu0 %4501  ;;  %v4337_v20 = vld [vmem:[#allocation2 + $0x16a] sm:$0xff]  ;;  %v4338_v52 = vld [vmem:[#allocation2 + $0x172] sm:$0xff]  ;;  %v4542_v2 = vsel %vm474_vm2, %v4378_v25, %v4442_v19 }
 0xb8d   : > { %v4322_v49 = vld [vmem:[#allocation2 + $0x171] sm:$0xff]  ;;  %v4556_v15 = vsel %vm924_vm4, %v4540_v41, %v4502_v6  ;;  %4511 = vrot.lane.b32.xlu0 %v4337_v20, %s6322_s16 }
 0xb8e   : > { %v4306_v16 = vld [vmem:[#allocation2 + $0x170] sm:$0xff]  ;;  %4449 = vrot.lane.b32.xlu2 %v4322_v49, %s6320_s13  ;;  %5789 = vmatmul.msk.f32.gmra.mxu0 %vm941_vm5, %v4556_v15 }
 0xb8f   : > { %4385 = vrot.lane.b32.xlu1 %v4306_v16, %s6319_s30  ;;  %5811 = vmatmul.msk.f32.gmra.mxu1 %vm941_vm5, %v4556_v15  ;;  %s9984_s30 = scalar_lea.vmem %s10049_s12, %s10051_s26 }
 0xb93   : > { %v4380_v55 = vpop.permute.xlu1 %4379 }
 0xb94   : > { %v4504_v27 = vpop.permute.xlu0 %4503  ;;  %v4543_v23 = vsel %vm474_vm2, %v4380_v55, %v4444_v22 }
 0xb95   : > { %v4557_v42 = vsel %vm924_vm4, %v4541_v3, %v4504_v27  ;;  %4513 = vrot.lane.b32.xlu0 %v4338_v52, %s6322_s16 }
 0xb96   : > { %5790 = vmatmul.msk.f32.gmra.mxu0 %vm941_vm5, %v4557_v42 }
 0xb97   : > { %5812 = vmatmul.msk.f32.gmra.mxu1 %vm941_vm5, %v4557_v42 }
 0xb9b   : > { %v4382_v17 = vpop.permute.xlu1 %4381 }
 0xb9c   : > { %v4506_v46 = vpop.permute.xlu0 %4505  ;;  %v4544_v56 = vsel %vm474_vm2, %v4382_v17, %v4446_v48 }
 0xb9d   : > { %v4558_v58 = vsel %vm924_vm4, %v4542_v2, %v4506_v46 }
 0xb9e   : > { %5791 = vmatmul.msk.f32.gmra.mxu0 %vm941_vm5, %v4558_v58 }
 0xb9f   : > { %5813 = vmatmul.msk.f32.gmra.mxu1 %vm941_vm5, %v4558_v58 }
 0xba4   : > { %v4508_v57 = vpop.permute.xlu0 %4507 }
 0xba5   : > { %v4559_v4 = vsel %vm924_vm4, %v4543_v23, %v4508_v57 }
 0xba6   : > { %5792 = vmatmul.msk.f32.gmra.mxu0 %vm941_vm5, %v4559_v4 }
 0xba7   : > { %5814 = vmatmul.msk.f32.gmra.mxu1 %vm941_vm5, %v4559_v4 }
 0xbac   : > { %v4510_v44 = vpop.permute.xlu0 %4509 }
 0xbad   : > { %v4560_v12 = vsel %vm924_vm4, %v4544_v56, %v4510_v44 }
 0xbae   : > { %5793 = vmatmul.msk.f32.gmra.mxu0 %vm941_vm5, %v4560_v12 }
 0xbaf   : > { %5815 = vmatmul.msk.f32.gmra.mxu1 %vm941_vm5, %v4560_v12 }
 0xbbb   : > { %v4636_v1 = vpop.f32.mrf.mxu0  ;;  %v4710_v11 = vpop.f32.mrf.mxu1 }
 0xbbc   : > { %v9082_v62 = vadd.f32 %v9074_v32, %v4636_v1  ;;  %v9085_v28 = vadd.f32 %v9079_v14, %v4710_v11 }
 0xbbe   : > { %v4758_v34 = vsel %vm474_vm2, %v9082_v62, 0.0  ;;  %v4796_v26 = vsel %vm474_vm2, %v9085_v28, 0.0 }
 0xbc4   : > { %v4639_v5 = vpop.f32.mrf.mxu0  ;;  %v4713_v29 = vpop.f32.mrf.mxu1 }
 0xbc5   : > { %v9088_v0 = vadd.f32 %v9074_v32, %v4639_v5  ;;  %v9091_v21 = vadd.f32 %v9079_v14, %v4713_v29 }
 0xbc7   : > { %v4759_v53 = vsel %vm474_vm2, %v9088_v0, 0.0  ;;  %v4797_v60 = vsel %vm474_vm2, %v9091_v21, 0.0 }
 0xbc8   : > { %v4760_v36 = vadd.f32 %v4759_v53, %v4758_v34  ;;  %v4798_v61 = vadd.f32 %v4797_v60, %v4796_v26 }
 0xbcc   : > { %v4642_v50 = vpop.f32.mrf.mxu0  ;;  %v4716_v45 = vpop.f32.mrf.mxu1 }
 0xbcd   : > { %v9102_v18 = vadd.f32 %v9074_v32, %v4642_v50  ;;  %v9105_v63 = vadd.f32 %v9079_v14, %v4716_v45 }
 0xbcf   : > { %v4761_v9 = vsel %vm474_vm2, %v9102_v18, 0.0  ;;  %v4799_v38 = vsel %vm474_vm2, %v9105_v63, 0.0 }
 0xbd0   : > { %v4762_v43 = vadd.f32 %v4761_v9, %v4760_v36  ;;  %v4800_v35 = vadd.f32 %v4799_v38, %v4798_v61 }
 0xbd4   : > { %v4645_v8 = vpop.f32.mrf.mxu0  ;;  %v4719_v24 = vpop.f32.mrf.mxu1 }
 0xbd5   : > { %v9112_v7 = vadd.f32 %v9074_v32, %v4645_v8  ;;  %v9115_v47 = vadd.f32 %v9079_v14, %v4719_v24 }
 0xbd6   : > { %v4448_v16 = vpop.permute.xlu2 %4447 }
 0xbd7   : > { %v4763_v39 = vsel %vm474_vm2, %v9112_v7, 0.0  ;;  %v4801_v54 = vsel %vm474_vm2, %v9115_v47, 0.0 }
 0xbd8   : > { %v4764_v40 = vadd.f32 %v4763_v39, %v4762_v43  ;;  %v4802_v31 = vadd.f32 %v4801_v54, %v4800_v35 }
 0xbdc   : > { %v4648_v30 = vpop.f32.mrf.mxu0  ;;  %v4722_v51 = vpop.f32.mrf.mxu1 }
 0xbdd   : > { %v9122_v10 = vadd.f32 %v9074_v32, %v4648_v30  ;;  %v9125_v13 = vadd.f32 %v9079_v14, %v4722_v51 }
 0xbdf   : > { %v4765_v33 = vsel %vm474_vm2, %v9122_v10, 0.0  ;;  %v4803_v41 = vsel %vm474_vm2, %v9125_v13, 0.0 }
 0xbe0   : > { %v4766_v6 = vadd.f32 %v4765_v33, %v4764_v40  ;;  %v4804_v20 = vadd.f32 %v4803_v41, %v4802_v31 }
 0xbe4   : > { %v4651_v2 = vpop.f32.mrf.mxu0  ;;  %v4725_v46 = vpop.f32.mrf.mxu1 }
 0xbe5   : > { %v9140_v29 = vadd.f32 %v9074_v32, %v4651_v2  ;;  %v9143_v34 = vadd.f32 %v9079_v14, %v4725_v46 }
 0xbe7   : > { %v4767_v60 = vsel %vm474_vm2, %v9140_v29, 0.0  ;;  %v4805_v36 = vsel %vm474_vm2, %v9143_v34, 0.0 }
 0xbe8   : > { %v4450_v52 = vpop.permute.xlu2 %4449  ;;  %v4768_v35 = vadd.f32 %v4767_v60, %v4766_v6  ;;  %v4806_v8 = vadd.f32 %v4805_v36, %v4804_v20 }
 0xbec   : > { %v4654_v58 = vpop.f32.mrf.mxu0  ;;  %v4728_v55 = vpop.f32.mrf.mxu1 }
 0xbed   : > { %v9146_v26 = vadd.f32 %v9074_v32, %v4654_v58  ;;  %v9149_v53 = vadd.f32 %v9079_v14, %v4728_v55 }
 0xbef   : > { %v4384_v49 = vpop.permute.xlu1 %4383  ;;  %v4769_v45 = vsel %vm474_vm2, %v9146_v26, 0.0  ;;  %v4807_v9 = vsel %vm474_vm2, %v9149_v53, 0.0 }
 0xbf0   : > { %v4545_v37 = vsel %vm474_vm2, %v4384_v49, %v4448_v16  ;;  %v4770_v51 = vadd.f32 %v4769_v45, %v4768_v35  ;;  %v4808_v33 = vadd.f32 %v4807_v9, %v4806_v8 }
 0xbf4   : > { %v4657_v22 = vpop.f32.mrf.mxu0  ;;  %v4731_v23 = vpop.f32.mrf.mxu1 }
 0xbf5   : > { %v9156_v61 = vadd.f32 %v9074_v32, %v4657_v22  ;;  %v9159_v50 = vadd.f32 %v9079_v14, %v4731_v23 }
 0xbf7   : > { %v4771_v54 = vsel %vm474_vm2, %v9156_v61, 0.0  ;;  %v4809_v40 = vsel %vm474_vm2, %v9159_v50, 0.0 }
 0xbf8   : > { %v4772_v16 = vadd.f32 %v4771_v54, %v4770_v51 }
 0xbfc   : > { %v4660_v57 = vpop.f32.mrf.mxu0  ;;  %v4734_v4 = vpop.f32.mrf.mxu1 }
 0xbfd   : > { %v9166_v38 = vadd.f32 %v9074_v32, %v4660_v57  ;;  %v9169_v43 = vadd.f32 %v9079_v14, %v4734_v4 }
 0xbff   : > { %v4512_v15 = vpop.permute.xlu0 %4511  ;;  %v4773_v41 = vsel %vm474_vm2, %v9166_v38, 0.0  ;;  %v4811_v6 = vsel %vm474_vm2, %v9169_v43, 0.0 }
 0xc00   : > { %v4561_v3 = vsel %vm924_vm4, %v4545_v37, %v4512_v15  ;;  %v4810_v37 = vadd.f32 %v4809_v40, %v4808_v33 }
 0xc01   : > { %5794 = vmatmul.msk.f32.gmra.mxu0 %vm941_vm5, %v4561_v3  ;;  %5816 = vmatmul.msk.f32.gmra.mxu1 %vm941_vm5, %v4561_v3  ;;  %v4386_v27 = vpop.permute.xlu1 %4385 }
 0xc02   : > { %v4546_v25 = vsel %vm474_vm2, %v4386_v27, %v4450_v52 }
 0xc07   : > { %v4514_v42 = vpop.permute.xlu0 %4513 }
 0xc08   : > { %v4562_v19 = vsel %vm924_vm4, %v4546_v25, %v4514_v42  ;;  %v4774_v25 = vadd.f32 %v4773_v41, %v4772_v16  ;;  %v4812_v42 = vadd.f32 %v4811_v6, %v4810_v37 }
 0xc09   : > { %5795 = vmatmul.msk.f32.gmra.mxu0 %vm941_vm5, %v4562_v19  ;;  %5817 = vmatmul.msk.f32.gmra.mxu1 %vm941_vm5, %v4562_v19 }
 0xc0b   : > { %v4663_v17 = vpop.f32.mrf.mxu0 }
 0xc0c   : > { %v4737_v48 = vpop.f32.mrf.mxu1  ;;  %v9176_v31 = vadd.f32 %v9074_v32, %v4663_v17 }
 0xc0d   : > { %v9179_v30 = vadd.f32 %v9079_v14, %v4737_v48 }
 0xc0e   : > { %v4775_v15 = vsel %vm474_vm2, %v9176_v31, 0.0 }
 0xc0f   : > { %v4813_v3 = vsel %vm474_vm2, %v9179_v30, 0.0  ;;  %v4776_v55 = vadd.f32 %v4775_v15, %v4774_v25 }
 0xc10   : > { %v4814_v22 = vadd.f32 %v4813_v3, %v4812_v42 }
 0xc13   : > { %v4666_v56 = vpop.f32.mrf.mxu0 }
 0xc14   : > { %v4740_v44 = vpop.f32.mrf.mxu1  ;;  %v9186_v20 = vadd.f32 %v9074_v32, %v4666_v56 }
 0xc15   : > { %v9189_v49 = vadd.f32 %v9079_v14, %v4740_v44 }
 0xc16   : > { %v4777_v19 = vsel %vm474_vm2, %v9186_v20, 0.0 }
 0xc17   : > { %v4815_v2 = vsel %vm474_vm2, %v9189_v49, 0.0  ;;  %v4778_v44 = vadd.f32 %v4777_v19, %v4776_v55 }
 0xc1b   : > { %v4669_v12 = vpop.f32.mrf.mxu0 }
 0xc1c   : > { %v4743_v1 = vpop.f32.mrf.mxu1  ;;  %v9196_v27 = vadd.f32 %v9074_v32, %v4669_v12  ;;  %v4816_v12 = vadd.f32 %v4815_v2, %v4814_v22 }
 0xc1d   : > { %v9199_v52 = vadd.f32 %v9079_v14, %v4743_v1 }
 0xc1e   : > { %v4779_v4 = vsel %vm474_vm2, %v9196_v27, 0.0 }
 0xc1f   : > { %v4817_v17 = vsel %vm474_vm2, %v9199_v52, 0.0  ;;  %v4780_v36 = vadd.f32 %v4779_v4, %v4778_v44 }
 0xc20   : > { %v4818_v45 = vadd.f32 %v4817_v17, %v4816_v12 }
 0xc23   : > { %v4672_v11 = vpop.f32.mrf.mxu0 }
 0xc24   : > { %v4746_v5 = vpop.f32.mrf.mxu1  ;;  %v9206_v46 = vadd.f32 %v9074_v32, %v4672_v11 }
 0xc25   : > { %v9209_v58 = vadd.f32 %v9079_v14, %v4746_v5 }
 0xc26   : > { %v4781_v1 = vsel %vm474_vm2, %v9206_v46, 0.0 }
 0xc27   : > { %v4819_v11 = vsel %vm474_vm2, %v9209_v58, 0.0  ;;  %v4782_v8 = vadd.f32 %v4781_v1, %v4780_v36 }
 0xc2b   : > { %v4675_v24 = vpop.f32.mrf.mxu0 }
 0xc2c   : > { %v4749_v39 = vpop.f32.mrf.mxu1  ;;  %v9216_v48 = vadd.f32 %v9074_v32, %v4675_v24  ;;  %v4820_v24 = vadd.f32 %v4819_v11, %v4818_v45 }
 0xc2d   : > { %v9219_v56 = vadd.f32 %v9079_v14, %v4749_v39 }
 0xc2e   : > { %v4783_v9 = vsel %vm474_vm2, %v9216_v48, 0.0 }
 0xc2f   : > { %v4821_v35 = vsel %vm474_vm2, %v9219_v56, 0.0  ;;  %v4784_v40 = vadd.f32 %v4783_v9, %v4782_v8 }
 0xc30   : > { %v4822_v51 = vadd.f32 %v4821_v35, %v4820_v24 }
 0xc7e   : > { %v4678_v23 = vpop.f32.mrf.mxu0  ;;  %v4752_v57 = vpop.f32.mrf.mxu1 }
 0xc7f   : > { %v9226_v5 = vadd.f32 %v9074_v32, %v4678_v23  ;;  %v9229_v60 = vadd.f32 %v9079_v14, %v4752_v57 }
 0xc81   : > { %v4785_v39 = vsel %vm474_vm2, %v9226_v5, 0.0  ;;  %v4823_v54 = vsel %vm474_vm2, %v9229_v60, 0.0 }
 0xc82   : > { %v4786_v37 = vadd.f32 %v4785_v39, %v4784_v40  ;;  %v4824_v15 = vadd.f32 %v4823_v54, %v4822_v51 }
 0xc86   : > { %v4681_v33 = vpop.f32.mrf.mxu0  ;;  %v4755_v41 = vpop.f32.mrf.mxu1 }
 0xc87   : > { %v9240_v6 = vadd.f32 %v9074_v32, %v4681_v33  ;;  %v9243_v16 = vadd.f32 %v9079_v14, %v4755_v41 }
 0xc89   : > { %v4787_v3 = vsel %vm474_vm2, %v9240_v6, 0.0  ;;  %v4825_v25 = vsel %vm474_vm2, %v9243_v16, 0.0 }
 0xc8a   : > { %v4788_v42 = vadd.f32 %v4787_v3, %v4786_v37  ;;  %v4826_v19 = vadd.f32 %v4825_v25, %v4824_v15 }
 0xc8c   : > { %v4789_v2 = vrot.slane %v4788_v42, 4  ;;  %v4827_v55 = vrot.slane %v4826_v19, 4 }
 0xc8e   : > { %v4790_v22 = vadd.f32 %v4789_v2, %v4788_v42  ;;  %v4828_v23 = vadd.f32 %v4827_v55, %v4826_v19 }
 0xc90   : > { %v4791_v57 = vrot.slane %v4790_v22, 2  ;;  %v4829_v32 = vrot.slane %v4828_v23, 2 }
 0xc92   : > { %v4792_v4 = vadd.f32 %v4791_v57, %v4790_v22  ;;  %v4830_v17 = vadd.f32 %v4829_v32, %v4828_v23 }
 0xc94   : > { %v4793_v14 = vrot.slane %v4792_v4, 1  ;;  %v4831_v44 = vrot.slane %v4830_v17, 1 }
 0xc96   : > { %v4794_v12 = vadd.f32 %v4793_v14, %v4792_v4  ;;  %v4832_v1 = vadd.f32 %v4831_v44, %v4830_v17 }
 0xc98   : > { %v4795_v11 = vmul.f32 %v4794_v12, %v6888_v59  ;;  %v4833_v36 = vmul.f32 %v4832_v1, %v6888_v59 }
 0xc9a   : > { %v4834_v45 = vadd.f32 %v4833_v36, %v4795_v11 }
 0xc9c   : > { %v9251_v9 = vmul.f32 0.5, %v4834_v45 }
 0xc9e   : > { %v9255_v35 = vsub.f32 %v9082_v62, %v9251_v9  ;;  %v9259_v8 = vsub.f32 %v9088_v0, %v9251_v9  ;;  %v9263_v24 = vsub.f32 %v9102_v18, %v9251_v9  ;;  %v9267_v39 = vsub.f32 %v9112_v7, %v9251_v9 }
 0xc9f   : > { %v9271_v54 = vsub.f32 %v9122_v10, %v9251_v9  ;;  %v9275_v62 = vsub.f32 %v9085_v28, %v9251_v9  ;;  %v9279_v0 = vsub.f32 %v9091_v21, %v9251_v9  ;;  %v9283_v18 = vsub.f32 %v9105_v63, %v9251_v9 }
 0xca0   : > { %v9287_v7 = vsub.f32 %v9115_v47, %v9251_v9  ;;  %v9291_v10 = vsub.f32 %v9125_v13, %v9251_v9  ;;  %v4868_v28 = vmul.f32 %v9255_v35, %v9255_v35  ;;  %v4869_v40 = vmul.f32 %v9259_v8, %v9259_v8 }
 0xca1   : > { %v4870_v21 = vmul.f32 %v9263_v24, %v9263_v24  ;;  %v9301_v63 = vsub.f32 %v9140_v29, %v9251_v9  ;;  %v4871_v47 = vmul.f32 %v9267_v39, %v9267_v39  ;;  %v9309_v41 = vsub.f32 %v9146_v26, %v9251_v9 }
 0xca2   : > { %v4884_v51 = vsel %vm474_vm2, %v4868_v28, 0.0  ;;  %v4885_v13 = vsel %vm474_vm2, %v4869_v40, 0.0  ;;  %v4872_v37 = vmul.f32 %v9271_v54, %v9271_v54  ;;  %v9316_v29 = vsub.f32 %v9156_v61, %v9251_v9 }
 0xca3   : > { %v4886_v33 = vadd.f32 %v4885_v13, %v4884_v51  ;;  %v4887_v15 = vsel %vm474_vm2, %v4870_v21, 0.0  ;;  %v4873_v25 = vmul.f32 %v9301_v63, %v9301_v63  ;;  %v4889_v42 = vsel %vm474_vm2, %v4871_v47, 0.0 }
 0xca4   : > { %v4922_v26 = vmul.f32 %v9275_v62, %v9275_v62  ;;  %v4923_v2 = vmul.f32 %v9279_v0, %v9279_v0  ;;  %v9327_v55 = vsub.f32 %v9166_v38, %v9251_v9  ;;  %v4874_v61 = vmul.f32 %v9309_v41, %v9309_v41 }
 0xca5   : > { %v4888_v3 = vadd.f32 %v4887_v15, %v4886_v33  ;;  %v4891_v22 = vsel %vm474_vm2, %v4872_v37, 0.0  ;;  %v4924_v57 = vmul.f32 %v9283_v18, %v9283_v18  ;;  %v9336_v32 = vsub.f32 %v9176_v31, %v9251_v9 }
 0xca6   : > { %v9340_v4 = vsub.f32 %v9143_v34, %v9251_v9  ;;  %v4875_v38 = vmul.f32 %v9316_v29, %v9316_v29  ;;  %v4893_v17 = vsel %vm474_vm2, %v4873_v25, 0.0  ;;  %v4925_v44 = vmul.f32 %v9287_v7, %v9287_v7 }
 0xca7   : > { %v4890_v19 = vadd.f32 %v4889_v42, %v4888_v3  ;;  %v4938_v12 = vsel %vm474_vm2, %v4922_v26, 0.0  ;;  %v4939_v1 = vsel %vm474_vm2, %v4923_v2, 0.0  ;;  %v9351_v31 = vsub.f32 %v9186_v20, %v9251_v9 }
 0xca8   : > { %v4876_v34 = vmul.f32 %v9327_v55, %v9327_v55  ;;  %v4895_v11 = vsel %vm474_vm2, %v4874_v61, 0.0  ;;  %v4940_v36 = vadd.f32 %v4939_v1, %v4938_v12  ;;  %v9358_v45 = vsub.f32 %v9149_v53, %v9251_v9 }
 0xca9   : > { %v4892_v23 = vadd.f32 %v4891_v22, %v4890_v19  ;;  %v4926_v40 = vmul.f32 %v9291_v10, %v9291_v10  ;;  %v4941_v21 = vsel %vm474_vm2, %v4924_v57, 0.0  ;;  %v9365_v20 = vsub.f32 %v9196_v27, %v9251_v9 }
 0xcaa   : > { %v4877_v47 = vmul.f32 %v9336_v32, %v9336_v32  ;;  %v4897_v51 = vsel %vm474_vm2, %v4875_v38, 0.0  ;;  %v4942_v13 = vadd.f32 %v4941_v21, %v4940_v36  ;;  %v9372_v53 = vsub.f32 %v9159_v50, %v9251_v9 }
 0xcab   : > { %v4894_v14 = vadd.f32 %v4893_v17, %v4892_v23  ;;  %v4927_v37 = vmul.f32 %v9340_v4, %v9340_v4  ;;  %v4943_v15 = vsel %vm474_vm2, %v4925_v44, 0.0  ;;  %v9379_v27 = vsub.f32 %v9206_v46, %v9251_v9 }
 0xcac   : > { %v4878_v3 = vmul.f32 %v9351_v31, %v9351_v31  ;;  %v4899_v25 = vsel %vm474_vm2, %v4876_v34, 0.0  ;;  %v4944_v42 = vadd.f32 %v4943_v15, %v4942_v13  ;;  %v9386_v50 = vsub.f32 %v9169_v43, %v9251_v9 }
 0xcad   : > { %v4896_v28 = vadd.f32 %v4895_v11, %v4894_v14  ;;  %v4928_v26 = vmul.f32 %v9358_v45, %v9358_v45  ;;  %v4945_v2 = vsel %vm474_vm2, %v4926_v40, 0.0  ;;  %v9393_v46 = vsub.f32 %v9216_v48, %v9251_v9 }
 0xcae   : > { %v4879_v61 = vmul.f32 %v9365_v20, %v9365_v20  ;;  %v4901_v22 = vsel %vm474_vm2, %v4877_v47, 0.0  ;;  %v4946_v23 = vadd.f32 %v4945_v2, %v4944_v42  ;;  %v9400_v43 = vsub.f32 %v9179_v30, %v9251_v9 }
 0xcaf   : > { %v4898_v33 = vadd.f32 %v4897_v51, %v4896_v28  ;;  %v4929_v38 = vmul.f32 %v9372_v53, %v9372_v53  ;;  %v4947_v17 = vsel %vm474_vm2, %v4927_v37, 0.0  ;;  %v9407_v48 = vsub.f32 %v9226_v5, %v9251_v9 }
 0xcb0   : > { %v4880_v14 = vmul.f32 %v9379_v27, %v9379_v27  ;;  %v4903_v44 = vsel %vm474_vm2, %v4878_v3, 0.0  ;;  %v4948_v12 = vadd.f32 %v4947_v17, %v4946_v23  ;;  %v9414_v30 = vsub.f32 %v9189_v49, %v9251_v9 }
 0xcb1   : > { %v4900_v19 = vadd.f32 %v4899_v25, %v4898_v33  ;;  %v4930_v34 = vmul.f32 %v9386_v50, %v9386_v50  ;;  %v4949_v11 = vsel %vm474_vm2, %v4928_v26, 0.0  ;;  %v9421_v5 = vsub.f32 %v9240_v6, %v9251_v9 }
 0xcb2   : > { %v4881_v36 = vmul.f32 %v9393_v46, %v9393_v46  ;;  %v4905_v28 = vsel %vm474_vm2, %v4879_v61, 0.0  ;;  %v4950_v40 = vadd.f32 %v4949_v11, %v4948_v12  ;;  %v9428_v49 = vsub.f32 %v9199_v52, %v9251_v9 }
 0xcb3   : > { %v4902_v57 = vadd.f32 %v4901_v22, %v4900_v19  ;;  %v4931_v47 = vmul.f32 %v9400_v43, %v9400_v43  ;;  %v4951_v51 = vsel %vm474_vm2, %v4929_v38, 0.0  ;;  %v4882_v6 = vmul.f32 %v9407_v48, %v9407_v48 }
 0xcb4   : > { %v4907_v13 = vsel %vm474_vm2, %v4880_v14, 0.0  ;;  %v4952_v33 = vadd.f32 %v4951_v51, %v4950_v40  ;;  %v9438_v37 = vsub.f32 %v9209_v58, %v9251_v9  ;;  %v4932_v52 = vmul.f32 %v9414_v30, %v9414_v30 }
 0xcb5   : > { %v4904_v1 = vadd.f32 %v4903_v44, %v4902_v57  ;;  %v4953_v3 = vsel %vm474_vm2, %v4930_v34, 0.0  ;;  %v4883_v25 = vmul.f32 %v9421_v5, %v9421_v5  ;;  %v4909_v42 = vsel %vm474_vm2, %v4881_v36, 0.0 }
 0xcb6   : > { %v4954_v19 = vadd.f32 %v4953_v3, %v4952_v33  ;;  %v9448_v26 = vsub.f32 %v9219_v56, %v9251_v9  ;;  %v4933_v58 = vmul.f32 %v9428_v49, %v9428_v49  ;;  %v4955_v61 = vsel %vm474_vm2, %v4931_v47, 0.0 }
 0xcb7   : > { %v4906_v21 = vadd.f32 %v4905_v28, %v4904_v1  ;;  %v4911_v22 = vsel %vm474_vm2, %v4882_v6, 0.0  ;;  %v9456_v57 = vsub.f32 %v9229_v60, %v9251_v9  ;;  %v4934_v17 = vmul.f32 %v9438_v37, %v9438_v37 }
 0xcb8   : > { %v4956_v23 = vadd.f32 %v4955_v61, %v4954_v19  ;;  %v4957_v56 = vsel %vm474_vm2, %v4932_v52, 0.0  ;;  %v4913_v14 = vsel %vm474_vm2, %v4883_v25, 0.0  ;;  %v4867_v12 = vsub.f32 %v9243_v16, %v9251_v9 }
 0xcb9   : > { %v4908_v15 = vadd.f32 %v4907_v13, %v4906_v21  ;;  %v4935_v34 = vmul.f32 %v9448_v26, %v9448_v26  ;;  %v4959_v11 = vsel %vm474_vm2, %v4933_v58, 0.0  ;;  %v4936_v28 = vmul.f32 %v9456_v57, %v9456_v57 }
 0xcba   : > { %v4958_v44 = vadd.f32 %v4957_v56, %v4956_v23  ;;  %v4961_v40 = vsel %vm474_vm2, %v4934_v17, 0.0  ;;  %v4937_v51 = vmul.f32 %v4867_v12, %v4867_v12 }
 0xcbb   : > { %v4910_v2 = vadd.f32 %v4909_v42, %v4908_v15  ;;  %v4963_v6 = vsel %vm474_vm2, %v4935_v34, 0.0  ;;  %v4965_v9 = vsel %vm474_vm2, %v4936_v28, 0.0 }
 0xcbc   : > { %v4960_v60 = vadd.f32 %v4959_v11, %v4958_v44  ;;  %v4967_v15 = vsel %vm474_vm2, %v4937_v51, 0.0 }
 0xcbd   : > { %v4912_v38 = vadd.f32 %v4911_v22, %v4910_v2 }
 0xcbe   : > { %v4962_v21 = vadd.f32 %v4961_v40, %v4960_v60  ;;  %v5821_v60 = vld [vmem:[%s10044_s7 + $0x38] sm:$0xff] }
 0xcbf   : > { %v4914_v1 = vadd.f32 %v4913_v14, %v4912_v38  ;;  %5465 = vmatpush.msrb.mxu3 %v5821_v60 }
 0xcc0   : > { %v4964_v13 = vadd.f32 %v4963_v6, %v4962_v21  ;;  %v9484_v21 = vld [vmem:[%s10046_s9 + $0x4] ss:$0 sm:$0xff] }
 0xcc1   : > { %v4915_v36 = vrot.slane %v4914_v1, 4 }
 0xcc2   : > { %v4966_v33 = vadd.f32 %v4965_v9, %v4964_v13 }
 0xcc3   : > { %v4916_v47 = vadd.f32 %v4915_v36, %v4914_v1  ;;  %v5399_v36 = vld [vmem:[%s10044_s7 + $0x18] sm:$0xff] }
 0xcc4   : > { %v4968_v3 = vadd.f32 %v4967_v15, %v4966_v33  ;;  %5578 = vmatpush.msrb.mxu2 %v5399_v36 }
 0xcc5   : > { %v4917_v16 = vrot.slane %v4916_v47, 2 }
 0xcc6   : > { %v4969_v25 = vrot.slane %v4968_v3, 4 }
 0xcc7   : > { %v4918_v52 = vadd.f32 %v4917_v16, %v4916_v47 }
 0xcc8   : > { %v4970_v19 = vadd.f32 %v4969_v25, %v4968_v3 }
 0xcc9   : > { %v4919_v42 = vrot.slane %v4918_v52, 1 }
 0xcca   : > { %v4971_v2 = vrot.slane %v4970_v19, 2 }
 0xccb   : > { %v4920_v58 = vadd.f32 %v4919_v42, %v4918_v52 }
 0xccc   : > { %v4972_v61 = vadd.f32 %v4971_v2, %v4970_v19  ;;  %v5820_v19 = vld [vmem:[%s10044_s7 + $0x30] sm:$0xff] }
 0xccd   : > { %v4921_v23 = vmul.f32 %v4920_v58, %v6888_v59  ;;  %v5398_v2 = vld [vmem:[%s10044_s7 + $0x10] sm:$0xff]  ;;  %5466 = vmatpush.msrb.mxu3 %v5820_v19 }
 0xcce   : > { %v4973_v22 = vrot.slane %v4972_v61, 1  ;;  %5579 = vmatpush.msrb.mxu2 %v5398_v2 }
 0xcd0   : > { %v4974_v38 = vadd.f32 %v4973_v22, %v4972_v61 }
 0xcd2   : > { %v4975_v17 = vmul.f32 %v4974_v38, %v6888_v59 }
 0xcd4   : > { %v4976_v56 = vadd.f32 %v4975_v17, %v4921_v23 }
 0xcd6   : > { %v4977_v14 = vmul.f32 0.5, %v4976_v56 }
 0xcd8   : > { %v4978_v44 = vadd.f32 1e-05, %v4977_v14 }
 0xcda   : > { %6305 = vrsqrt.f32 %v4978_v44  ;;  %vm4985_vm3 = vweird.f32 %v4978_v44 }
 0xce0   : > { %v6306_v1 = vpop.eup %6305 }
 0xce1   : > { %v4980_v34 = vmul.f32 %v6306_v1, %v4978_v44  ;;  %vm4986_vm5 = vweird.f32 %v6306_v1 }
 0xce2   : > { %vm4987_vm8 = vmor %vm4985_vm3, %vm4986_vm5 }
 0xce3   : > { %v4981_v11 = vmul.f32 %v6306_v1, %v4980_v34 }
 0xce5   : > { %v4982_v28 = vmul.f32 0.5, %v4981_v11 }
 0xce7   : > { %v4983_v40 = vsub.f32 1.5, %v4982_v28 }
 0xce9   : > { %v4984_v59 = vmul.f32 %v6306_v1, %v4983_v40 }
 0xceb   : > { %v9486_v47 = vsel %vm4987_vm8, %v6306_v1, %v4984_v59 }
 0xcec   : > { %v5106_v51 = vmul.f32 %v9486_v47, %v4867_v12  ;;  %v5004_v13 = vmul.f32 %v9486_v47, %v9379_v27  ;;  %v5005_v16 = vmul.f32 %v9486_v47, %v9393_v46  ;;  %v5006_v9 = vmul.f32 %v9486_v47, %v9407_v48  ;;  %v9511_v46 = vld [vmem:[%s10047_s10 + $0x4] ss:$0 sm:$0xff] }
 0xced   : > { %v5007_v33 = vmul.f32 %v9486_v47, %v9421_v5  ;;  %v4992_v15 = vmul.f32 %v9486_v47, %v9255_v35  ;;  %v4993_v12 = vmul.f32 %v9486_v47, %v9259_v8  ;;  %v4994_v52 = vmul.f32 %v9486_v47, %v9263_v24 }
 0xcee   : > { %v9490_v6 = vmul.f32 %v9484_v21, %v5106_v51  ;;  %v4995_v27 = vmul.f32 %v9486_v47, %v9267_v39  ;;  %v5021_v48 = vmul.f32 %v9484_v21, %v5004_v13  ;;  %v5022_v5 = vmul.f32 %v9484_v21, %v5005_v16  ;;  %v9522_v39 = vld [vmem:[%s10048_s11 + $0x4] ss:$0 sm:$0xff] }
 0xcef   : > { %v5023_v35 = vmul.f32 %v9484_v21, %v5006_v9  ;;  %v5024_v3 = vmul.f32 %v9484_v21, %v5007_v33  ;;  %v5009_v8 = vmul.f32 %v9484_v21, %v4992_v15  ;;  %v5010_v24 = vmul.f32 %v9484_v21, %v4993_v12 }
 0xcf0   : > { %v5011_v25 = vmul.f32 %v9484_v21, %v4994_v52  ;;  %v5012_v42 = vmul.f32 %v9484_v21, %v4995_v27  ;;  %v5091_v58 = vmul.f32 %v9486_v47, %v9275_v62  ;;  %v9535_v61 = vadd.f32 %v9511_v46, %v5021_v48 }
 0xcf1   : > { %v9538_v22 = vadd.f32 %v9511_v46, %v5022_v5  ;;  %v9541_v23 = vadd.f32 %v9511_v46, %v5023_v35  ;;  %v5092_v38 = vmul.f32 %v9486_v47, %v9279_v0  ;;  %v5093_v17 = vmul.f32 %v9486_v47, %v9283_v18 }
 0xcf2   : > { %v9548_v56 = vadd.f32 %v9511_v46, %v5024_v3  ;;  %v5103_v62 = vmul.f32 %v9486_v47, %v9438_v37  ;;  %v5104_v14 = vmul.f32 %v9486_v47, %v9448_v26  ;;  %v5026_v44 = vadd.f32 %v9511_v46, %v5009_v8 }
 0xcf3   : > { %v5027_v1 = vadd.f32 %v9511_v46, %v5010_v24  ;;  %v5105_v0 = vmul.f32 %v9486_v47, %v9456_v57  ;;  %v5028_v34 = vadd.f32 %v9511_v46, %v5011_v25  ;;  %v5029_v18 = vadd.f32 %v9511_v46, %v5012_v42 }
 0xcf4   : > { %v9562_v11 = vmul.f32 %v9522_v39, %v9535_v61  ;;  %v9566_v37 = vmul.f32 %v9522_v39, %v9538_v22  ;;  %v9570_v26 = vmul.f32 %v9522_v39, %v9541_v23  ;;  %v9574_v60 = vmul.f32 %v9522_v39, %v9548_v56 }
 0xcf5   : > { %v5107_v57 = vmul.f32 %v9484_v21, %v5091_v58  ;;  %v5108_v36 = vmul.f32 %v9484_v21, %v5092_v38  ;;  %v4996_v28 = vmul.f32 %v9486_v47, %v9271_v54  ;;  %v5059_v40 = vmul.f32 %v9522_v39, %v5026_v44 }
 0xcf6   : > { %v5060_v59 = vmul.f32 %v9522_v39, %v5027_v1  ;;  %v5061_v51 = vmul.f32 %v9522_v39, %v5028_v34  ;;  %v5062_v13 = vmul.f32 %v9522_v39, %v5029_v18  ;;  %v5109_v16 = vmul.f32 %v9484_v21, %v5093_v17 }
 0xcf7   : > { %v9586_v9 = vmul.f32 %v9484_v21, %v5103_v62  ;;  %v9589_v33 = vmul.f32 %v9484_v21, %v5104_v14  ;;  %v9592_v15 = vmul.f32 %v9484_v21, %v5105_v0  ;;  %v5124_v54 = vadd.f32 %v9511_v46, %v5108_v36 }
 0xcf8   : > { %v5123_v12 = vadd.f32 %v9511_v46, %v5107_v57  ;;  %vm5042_vm10 = vcmp.gt.f32.partialorder %v5026_v44, 0.0  ;;  %vm5043_vm11 = vcmp.gt.f32.partialorder %v5027_v1, 0.0  ;;  %vm5044_vm12 = vcmp.gt.f32.partialorder %v5028_v34, 0.0 }
 0xcf9   : > { %vm5045_vm6 = vcmp.gt.f32.partialorder %v5029_v18, 0.0  ;;  %vm5140_vm13 = vcmp.gt.f32.partialorder %v5124_v54, 0.0  ;;  %v5156_v52 = vmul.f32 %v9522_v39, %v5124_v54  ;;  %v5094_v48 = vmul.f32 %v9486_v47, %v9287_v7 }
 0xcfa   : > { %vm5139_vm14 = vcmp.gt.f32.partialorder %v5123_v12, 0.0  ;;  %v5155_v27 = vmul.f32 %v9522_v39, %v5123_v12  ;;  %v5095_v5 = vmul.f32 %v9486_v47, %v9291_v10  ;;  %v9602_v35 = vsel %vm5042_vm10, %v5026_v44, %v5059_v40 }
 0xcfb   : > { %v9604_v3 = vsel %vm5043_vm11, %v5027_v1, %v5060_v59  ;;  %v9606_v8 = vsel %vm5140_vm13, %v5124_v54, %v5156_v52  ;;  %v5204_v25 = vrot.slane %v9602_v35, 1  ;;  %v4997_v19 = vmul.f32 %v9486_v47, %v9301_v63 }
 0xcfc   : > { %v9608_v24 = vsel %vm5139_vm14, %v5123_v12, %v5155_v27  ;;  %v5205_v42 = vrot.slane %v9604_v3, 1  ;;  %5262 = vrot.lane.b32.xlu0 %v9606_v8, %s6316_s24  ;;  %v9619_v7 = vsel %vm5044_vm12, %v5028_v34, %v5061_v51  ;;  %v9622_v10 = vsel %vm5045_vm6, %v5029_v18, %v5062_v13 }
 0xcfd   : > { %5260 = vrot.lane.b32.xlu1 %v9608_v24, %s6316_s24  ;;  %v5125_v58 = vadd.f32 %v9511_v46, %v5109_v16  ;;  %v5013_v38 = vmul.f32 %v9484_v21, %v4996_v28  ;;  %v5110_v63 = vmul.f32 %v9484_v21, %v5094_v48  ;;  %v5111_v17 = vmul.f32 %v9484_v21, %v5095_v5 }
 0xcfe   : > { %v5206_v2 = vsel %vm5203_vm9, %v5204_v25, %v5205_v42  ;;  %v5207_v62 = vrot.slane %v9619_v7, 1  ;;  %v5208_v14 = vrot.slane %v9622_v10, 1  ;;  %v5014_v44 = vmul.f32 %v9484_v21, %v4997_v19 }
 0xcff   : > { %5332 = vrot.lane.b32.xlu2 %v5206_v2, %s6316_s24  ;;  %v4998_v1 = vmul.f32 %v9486_v47, %v9309_v41  ;;  %v4999_v0 = vmul.f32 %v9486_v47, %v9316_v29  ;;  %v5000_v34 = vmul.f32 %v9486_v47, %v9327_v55  ;;  %v5157_v18 = vmul.f32 %v9522_v39, %v5125_v58 }
 0xd00   : > { %v5001_v57 = vmul.f32 %v9486_v47, %v9336_v32  ;;  %v5096_v36 = vmul.f32 %v9486_v47, %v9340_v4  ;;  %v5030_v28 = vadd.f32 %v9511_v46, %v5013_v38  ;;  %vm5141_vm15 = vcmp.gt.f32.partialorder %v5125_v58, 0.0 }
 0xd01   : > { %v5209_v40 = vsel %vm5203_vm9, %v5207_v62, %v5208_v14  ;;  %v5236_v41 = vsel %vm5203_vm9, %v5205_v42, 0.0  ;;  %v5127_v29 = vadd.f32 %v9511_v46, %v5111_v17  ;;  %v5126_v59 = vadd.f32 %v9511_v46, %v5110_v63 }
 0xd02   : > { %v5031_v55 = vadd.f32 %v9511_v46, %v5014_v44  ;;  %v5015_v32 = vmul.f32 %v9484_v21, %v4998_v1  ;;  %v5016_v4 = vmul.f32 %v9484_v21, %v4999_v0  ;;  %v9654_v51 = vsel %vm5141_vm15, %v5125_v58, %v5157_v18 }
 0xd03   : > { %v5098_v13 = vmul.f32 %v9486_v47, %v9372_v53  ;;  %v5017_v16 = vmul.f32 %v9484_v21, %v5000_v34  ;;  %v5018_v54 = vmul.f32 %v9484_v21, %v5001_v57  ;;  %v5063_v12 = vmul.f32 %v9522_v39, %v5030_v28 }
 0xd04   : > { %5336 = vrot.lane.b32.xlu0 %v5209_v40, %s6316_s24  ;;  %v5112_v52 = vmul.f32 %v9484_v21, %v5096_v36  ;;  %v5159_v27 = vmul.f32 %v9522_v39, %v5127_v29  ;;  %v5158_v48 = vmul.f32 %v9522_v39, %v5126_v59  ;;  %vm5143_vm0 = vcmp.gt.f32.partialorder %v5127_v29, 0.0  ;;  %v5819_v36 = vld [vmem:[%s10044_s7 + $0x28] sm:$0xff] }
 0xd05   : > { %5334 = vrot.lane.b32.xlu1 %v5236_v41, %s6316_s24  ;;  %vm5142_vm7 = vcmp.gt.f32.partialorder %v5126_v59, 0.0  ;;  %v5064_v5 = vmul.f32 %v9522_v39, %v5031_v55  ;;  %vm5046_vm1 = vcmp.gt.f32.partialorder %v5030_v28, 0.0  ;;  %v5097_v53 = vmul.f32 %v9486_v47, %v9358_v45  ;;  %5467 = vmatpush.msrb.mxu3 %v5819_v36 }
 0xd06   : > { %v5032_v25 = vadd.f32 %v9511_v46, %v5015_v32  ;;  %v5033_v42 = vadd.f32 %v9511_v46, %v5016_v4  ;;  %vm5047_vm5 = vcmp.gt.f32.partialorder %v5031_v55, 0.0  ;;  %v5099_v19 = vmul.f32 %v9486_v47, %v9386_v50 }
 0xd07   : > { %5264 = vrot.lane.b32.xlu2 %v9654_v51, %s6316_s24  ;;  %v5114_v2 = vmul.f32 %v9484_v21, %v5098_v13  ;;  %v9674_v58 = vsel %vm5143_vm0, %v5127_v29, %v5159_v27  ;;  %v9676_v38 = vsel %vm5142_vm7, %v5126_v59, %v5158_v48  ;;  %v9678_v63 = vsel %vm5046_vm1, %v5030_v28, %v5063_v12  ;;  %v5397_v28 = vld [vmem:[%s10044_s7 + $0x8] sm:$0xff] }
 0xd08   : > { %v5128_v17 = vadd.f32 %v9511_v46, %v5112_v52  ;;  %v9682_v45 = vadd.f32 %v9511_v46, %v5017_v16  ;;  %v9685_v62 = vadd.f32 %v9511_v46, %v5018_v54  ;;  %v9691_v50 = vsel %vm5047_vm5, %v5031_v55, %v5064_v5  ;;  %5580 = vmatpush.msrb.mxu2 %v5397_v28 }
 0xd09   : > { %v5065_v44 = vmul.f32 %v9522_v39, %v5032_v25  ;;  %v5066_v1 = vmul.f32 %v9522_v39, %v5033_v42  ;;  %v5113_v0 = vmul.f32 %v9484_v21, %v5097_v53  ;;  %v5237_v34 = vsel %vm5203_vm9, %v5208_v14, 0.0 }
 0xd0a   : > { %v5210_v18 = vrot.slane %v9678_v63, 1  ;;  %v5130_v57 = vadd.f32 %v9511_v46, %v5114_v2  ;;  %v5136_v40 = vadd.f32 %v9511_v46, %v9589_v33  ;;  %v5135_v14 = vadd.f32 %v9511_v46, %v9586_v9 }
 0xd0b   : > { %v5211_v41 = vrot.slane %v9691_v50, 1  ;;  %vm5144_vm3 = vcmp.gt.f32.partialorder %v5128_v17, 0.0  ;;  %v5160_v29 = vmul.f32 %v9522_v39, %v5128_v17  ;;  %vm5054_vm8 = vcmp.gt.f32.partialorder %v9535_v61, 0.0 }
 0xd0c   : > { %5268 = vrot.lane.b32.xlu0 %v9674_v58, %s6316_s24  ;;  %vm5152_vm10 = vcmp.gt.f32.partialorder %v5136_v40, 0.0  ;;  %v5168_v59 = vmul.f32 %v9522_v39, %v5136_v40  ;;  %vm5151_vm11 = vcmp.gt.f32.partialorder %v5135_v14, 0.0  ;;  %v5167_v55 = vmul.f32 %v9522_v39, %v5135_v14 }
 0xd0d   : > { %5266 = vrot.lane.b32.xlu1 %v9676_v38, %s6316_s24  ;;  %v5129_v33 = vadd.f32 %v9511_v46, %v5113_v0  ;;  %vm5048_vm12 = vcmp.gt.f32.partialorder %v5032_v25, 0.0  ;;  %vm5049_vm6 = vcmp.gt.f32.partialorder %v5033_v42, 0.0  ;;  %vm5055_vm13 = vcmp.gt.f32.partialorder %v9538_v22, 0.0 }
 0xd0e   : > { %v9717_v9 = vsel %vm5152_vm10, %v5136_v40, %v5168_v59  ;;  %v9719_v32 = vsel %vm5151_vm11, %v5135_v14, %v5167_v55  ;;  %v9723_v4 = vsel %vm5054_vm8, %v9535_v61, %v9562_v11  ;;  %v9727_v13 = vsel %vm5055_vm13, %v9538_v22, %v9566_v37 }
 0xd0f   : > { %5338 = vrot.lane.b32.xlu2 %v5237_v34, %s6316_s24  ;;  %v5238_v16 = vsel %vm5203_vm9, %v5211_v41, 0.0  ;;  %v5212_v54 = vsel %vm5203_vm9, %v5210_v18, %v5211_v41  ;;  %vm5056_vm14 = vcmp.gt.f32.partialorder %v9541_v23, 0.0  ;;  %vm5057_vm15 = vcmp.gt.f32.partialorder %v9548_v56, 0.0 }
 0xd10   : > { %v9737_v61 = vsel %vm5056_vm14, %v9541_v23, %v9570_v26  ;;  %v9741_v22 = vsel %vm5057_vm15, %v9548_v56, %v9574_v60  ;;  %v5137_v11 = vadd.f32 %v9511_v46, %v9592_v15  ;;  %v5067_v37 = vmul.f32 %v9522_v39, %v9682_v45 }
 0xd11   : > { %v5068_v12 = vmul.f32 %v9522_v39, %v9685_v62  ;;  %v9750_v52 = vsel %vm5144_vm3, %v5128_v17, %v5160_v29  ;;  %v9753_v27 = vsel %vm5048_vm12, %v5032_v25, %v5065_v44  ;;  %v9758_v23 = vsel %vm5049_vm6, %v5033_v42, %v5066_v1 }
 0xd12   : > { %vm5153_vm0 = vcmp.gt.f32.partialorder %v5137_v11, 0.0  ;;  %v5169_v56 = vmul.f32 %v9522_v39, %v5137_v11  ;;  %v5138_v26 = vadd.f32 %v9511_v46, %v9490_v6  ;;  %v5115_v60 = vmul.f32 %v9484_v21, %v5099_v19 }
 0xd13   : > { %vm5146_vm7 = vcmp.gt.f32.partialorder %v5130_v57, 0.0  ;;  %v5162_v15 = vmul.f32 %v9522_v39, %v5130_v57  ;;  %v5161_v48 = vmul.f32 %v9522_v39, %v5129_v33  ;;  %vm5145_vm1 = vcmp.gt.f32.partialorder %v5129_v33, 0.0 }
 0xd14   : > { %5342 = vrot.lane.b32.xlu0 %v5238_v16, %s6316_s24  ;;  %v9766_v5 = vsel %vm5153_vm0, %v5137_v11, %v5169_v56  ;;  %vm5154_vm5 = vcmp.gt.f32.partialorder %v5138_v26, 0.0  ;;  %v5170_v53 = vmul.f32 %v9522_v39, %v5138_v26  ;;  %v5213_v25 = vrot.slane %v9753_v27, 1 }
 0xd15   : > { %5340 = vrot.lane.b32.xlu1 %v5212_v54, %s6316_s24  ;;  %v5214_v42 = vrot.slane %v9758_v23, 1  ;;  %vm5050_vm3 = vcmp.gt.f32.partialorder %v9682_v45, 0.0  ;;  %vm5051_vm8 = vcmp.gt.f32.partialorder %v9685_v62, 0.0  ;;  %v5002_v6 = vmul.f32 %v9486_v47, %v9351_v31 }
 0xd16   : > { %v9775_v19 = vsel %vm5154_vm5, %v5138_v26, %v5170_v53  ;;  %v5100_v2 = vmul.f32 %v9486_v47, %v9400_v43  ;;  %v5101_v17 = vmul.f32 %v9486_v47, %v9414_v30  ;;  %v9781_v44 = vsel %vm5146_vm7, %v5130_v57, %v5162_v15  ;;  %v5396_v53 = vld [vmem:[%s10044_s7] sm:$0xff] }
 0xd17   : > { %5270 = vrot.lane.b32.xlu2 %v9750_v52, %s6316_s24  ;;  %v9783_v1 = vsel %vm5145_vm1, %v5129_v33, %v5161_v48  ;;  %v5003_v0 = vmul.f32 %v9486_v47, %v9365_v20  ;;  %v9792_v31 = vsel %vm5050_vm3, %v9682_v45, %v5067_v37  ;;  %v9795_v43 = vsel %vm5051_vm8, %v9685_v62, %v5068_v12  ;;  %v5818_v48 = vld [vmem:[%s10044_s7 + $0x20] sm:$0xff] }
 0xd18   : > { %v5215_v30 = vsel %vm5203_vm9, %v5213_v25, %v5214_v42  ;;  %v5131_v34 = vadd.f32 %v9511_v46, %v5115_v60  ;;  %v5116_v20 = vmul.f32 %v9484_v21, %v5100_v2  ;;  %v5117_v18 = vmul.f32 %v9484_v21, %v5101_v17  ;;  %5468 = vmatpush.msrb.mxu3 %v5818_v48 }
 0xd19   : > { %v5216_v57 = vrot.slane %v9792_v31, 1  ;;  %v5217_v36 = vrot.slane %v9795_v43, 1  ;;  %v5019_v45 = vmul.f32 %v9484_v21, %v5002_v6  ;;  %v5020_v28 = vmul.f32 %v9484_v21, %v5003_v0  ;;  %5581 = vmatpush.msrb.mxu2 %v5396_v53 }
 0xd1a   : > { %v5163_v62 = vmul.f32 %v9522_v39, %v5131_v34  ;;  %vm5147_vm10 = vcmp.gt.f32.partialorder %v5131_v34, 0.0  ;;  %v5239_v14 = vsel %vm5203_vm9, %v5214_v42, 0.0  ;;  %v5133_v41 = vadd.f32 %v9511_v46, %v5117_v18 }
 0xd1b   : > { %v5218_v40 = vsel %vm5203_vm9, %v5216_v57, %v5217_v36  ;;  %v5132_v29 = vadd.f32 %v9511_v46, %v5116_v20  ;;  %v5036_v59 = vadd.f32 %v9511_v46, %v5019_v45  ;;  %v5037_v55 = vadd.f32 %v9511_v46, %v5020_v28 }
 0xd1c   : > { %5274 = vrot.lane.b32.xlu0 %v9781_v44, %s6316_s24  ;;  %v5102_v33 = vmul.f32 %v9486_v47, %v9428_v49  ;;  %v9817_v16 = vsel %vm5147_vm10, %v5131_v34, %v5163_v62  ;;  %v5165_v54 = vmul.f32 %v9522_v39, %v5133_v41  ;;  %vm5149_vm11 = vcmp.gt.f32.partialorder %v5133_v41, 0.0 }
 0xd1d   : > { %5272 = vrot.lane.b32.xlu1 %v9783_v1, %s6316_s24  ;;  %v5164_v11 = vmul.f32 %v9522_v39, %v5132_v29  ;;  %v5069_v37 = vmul.f32 %v9522_v39, %v5036_v59  ;;  %vm5148_vm12 = vcmp.gt.f32.partialorder %v5132_v29, 0.0  ;;  %v5070_v12 = vmul.f32 %v9522_v39, %v5037_v55 }
 0xd1e   : > { %v5118_v56 = vmul.f32 %v9484_v21, %v5102_v33  ;;  %vm5053_vm6 = vcmp.gt.f32.partialorder %v5037_v55, 0.0  ;;  %vm5052_vm13 = vcmp.gt.f32.partialorder %v5036_v59, 0.0  ;;  %v9826_v49 = vsel %vm5149_vm11, %v5133_v41, %v5165_v54 }
 0xd1f   : > { %5344 = vrot.lane.b32.xlu2 %v5215_v30, %s6316_s24  ;;  %v9828_v47 = vsel %vm5148_vm12, %v5132_v29, %v5164_v11  ;;  %v9834_v26 = vsel %vm5053_vm6, %v5037_v55, %v5070_v12  ;;  %v9836_v60 = vsel %vm5052_vm13, %v5036_v59, %v5069_v37  ;;  %v5240_v15 = vsel %vm5203_vm9, %v5217_v36, 0.0 }
 0xd20   : > { %v5134_v21 = vadd.f32 %v9511_v46, %v5118_v56  ;;  %v5220_v25 = vrot.slane %v9834_v26, 1  ;;  %v5219_v42 = vrot.slane %v9836_v60, 1  ;;  %v5222_v0 = vrot.slane %v9723_v4, 1 }
 0xd21   : > { %v5223_v30 = vrot.slane %v9727_v13, 1  ;;  %v5225_v34 = vrot.slane %v9737_v61, 1  ;;  %v5226_v20 = vrot.slane %v9741_v22, 1 }
 0xd22   : > { %v5166_v6 = vmul.f32 %v9522_v39, %v5134_v21  ;;  %vm5150_vm14 = vcmp.gt.f32.partialorder %v5134_v21, 0.0  ;;  %v5241_v46 = vsel %vm5203_vm9, %v5220_v25, 0.0  ;;  %v5221_v2 = vsel %vm5203_vm9, %v5219_v42, %v5220_v25 }
 0xd23   : > { %v5224_v39 = vsel %vm5203_vm9, %v5222_v0, %v5223_v30  ;;  %v5227_v18 = vsel %vm5203_vm9, %v5225_v34, %v5226_v20  ;;  %v5242_v57 = vsel %vm5203_vm9, %v5223_v30, 0.0  ;;  %v5243_v36 = vsel %vm5203_vm9, %v5226_v20, 0.0 }
 0xd24   : > { %5348 = vrot.lane.b32.xlu0 %v5218_v40, %s6316_s24  ;;  %v9854_v17 = vsel %vm5150_vm14, %v5134_v21, %v5166_v6 }
 0xd25   : > { %5346 = vrot.lane.b32.xlu1 %v5239_v14, %s6316_s24 }
 0xd27   : > { %5276 = vrot.lane.b32.xlu2 %v9817_v16, %s6316_s24 }
 0xd2c   : > { %5280 = vrot.lane.b32.xlu0 %v9826_v49, %s6316_s24 }
 0xd2d   : > { %5278 = vrot.lane.b32.xlu1 %v9828_v47, %s6316_s24 }
 0xd2f   : > { %5350 = vrot.lane.b32.xlu2 %v5240_v15, %s6316_s24 }
 0xd34   : > { %5354 = vrot.lane.b32.xlu0 %v5241_v46, %s6316_s24 }
 0xd35   : > { %5352 = vrot.lane.b32.xlu1 %v5221_v2, %s6316_s24 }
 0xd37   : > { %5282 = vrot.lane.b32.xlu2 %v9854_v17, %s6316_s24 }
 0xd3c   : > { %5286 = vrot.lane.b32.xlu0 %v9717_v9, %s6316_s24 }
 0xd3d   : > { %5284 = vrot.lane.b32.xlu1 %v9719_v32, %s6316_s24 }
 0xd3f   : > { %5356 = vrot.lane.b32.xlu2 %v5224_v39, %s6316_s24 }
 0xd44   : > { %5360 = vrot.lane.b32.xlu0 %v5227_v18, %s6316_s24 }
 0xd45   : > { %5358 = vrot.lane.b32.xlu1 %v5242_v57, %s6316_s24 }
 0xd47   : > { %5288 = vrot.lane.b32.xlu2 %v9766_v5, %s6316_s24 }
 0xd4d   : > { %5290 = vrot.lane.b32.xlu1 %v9775_v19, %s6316_s24 }
 0xd4f   : > { %5362 = vrot.lane.b32.xlu2 %v5243_v36, %s6316_s24 }
 0xd59   : > { %v5333_v45 = vpop.permute.xlu2 %5332 }
 0xd5a   : > { %v5380_v28 = vsel %vm474_vm2, %v9608_v24, %v5333_v45 }
 0xd5b   : > { %5822 = vmatmul.msk.f32.vlgmr.msrb.gmra.mxu3 %vm924_vm4, %v5380_v28 }
 0xd61   : > { %v5265_v24 = vpop.permute.xlu2 %5264 }
 0xd62   : > { %v5310_v33 = vsel %vm474_vm2, %v9619_v7, %v5265_v24 }
 0xd69   : > { %v5339_v54 = vpop.permute.xlu2 %5338 }
 0xd6e   : > { %v5263_v14 = vpop.permute.xlu0 %5262 }
 0xd6f   : > { %v5261_v62 = vpop.permute.xlu1 %5260  ;;  %v5309_v29 = vsel %vm474_vm2, %v9604_v3, %v5263_v14 }
 0xd70   : > { %v5308_v40 = vsel %vm474_vm2, %v9602_v35, %v5261_v62 }
 0xd71   : > { %5838 = vmatmul.msk.f32.vlgmr.msrb.gmra.mxu2 %vm924_vm4, %v5308_v40 }
 0xd76   : > { %v5337_v55 = vpop.permute.xlu0 %5336 }
 0xd77   : > { %v5335_v41 = vpop.permute.xlu1 %5334  ;;  %v5382_v35 = vsel %vm474_vm2, %v9654_v51, %v5337_v55 }
 0xd78   : > { %v5381_v59 = vsel %vm474_vm2, %v9606_v8, %v5335_v41  ;;  %v5383_v8 = vsel %vm474_vm2, %v9676_v38, %v5339_v54  ;;  %v5271_v38 = vpop.permute.xlu2 %5270 }
 0xd79   : > { %5823 = vmatmul.msk.f32.gmra.mxu3 %vm924_vm4, %v5381_v59  ;;  %5839 = vmatmul.msk.f32.gmra.mxu2 %vm924_vm4, %v5309_v29 }
 0xd7e   : > { %v5269_v7 = vpop.permute.xlu0 %5268 }
 0xd7f   : > { %v5267_v3 = vpop.permute.xlu1 %5266  ;;  %v5312_v51 = vsel %vm474_vm2, %v9678_v63, %v5269_v7 }
 0xd80   : > { %v5311_v11 = vsel %vm474_vm2, %v9622_v10, %v5267_v3  ;;  %v5313_v10 = vsel %vm474_vm2, %v9691_v50, %v5271_v38  ;;  %v5345_v21 = vpop.permute.xlu2 %5344 }
 0xd81   : > { %5824 = vmatmul.msk.f32.gmra.mxu3 %vm924_vm4, %v5382_v35  ;;  %5840 = vmatmul.msk.f32.gmra.mxu2 %vm924_vm4, %v5310_v33 }
 0xd86   : > { %v5343_v56 = vpop.permute.xlu0 %5342 }
 0xd87   : > { %v5341_v37 = vpop.permute.xlu1 %5340  ;;  %v5385_v15 = vsel %vm474_vm2, %v9750_v52, %v5343_v56 }
 0xd88   : > { %v5384_v12 = vsel %vm474_vm2, %v9674_v58, %v5341_v37  ;;  %v5386_v58 = vsel %vm474_vm2, %v9783_v1, %v5345_v21  ;;  %v5277_v1 = vpop.permute.xlu2 %5276 }
 0xd89   : > { %5825 = vmatmul.msk.f32.gmra.mxu3 %vm924_vm4, %v5383_v8  ;;  %5841 = vmatmul.msk.f32.gmra.mxu2 %vm924_vm4, %v5311_v11 }
 0xd8e   : > { %v5275_v50 = vpop.permute.xlu0 %5274 }
 0xd8f   : > { %v5273_v63 = vpop.permute.xlu1 %5272  ;;  %v5315_v52 = vsel %vm474_vm2, %v9758_v23, %v5275_v50 }
 0xd90   : > { %v5314_v48 = vsel %vm474_vm2, %v9753_v27, %v5273_v63  ;;  %v5316_v27 = vsel %vm474_vm2, %v9792_v31, %v5277_v1  ;;  %v5351_v46 = vpop.permute.xlu2 %5350 }
 0xd91   : > { %5826 = vmatmul.msk.f32.gmra.mxu3 %vm924_vm4, %v5384_v12  ;;  %5842 = vmatmul.msk.f32.gmra.mxu2 %vm924_vm4, %v5312_v51 }
 0xd96   : > { %v5349_v42 = vpop.permute.xlu0 %5348 }
 0xd97   : > { %v5347_v53 = vpop.permute.xlu1 %5346  ;;  %v5388_v6 = vsel %vm474_vm2, %v9817_v16, %v5349_v42 }
 0xd98   : > { %v5387_v25 = vsel %vm474_vm2, %v9781_v44, %v5347_v53  ;;  %v5389_v44 = vsel %vm474_vm2, %v9828_v47, %v5351_v46  ;;  %v5283_v47 = vpop.permute.xlu2 %5282 }
 0xd99   : > { %5827 = vmatmul.msk.f32.gmra.mxu3 %vm924_vm4, %v5385_v15  ;;  %5843 = vmatmul.msk.f32.gmra.mxu2 %vm924_vm4, %v5313_v10 }
 0xd9e   : > { %v5281_v31 = vpop.permute.xlu0 %5280 }
 0xd9f   : > { %v5279_v23 = vpop.permute.xlu1 %5278  ;;  %v5318_v16 = vsel %vm474_vm2, %v9836_v60, %v5281_v31 }
 0xda0   : > { %v5317_v2 = vsel %vm474_vm2, %v9795_v43, %v5279_v23  ;;  %v5319_v43 = vsel %vm474_vm2, %v9834_v26, %v5283_v47  ;;  %v5357_v20 = vpop.permute.xlu2 %5356 }
 0xda1   : > { %5828 = vmatmul.msk.f32.gmra.mxu3 %vm924_vm4, %v5386_v58  ;;  %5844 = vmatmul.msk.f32.gmra.mxu2 %vm924_vm4, %v5314_v48 }
 0xda6   : > { %v5355_v39 = vpop.permute.xlu0 %5354 }
 0xda7   : > { %v5353_v0 = vpop.permute.xlu1 %5352  ;;  %v5391_v34 = vsel %vm474_vm2, %v9854_v17, %v5355_v39 }
 0xda8   : > { %v5390_v30 = vsel %vm474_vm2, %v9826_v49, %v5353_v0  ;;  %v5392_v49 = vsel %vm474_vm2, %v9719_v32, %v5357_v20  ;;  %v5289_v32 = vpop.permute.xlu2 %5288 }
 0xda9   : > { %5829 = vmatmul.msk.f32.gmra.mxu3 %vm924_vm4, %v5387_v25  ;;  %5845 = vmatmul.msk.f32.gmra.mxu2 %vm924_vm4, %v5315_v52 }
 0xdae   : > { %v5287_v26 = vpop.permute.xlu0 %5286 }
 0xdaf   : > { %v5285_v60 = vpop.permute.xlu1 %5284  ;;  %v5321_v17 = vsel %vm474_vm2, %v9727_v13, %v5287_v26 }
 0xdb0   : > { %v5320_v18 = vsel %vm474_vm2, %v9723_v4, %v5285_v60  ;;  %v5322_v4 = vsel %vm474_vm2, %v9737_v61, %v5289_v32  ;;  %v5363_v13 = vpop.permute.xlu2 %5362  ;;  %v9977_v61 = vld [vmem:[%s10045_s8] ss:$0 sm:$0xff] }
 0xdb1   : > { %5830 = vmatmul.msk.f32.gmra.mxu3 %vm924_vm4, %v5388_v6  ;;  %5846 = vmatmul.msk.f32.gmra.mxu2 %vm924_vm4, %v5316_v27 }
 0xdb6   : > { %v5361_v45 = vpop.permute.xlu0 %5360 }
 0xdb7   : > { %v5359_v57 = vpop.permute.xlu1 %5358  ;;  %v5394_v28 = vsel %vm474_vm2, %v9766_v5, %v5361_v45 }
 0xdb8   : > { %v5393_v36 = vsel %vm474_vm2, %v9717_v9, %v5359_v57  ;;  %v5395_v9 = vsel %vm474_vm2, %v9775_v19, %v5363_v13 }
 0xdb9   : > { %5831 = vmatmul.msk.f32.gmra.mxu3 %vm924_vm4, %v5389_v44  ;;  %5847 = vmatmul.msk.f32.gmra.mxu2 %vm924_vm4, %v5317_v2 }
 0xdbf   : > { %v5291_v62 = vpop.permute.xlu1 %5290 }
 0xdc0   : > { %v5323_v40 = vsel %vm474_vm2, %v9741_v22, %v5291_v62  ;;  %vm5651_vm2 = vcmask 64512  }
 0xdc1   : > { %5832 = vmatmul.msk.f32.gmra.mxu3 %vm924_vm4, %v5390_v30  ;;  %5848 = vmatmul.msk.f32.gmra.mxu2 %vm924_vm4, %v5318_v16 }
 0xdc9   : > { %5833 = vmatmul.msk.f32.gmra.mxu3 %vm924_vm4, %v5391_v34  ;;  %5849 = vmatmul.msk.f32.gmra.mxu2 %vm924_vm4, %v5319_v43 }
 0xdd1   : > { %5834 = vmatmul.msk.f32.gmra.mxu3 %vm924_vm4, %v5392_v49  ;;  %5850 = vmatmul.msk.f32.gmra.mxu2 %vm924_vm4, %v5320_v18 }
 0xdd9   : > { %5835 = vmatmul.msk.f32.gmra.mxu3 %vm924_vm4, %v5393_v36  ;;  %5851 = vmatmul.msk.f32.gmra.mxu2 %vm924_vm4, %v5321_v17 }
 0xdde   : > { %v5470_v5 = vpop.f32.mrf.mxu3 }
 0xde1   : > { %5836 = vmatmul.msk.f32.gmra.mxu3 %vm924_vm4, %v5394_v28  ;;  %5852 = vmatmul.msk.f32.gmra.mxu2 %vm924_vm4, %v5322_v4 }
 0xde9   : > { %5837 = vmatmul.msk.f32.gmra.mxu3 %vm924_vm4, %v5395_v9  ;;  %5853 = vmatmul.msk.f32.gmra.mxu2 %vm924_vm4, %v5323_v40 }
 0xdf4   : > { %v5583_v14 = vpop.f32.mrf.mxu2 }
 0xdf5   : > { %v5584_v41 = vadd.f32 %v5583_v14, %v5470_v5 }
 0xdf7   : > { %v5635_v22 = vadd.f32 %v9977_v61, %v5584_v41 }
 0xdf9   : > { %5652 = vst.msk [vmem:[%s9984_s30] sm:$0xff] %vm5651_vm2, %v5635_v22 }
 0xdfc   : > { %v5473_v19 = vpop.f32.mrf.mxu3  ;;  %v5586_v29 = vpop.f32.mrf.mxu2 }
 0xdfd   : > { %v5587_v59 = vadd.f32 %v5586_v29, %v5473_v19 }
 0xdff   : > { %v5636_v24 = vadd.f32 %v9977_v61, %v5587_v59 }
 0xe01   : > { %5653 = vst.msk [vmem:[%s9984_s30 + $0x8] sm:$0xff] %vm5651_vm2, %v5636_v24 }
 0xe04   : > { %v5476_v55 = vpop.f32.mrf.mxu3  ;;  %v5589_v33 = vpop.f32.mrf.mxu2 }
 0xe05   : > { %v5590_v35 = vadd.f32 %v5589_v33, %v5476_v55 }
 0xe07   : > { %v5637_v3 = vadd.f32 %v9977_v61, %v5590_v35 }
 0xe09   : > { %5654 = vst.msk [vmem:[%s9984_s30 + $0x10] sm:$0xff] %vm5651_vm2, %v5637_v3 }
 0xe0c   : > { %v5479_v54 = vpop.f32.mrf.mxu3  ;;  %v5592_v8 = vpop.f32.mrf.mxu2 }
 0xe0d   : > { %v5593_v11 = vadd.f32 %v5592_v8, %v5479_v54 }
 0xe0f   : > { %v5638_v7 = vadd.f32 %v9977_v61, %v5593_v11 }
 0xe11   : > { %5655 = vst.msk [vmem:[%s9984_s30 + $0x18] sm:$0xff] %vm5651_vm2, %v5638_v7 }
 0xe14   : > { %v5482_v37 = vpop.f32.mrf.mxu3  ;;  %v5595_v51 = vpop.f32.mrf.mxu2 }
 0xe15   : > { %v5596_v12 = vadd.f32 %v5595_v51, %v5482_v37 }
 0xe17   : > { %v5639_v38 = vadd.f32 %v9977_v61, %v5596_v12 }
 0xe19   : > { %5656 = vst.msk [vmem:[%s9984_s30 + $0x20] sm:$0xff] %vm5651_vm2, %v5639_v38 }
 0xe1c   : > { %v5485_v56 = vpop.f32.mrf.mxu3  ;;  %v5598_v10 = vpop.f32.mrf.mxu2 }
 0xe1d   : > { %v5599_v15 = vadd.f32 %v5598_v10, %v5485_v56 }
 0xe1f   : > { %v5640_v63 = vadd.f32 %v9977_v61, %v5599_v15 }
 0xe21   : > { %5657 = vst.msk [vmem:[%s9984_s30 + $0x28] sm:$0xff] %vm5651_vm2, %v5640_v63 }
 0xe24   : > { %v5488_v21 = vpop.f32.mrf.mxu3  ;;  %v5601_v58 = vpop.f32.mrf.mxu2 }
 0xe25   : > { %v5602_v48 = vadd.f32 %v5601_v58, %v5488_v21 }
 0xe27   : > { %v5641_v50 = vadd.f32 %v9977_v61, %v5602_v48 }
 0xe29   : > { %5658 = vst.msk [vmem:[%s9984_s30 + $0x30] sm:$0xff] %vm5651_vm2, %v5641_v50 }
 0xe2c   : > { %v5491_v53 = vpop.f32.mrf.mxu3  ;;  %v5604_v52 = vpop.f32.mrf.mxu2 }
 0xe2d   : > { %v5605_v25 = vadd.f32 %v5604_v52, %v5491_v53 }
 0xe2f   : > { %v5642_v1 = vadd.f32 %v9977_v61, %v5605_v25 }
 0xe31   : > { %5659 = vst.msk [vmem:[%s9984_s30 + $0x38] sm:$0xff] %vm5651_vm2, %v5642_v1 }
 0xe34   : > { %v5494_v42 = vpop.f32.mrf.mxu3  ;;  %v5607_v27 = vpop.f32.mrf.mxu2 }
 0xe35   : > { %v5608_v6 = vadd.f32 %v5607_v27, %v5494_v42 }
 0xe37   : > { %v5643_v23 = vadd.f32 %v9977_v61, %v5608_v6 }
 0xe39   : > { %5660 = vst.msk [vmem:[%s9984_s30 + $0x40] sm:$0xff] %vm5651_vm2, %v5643_v23 }
 0xe3c   : > { %v5497_v46 = vpop.f32.mrf.mxu3  ;;  %v5610_v44 = vpop.f32.mrf.mxu2 }
 0xe3d   : > { %v5611_v2 = vadd.f32 %v5610_v44, %v5497_v46 }
 0xe3f   : > { %v5644_v31 = vadd.f32 %v9977_v61, %v5611_v2 }
 0xe41   : > { %5661 = vst.msk [vmem:[%s9984_s30 + $0x48] sm:$0xff] %vm5651_vm2, %v5644_v31 }
 0xe44   : > { %v5500_v0 = vpop.f32.mrf.mxu3  ;;  %v5613_v16 = vpop.f32.mrf.mxu2 }
 0xe45   : > { %v5614_v30 = vadd.f32 %v5613_v16, %v5500_v0 }
 0xe47   : > { %v5645_v47 = vadd.f32 %v9977_v61, %v5614_v30 }
 0xe49   : > { %5662 = vst.msk [vmem:[%s9984_s30 + $0x50] sm:$0xff] %vm5651_vm2, %v5645_v47 }
 0xe4c   : > { %v5503_v39 = vpop.f32.mrf.mxu3  ;;  %v5616_v43 = vpop.f32.mrf.mxu2 }
 0xe4d   : > { %v5617_v34 = vadd.f32 %v5616_v43, %v5503_v39 }
 0xe4f   : > { %v5646_v60 = vadd.f32 %v9977_v61, %v5617_v34 }
 0xe51   : > { %5663 = vst.msk [vmem:[%s9984_s30 + $0x58] sm:$0xff] %vm5651_vm2, %v5646_v60 }
 0xe54   : > { %v5506_v20 = vpop.f32.mrf.mxu3  ;;  %v5619_v49 = vpop.f32.mrf.mxu2 }
 0xe55   : > { %v5620_v18 = vadd.f32 %v5619_v49, %v5506_v20 }
 0xe57   : > { %v5647_v26 = vadd.f32 %v9977_v61, %v5620_v18 }
 0xe59   : > { %5664 = vst.msk [vmem:[%s9984_s30 + $0x60] sm:$0xff] %vm5651_vm2, %v5647_v26 }
 0xe5c   : > { %v5509_v57 = vpop.f32.mrf.mxu3  ;;  %v5622_v17 = vpop.f32.mrf.mxu2 }
 0xe5d   : > { %v5623_v36 = vadd.f32 %v5622_v17, %v5509_v57 }
 0xe5f   : > { %v5648_v32 = vadd.f32 %v9977_v61, %v5623_v36 }
 0xe61   : > { %5665 = vst.msk [vmem:[%s9984_s30 + $0x68] sm:$0xff] %vm5651_vm2, %v5648_v32 }
 0xe64   : > { %v5512_v45 = vpop.f32.mrf.mxu3  ;;  %v5625_v4 = vpop.f32.mrf.mxu2 }
 0xe65   : > { %v5626_v28 = vadd.f32 %v5625_v4, %v5512_v45 }
 0xe67   : > { %v5649_v13 = vadd.f32 %v9977_v61, %v5626_v28 }
 0xe69   : > { %5666 = vst.msk [vmem:[%s9984_s30 + $0x70] sm:$0xff] %vm5651_vm2, %v5649_v13 }
 0xe6c   : > { %v5515_v62 = vpop.f32.mrf.mxu3  ;;  %v5628_v9 = vpop.f32.mrf.mxu2 }
 0xe6d   : > { %v5629_v40 = vadd.f32 %v5628_v9, %v5515_v62 }
 0xe6f   : > { %v5650_v5 = vadd.f32 %v9977_v61, %v5629_v40 }
 0xe71   : > { %5667 = vst.msk [vmem:[%s9984_s30 + $0x78] sm:$0xff] %vm5651_vm2, %v5650_v5 }
 0xe72 PF: > { %s22_s21 = sadd.s32 1, %s6313_s21  }
 0xe73   : > { %p19_p4 = scmp.ge.s32.totalorder %s22_s21, 4  }
 0xe75   :  { %21 = sbr.rel (!%p19_p4) target bundleno = 1 (0x1), region = 104 }

</bundles_post_ra>
